<compile_context>
chip_gen: v7x
topology: tpu7x:2x2x1
jax: 0.10.0
libtpu: 0.0.40
codegen_flags: <defaults>
</compile_context>

<pallas_src>
import jax
import jax.numpy as jnp
from jax.experimental import pallas as pl
from jax.experimental.pallas import tpu as pltpu


# ----------------------------------------------------------------------------
# In-kernel helpers
# ----------------------------------------------------------------------------
def _maxpool2x2(y):
    """2x2/stride-2 max pool on NHWC (first reshape splits a major dim: free)."""
    n, h, w, c = y.shape
    y = jnp.max(y.reshape(n, h // 2, 2, w, c), axis=2)
    y = jnp.max(y.reshape(n, h // 2, w // 2, 2, c), axis=3)
    return y


# ----------------------------------------------------------------------------
# Fused kernel: whole CompactStudentNet forward for one batch tile
# ----------------------------------------------------------------------------
def fused_student_kernel(x_ref, w1_ref, s1_ref, c1_ref,
                         w2_ref, s2_ref, c2_ref,
                         dw_ref, dwb_ref, pw_ref, s3_ref, c3_ref,
                         wh_ref, bh_ref,
                         o_ref,
                         p1_ref, p2_ref, p3_ref):
    bt = x_ref.shape[0]
    f32 = jnp.float32

    # ---- Zero ONLY the border strips of the padded scratch buffers ----------
    p1_ref[:, 0, :] = jnp.zeros((bt, 18), f32)
    p1_ref[:, 17, :] = jnp.zeros((bt, 18), f32)
    p1_ref[:, :, 0:1] = jnp.zeros((bt, 18, 1), f32)
    p1_ref[:, :, 17:18] = jnp.zeros((bt, 18, 1), f32)

    p2_ref[:, 0, :, :] = jnp.zeros((bt, 10, 16), f32)
    p2_ref[:, 9, :, :] = jnp.zeros((bt, 10, 16), f32)
    p2_ref[:, :, 0:1, :] = jnp.zeros((bt, 10, 1, 16), f32)
    p2_ref[:, :, 9:10, :] = jnp.zeros((bt, 10, 1, 16), f32)

    p3_ref[:, 0, :, :] = jnp.zeros((bt, 6, 32), f32)
    p3_ref[:, 5, :, :] = jnp.zeros((bt, 6, 32), f32)
    p3_ref[:, :, 0:1, :] = jnp.zeros((bt, 6, 1, 32), f32)
    p3_ref[:, :, 5:6, :] = jnp.zeros((bt, 6, 1, 32), f32)

    # ---- Block 1: Conv2d(1->16, 3x3, p=1) + BN + ReLU + MaxPool --------------
    # Streamed over pooled output rows; each pooled row goes straight into
    # block-2's padded scratch, so the live set stays a few vregs.
    p1_ref[:, 1:17, 1:17] = x_ref[...]
    for r in range(8):                                   # pooled row index
        acc = jnp.zeros((bt, 2, 16, 16), f32)            # (b, row-pair, x, co)
        for kw in range(3):
            # one W-window slice (+ one small relayout) per kw, shared over kh
            cols = p1_ref[:, 2 * r:2 * r + 4, kw:kw + 16][..., None]  # (bt,4,16,1)
            for kh in range(3):
                acc = acc + cols[:, kh:kh + 2] * w1_ref[kh:kh + 1, kw:kw + 1, :]
        y = jnp.maximum(acc * s1_ref[...] + c1_ref[...], 0.0)
        y = jnp.max(y, axis=1)                           # pool the two rows
        y = jnp.max(y.reshape(bt, 8, 2, 16), axis=2)     # pool adjacent columns
        p2_ref[:, 1 + r, 1:9, :] = y                     # (bt, 8, 16)

    # ---- Block 2: Conv2d(16->32, 3x3, p=1) + BN + ReLU + MaxPool (MXU) -------
    acc2 = jnp.zeros((bt * 64, 32), f32)
    for kw in range(3):
        xw = p2_ref[:, :, kw:kw + 8, :]                  # (bt,10,8,16)
        for kh in range(3):
            tap = xw[:, kh:kh + 8].reshape(bt * 64, 16)  # major-dim slice: free
            acc2 = acc2 + jnp.dot(tap, w2_ref[kh, kw],
                                  preferred_element_type=f32)
    z2 = jnp.maximum(acc2 * s2_ref[...] + c2_ref[...], 0.0)
    y2 = _maxpool2x2(z2.reshape(bt, 8, 8, 32))           # (bt,4,4,32)
    p3_ref[:, 1:5, 1:5, :] = y2

    # ---- Block 3: depthwise 3x3 (VPU) + pointwise 1x1 (MXU) + BN + ReLU + pool
    acc3 = jnp.zeros((bt, 4, 4, 32), f32)
    for kw in range(3):
        xw = p3_ref[:, :, kw:kw + 4, :]                  # (bt,6,4,32)
        for kh in range(3):
            acc3 = acc3 + xw[:, kh:kh + 4] * dw_ref[kh:kh + 1, kw:kw + 1, :]
    acc3 = acc3 + dwb_ref[...]
    z3 = jnp.dot(acc3.reshape(bt * 16, 32), pw_ref[...],
                 preferred_element_type=f32)             # (bt*16, 64)
    z3 = jnp.maximum(z3 * s3_ref[...] + c3_ref[...], 0.0)
    y3 = _maxpool2x2(z3.reshape(bt, 4, 4, 64))           # (bt,2,2,64)

    # ---- Head: AdaptiveAvgPool((2,2)) is identity on a 2x2 map; flatten+Linear
    # fused into a single (bt,256) x (256,128) matmul (nc padded to 128 lanes).
    feats = jnp.concatenate(
        [y3[:, 0, 0, :], y3[:, 0, 1, :], y3[:, 1, 0, :], y3[:, 1, 1, :]],
        axis=-1)                                         # (bt, 256)
    o_ref[...] = jnp.dot(feats, wh_ref[...],
                         preferred_element_type=f32) + bh_ref[...]


# ----------------------------------------------------------------------------
# Wrapper: one pallas_call for the whole network
# ----------------------------------------------------------------------------
def compact_student_net(x_nchw, params, *, batch_tile=None):
    x = x_nchw.astype(jnp.float32)
    n, cin, h, w = x.shape
    assert cin == 1, "CompactStudentNet expects 1 input channel"
    assert h == 16 and w == 16, "kernel assumes a 2x2 map after the 3 pools"
    # TODO(synk): general AdaptiveAvgPool2d((2,2)) for input sizes other than 16x16.
    x = x[:, 0, :, :]                         # (n,16,16): drop the size-1 channel

    nc = params["lin_w"].shape[0]
    assert nc <= 128
    # TODO(synk): tile the classifier if num_classes > 128.

    # Head weight: torch flattens (C,H,W); the kernel flattens (H,W,C).
    # Reorder + pad the class dim to 128 so the kernel output is lane-dense.
    lin_w = params["lin_w"]                                        # (nc, 256)
    wh = jnp.transpose(lin_w.reshape(nc, 64, 2, 2), (2, 3, 1, 0)).reshape(256, nc)
    wh = jnp.pad(wh, ((0, 0), (0, 128 - nc)))                      # (256, 128)
    bh = jnp.pad(params["lin_b"], (0, 128 - nc)).reshape(1, 128)   # (1, 128)

    # Batch tile: whole batch for small N; otherwise multiples of 8 (so the
    # (8,128) out-block rule holds) with >=2 grid steps so v7x's second
    # TensorCore gets work; capped at 16 to keep the per-step live set small.
    if batch_tile is not None:
        bt = batch_tile
    elif n > 8 and n % 8 == 0:
        bt = 16 if (n % 16 == 0 and n // 16 >= 2) else 8
    else:
        bt = n
    assert n % bt == 0
    grid = (n // bt,)

    flops = n * (2 * 9 * 16 * 16 * 16           # block 1 conv
                 + 2 * 9 * 8 * 8 * 16 * 32      # block 2 conv
                 + 2 * 9 * 4 * 4 * 32           # depthwise
                 + 2 * 4 * 4 * 32 * 64          # pointwise
                 + 2 * 4 * 64 * nc)             # head
    operands = (x, params["w1"], params["s1"], params["c1"],
                params["w2"], params["s2"], params["c2"],
                params["dw"], params["dwb"], params["pw"],
                params["s3"], params["c3"], wh, bh)
    # Constant index maps -> parameter blocks are DMA'd once, not per grid step.
    param_bytes = sum(int(v.size) * 4 for v in operands[1:])
    bytes_accessed = int(x.size) * 4 + n * 128 * 4 + param_bytes

    const2 = lambda i: (0, 0)
    const3 = lambda i: (0, 0, 0)
    const4 = lambda i: (0, 0, 0, 0)

    out = pl.pallas_call(
        fused_student_kernel,
        grid=grid,
        in_specs=[
            pl.BlockSpec((bt, 16, 16), lambda i: (i, 0, 0)),   # x
            pl.BlockSpec((3, 3, 16), const3),      # w1
            pl.BlockSpec((1, 16), const2),         # s1
            pl.BlockSpec((1, 16), const2),         # c1
            pl.BlockSpec((3, 3, 16, 32), const4),  # w2
            pl.BlockSpec((1, 32), const2),         # s2
            pl.BlockSpec((1, 32), const2),         # c2
            pl.BlockSpec((3, 3, 32), const3),      # dw
            pl.BlockSpec((1, 32), const2),         # dwb
            pl.BlockSpec((32, 64), const2),        # pw
            pl.BlockSpec((1, 64), const2),         # s3
            pl.BlockSpec((1, 64), const2),         # c3
            pl.BlockSpec((256, 128), const2),      # w_head (padded)
            pl.BlockSpec((1, 128), const2),        # lin_b  (padded)
        ],
        out_specs=pl.BlockSpec((bt, 128), lambda i: (i, 0)),
        out_shape=jax.ShapeDtypeStruct((n, 128), jnp.float32),
        scratch_shapes=[
            pltpu.VMEM((bt, 18, 18), jnp.float32),      # padded block-1 input
            pltpu.VMEM((bt, 10, 10, 16), jnp.float32),  # padded block-2 input
            pltpu.VMEM((bt, 6, 6, 32), jnp.float32),    # padded block-3 input
        ],
        compiler_params=pltpu.CompilerParams(
            dimension_semantics=("parallel",),
            vmem_limit_bytes=32 * 1024 * 1024,
        ),
        cost_estimate=pl.CostEstimate(flops=flops, transcendentals=0,
                                      bytes_accessed=bytes_accessed),
    )(*operands)
    return out[:, :nc]


# ----------------------------------------------------------------------------
# Parameters (deterministic synthetic init; eval-mode BN folded to scale/bias)
# ----------------------------------------------------------------------------
def _fold_bn(it, c, conv_bias, eps=1e-5):
    gamma = 1.0 + 0.1 * jax.random.normal(next(it), (c,), jnp.float32)
    beta = 0.1 * jax.random.normal(next(it), (c,), jnp.float32)
    mean = 0.1 * jax.random.normal(next(it), (c,), jnp.float32)
    var = 0.5 + jax.random.uniform(next(it), (c,), dtype=jnp.float32)
    scale = gamma / jnp.sqrt(var + eps)
    bias = beta + (conv_bias - mean) * scale
    return scale.reshape(1, c), bias.reshape(1, c)


def init_params(key, num_classes=10):
    it = iter(jax.random.split(key, 24))

    def nrm(shape, s=0.1):
        return s * jax.random.normal(next(it), shape, jnp.float32)

    p = {}
    # block 1: Conv2d(1,16,3,p=1) + BN(16)
    p["w1"] = nrm((3, 3, 16))
    p["s1"], p["c1"] = _fold_bn(it, 16, nrm((16,)))
    # block 2: Conv2d(16,32,3,p=1) + BN(32)
    p["w2"] = nrm((3, 3, 16, 32))
    p["s2"], p["c2"] = _fold_bn(it, 32, nrm((32,)))
    # block 3: depthwise Conv2d(32,32,3,p=1,groups=32) + Conv2d(32,64,1) + BN(64)
    p["dw"] = nrm((3, 3, 32))
    p["dwb"] = nrm((32,)).reshape(1, 32)
    p["pw"] = nrm((32, 64))
    p["s3"], p["c3"] = _fold_bn(it, 64, nrm((64,)))
    # classifier: Linear(64*2*2, num_classes), torch (C,H,W) flatten order
    p["lin_w"] = nrm((num_classes, 64 * 2 * 2))
    p["lin_b"] = nrm((num_classes,))
    return p


# ----------------------------------------------------------------------------
# Pure-jnp reference (no Pallas) for a numerical self-check
# ----------------------------------------------------------------------------
def _reference_forward(x_nchw, p):
    x = jnp.transpose(x_nchw.astype(jnp.float32), (0, 2, 3, 1))   # NHWC, C=1
    n = x.shape[0]

    def pad(v):
        return jnp.pad(v, ((0, 0), (1, 1), (1, 1), (0, 0)))

    def pool(v):
        b, h, w, c = v.shape
        v = jnp.max(v.reshape(b, h // 2, 2, w, c), axis=2)
        return jnp.max(v.reshape(b, h // 2, w // 2, 2, c), axis=3)

    # block 1
    xp = pad(x)
    acc = jnp.zeros((n, 16, 16, 16), jnp.float32)
    for kh in range(3):
        for kw in range(3):
            acc = acc + xp[:, kh:kh + 16, kw:kw + 16, :] * p["w1"][kh, kw]
    y = pool(jnp.maximum(acc * p["s1"] + p["c1"], 0.0))
    # block 2
    xp = pad(y)
    acc = jnp.zeros((n, 8, 8, 32), jnp.float32)
    for kh in range(3):
        for kw in range(3):
            acc = acc + jnp.einsum("nhwc,cd->nhwd",
                                   xp[:, kh:kh + 8, kw:kw + 8, :], p["w2"][kh, kw])
    y = pool(jnp.maximum(acc * p["s2"] + p["c2"], 0.0))
    # block 3
    xp = pad(y)
    acc = jnp.zeros((n, 4, 4, 32), jnp.float32)
    for kh in range(3):
        for kw in range(3):
            acc = acc + xp[:, kh:kh + 4, kw:kw + 4, :] * p["dw"][kh, kw]
    acc = acc + p["dwb"]
    z = jnp.einsum("nhwc,cd->nhwd", acc, p["pw"])
    y = pool(jnp.maximum(z * p["s3"] + p["c3"], 0.0))              # (n,2,2,64)
    feat = jnp.transpose(y, (0, 3, 1, 2)).reshape(n, 256)          # torch flatten
    return feat @ p["lin_w"].T + p["lin_b"]


if __name__ == "__main__":
    root = jax.random.PRNGKey(0)
    kx, kp = jax.random.split(root)
    params = init_params(kp, num_classes=10)
    x = jax.random.normal(kx, (2, 1, 16, 16), jnp.float32)

    logits = jax.jit(compact_student_net)(x, params)
    jax.block_until_ready(logits)
    assert logits.shape == (2, 10) and logits.dtype == jnp.float32

    ref = jax.jit(_reference_forward)(x, params)
    jax.block_until_ready(ref)
    err = float(jnp.max(jnp.abs(logits - ref)))
    assert jnp.allclose(logits, ref, atol=1e-4, rtol=1e-4), f"max abs err {err}"

    print("KERNEL_OK")
</pallas_src>

<mosaic_0001>
module attributes {stable_mosaic.version = 11 : i64} {
  func.func @fused_student_kernel(%arg0: i32, %arg1: memref<2x16x16xf32, #tpu.memory_space<vmem>>, %arg2: memref<3x3x16xf32, #tpu.memory_space<vmem>>, %arg3: memref<1x16xf32, #tpu.memory_space<vmem>>, %arg4: memref<1x16xf32, #tpu.memory_space<vmem>>, %arg5: memref<3x3x16x32xf32, #tpu.memory_space<vmem>>, %arg6: memref<1x32xf32, #tpu.memory_space<vmem>>, %arg7: memref<1x32xf32, #tpu.memory_space<vmem>>, %arg8: memref<3x3x32xf32, #tpu.memory_space<vmem>>, %arg9: memref<1x32xf32, #tpu.memory_space<vmem>>, %arg10: memref<32x64xf32, #tpu.memory_space<vmem>>, %arg11: memref<1x64xf32, #tpu.memory_space<vmem>>, %arg12: memref<1x64xf32, #tpu.memory_space<vmem>>, %arg13: memref<256x128xf32, #tpu.memory_space<vmem>>, %arg14: memref<1x128xf32, #tpu.memory_space<vmem>>, %arg15: memref<2x128xf32, #tpu.memory_space<vmem>>, %arg16: memref<2x18x18xf32, #tpu.memory_space<vmem>>, %arg17: memref<2x10x10x16xf32, #tpu.memory_space<vmem>>, %arg18: memref<2x6x6x32xf32, #tpu.memory_space<vmem>>) attributes {dimension_semantics = [#tpu.dimension_semantics<parallel>], iteration_bounds = array<i64: 1>, scalar_prefetch = 0 : i64, scratch_operands = 3 : i64, tpu.core_type = #tpu.core_type<tc>, window_params = [{transform_indices = @transform_0, window_bounds = array<i64: 2, 16, 16>}, {pipeline_mode = #tpu.pipeline_mode<synchronous>, transform_indices = @transform_1, window_bounds = array<i64: 3, 3, 16>}, {pipeline_mode = #tpu.pipeline_mode<synchronous>, transform_indices = @transform_2, window_bounds = array<i64: 1, 16>}, {pipeline_mode = #tpu.pipeline_mode<synchronous>, transform_indices = @transform_3, window_bounds = array<i64: 1, 16>}, {pipeline_mode = #tpu.pipeline_mode<synchronous>, transform_indices = @transform_4, window_bounds = array<i64: 3, 3, 16, 32>}, {pipeline_mode = #tpu.pipeline_mode<synchronous>, transform_indices = @transform_5, window_bounds = array<i64: 1, 32>}, {pipeline_mode = #tpu.pipeline_mode<synchronous>, transform_indices = @transform_6, window_bounds = array<i64: 1, 32>}, {pipeline_mode = #tpu.pipeline_mode<synchronous>, transform_indices = @transform_7, window_bounds = array<i64: 3, 3, 32>}, {pipeline_mode = #tpu.pipeline_mode<synchronous>, transform_indices = @transform_8, window_bounds = array<i64: 1, 32>}, {pipeline_mode = #tpu.pipeline_mode<synchronous>, transform_indices = @transform_9, window_bounds = array<i64: 32, 64>}, {pipeline_mode = #tpu.pipeline_mode<synchronous>, transform_indices = @transform_10, window_bounds = array<i64: 1, 64>}, {pipeline_mode = #tpu.pipeline_mode<synchronous>, transform_indices = @transform_11, window_bounds = array<i64: 1, 64>}, {pipeline_mode = #tpu.pipeline_mode<synchronous>, transform_indices = @transform_12, window_bounds = array<i64: 256, 128>}, {pipeline_mode = #tpu.pipeline_mode<synchronous>, transform_indices = @transform_13, window_bounds = array<i64: 1, 128>}, {transform_indices = @transform_14, window_bounds = array<i64: 2, 128>}]} {
    %cst = arith.constant 0.000000e+00 : f32
    %0 = vector.broadcast %cst : f32 to vector<2x18xf32>
    %c0 = arith.constant 0 : index
    %c0_0 = arith.constant 0 : index
    %c0_1 = arith.constant 0 : index
    %1 = vector.load %arg16[%c0, %c0_0, %c0_1] : memref<2x18x18xf32, #tpu.memory_space<vmem>>, vector<2x1x18xf32>
    %2 = vector.shape_cast %1 : vector<2x1x18xf32> to vector<2x18xf32>
    %3 = vector.shape_cast %0 : vector<2x18xf32> to vector<2x1x18xf32>
    tpu.vector_store %arg16[%c0, %c0_0, %c0_1], %3 {strides = array<i32>} : memref<2x18x18xf32, #tpu.memory_space<vmem>>, vector<2x1x18xf32>,
    %cst_2 = arith.constant 0.000000e+00 : f32
    %4 = vector.broadcast %cst_2 : f32 to vector<2x18xf32>
    %c0_3 = arith.constant 0 : index
    %c17 = arith.constant 17 : index
    %c0_4 = arith.constant 0 : index
    %5 = vector.load %arg16[%c0_3, %c17, %c0_4] : memref<2x18x18xf32, #tpu.memory_space<vmem>>, vector<2x1x18xf32>
    %6 = vector.shape_cast %5 : vector<2x1x18xf32> to vector<2x18xf32>
    %7 = vector.shape_cast %4 : vector<2x18xf32> to vector<2x1x18xf32>
    tpu.vector_store %arg16[%c0_3, %c17, %c0_4], %7 {strides = array<i32>} : memref<2x18x18xf32, #tpu.memory_space<vmem>>, vector<2x1x18xf32>,
    %cst_5 = arith.constant 0.000000e+00 : f32
    %8 = vector.broadcast %cst_5 : f32 to vector<2x18x1xf32>
    %c0_6 = arith.constant 0 : index
    %c0_7 = arith.constant 0 : index
    %c0_8 = arith.constant 0 : index
    %9 = vector.load %arg16[%c0_6, %c0_7, %c0_8] : memref<2x18x18xf32, #tpu.memory_space<vmem>>, vector<2x18x1xf32>
    tpu.vector_store %arg16[%c0_6, %c0_7, %c0_8], %8 {strides = array<i32>} : memref<2x18x18xf32, #tpu.memory_space<vmem>>, vector<2x18x1xf32>,
    %cst_9 = arith.constant 0.000000e+00 : f32
    %10 = vector.broadcast %cst_9 : f32 to vector<2x18x1xf32>
    %c0_10 = arith.constant 0 : index
    %c0_11 = arith.constant 0 : index
    %c17_12 = arith.constant 17 : index
    %11 = vector.load %arg16[%c0_10, %c0_11, %c17_12] : memref<2x18x18xf32, #tpu.memory_space<vmem>>, vector<2x18x1xf32>
    tpu.vector_store %arg16[%c0_10, %c0_11, %c17_12], %10 {strides = array<i32>} : memref<2x18x18xf32, #tpu.memory_space<vmem>>, vector<2x18x1xf32>,
    %cst_13 = arith.constant 0.000000e+00 : f32
    %12 = vector.broadcast %cst_13 : f32 to vector<2x10x16xf32>
    %c0_14 = arith.constant 0 : index
    %c0_15 = arith.constant 0 : index
    %c0_16 = arith.constant 0 : index
    %c0_17 = arith.constant 0 : index
    %13 = vector.load %arg17[%c0_14, %c0_15, %c0_16, %c0_17] : memref<2x10x10x16xf32, #tpu.memory_space<vmem>>, vector<2x1x10x16xf32>
    %14 = vector.shape_cast %13 : vector<2x1x10x16xf32> to vector<2x10x16xf32>
    %15 = vector.shape_cast %12 : vector<2x10x16xf32> to vector<2x1x10x16xf32>
    tpu.vector_store %arg17[%c0_14, %c0_15, %c0_16, %c0_17], %15 {strides = array<i32>} : memref<2x10x10x16xf32, #tpu.memory_space<vmem>>, vector<2x1x10x16xf32>,
    %cst_18 = arith.constant 0.000000e+00 : f32
    %16 = vector.broadcast %cst_18 : f32 to vector<2x10x16xf32>
    %c0_19 = arith.constant 0 : index
    %c9 = arith.constant 9 : index
    %c0_20 = arith.constant 0 : index
    %c0_21 = arith.constant 0 : index
    %17 = vector.load %arg17[%c0_19, %c9, %c0_20, %c0_21] : memref<2x10x10x16xf32, #tpu.memory_space<vmem>>, vector<2x1x10x16xf32>
    %18 = vector.shape_cast %17 : vector<2x1x10x16xf32> to vector<2x10x16xf32>
    %19 = vector.shape_cast %16 : vector<2x10x16xf32> to vector<2x1x10x16xf32>
    tpu.vector_store %arg17[%c0_19, %c9, %c0_20, %c0_21], %19 {strides = array<i32>} : memref<2x10x10x16xf32, #tpu.memory_space<vmem>>, vector<2x1x10x16xf32>,
    %cst_22 = arith.constant 0.000000e+00 : f32
    %20 = vector.broadcast %cst_22 : f32 to vector<2x10x1x16xf32>
    %c0_23 = arith.constant 0 : index
    %c0_24 = arith.constant 0 : index
    %c0_25 = arith.constant 0 : index
    %c0_26 = arith.constant 0 : index
    %21 = vector.load %arg17[%c0_23, %c0_24, %c0_25, %c0_26] : memref<2x10x10x16xf32, #tpu.memory_space<vmem>>, vector<2x10x1x16xf32>
    tpu.vector_store %arg17[%c0_23, %c0_24, %c0_25, %c0_26], %20 {strides = array<i32>} : memref<2x10x10x16xf32, #tpu.memory_space<vmem>>, vector<2x10x1x16xf32>,
    %cst_27 = arith.constant 0.000000e+00 : f32
    %22 = vector.broadcast %cst_27 : f32 to vector<2x10x1x16xf32>
    %c0_28 = arith.constant 0 : index
    %c0_29 = arith.constant 0 : index
    %c9_30 = arith.constant 9 : index
    %c0_31 = arith.constant 0 : index
    %23 = vector.load %arg17[%c0_28, %c0_29, %c9_30, %c0_31] : memref<2x10x10x16xf32, #tpu.memory_space<vmem>>, vector<2x10x1x16xf32>
    tpu.vector_store %arg17[%c0_28, %c0_29, %c9_30, %c0_31], %22 {strides = array<i32>} : memref<2x10x10x16xf32, #tpu.memory_space<vmem>>, vector<2x10x1x16xf32>,
    %cst_32 = arith.constant 0.000000e+00 : f32
    %24 = vector.broadcast %cst_32 : f32 to vector<2x6x32xf32>
    %c0_33 = arith.constant 0 : index
    %c0_34 = arith.constant 0 : index
    %c0_35 = arith.constant 0 : index
    %c0_36 = arith.constant 0 : index
    %25 = vector.load %arg18[%c0_33, %c0_34, %c0_35, %c0_36] : memref<2x6x6x32xf32, #tpu.memory_space<vmem>>, vector<2x1x6x32xf32>
    %26 = vector.shape_cast %25 : vector<2x1x6x32xf32> to vector<2x6x32xf32>
    %27 = vector.shape_cast %24 : vector<2x6x32xf32> to vector<2x1x6x32xf32>
    tpu.vector_store %arg18[%c0_33, %c0_34, %c0_35, %c0_36], %27 {strides = array<i32>} : memref<2x6x6x32xf32, #tpu.memory_space<vmem>>, vector<2x1x6x32xf32>,
    %cst_37 = arith.constant 0.000000e+00 : f32
    %28 = vector.broadcast %cst_37 : f32 to vector<2x6x32xf32>
    %c0_38 = arith.constant 0 : index
    %c5 = arith.constant 5 : index
    %c0_39 = arith.constant 0 : index
    %c0_40 = arith.constant 0 : index
    %29 = vector.load %arg18[%c0_38, %c5, %c0_39, %c0_40] : memref<2x6x6x32xf32, #tpu.memory_space<vmem>>, vector<2x1x6x32xf32>
    %30 = vector.shape_cast %29 : vector<2x1x6x32xf32> to vector<2x6x32xf32>
    %31 = vector.shape_cast %28 : vector<2x6x32xf32> to vector<2x1x6x32xf32>
    tpu.vector_store %arg18[%c0_38, %c5, %c0_39, %c0_40], %31 {strides = array<i32>} : memref<2x6x6x32xf32, #tpu.memory_space<vmem>>, vector<2x1x6x32xf32>,
    %cst_41 = arith.constant 0.000000e+00 : f32
    %32 = vector.broadcast %cst_41 : f32 to vector<2x6x1x32xf32>
    %c0_42 = arith.constant 0 : index
    %c0_43 = arith.constant 0 : index
    %c0_44 = arith.constant 0 : index
    %c0_45 = arith.constant 0 : index
    %33 = vector.load %arg18[%c0_42, %c0_43, %c0_44, %c0_45] : memref<2x6x6x32xf32, #tpu.memory_space<vmem>>, vector<2x6x1x32xf32>
    tpu.vector_store %arg18[%c0_42, %c0_43, %c0_44, %c0_45], %32 {strides = array<i32>} : memref<2x6x6x32xf32, #tpu.memory_space<vmem>>, vector<2x6x1x32xf32>,
    %cst_46 = arith.constant 0.000000e+00 : f32
    %34 = vector.broadcast %cst_46 : f32 to vector<2x6x1x32xf32>
    %c0_47 = arith.constant 0 : index
    %c0_48 = arith.constant 0 : index
    %c5_49 = arith.constant 5 : index
    %c0_50 = arith.constant 0 : index
    %35 = vector.load %arg18[%c0_47, %c0_48, %c5_49, %c0_50] : memref<2x6x6x32xf32, #tpu.memory_space<vmem>>, vector<2x6x1x32xf32>
    tpu.vector_store %arg18[%c0_47, %c0_48, %c5_49, %c0_50], %34 {strides = array<i32>} : memref<2x6x6x32xf32, #tpu.memory_space<vmem>>, vector<2x6x1x32xf32>,
    %c0_51 = arith.constant 0 : index
    %c0_52 = arith.constant 0 : index
    %c0_53 = arith.constant 0 : index
    %36 = vector.load %arg1[%c0_51, %c0_52, %c0_53] : memref<2x16x16xf32, #tpu.memory_space<vmem>>, vector<2x16x16xf32>
    %c0_54 = arith.constant 0 : index
    %c1 = arith.constant 1 : index
    %c1_55 = arith.constant 1 : index
    %37 = vector.load %arg16[%c0_54, %c1, %c1_55] : memref<2x18x18xf32, #tpu.memory_space<vmem>>, vector<2x16x16xf32>
    tpu.vector_store %arg16[%c0_54, %c1, %c1_55], %36 {strides = array<i32>} : memref<2x18x18xf32, #tpu.memory_space<vmem>>, vector<2x16x16xf32>,
    %cst_56 = arith.constant 0.000000e+00 : f32
    %38 = vector.broadcast %cst_56 : f32 to vector<2x2x16x16xf32>
    %c0_57 = arith.constant 0 : index
    %c0_58 = arith.constant 0 : index
    %c0_59 = arith.constant 0 : index
    %39 = vector.load %arg16[%c0_57, %c0_58, %c0_59] : memref<2x18x18xf32, #tpu.memory_space<vmem>>, vector<2x4x16xf32>
    %40 = vector.shape_cast %39 : vector<2x4x16xf32> to vector<2x4x16x1xf32>
    %41 = vector.extract_strided_slice %40 {offsets = [0, 0, 0, 0], sizes = [2, 2, 16, 1], strides = [1, 1, 1, 1]} : vector<2x4x16x1xf32> to vector<2x2x16x1xf32>
    %c0_60 = arith.constant 0 : index
    %c0_61 = arith.constant 0 : index
    %c0_62 = arith.constant 0 : index
    %42 = vector.load %arg2[%c0_60, %c0_61, %c0_62] : memref<3x3x16xf32, #tpu.memory_space<vmem>>, vector<1x1x16xf32>
    %43 = vector.shape_cast %42 : vector<1x1x16xf32> to vector<1x1x1x16xf32>
    %44 = vector.broadcast %41 : vector<2x2x16x1xf32> to vector<2x2x16x16xf32>
    %45 = vector.broadcast %43 : vector<1x1x1x16xf32> to vector<2x2x16x16xf32>
    %46 = arith.mulf %44, %45 : vector<2x2x16x16xf32>
    %47 = arith.addf %38, %46 : vector<2x2x16x16xf32>
    %48 = vector.extract_strided_slice %40 {offsets = [0, 1, 0, 0], sizes = [2, 2, 16, 1], strides = [1, 1, 1, 1]} : vector<2x4x16x1xf32> to vector<2x2x16x1xf32>
    %c1_63 = arith.constant 1 : index
    %c0_64 = arith.constant 0 : index
    %c0_65 = arith.constant 0 : index
    %49 = vector.load %arg2[%c1_63, %c0_64, %c0_65] : memref<3x3x16xf32, #tpu.memory_space<vmem>>, vector<1x1x16xf32>
    %50 = vector.shape_cast %49 : vector<1x1x16xf32> to vector<1x1x1x16xf32>
    %51 = vector.broadcast %48 : vector<2x2x16x1xf32> to vector<2x2x16x16xf32>
    %52 = vector.broadcast %50 : vector<1x1x1x16xf32> to vector<2x2x16x16xf32>
    %53 = arith.mulf %51, %52 : vector<2x2x16x16xf32>
    %54 = arith.addf %47, %53 : vector<2x2x16x16xf32>
    %55 = vector.extract_strided_slice %40 {offsets = [0, 2, 0, 0], sizes = [2, 2, 16, 1], strides = [1, 1, 1, 1]} : vector<2x4x16x1xf32> to vector<2x2x16x1xf32>
    %c2 = arith.constant 2 : index
    %c0_66 = arith.constant 0 : index
    %c0_67 = arith.constant 0 : index
    %56 = vector.load %arg2[%c2, %c0_66, %c0_67] : memref<3x3x16xf32, #tpu.memory_space<vmem>>, vector<1x1x16xf32>
    %57 = vector.shape_cast %56 : vector<1x1x16xf32> to vector<1x1x1x16xf32>
    %58 = vector.broadcast %55 : vector<2x2x16x1xf32> to vector<2x2x16x16xf32>
    %59 = vector.broadcast %57 : vector<1x1x1x16xf32> to vector<2x2x16x16xf32>
    %60 = arith.mulf %58, %59 : vector<2x2x16x16xf32>
    %61 = arith.addf %54, %60 : vector<2x2x16x16xf32>
    %c0_68 = arith.constant 0 : index
    %c0_69 = arith.constant 0 : index
    %c1_70 = arith.constant 1 : index
    %62 = vector.load %arg16[%c0_68, %c0_69, %c1_70] : memref<2x18x18xf32, #tpu.memory_space<vmem>>, vector<2x4x16xf32>
    %63 = vector.shape_cast %62 : vector<2x4x16xf32> to vector<2x4x16x1xf32>
    %64 = vector.extract_strided_slice %63 {offsets = [0, 0, 0, 0], sizes = [2, 2, 16, 1], strides = [1, 1, 1, 1]} : vector<2x4x16x1xf32> to vector<2x2x16x1xf32>
    %c0_71 = arith.constant 0 : index
    %c1_72 = arith.constant 1 : index
    %c0_73 = arith.constant 0 : index
    %65 = vector.load %arg2[%c0_71, %c1_72, %c0_73] : memref<3x3x16xf32, #tpu.memory_space<vmem>>, vector<1x1x16xf32>
    %66 = vector.shape_cast %65 : vector<1x1x16xf32> to vector<1x1x1x16xf32>
    %67 = vector.broadcast %64 : vector<2x2x16x1xf32> to vector<2x2x16x16xf32>
    %68 = vector.broadcast %66 : vector<1x1x1x16xf32> to vector<2x2x16x16xf32>
    %69 = arith.mulf %67, %68 : vector<2x2x16x16xf32>
    %70 = arith.addf %61, %69 : vector<2x2x16x16xf32>
    %71 = vector.extract_strided_slice %63 {offsets = [0, 1, 0, 0], sizes = [2, 2, 16, 1], strides = [1, 1, 1, 1]} : vector<2x4x16x1xf32> to vector<2x2x16x1xf32>
    %c1_74 = arith.constant 1 : index
    %c1_75 = arith.constant 1 : index
    %c0_76 = arith.constant 0 : index
    %72 = vector.load %arg2[%c1_74, %c1_75, %c0_76] : memref<3x3x16xf32, #tpu.memory_space<vmem>>, vector<1x1x16xf32>
    %73 = vector.shape_cast %72 : vector<1x1x16xf32> to vector<1x1x1x16xf32>
    %74 = vector.broadcast %71 : vector<2x2x16x1xf32> to vector<2x2x16x16xf32>
    %75 = vector.broadcast %73 : vector<1x1x1x16xf32> to vector<2x2x16x16xf32>
    %76 = arith.mulf %74, %75 : vector<2x2x16x16xf32>
    %77 = arith.addf %70, %76 : vector<2x2x16x16xf32>
    %78 = vector.extract_strided_slice %63 {offsets = [0, 2, 0, 0], sizes = [2, 2, 16, 1], strides = [1, 1, 1, 1]} : vector<2x4x16x1xf32> to vector<2x2x16x1xf32>
    %c2_77 = arith.constant 2 : index
    %c1_78 = arith.constant 1 : index
    %c0_79 = arith.constant 0 : index
    %79 = vector.load %arg2[%c2_77, %c1_78, %c0_79] : memref<3x3x16xf32, #tpu.memory_space<vmem>>, vector<1x1x16xf32>
    %80 = vector.shape_cast %79 : vector<1x1x16xf32> to vector<1x1x1x16xf32>
    %81 = vector.broadcast %78 : vector<2x2x16x1xf32> to vector<2x2x16x16xf32>
    %82 = vector.broadcast %80 : vector<1x1x1x16xf32> to vector<2x2x16x16xf32>
    %83 = arith.mulf %81, %82 : vector<2x2x16x16xf32>
    %84 = arith.addf %77, %83 : vector<2x2x16x16xf32>
    %c0_80 = arith.constant 0 : index
    %c0_81 = arith.constant 0 : index
    %c2_82 = arith.constant 2 : index
    %85 = vector.load %arg16[%c0_80, %c0_81, %c2_82] : memref<2x18x18xf32, #tpu.memory_space<vmem>>, vector<2x4x16xf32>
    %86 = vector.shape_cast %85 : vector<2x4x16xf32> to vector<2x4x16x1xf32>
    %87 = vector.extract_strided_slice %86 {offsets = [0, 0, 0, 0], sizes = [2, 2, 16, 1], strides = [1, 1, 1, 1]} : vector<2x4x16x1xf32> to vector<2x2x16x1xf32>
    %c0_83 = arith.constant 0 : index
    %c2_84 = arith.constant 2 : index
    %c0_85 = arith.constant 0 : index
    %88 = vector.load %arg2[%c0_83, %c2_84, %c0_85] : memref<3x3x16xf32, #tpu.memory_space<vmem>>, vector<1x1x16xf32>
    %89 = vector.shape_cast %88 : vector<1x1x16xf32> to vector<1x1x1x16xf32>
    %90 = vector.broadcast %87 : vector<2x2x16x1xf32> to vector<2x2x16x16xf32>
    %91 = vector.broadcast %89 : vector<1x1x1x16xf32> to vector<2x2x16x16xf32>
    %92 = arith.mulf %90, %91 : vector<2x2x16x16xf32>
    %93 = arith.addf %84, %92 : vector<2x2x16x16xf32>
    %94 = vector.extract_strided_slice %86 {offsets = [0, 1, 0, 0], sizes = [2, 2, 16, 1], strides = [1, 1, 1, 1]} : vector<2x4x16x1xf32> to vector<2x2x16x1xf32>
    %c1_86 = arith.constant 1 : index
    %c2_87 = arith.constant 2 : index
    %c0_88 = arith.constant 0 : index
    %95 = vector.load %arg2[%c1_86, %c2_87, %c0_88] : memref<3x3x16xf32, #tpu.memory_space<vmem>>, vector<1x1x16xf32>
    %96 = vector.shape_cast %95 : vector<1x1x16xf32> to vector<1x1x1x16xf32>
    %97 = vector.broadcast %94 : vector<2x2x16x1xf32> to vector<2x2x16x16xf32>
    %98 = vector.broadcast %96 : vector<1x1x1x16xf32> to vector<2x2x16x16xf32>
    %99 = arith.mulf %97, %98 : vector<2x2x16x16xf32>
    %100 = arith.addf %93, %99 : vector<2x2x16x16xf32>
    %101 = vector.extract_strided_slice %86 {offsets = [0, 2, 0, 0], sizes = [2, 2, 16, 1], strides = [1, 1, 1, 1]} : vector<2x4x16x1xf32> to vector<2x2x16x1xf32>
    %c2_89 = arith.constant 2 : index
    %c2_90 = arith.constant 2 : index
    %c0_91 = arith.constant 0 : index
    %102 = vector.load %arg2[%c2_89, %c2_90, %c0_91] : memref<3x3x16xf32, #tpu.memory_space<vmem>>, vector<1x1x16xf32>
    %103 = vector.shape_cast %102 : vector<1x1x16xf32> to vector<1x1x1x16xf32>
    %104 = vector.broadcast %101 : vector<2x2x16x1xf32> to vector<2x2x16x16xf32>
    %105 = vector.broadcast %103 : vector<1x1x1x16xf32> to vector<2x2x16x16xf32>
    %106 = arith.mulf %104, %105 : vector<2x2x16x16xf32>
    %107 = arith.addf %100, %106 : vector<2x2x16x16xf32>
    %c0_92 = arith.constant 0 : index
    %c0_93 = arith.constant 0 : index
    %108 = vector.load %arg3[%c0_92, %c0_93] : memref<1x16xf32, #tpu.memory_space<vmem>>, vector<1x16xf32>
    %109 = vector.shape_cast %108 : vector<1x16xf32> to vector<1x1x1x16xf32>
    %110 = vector.broadcast %109 : vector<1x1x1x16xf32> to vector<2x2x16x16xf32>
    %111 = arith.mulf %107, %110 : vector<2x2x16x16xf32>
    %c0_94 = arith.constant 0 : index
    %c0_95 = arith.constant 0 : index
    %112 = vector.load %arg4[%c0_94, %c0_95] : memref<1x16xf32, #tpu.memory_space<vmem>>, vector<1x16xf32>
    %113 = vector.shape_cast %112 : vector<1x16xf32> to vector<1x1x1x16xf32>
    %114 = vector.broadcast %113 : vector<1x1x1x16xf32> to vector<2x2x16x16xf32>
    %115 = arith.addf %111, %114 : vector<2x2x16x16xf32>
    %cst_96 = arith.constant 0.000000e+00 : f32
    %116 = vector.broadcast %cst_96 : f32 to vector<2x2x16x16xf32>
    %117 = arith.maximumf %115, %116 : vector<2x2x16x16xf32>
    %cst_97 = arith.constant dense<0xFF800000> : vector<2x16x16xf32>
    %118 = vector.multi_reduction <maximumf>, %117, %cst_97 [1] : vector<2x2x16x16xf32> to vector<2x16x16xf32>
    %119 = vector.shape_cast %118 : vector<2x16x16xf32> to vector<2x8x2x16xf32>
    %cst_98 = arith.constant dense<0xFF800000> : vector<2x8x16xf32>
    %120 = vector.multi_reduction <maximumf>, %119, %cst_98 [2] : vector<2x8x2x16xf32> to vector<2x8x16xf32>
    %c0_99 = arith.constant 0 : index
    %c1_100 = arith.constant 1 : index
    %c1_101 = arith.constant 1 : index
    %c0_102 = arith.constant 0 : index
    %121 = vector.load %arg17[%c0_99, %c1_100, %c1_101, %c0_102] : memref<2x10x10x16xf32, #tpu.memory_space<vmem>>, vector<2x1x8x16xf32>
    %122 = vector.shape_cast %121 : vector<2x1x8x16xf32> to vector<2x8x16xf32>
    %123 = vector.shape_cast %120 : vector<2x8x16xf32> to vector<2x1x8x16xf32>
    tpu.vector_store %arg17[%c0_99, %c1_100, %c1_101, %c0_102], %123 {strides = array<i32>} : memref<2x10x10x16xf32, #tpu.memory_space<vmem>>, vector<2x1x8x16xf32>,
    %cst_103 = arith.constant 0.000000e+00 : f32
    %124 = vector.broadcast %cst_103 : f32 to vector<2x2x16x16xf32>
    %c0_104 = arith.constant 0 : index
    %c2_105 = arith.constant 2 : index
    %c0_106 = arith.constant 0 : index
    %125 = vector.load %arg16[%c0_104, %c2_105, %c0_106] : memref<2x18x18xf32, #tpu.memory_space<vmem>>, vector<2x4x16xf32>
    %126 = vector.shape_cast %125 : vector<2x4x16xf32> to vector<2x4x16x1xf32>
    %127 = vector.extract_strided_slice %126 {offsets = [0, 0, 0, 0], sizes = [2, 2, 16, 1], strides = [1, 1, 1, 1]} : vector<2x4x16x1xf32> to vector<2x2x16x1xf32>
    %c0_107 = arith.constant 0 : index
    %c0_108 = arith.constant 0 : index
    %c0_109 = arith.constant 0 : index
    %128 = vector.load %arg2[%c0_107, %c0_108, %c0_109] : memref<3x3x16xf32, #tpu.memory_space<vmem>>, vector<1x1x16xf32>
    %129 = vector.shape_cast %128 : vector<1x1x16xf32> to vector<1x1x1x16xf32>
    %130 = vector.broadcast %127 : vector<2x2x16x1xf32> to vector<2x2x16x16xf32>
    %131 = vector.broadcast %129 : vector<1x1x1x16xf32> to vector<2x2x16x16xf32>
    %132 = arith.mulf %130, %131 : vector<2x2x16x16xf32>
    %133 = arith.addf %124, %132 : vector<2x2x16x16xf32>
    %134 = vector.extract_strided_slice %126 {offsets = [0, 1, 0, 0], sizes = [2, 2, 16, 1], strides = [1, 1, 1, 1]} : vector<2x4x16x1xf32> to vector<2x2x16x1xf32>
    %c1_110 = arith.constant 1 : index
    %c0_111 = arith.constant 0 : index
    %c0_112 = arith.constant 0 : index
    %135 = vector.load %arg2[%c1_110, %c0_111, %c0_112] : memref<3x3x16xf32, #tpu.memory_space<vmem>>, vector<1x1x16xf32>
    %136 = vector.shape_cast %135 : vector<1x1x16xf32> to vector<1x1x1x16xf32>
    %137 = vector.broadcast %134 : vector<2x2x16x1xf32> to vector<2x2x16x16xf32>
    %138 = vector.broadcast %136 : vector<1x1x1x16xf32> to vector<2x2x16x16xf32>
    %139 = arith.mulf %137, %138 : vector<2x2x16x16xf32>
    %140 = arith.addf %133, %139 : vector<2x2x16x16xf32>
    %141 = vector.extract_strided_slice %126 {offsets = [0, 2, 0, 0], sizes = [2, 2, 16, 1], strides = [1, 1, 1, 1]} : vector<2x4x16x1xf32> to vector<2x2x16x1xf32>
    %c2_113 = arith.constant 2 : index
    %c0_114 = arith.constant 0 : index
    %c0_115 = arith.constant 0 : index
    %142 = vector.load %arg2[%c2_113, %c0_114, %c0_115] : memref<3x3x16xf32, #tpu.memory_space<vmem>>, vector<1x1x16xf32>
    %143 = vector.shape_cast %142 : vector<1x1x16xf32> to vector<1x1x1x16xf32>
    %144 = vector.broadcast %141 : vector<2x2x16x1xf32> to vector<2x2x16x16xf32>
    %145 = vector.broadcast %143 : vector<1x1x1x16xf32> to vector<2x2x16x16xf32>
    %146 = arith.mulf %144, %145 : vector<2x2x16x16xf32>
    %147 = arith.addf %140, %146 : vector<2x2x16x16xf32>
    %c0_116 = arith.constant 0 : index
    %c2_117 = arith.constant 2 : index
    %c1_118 = arith.constant 1 : index
    %148 = vector.load %arg16[%c0_116, %c2_117, %c1_118] : memref<2x18x18xf32, #tpu.memory_space<vmem>>, vector<2x4x16xf32>
    %149 = vector.shape_cast %148 : vector<2x4x16xf32> to vector<2x4x16x1xf32>
    %150 = vector.extract_strided_slice %149 {offsets = [0, 0, 0, 0], sizes = [2, 2, 16, 1], strides = [1, 1, 1, 1]} : vector<2x4x16x1xf32> to vector<2x2x16x1xf32>
    %c0_119 = arith.constant 0 : index
    %c1_120 = arith.constant 1 : index
    %c0_121 = arith.constant 0 : index
    %151 = vector.load %arg2[%c0_119, %c1_120, %c0_121] : memref<3x3x16xf32, #tpu.memory_space<vmem>>, vector<1x1x16xf32>
    %152 = vector.shape_cast %151 : vector<1x1x16xf32> to vector<1x1x1x16xf32>
    %153 = vector.broadcast %150 : vector<2x2x16x1xf32> to vector<2x2x16x16xf32>
    %154 = vector.broadcast %152 : vector<1x1x1x16xf32> to vector<2x2x16x16xf32>
    %155 = arith.mulf %153, %154 : vector<2x2x16x16xf32>
    %156 = arith.addf %147, %155 : vector<2x2x16x16xf32>
    %157 = vector.extract_strided_slice %149 {offsets = [0, 1, 0, 0], sizes = [2, 2, 16, 1], strides = [1, 1, 1, 1]} : vector<2x4x16x1xf32> to vector<2x2x16x1xf32>
    %c1_122 = arith.constant 1 : index
    %c1_123 = arith.constant 1 : index
    %c0_124 = arith.constant 0 : index
    %158 = vector.load %arg2[%c1_122, %c1_123, %c0_124] : memref<3x3x16xf32, #tpu.memory_space<vmem>>, vector<1x1x16xf32>
    %159 = vector.shape_cast %158 : vector<1x1x16xf32> to vector<1x1x1x16xf32>
    %160 = vector.broadcast %157 : vector<2x2x16x1xf32> to vector<2x2x16x16xf32>
    %161 = vector.broadcast %159 : vector<1x1x1x16xf32> to vector<2x2x16x16xf32>
    %162 = arith.mulf %160, %161 : vector<2x2x16x16xf32>
    %163 = arith.addf %156, %162 : vector<2x2x16x16xf32>
    %164 = vector.extract_strided_slice %149 {offsets = [0, 2, 0, 0], sizes = [2, 2, 16, 1], strides = [1, 1, 1, 1]} : vector<2x4x16x1xf32> to vector<2x2x16x1xf32>
    %c2_125 = arith.constant 2 : index
    %c1_126 = arith.constant 1 : index
    %c0_127 = arith.constant 0 : index
    %165 = vector.load %arg2[%c2_125, %c1_126, %c0_127] : memref<3x3x16xf32, #tpu.memory_space<vmem>>, vector<1x1x16xf32>
    %166 = vector.shape_cast %165 : vector<1x1x16xf32> to vector<1x1x1x16xf32>
    %167 = vector.broadcast %164 : vector<2x2x16x1xf32> to vector<2x2x16x16xf32>
    %168 = vector.broadcast %166 : vector<1x1x1x16xf32> to vector<2x2x16x16xf32>
    %169 = arith.mulf %167, %168 : vector<2x2x16x16xf32>
    %170 = arith.addf %163, %169 : vector<2x2x16x16xf32>
    %c0_128 = arith.constant 0 : index
    %c2_129 = arith.constant 2 : index
    %c2_130 = arith.constant 2 : index
    %171 = vector.load %arg16[%c0_128, %c2_129, %c2_130] : memref<2x18x18xf32, #tpu.memory_space<vmem>>, vector<2x4x16xf32>
    %172 = vector.shape_cast %171 : vector<2x4x16xf32> to vector<2x4x16x1xf32>
    %173 = vector.extract_strided_slice %172 {offsets = [0, 0, 0, 0], sizes = [2, 2, 16, 1], strides = [1, 1, 1, 1]} : vector<2x4x16x1xf32> to vector<2x2x16x1xf32>
    %c0_131 = arith.constant 0 : index
    %c2_132 = arith.constant 2 : index
    %c0_133 = arith.constant 0 : index
    %174 = vector.load %arg2[%c0_131, %c2_132, %c0_133] : memref<3x3x16xf32, #tpu.memory_space<vmem>>, vector<1x1x16xf32>
    %175 = vector.shape_cast %174 : vector<1x1x16xf32> to vector<1x1x1x16xf32>
    %176 = vector.broadcast %173 : vector<2x2x16x1xf32> to vector<2x2x16x16xf32>
    %177 = vector.broadcast %175 : vector<1x1x1x16xf32> to vector<2x2x16x16xf32>
    %178 = arith.mulf %176, %177 : vector<2x2x16x16xf32>
    %179 = arith.addf %170, %178 : vector<2x2x16x16xf32>
    %180 = vector.extract_strided_slice %172 {offsets = [0, 1, 0, 0], sizes = [2, 2, 16, 1], strides = [1, 1, 1, 1]} : vector<2x4x16x1xf32> to vector<2x2x16x1xf32>
    %c1_134 = arith.constant 1 : index
    %c2_135 = arith.constant 2 : index
    %c0_136 = arith.constant 0 : index
    %181 = vector.load %arg2[%c1_134, %c2_135, %c0_136] : memref<3x3x16xf32, #tpu.memory_space<vmem>>, vector<1x1x16xf32>
    %182 = vector.shape_cast %181 : vector<1x1x16xf32> to vector<1x1x1x16xf32>
    %183 = vector.broadcast %180 : vector<2x2x16x1xf32> to vector<2x2x16x16xf32>
    %184 = vector.broadcast %182 : vector<1x1x1x16xf32> to vector<2x2x16x16xf32>
    %185 = arith.mulf %183, %184 : vector<2x2x16x16xf32>
    %186 = arith.addf %179, %185 : vector<2x2x16x16xf32>
    %187 = vector.extract_strided_slice %172 {offsets = [0, 2, 0, 0], sizes = [2, 2, 16, 1], strides = [1, 1, 1, 1]} : vector<2x4x16x1xf32> to vector<2x2x16x1xf32>
    %c2_137 = arith.constant 2 : index
    %c2_138 = arith.constant 2 : index
    %c0_139 = arith.constant 0 : index
    %188 = vector.load %arg2[%c2_137, %c2_138, %c0_139] : memref<3x3x16xf32, #tpu.memory_space<vmem>>, vector<1x1x16xf32>
    %189 = vector.shape_cast %188 : vector<1x1x16xf32> to vector<1x1x1x16xf32>
    %190 = vector.broadcast %187 : vector<2x2x16x1xf32> to vector<2x2x16x16xf32>
    %191 = vector.broadcast %189 : vector<1x1x1x16xf32> to vector<2x2x16x16xf32>
    %192 = arith.mulf %190, %191 : vector<2x2x16x16xf32>
    %193 = arith.addf %186, %192 : vector<2x2x16x16xf32>
    %c0_140 = arith.constant 0 : index
    %c0_141 = arith.constant 0 : index
    %194 = vector.load %arg3[%c0_140, %c0_141] : memref<1x16xf32, #tpu.memory_space<vmem>>, vector<1x16xf32>
    %195 = vector.shape_cast %194 : vector<1x16xf32> to vector<1x1x1x16xf32>
    %196 = vector.broadcast %195 : vector<1x1x1x16xf32> to vector<2x2x16x16xf32>
    %197 = arith.mulf %193, %196 : vector<2x2x16x16xf32>
    %c0_142 = arith.constant 0 : index
    %c0_143 = arith.constant 0 : index
    %198 = vector.load %arg4[%c0_142, %c0_143] : memref<1x16xf32, #tpu.memory_space<vmem>>, vector<1x16xf32>
    %199 = vector.shape_cast %198 : vector<1x16xf32> to vector<1x1x1x16xf32>
    %200 = vector.broadcast %199 : vector<1x1x1x16xf32> to vector<2x2x16x16xf32>
    %201 = arith.addf %197, %200 : vector<2x2x16x16xf32>
    %cst_144 = arith.constant 0.000000e+00 : f32
    %202 = vector.broadcast %cst_144 : f32 to vector<2x2x16x16xf32>
    %203 = arith.maximumf %201, %202 : vector<2x2x16x16xf32>
    %cst_145 = arith.constant dense<0xFF800000> : vector<2x16x16xf32>
    %204 = vector.multi_reduction <maximumf>, %203, %cst_145 [1] : vector<2x2x16x16xf32> to vector<2x16x16xf32>
    %205 = vector.shape_cast %204 : vector<2x16x16xf32> to vector<2x8x2x16xf32>
    %cst_146 = arith.constant dense<0xFF800000> : vector<2x8x16xf32>
    %206 = vector.multi_reduction <maximumf>, %205, %cst_146 [2] : vector<2x8x2x16xf32> to vector<2x8x16xf32>
    %c0_147 = arith.constant 0 : index
    %c2_148 = arith.constant 2 : index
    %c1_149 = arith.constant 1 : index
    %c0_150 = arith.constant 0 : index
    %207 = vector.load %arg17[%c0_147, %c2_148, %c1_149, %c0_150] : memref<2x10x10x16xf32, #tpu.memory_space<vmem>>, vector<2x1x8x16xf32>
    %208 = vector.shape_cast %207 : vector<2x1x8x16xf32> to vector<2x8x16xf32>
    %209 = vector.shape_cast %206 : vector<2x8x16xf32> to vector<2x1x8x16xf32>
    tpu.vector_store %arg17[%c0_147, %c2_148, %c1_149, %c0_150], %209 {strides = array<i32>} : memref<2x10x10x16xf32, #tpu.memory_space<vmem>>, vector<2x1x8x16xf32>,
    %cst_151 = arith.constant 0.000000e+00 : f32
    %210 = vector.broadcast %cst_151 : f32 to vector<2x2x16x16xf32>
    %c0_152 = arith.constant 0 : index
    %c4 = arith.constant 4 : index
    %c0_153 = arith.constant 0 : index
    %211 = vector.load %arg16[%c0_152, %c4, %c0_153] : memref<2x18x18xf32, #tpu.memory_space<vmem>>, vector<2x4x16xf32>
    %212 = vector.shape_cast %211 : vector<2x4x16xf32> to vector<2x4x16x1xf32>
    %213 = vector.extract_strided_slice %212 {offsets = [0, 0, 0, 0], sizes = [2, 2, 16, 1], strides = [1, 1, 1, 1]} : vector<2x4x16x1xf32> to vector<2x2x16x1xf32>
    %c0_154 = arith.constant 0 : index
    %c0_155 = arith.constant 0 : index
    %c0_156 = arith.constant 0 : index
    %214 = vector.load %arg2[%c0_154, %c0_155, %c0_156] : memref<3x3x16xf32, #tpu.memory_space<vmem>>, vector<1x1x16xf32>
    %215 = vector.shape_cast %214 : vector<1x1x16xf32> to vector<1x1x1x16xf32>
    %216 = vector.broadcast %213 : vector<2x2x16x1xf32> to vector<2x2x16x16xf32>
    %217 = vector.broadcast %215 : vector<1x1x1x16xf32> to vector<2x2x16x16xf32>
    %218 = arith.mulf %216, %217 : vector<2x2x16x16xf32>
    %219 = arith.addf %210, %218 : vector<2x2x16x16xf32>
    %220 = vector.extract_strided_slice %212 {offsets = [0, 1, 0, 0], sizes = [2, 2, 16, 1], strides = [1, 1, 1, 1]} : vector<2x4x16x1xf32> to vector<2x2x16x1xf32>
    %c1_157 = arith.constant 1 : index
    %c0_158 = arith.constant 0 : index
    %c0_159 = arith.constant 0 : index
    %221 = vector.load %arg2[%c1_157, %c0_158, %c0_159] : memref<3x3x16xf32, #tpu.memory_space<vmem>>, vector<1x1x16xf32>
    %222 = vector.shape_cast %221 : vector<1x1x16xf32> to vector<1x1x1x16xf32>
    %223 = vector.broadcast %220 : vector<2x2x16x1xf32> to vector<2x2x16x16xf32>
    %224 = vector.broadcast %222 : vector<1x1x1x16xf32> to vector<2x2x16x16xf32>
    %225 = arith.mulf %223, %224 : vector<2x2x16x16xf32>
    %226 = arith.addf %219, %225 : vector<2x2x16x16xf32>
    %227 = vector.extract_strided_slice %212 {offsets = [0, 2, 0, 0], sizes = [2, 2, 16, 1], strides = [1, 1, 1, 1]} : vector<2x4x16x1xf32> to vector<2x2x16x1xf32>
    %c2_160 = arith.constant 2 : index
    %c0_161 = arith.constant 0 : index
    %c0_162 = arith.constant 0 : index
    %228 = vector.load %arg2[%c2_160, %c0_161, %c0_162] : memref<3x3x16xf32, #tpu.memory_space<vmem>>, vector<1x1x16xf32>
    %229 = vector.shape_cast %228 : vector<1x1x16xf32> to vector<1x1x1x16xf32>
    %230 = vector.broadcast %227 : vector<2x2x16x1xf32> to vector<2x2x16x16xf32>
    %231 = vector.broadcast %229 : vector<1x1x1x16xf32> to vector<2x2x16x16xf32>
    %232 = arith.mulf %230, %231 : vector<2x2x16x16xf32>
    %233 = arith.addf %226, %232 : vector<2x2x16x16xf32>
    %c0_163 = arith.constant 0 : index
    %c4_164 = arith.constant 4 : index
    %c1_165 = arith.constant 1 : index
    %234 = vector.load %arg16[%c0_163, %c4_164, %c1_165] : memref<2x18x18xf32, #tpu.memory_space<vmem>>, vector<2x4x16xf32>
    %235 = vector.shape_cast %234 : vector<2x4x16xf32> to vector<2x4x16x1xf32>
    %236 = vector.extract_strided_slice %235 {offsets = [0, 0, 0, 0], sizes = [2, 2, 16, 1], strides = [1, 1, 1, 1]} : vector<2x4x16x1xf32> to vector<2x2x16x1xf32>
    %c0_166 = arith.constant 0 : index
    %c1_167 = arith.constant 1 : index
    %c0_168 = arith.constant 0 : index
    %237 = vector.load %arg2[%c0_166, %c1_167, %c0_168] : memref<3x3x16xf32, #tpu.memory_space<vmem>>, vector<1x1x16xf32>
    %238 = vector.shape_cast %237 : vector<1x1x16xf32> to vector<1x1x1x16xf32>
    %239 = vector.broadcast %236 : vector<2x2x16x1xf32> to vector<2x2x16x16xf32>
    %240 = vector.broadcast %238 : vector<1x1x1x16xf32> to vector<2x2x16x16xf32>
    %241 = arith.mulf %239, %240 : vector<2x2x16x16xf32>
    %242 = arith.addf %233, %241 : vector<2x2x16x16xf32>
    %243 = vector.extract_strided_slice %235 {offsets = [0, 1, 0, 0], sizes = [2, 2, 16, 1], strides = [1, 1, 1, 1]} : vector<2x4x16x1xf32> to vector<2x2x16x1xf32>
    %c1_169 = arith.constant 1 : index
    %c1_170 = arith.constant 1 : index
    %c0_171 = arith.constant 0 : index
    %244 = vector.load %arg2[%c1_169, %c1_170, %c0_171] : memref<3x3x16xf32, #tpu.memory_space<vmem>>, vector<1x1x16xf32>
    %245 = vector.shape_cast %244 : vector<1x1x16xf32> to vector<1x1x1x16xf32>
    %246 = vector.broadcast %243 : vector<2x2x16x1xf32> to vector<2x2x16x16xf32>
    %247 = vector.broadcast %245 : vector<1x1x1x16xf32> to vector<2x2x16x16xf32>
    %248 = arith.mulf %246, %247 : vector<2x2x16x16xf32>
    %249 = arith.addf %242, %248 : vector<2x2x16x16xf32>
    %250 = vector.extract_strided_slice %235 {offsets = [0, 2, 0, 0], sizes = [2, 2, 16, 1], strides = [1, 1, 1, 1]} : vector<2x4x16x1xf32> to vector<2x2x16x1xf32>
    %c2_172 = arith.constant 2 : index
    %c1_173 = arith.constant 1 : index
    %c0_174 = arith.constant 0 : index
    %251 = vector.load %arg2[%c2_172, %c1_173, %c0_174] : memref<3x3x16xf32, #tpu.memory_space<vmem>>, vector<1x1x16xf32>
    %252 = vector.shape_cast %251 : vector<1x1x16xf32> to vector<1x1x1x16xf32>
    %253 = vector.broadcast %250 : vector<2x2x16x1xf32> to vector<2x2x16x16xf32>
    %254 = vector.broadcast %252 : vector<1x1x1x16xf32> to vector<2x2x16x16xf32>
    %255 = arith.mulf %253, %254 : vector<2x2x16x16xf32>
    %256 = arith.addf %249, %255 : vector<2x2x16x16xf32>
    %c0_175 = arith.constant 0 : index
    %c4_176 = arith.constant 4 : index
    %c2_177 = arith.constant 2 : index
    %257 = vector.load %arg16[%c0_175, %c4_176, %c2_177] : memref<2x18x18xf32, #tpu.memory_space<vmem>>, vector<2x4x16xf32>
    %258 = vector.shape_cast %257 : vector<2x4x16xf32> to vector<2x4x16x1xf32>
    %259 = vector.extract_strided_slice %258 {offsets = [0, 0, 0, 0], sizes = [2, 2, 16, 1], strides = [1, 1, 1, 1]} : vector<2x4x16x1xf32> to vector<2x2x16x1xf32>
    %c0_178 = arith.constant 0 : index
    %c2_179 = arith.constant 2 : index
    %c0_180 = arith.constant 0 : index
    %260 = vector.load %arg2[%c0_178, %c2_179, %c0_180] : memref<3x3x16xf32, #tpu.memory_space<vmem>>, vector<1x1x16xf32>
    %261 = vector.shape_cast %260 : vector<1x1x16xf32> to vector<1x1x1x16xf32>
    %262 = vector.broadcast %259 : vector<2x2x16x1xf32> to vector<2x2x16x16xf32>
    %263 = vector.broadcast %261 : vector<1x1x1x16xf32> to vector<2x2x16x16xf32>
    %264 = arith.mulf %262, %263 : vector<2x2x16x16xf32>
    %265 = arith.addf %256, %264 : vector<2x2x16x16xf32>
    %266 = vector.extract_strided_slice %258 {offsets = [0, 1, 0, 0], sizes = [2, 2, 16, 1], strides = [1, 1, 1, 1]} : vector<2x4x16x1xf32> to vector<2x2x16x1xf32>
    %c1_181 = arith.constant 1 : index
    %c2_182 = arith.constant 2 : index
    %c0_183 = arith.constant 0 : index
    %267 = vector.load %arg2[%c1_181, %c2_182, %c0_183] : memref<3x3x16xf32, #tpu.memory_space<vmem>>, vector<1x1x16xf32>
    %268 = vector.shape_cast %267 : vector<1x1x16xf32> to vector<1x1x1x16xf32>
    %269 = vector.broadcast %266 : vector<2x2x16x1xf32> to vector<2x2x16x16xf32>
    %270 = vector.broadcast %268 : vector<1x1x1x16xf32> to vector<2x2x16x16xf32>
    %271 = arith.mulf %269, %270 : vector<2x2x16x16xf32>
    %272 = arith.addf %265, %271 : vector<2x2x16x16xf32>
    %273 = vector.extract_strided_slice %258 {offsets = [0, 2, 0, 0], sizes = [2, 2, 16, 1], strides = [1, 1, 1, 1]} : vector<2x4x16x1xf32> to vector<2x2x16x1xf32>
    %c2_184 = arith.constant 2 : index
    %c2_185 = arith.constant 2 : index
    %c0_186 = arith.constant 0 : index
    %274 = vector.load %arg2[%c2_184, %c2_185, %c0_186] : memref<3x3x16xf32, #tpu.memory_space<vmem>>, vector<1x1x16xf32>
    %275 = vector.shape_cast %274 : vector<1x1x16xf32> to vector<1x1x1x16xf32>
    %276 = vector.broadcast %273 : vector<2x2x16x1xf32> to vector<2x2x16x16xf32>
    %277 = vector.broadcast %275 : vector<1x1x1x16xf32> to vector<2x2x16x16xf32>
    %278 = arith.mulf %276, %277 : vector<2x2x16x16xf32>
    %279 = arith.addf %272, %278 : vector<2x2x16x16xf32>
    %c0_187 = arith.constant 0 : index
    %c0_188 = arith.constant 0 : index
    %280 = vector.load %arg3[%c0_187, %c0_188] : memref<1x16xf32, #tpu.memory_space<vmem>>, vector<1x16xf32>
    %281 = vector.shape_cast %280 : vector<1x16xf32> to vector<1x1x1x16xf32>
    %282 = vector.broadcast %281 : vector<1x1x1x16xf32> to vector<2x2x16x16xf32>
    %283 = arith.mulf %279, %282 : vector<2x2x16x16xf32>
    %c0_189 = arith.constant 0 : index
    %c0_190 = arith.constant 0 : index
    %284 = vector.load %arg4[%c0_189, %c0_190] : memref<1x16xf32, #tpu.memory_space<vmem>>, vector<1x16xf32>
    %285 = vector.shape_cast %284 : vector<1x16xf32> to vector<1x1x1x16xf32>
    %286 = vector.broadcast %285 : vector<1x1x1x16xf32> to vector<2x2x16x16xf32>
    %287 = arith.addf %283, %286 : vector<2x2x16x16xf32>
    %cst_191 = arith.constant 0.000000e+00 : f32
    %288 = vector.broadcast %cst_191 : f32 to vector<2x2x16x16xf32>
    %289 = arith.maximumf %287, %288 : vector<2x2x16x16xf32>
    %cst_192 = arith.constant dense<0xFF800000> : vector<2x16x16xf32>
    %290 = vector.multi_reduction <maximumf>, %289, %cst_192 [1] : vector<2x2x16x16xf32> to vector<2x16x16xf32>
    %291 = vector.shape_cast %290 : vector<2x16x16xf32> to vector<2x8x2x16xf32>
    %cst_193 = arith.constant dense<0xFF800000> : vector<2x8x16xf32>
    %292 = vector.multi_reduction <maximumf>, %291, %cst_193 [2] : vector<2x8x2x16xf32> to vector<2x8x16xf32>
    %c0_194 = arith.constant 0 : index
    %c3 = arith.constant 3 : index
    %c1_195 = arith.constant 1 : index
    %c0_196 = arith.constant 0 : index
    %293 = vector.load %arg17[%c0_194, %c3, %c1_195, %c0_196] : memref<2x10x10x16xf32, #tpu.memory_space<vmem>>, vector<2x1x8x16xf32>
    %294 = vector.shape_cast %293 : vector<2x1x8x16xf32> to vector<2x8x16xf32>
    %295 = vector.shape_cast %292 : vector<2x8x16xf32> to vector<2x1x8x16xf32>
    tpu.vector_store %arg17[%c0_194, %c3, %c1_195, %c0_196], %295 {strides = array<i32>} : memref<2x10x10x16xf32, #tpu.memory_space<vmem>>, vector<2x1x8x16xf32>,
    %cst_197 = arith.constant 0.000000e+00 : f32
    %296 = vector.broadcast %cst_197 : f32 to vector<2x2x16x16xf32>
    %c0_198 = arith.constant 0 : index
    %c6 = arith.constant 6 : index
    %c0_199 = arith.constant 0 : index
    %297 = vector.load %arg16[%c0_198, %c6, %c0_199] : memref<2x18x18xf32, #tpu.memory_space<vmem>>, vector<2x4x16xf32>
    %298 = vector.shape_cast %297 : vector<2x4x16xf32> to vector<2x4x16x1xf32>
    %299 = vector.extract_strided_slice %298 {offsets = [0, 0, 0, 0], sizes = [2, 2, 16, 1], strides = [1, 1, 1, 1]} : vector<2x4x16x1xf32> to vector<2x2x16x1xf32>
    %c0_200 = arith.constant 0 : index
    %c0_201 = arith.constant 0 : index
    %c0_202 = arith.constant 0 : index
    %300 = vector.load %arg2[%c0_200, %c0_201, %c0_202] : memref<3x3x16xf32, #tpu.memory_space<vmem>>, vector<1x1x16xf32>
    %301 = vector.shape_cast %300 : vector<1x1x16xf32> to vector<1x1x1x16xf32>
    %302 = vector.broadcast %299 : vector<2x2x16x1xf32> to vector<2x2x16x16xf32>
    %303 = vector.broadcast %301 : vector<1x1x1x16xf32> to vector<2x2x16x16xf32>
    %304 = arith.mulf %302, %303 : vector<2x2x16x16xf32>
    %305 = arith.addf %296, %304 : vector<2x2x16x16xf32>
    %306 = vector.extract_strided_slice %298 {offsets = [0, 1, 0, 0], sizes = [2, 2, 16, 1], strides = [1, 1, 1, 1]} : vector<2x4x16x1xf32> to vector<2x2x16x1xf32>
    %c1_203 = arith.constant 1 : index
    %c0_204 = arith.constant 0 : index
    %c0_205 = arith.constant 0 : index
    %307 = vector.load %arg2[%c1_203, %c0_204, %c0_205] : memref<3x3x16xf32, #tpu.memory_space<vmem>>, vector<1x1x16xf32>
    %308 = vector.shape_cast %307 : vector<1x1x16xf32> to vector<1x1x1x16xf32>
    %309 = vector.broadcast %306 : vector<2x2x16x1xf32> to vector<2x2x16x16xf32>
    %310 = vector.broadcast %308 : vector<1x1x1x16xf32> to vector<2x2x16x16xf32>
    %311 = arith.mulf %309, %310 : vector<2x2x16x16xf32>
    %312 = arith.addf %305, %311 : vector<2x2x16x16xf32>
    %313 = vector.extract_strided_slice %298 {offsets = [0, 2, 0, 0], sizes = [2, 2, 16, 1], strides = [1, 1, 1, 1]} : vector<2x4x16x1xf32> to vector<2x2x16x1xf32>
    %c2_206 = arith.constant 2 : index
    %c0_207 = arith.constant 0 : index
    %c0_208 = arith.constant 0 : index
    %314 = vector.load %arg2[%c2_206, %c0_207, %c0_208] : memref<3x3x16xf32, #tpu.memory_space<vmem>>, vector<1x1x16xf32>
    %315 = vector.shape_cast %314 : vector<1x1x16xf32> to vector<1x1x1x16xf32>
    %316 = vector.broadcast %313 : vector<2x2x16x1xf32> to vector<2x2x16x16xf32>
    %317 = vector.broadcast %315 : vector<1x1x1x16xf32> to vector<2x2x16x16xf32>
    %318 = arith.mulf %316, %317 : vector<2x2x16x16xf32>
    %319 = arith.addf %312, %318 : vector<2x2x16x16xf32>
    %c0_209 = arith.constant 0 : index
    %c6_210 = arith.constant 6 : index
    %c1_211 = arith.constant 1 : index
    %320 = vector.load %arg16[%c0_209, %c6_210, %c1_211] : memref<2x18x18xf32, #tpu.memory_space<vmem>>, vector<2x4x16xf32>
    %321 = vector.shape_cast %320 : vector<2x4x16xf32> to vector<2x4x16x1xf32>
    %322 = vector.extract_strided_slice %321 {offsets = [0, 0, 0, 0], sizes = [2, 2, 16, 1], strides = [1, 1, 1, 1]} : vector<2x4x16x1xf32> to vector<2x2x16x1xf32>
    %c0_212 = arith.constant 0 : index
    %c1_213 = arith.constant 1 : index
    %c0_214 = arith.constant 0 : index
    %323 = vector.load %arg2[%c0_212, %c1_213, %c0_214] : memref<3x3x16xf32, #tpu.memory_space<vmem>>, vector<1x1x16xf32>
    %324 = vector.shape_cast %323 : vector<1x1x16xf32> to vector<1x1x1x16xf32>
    %325 = vector.broadcast %322 : vector<2x2x16x1xf32> to vector<2x2x16x16xf32>
    %326 = vector.broadcast %324 : vector<1x1x1x16xf32> to vector<2x2x16x16xf32>
    %327 = arith.mulf %325, %326 : vector<2x2x16x16xf32>
    %328 = arith.addf %319, %327 : vector<2x2x16x16xf32>
    %329 = vector.extract_strided_slice %321 {offsets = [0, 1, 0, 0], sizes = [2, 2, 16, 1], strides = [1, 1, 1, 1]} : vector<2x4x16x1xf32> to vector<2x2x16x1xf32>
    %c1_215 = arith.constant 1 : index
    %c1_216 = arith.constant 1 : index
    %c0_217 = arith.constant 0 : index
    %330 = vector.load %arg2[%c1_215, %c1_216, %c0_217] : memref<3x3x16xf32, #tpu.memory_space<vmem>>, vector<1x1x16xf32>
    %331 = vector.shape_cast %330 : vector<1x1x16xf32> to vector<1x1x1x16xf32>
    %332 = vector.broadcast %329 : vector<2x2x16x1xf32> to vector<2x2x16x16xf32>
    %333 = vector.broadcast %331 : vector<1x1x1x16xf32> to vector<2x2x16x16xf32>
    %334 = arith.mulf %332, %333 : vector<2x2x16x16xf32>
    %335 = arith.addf %328, %334 : vector<2x2x16x16xf32>
    %336 = vector.extract_strided_slice %321 {offsets = [0, 2, 0, 0], sizes = [2, 2, 16, 1], strides = [1, 1, 1, 1]} : vector<2x4x16x1xf32> to vector<2x2x16x1xf32>
    %c2_218 = arith.constant 2 : index
    %c1_219 = arith.constant 1 : index
    %c0_220 = arith.constant 0 : index
    %337 = vector.load %arg2[%c2_218, %c1_219, %c0_220] : memref<3x3x16xf32, #tpu.memory_space<vmem>>, vector<1x1x16xf32>
    %338 = vector.shape_cast %337 : vector<1x1x16xf32> to vector<1x1x1x16xf32>
    %339 = vector.broadcast %336 : vector<2x2x16x1xf32> to vector<2x2x16x16xf32>
    %340 = vector.broadcast %338 : vector<1x1x1x16xf32> to vector<2x2x16x16xf32>
    %341 = arith.mulf %339, %340 : vector<2x2x16x16xf32>
    %342 = arith.addf %335, %341 : vector<2x2x16x16xf32>
    %c0_221 = arith.constant 0 : index
    %c6_222 = arith.constant 6 : index
    %c2_223 = arith.constant 2 : index
    %343 = vector.load %arg16[%c0_221, %c6_222, %c2_223] : memref<2x18x18xf32, #tpu.memory_space<vmem>>, vector<2x4x16xf32>
    %344 = vector.shape_cast %343 : vector<2x4x16xf32> to vector<2x4x16x1xf32>
    %345 = vector.extract_strided_slice %344 {offsets = [0, 0, 0, 0], sizes = [2, 2, 16, 1], strides = [1, 1, 1, 1]} : vector<2x4x16x1xf32> to vector<2x2x16x1xf32>
    %c0_224 = arith.constant 0 : index
    %c2_225 = arith.constant 2 : index
    %c0_226 = arith.constant 0 : index
    %346 = vector.load %arg2[%c0_224, %c2_225, %c0_226] : memref<3x3x16xf32, #tpu.memory_space<vmem>>, vector<1x1x16xf32>
    %347 = vector.shape_cast %346 : vector<1x1x16xf32> to vector<1x1x1x16xf32>
    %348 = vector.broadcast %345 : vector<2x2x16x1xf32> to vector<2x2x16x16xf32>
    %349 = vector.broadcast %347 : vector<1x1x1x16xf32> to vector<2x2x16x16xf32>
    %350 = arith.mulf %348, %349 : vector<2x2x16x16xf32>
    %351 = arith.addf %342, %350 : vector<2x2x16x16xf32>
    %352 = vector.extract_strided_slice %344 {offsets = [0, 1, 0, 0], sizes = [2, 2, 16, 1], strides = [1, 1, 1, 1]} : vector<2x4x16x1xf32> to vector<2x2x16x1xf32>
    %c1_227 = arith.constant 1 : index
    %c2_228 = arith.constant 2 : index
    %c0_229 = arith.constant 0 : index
    %353 = vector.load %arg2[%c1_227, %c2_228, %c0_229] : memref<3x3x16xf32, #tpu.memory_space<vmem>>, vector<1x1x16xf32>
    %354 = vector.shape_cast %353 : vector<1x1x16xf32> to vector<1x1x1x16xf32>
    %355 = vector.broadcast %352 : vector<2x2x16x1xf32> to vector<2x2x16x16xf32>
    %356 = vector.broadcast %354 : vector<1x1x1x16xf32> to vector<2x2x16x16xf32>
    %357 = arith.mulf %355, %356 : vector<2x2x16x16xf32>
    %358 = arith.addf %351, %357 : vector<2x2x16x16xf32>
    %359 = vector.extract_strided_slice %344 {offsets = [0, 2, 0, 0], sizes = [2, 2, 16, 1], strides = [1, 1, 1, 1]} : vector<2x4x16x1xf32> to vector<2x2x16x1xf32>
    %c2_230 = arith.constant 2 : index
    %c2_231 = arith.constant 2 : index
    %c0_232 = arith.constant 0 : index
    %360 = vector.load %arg2[%c2_230, %c2_231, %c0_232] : memref<3x3x16xf32, #tpu.memory_space<vmem>>, vector<1x1x16xf32>
    %361 = vector.shape_cast %360 : vector<1x1x16xf32> to vector<1x1x1x16xf32>
    %362 = vector.broadcast %359 : vector<2x2x16x1xf32> to vector<2x2x16x16xf32>
    %363 = vector.broadcast %361 : vector<1x1x1x16xf32> to vector<2x2x16x16xf32>
    %364 = arith.mulf %362, %363 : vector<2x2x16x16xf32>
    %365 = arith.addf %358, %364 : vector<2x2x16x16xf32>
    %c0_233 = arith.constant 0 : index
    %c0_234 = arith.constant 0 : index
    %366 = vector.load %arg3[%c0_233, %c0_234] : memref<1x16xf32, #tpu.memory_space<vmem>>, vector<1x16xf32>
    %367 = vector.shape_cast %366 : vector<1x16xf32> to vector<1x1x1x16xf32>
    %368 = vector.broadcast %367 : vector<1x1x1x16xf32> to vector<2x2x16x16xf32>
    %369 = arith.mulf %365, %368 : vector<2x2x16x16xf32>
    %c0_235 = arith.constant 0 : index
    %c0_236 = arith.constant 0 : index
    %370 = vector.load %arg4[%c0_235, %c0_236] : memref<1x16xf32, #tpu.memory_space<vmem>>, vector<1x16xf32>
    %371 = vector.shape_cast %370 : vector<1x16xf32> to vector<1x1x1x16xf32>
    %372 = vector.broadcast %371 : vector<1x1x1x16xf32> to vector<2x2x16x16xf32>
    %373 = arith.addf %369, %372 : vector<2x2x16x16xf32>
    %cst_237 = arith.constant 0.000000e+00 : f32
    %374 = vector.broadcast %cst_237 : f32 to vector<2x2x16x16xf32>
    %375 = arith.maximumf %373, %374 : vector<2x2x16x16xf32>
    %cst_238 = arith.constant dense<0xFF800000> : vector<2x16x16xf32>
    %376 = vector.multi_reduction <maximumf>, %375, %cst_238 [1] : vector<2x2x16x16xf32> to vector<2x16x16xf32>
    %377 = vector.shape_cast %376 : vector<2x16x16xf32> to vector<2x8x2x16xf32>
    %cst_239 = arith.constant dense<0xFF800000> : vector<2x8x16xf32>
    %378 = vector.multi_reduction <maximumf>, %377, %cst_239 [2] : vector<2x8x2x16xf32> to vector<2x8x16xf32>
    %c0_240 = arith.constant 0 : index
    %c4_241 = arith.constant 4 : index
    %c1_242 = arith.constant 1 : index
    %c0_243 = arith.constant 0 : index
    %379 = vector.load %arg17[%c0_240, %c4_241, %c1_242, %c0_243] : memref<2x10x10x16xf32, #tpu.memory_space<vmem>>, vector<2x1x8x16xf32>
    %380 = vector.shape_cast %379 : vector<2x1x8x16xf32> to vector<2x8x16xf32>
    %381 = vector.shape_cast %378 : vector<2x8x16xf32> to vector<2x1x8x16xf32>
    tpu.vector_store %arg17[%c0_240, %c4_241, %c1_242, %c0_243], %381 {strides = array<i32>} : memref<2x10x10x16xf32, #tpu.memory_space<vmem>>, vector<2x1x8x16xf32>,
    %cst_244 = arith.constant 0.000000e+00 : f32
    %382 = vector.broadcast %cst_244 : f32 to vector<2x2x16x16xf32>
    %c0_245 = arith.constant 0 : index
    %c8 = arith.constant 8 : index
    %c0_246 = arith.constant 0 : index
    %383 = vector.load %arg16[%c0_245, %c8, %c0_246] : memref<2x18x18xf32, #tpu.memory_space<vmem>>, vector<2x4x16xf32>
    %384 = vector.shape_cast %383 : vector<2x4x16xf32> to vector<2x4x16x1xf32>
    %385 = vector.extract_strided_slice %384 {offsets = [0, 0, 0, 0], sizes = [2, 2, 16, 1], strides = [1, 1, 1, 1]} : vector<2x4x16x1xf32> to vector<2x2x16x1xf32>
    %c0_247 = arith.constant 0 : index
    %c0_248 = arith.constant 0 : index
    %c0_249 = arith.constant 0 : index
    %386 = vector.load %arg2[%c0_247, %c0_248, %c0_249] : memref<3x3x16xf32, #tpu.memory_space<vmem>>, vector<1x1x16xf32>
    %387 = vector.shape_cast %386 : vector<1x1x16xf32> to vector<1x1x1x16xf32>
    %388 = vector.broadcast %385 : vector<2x2x16x1xf32> to vector<2x2x16x16xf32>
    %389 = vector.broadcast %387 : vector<1x1x1x16xf32> to vector<2x2x16x16xf32>
    %390 = arith.mulf %388, %389 : vector<2x2x16x16xf32>
    %391 = arith.addf %382, %390 : vector<2x2x16x16xf32>
    %392 = vector.extract_strided_slice %384 {offsets = [0, 1, 0, 0], sizes = [2, 2, 16, 1], strides = [1, 1, 1, 1]} : vector<2x4x16x1xf32> to vector<2x2x16x1xf32>
    %c1_250 = arith.constant 1 : index
    %c0_251 = arith.constant 0 : index
    %c0_252 = arith.constant 0 : index
    %393 = vector.load %arg2[%c1_250, %c0_251, %c0_252] : memref<3x3x16xf32, #tpu.memory_space<vmem>>, vector<1x1x16xf32>
    %394 = vector.shape_cast %393 : vector<1x1x16xf32> to vector<1x1x1x16xf32>
    %395 = vector.broadcast %392 : vector<2x2x16x1xf32> to vector<2x2x16x16xf32>
    %396 = vector.broadcast %394 : vector<1x1x1x16xf32> to vector<2x2x16x16xf32>
    %397 = arith.mulf %395, %396 : vector<2x2x16x16xf32>
    %398 = arith.addf %391, %397 : vector<2x2x16x16xf32>
    %399 = vector.extract_strided_slice %384 {offsets = [0, 2, 0, 0], sizes = [2, 2, 16, 1], strides = [1, 1, 1, 1]} : vector<2x4x16x1xf32> to vector<2x2x16x1xf32>
    %c2_253 = arith.constant 2 : index
    %c0_254 = arith.constant 0 : index
    %c0_255 = arith.constant 0 : index
    %400 = vector.load %arg2[%c2_253, %c0_254, %c0_255] : memref<3x3x16xf32, #tpu.memory_space<vmem>>, vector<1x1x16xf32>
    %401 = vector.shape_cast %400 : vector<1x1x16xf32> to vector<1x1x1x16xf32>
    %402 = vector.broadcast %399 : vector<2x2x16x1xf32> to vector<2x2x16x16xf32>
    %403 = vector.broadcast %401 : vector<1x1x1x16xf32> to vector<2x2x16x16xf32>
    %404 = arith.mulf %402, %403 : vector<2x2x16x16xf32>
    %405 = arith.addf %398, %404 : vector<2x2x16x16xf32>
    %c0_256 = arith.constant 0 : index
    %c8_257 = arith.constant 8 : index
    %c1_258 = arith.constant 1 : index
    %406 = vector.load %arg16[%c0_256, %c8_257, %c1_258] : memref<2x18x18xf32, #tpu.memory_space<vmem>>, vector<2x4x16xf32>
    %407 = vector.shape_cast %406 : vector<2x4x16xf32> to vector<2x4x16x1xf32>
    %408 = vector.extract_strided_slice %407 {offsets = [0, 0, 0, 0], sizes = [2, 2, 16, 1], strides = [1, 1, 1, 1]} : vector<2x4x16x1xf32> to vector<2x2x16x1xf32>
    %c0_259 = arith.constant 0 : index
    %c1_260 = arith.constant 1 : index
    %c0_261 = arith.constant 0 : index
    %409 = vector.load %arg2[%c0_259, %c1_260, %c0_261] : memref<3x3x16xf32, #tpu.memory_space<vmem>>, vector<1x1x16xf32>
    %410 = vector.shape_cast %409 : vector<1x1x16xf32> to vector<1x1x1x16xf32>
    %411 = vector.broadcast %408 : vector<2x2x16x1xf32> to vector<2x2x16x16xf32>
    %412 = vector.broadcast %410 : vector<1x1x1x16xf32> to vector<2x2x16x16xf32>
    %413 = arith.mulf %411, %412 : vector<2x2x16x16xf32>
    %414 = arith.addf %405, %413 : vector<2x2x16x16xf32>
    %415 = vector.extract_strided_slice %407 {offsets = [0, 1, 0, 0], sizes = [2, 2, 16, 1], strides = [1, 1, 1, 1]} : vector<2x4x16x1xf32> to vector<2x2x16x1xf32>
    %c1_262 = arith.constant 1 : index
    %c1_263 = arith.constant 1 : index
    %c0_264 = arith.constant 0 : index
    %416 = vector.load %arg2[%c1_262, %c1_263, %c0_264] : memref<3x3x16xf32, #tpu.memory_space<vmem>>, vector<1x1x16xf32>
    %417 = vector.shape_cast %416 : vector<1x1x16xf32> to vector<1x1x1x16xf32>
    %418 = vector.broadcast %415 : vector<2x2x16x1xf32> to vector<2x2x16x16xf32>
    %419 = vector.broadcast %417 : vector<1x1x1x16xf32> to vector<2x2x16x16xf32>
    %420 = arith.mulf %418, %419 : vector<2x2x16x16xf32>
    %421 = arith.addf %414, %420 : vector<2x2x16x16xf32>
    %422 = vector.extract_strided_slice %407 {offsets = [0, 2, 0, 0], sizes = [2, 2, 16, 1], strides = [1, 1, 1, 1]} : vector<2x4x16x1xf32> to vector<2x2x16x1xf32>
    %c2_265 = arith.constant 2 : index
    %c1_266 = arith.constant 1 : index
    %c0_267 = arith.constant 0 : index
    %423 = vector.load %arg2[%c2_265, %c1_266, %c0_267] : memref<3x3x16xf32, #tpu.memory_space<vmem>>, vector<1x1x16xf32>
    %424 = vector.shape_cast %423 : vector<1x1x16xf32> to vector<1x1x1x16xf32>
    %425 = vector.broadcast %422 : vector<2x2x16x1xf32> to vector<2x2x16x16xf32>
    %426 = vector.broadcast %424 : vector<1x1x1x16xf32> to vector<2x2x16x16xf32>
    %427 = arith.mulf %425, %426 : vector<2x2x16x16xf32>
    %428 = arith.addf %421, %427 : vector<2x2x16x16xf32>
    %c0_268 = arith.constant 0 : index
    %c8_269 = arith.constant 8 : index
    %c2_270 = arith.constant 2 : index
    %429 = vector.load %arg16[%c0_268, %c8_269, %c2_270] : memref<2x18x18xf32, #tpu.memory_space<vmem>>, vector<2x4x16xf32>
    %430 = vector.shape_cast %429 : vector<2x4x16xf32> to vector<2x4x16x1xf32>
    %431 = vector.extract_strided_slice %430 {offsets = [0, 0, 0, 0], sizes = [2, 2, 16, 1], strides = [1, 1, 1, 1]} : vector<2x4x16x1xf32> to vector<2x2x16x1xf32>
    %c0_271 = arith.constant 0 : index
    %c2_272 = arith.constant 2 : index
    %c0_273 = arith.constant 0 : index
    %432 = vector.load %arg2[%c0_271, %c2_272, %c0_273] : memref<3x3x16xf32, #tpu.memory_space<vmem>>, vector<1x1x16xf32>
    %433 = vector.shape_cast %432 : vector<1x1x16xf32> to vector<1x1x1x16xf32>
    %434 = vector.broadcast %431 : vector<2x2x16x1xf32> to vector<2x2x16x16xf32>
    %435 = vector.broadcast %433 : vector<1x1x1x16xf32> to vector<2x2x16x16xf32>
    %436 = arith.mulf %434, %435 : vector<2x2x16x16xf32>
    %437 = arith.addf %428, %436 : vector<2x2x16x16xf32>
    %438 = vector.extract_strided_slice %430 {offsets = [0, 1, 0, 0], sizes = [2, 2, 16, 1], strides = [1, 1, 1, 1]} : vector<2x4x16x1xf32> to vector<2x2x16x1xf32>
    %c1_274 = arith.constant 1 : index
    %c2_275 = arith.constant 2 : index
    %c0_276 = arith.constant 0 : index
    %439 = vector.load %arg2[%c1_274, %c2_275, %c0_276] : memref<3x3x16xf32, #tpu.memory_space<vmem>>, vector<1x1x16xf32>
    %440 = vector.shape_cast %439 : vector<1x1x16xf32> to vector<1x1x1x16xf32>
    %441 = vector.broadcast %438 : vector<2x2x16x1xf32> to vector<2x2x16x16xf32>
    %442 = vector.broadcast %440 : vector<1x1x1x16xf32> to vector<2x2x16x16xf32>
    %443 = arith.mulf %441, %442 : vector<2x2x16x16xf32>
    %444 = arith.addf %437, %443 : vector<2x2x16x16xf32>
    %445 = vector.extract_strided_slice %430 {offsets = [0, 2, 0, 0], sizes = [2, 2, 16, 1], strides = [1, 1, 1, 1]} : vector<2x4x16x1xf32> to vector<2x2x16x1xf32>
    %c2_277 = arith.constant 2 : index
    %c2_278 = arith.constant 2 : index
    %c0_279 = arith.constant 0 : index
    %446 = vector.load %arg2[%c2_277, %c2_278, %c0_279] : memref<3x3x16xf32, #tpu.memory_space<vmem>>, vector<1x1x16xf32>
    %447 = vector.shape_cast %446 : vector<1x1x16xf32> to vector<1x1x1x16xf32>
    %448 = vector.broadcast %445 : vector<2x2x16x1xf32> to vector<2x2x16x16xf32>
    %449 = vector.broadcast %447 : vector<1x1x1x16xf32> to vector<2x2x16x16xf32>
    %450 = arith.mulf %448, %449 : vector<2x2x16x16xf32>
    %451 = arith.addf %444, %450 : vector<2x2x16x16xf32>
    %c0_280 = arith.constant 0 : index
    %c0_281 = arith.constant 0 : index
    %452 = vector.load %arg3[%c0_280, %c0_281] : memref<1x16xf32, #tpu.memory_space<vmem>>, vector<1x16xf32>
    %453 = vector.shape_cast %452 : vector<1x16xf32> to vector<1x1x1x16xf32>
    %454 = vector.broadcast %453 : vector<1x1x1x16xf32> to vector<2x2x16x16xf32>
    %455 = arith.mulf %451, %454 : vector<2x2x16x16xf32>
    %c0_282 = arith.constant 0 : index
    %c0_283 = arith.constant 0 : index
    %456 = vector.load %arg4[%c0_282, %c0_283] : memref<1x16xf32, #tpu.memory_space<vmem>>, vector<1x16xf32>
    %457 = vector.shape_cast %456 : vector<1x16xf32> to vector<1x1x1x16xf32>
    %458 = vector.broadcast %457 : vector<1x1x1x16xf32> to vector<2x2x16x16xf32>
    %459 = arith.addf %455, %458 : vector<2x2x16x16xf32>
    %cst_284 = arith.constant 0.000000e+00 : f32
    %460 = vector.broadcast %cst_284 : f32 to vector<2x2x16x16xf32>
    %461 = arith.maximumf %459, %460 : vector<2x2x16x16xf32>
    %cst_285 = arith.constant dense<0xFF800000> : vector<2x16x16xf32>
    %462 = vector.multi_reduction <maximumf>, %461, %cst_285 [1] : vector<2x2x16x16xf32> to vector<2x16x16xf32>
    %463 = vector.shape_cast %462 : vector<2x16x16xf32> to vector<2x8x2x16xf32>
    %cst_286 = arith.constant dense<0xFF800000> : vector<2x8x16xf32>
    %464 = vector.multi_reduction <maximumf>, %463, %cst_286 [2] : vector<2x8x2x16xf32> to vector<2x8x16xf32>
    %c0_287 = arith.constant 0 : index
    %c5_288 = arith.constant 5 : index
    %c1_289 = arith.constant 1 : index
    %c0_290 = arith.constant 0 : index
    %465 = vector.load %arg17[%c0_287, %c5_288, %c1_289, %c0_290] : memref<2x10x10x16xf32, #tpu.memory_space<vmem>>, vector<2x1x8x16xf32>
    %466 = vector.shape_cast %465 : vector<2x1x8x16xf32> to vector<2x8x16xf32>
    %467 = vector.shape_cast %464 : vector<2x8x16xf32> to vector<2x1x8x16xf32>
    tpu.vector_store %arg17[%c0_287, %c5_288, %c1_289, %c0_290], %467 {strides = array<i32>} : memref<2x10x10x16xf32, #tpu.memory_space<vmem>>, vector<2x1x8x16xf32>,
    %cst_291 = arith.constant 0.000000e+00 : f32
    %468 = vector.broadcast %cst_291 : f32 to vector<2x2x16x16xf32>
    %c0_292 = arith.constant 0 : index
    %c10 = arith.constant 10 : index
    %c0_293 = arith.constant 0 : index
    %469 = vector.load %arg16[%c0_292, %c10, %c0_293] : memref<2x18x18xf32, #tpu.memory_space<vmem>>, vector<2x4x16xf32>
    %470 = vector.shape_cast %469 : vector<2x4x16xf32> to vector<2x4x16x1xf32>
    %471 = vector.extract_strided_slice %470 {offsets = [0, 0, 0, 0], sizes = [2, 2, 16, 1], strides = [1, 1, 1, 1]} : vector<2x4x16x1xf32> to vector<2x2x16x1xf32>
    %c0_294 = arith.constant 0 : index
    %c0_295 = arith.constant 0 : index
    %c0_296 = arith.constant 0 : index
    %472 = vector.load %arg2[%c0_294, %c0_295, %c0_296] : memref<3x3x16xf32, #tpu.memory_space<vmem>>, vector<1x1x16xf32>
    %473 = vector.shape_cast %472 : vector<1x1x16xf32> to vector<1x1x1x16xf32>
    %474 = vector.broadcast %471 : vector<2x2x16x1xf32> to vector<2x2x16x16xf32>
    %475 = vector.broadcast %473 : vector<1x1x1x16xf32> to vector<2x2x16x16xf32>
    %476 = arith.mulf %474, %475 : vector<2x2x16x16xf32>
    %477 = arith.addf %468, %476 : vector<2x2x16x16xf32>
    %478 = vector.extract_strided_slice %470 {offsets = [0, 1, 0, 0], sizes = [2, 2, 16, 1], strides = [1, 1, 1, 1]} : vector<2x4x16x1xf32> to vector<2x2x16x1xf32>
    %c1_297 = arith.constant 1 : index
    %c0_298 = arith.constant 0 : index
    %c0_299 = arith.constant 0 : index
    %479 = vector.load %arg2[%c1_297, %c0_298, %c0_299] : memref<3x3x16xf32, #tpu.memory_space<vmem>>, vector<1x1x16xf32>
    %480 = vector.shape_cast %479 : vector<1x1x16xf32> to vector<1x1x1x16xf32>
    %481 = vector.broadcast %478 : vector<2x2x16x1xf32> to vector<2x2x16x16xf32>
    %482 = vector.broadcast %480 : vector<1x1x1x16xf32> to vector<2x2x16x16xf32>
    %483 = arith.mulf %481, %482 : vector<2x2x16x16xf32>
    %484 = arith.addf %477, %483 : vector<2x2x16x16xf32>
    %485 = vector.extract_strided_slice %470 {offsets = [0, 2, 0, 0], sizes = [2, 2, 16, 1], strides = [1, 1, 1, 1]} : vector<2x4x16x1xf32> to vector<2x2x16x1xf32>
    %c2_300 = arith.constant 2 : index
    %c0_301 = arith.constant 0 : index
    %c0_302 = arith.constant 0 : index
    %486 = vector.load %arg2[%c2_300, %c0_301, %c0_302] : memref<3x3x16xf32, #tpu.memory_space<vmem>>, vector<1x1x16xf32>
    %487 = vector.shape_cast %486 : vector<1x1x16xf32> to vector<1x1x1x16xf32>
    %488 = vector.broadcast %485 : vector<2x2x16x1xf32> to vector<2x2x16x16xf32>
    %489 = vector.broadcast %487 : vector<1x1x1x16xf32> to vector<2x2x16x16xf32>
    %490 = arith.mulf %488, %489 : vector<2x2x16x16xf32>
    %491 = arith.addf %484, %490 : vector<2x2x16x16xf32>
    %c0_303 = arith.constant 0 : index
    %c10_304 = arith.constant 10 : index
    %c1_305 = arith.constant 1 : index
    %492 = vector.load %arg16[%c0_303, %c10_304, %c1_305] : memref<2x18x18xf32, #tpu.memory_space<vmem>>, vector<2x4x16xf32>
    %493 = vector.shape_cast %492 : vector<2x4x16xf32> to vector<2x4x16x1xf32>
    %494 = vector.extract_strided_slice %493 {offsets = [0, 0, 0, 0], sizes = [2, 2, 16, 1], strides = [1, 1, 1, 1]} : vector<2x4x16x1xf32> to vector<2x2x16x1xf32>
    %c0_306 = arith.constant 0 : index
    %c1_307 = arith.constant 1 : index
    %c0_308 = arith.constant 0 : index
    %495 = vector.load %arg2[%c0_306, %c1_307, %c0_308] : memref<3x3x16xf32, #tpu.memory_space<vmem>>, vector<1x1x16xf32>
    %496 = vector.shape_cast %495 : vector<1x1x16xf32> to vector<1x1x1x16xf32>
    %497 = vector.broadcast %494 : vector<2x2x16x1xf32> to vector<2x2x16x16xf32>
    %498 = vector.broadcast %496 : vector<1x1x1x16xf32> to vector<2x2x16x16xf32>
    %499 = arith.mulf %497, %498 : vector<2x2x16x16xf32>
    %500 = arith.addf %491, %499 : vector<2x2x16x16xf32>
    %501 = vector.extract_strided_slice %493 {offsets = [0, 1, 0, 0], sizes = [2, 2, 16, 1], strides = [1, 1, 1, 1]} : vector<2x4x16x1xf32> to vector<2x2x16x1xf32>
    %c1_309 = arith.constant 1 : index
    %c1_310 = arith.constant 1 : index
    %c0_311 = arith.constant 0 : index
    %502 = vector.load %arg2[%c1_309, %c1_310, %c0_311] : memref<3x3x16xf32, #tpu.memory_space<vmem>>, vector<1x1x16xf32>
    %503 = vector.shape_cast %502 : vector<1x1x16xf32> to vector<1x1x1x16xf32>
    %504 = vector.broadcast %501 : vector<2x2x16x1xf32> to vector<2x2x16x16xf32>
    %505 = vector.broadcast %503 : vector<1x1x1x16xf32> to vector<2x2x16x16xf32>
    %506 = arith.mulf %504, %505 : vector<2x2x16x16xf32>
    %507 = arith.addf %500, %506 : vector<2x2x16x16xf32>
    %508 = vector.extract_strided_slice %493 {offsets = [0, 2, 0, 0], sizes = [2, 2, 16, 1], strides = [1, 1, 1, 1]} : vector<2x4x16x1xf32> to vector<2x2x16x1xf32>
    %c2_312 = arith.constant 2 : index
    %c1_313 = arith.constant 1 : index
    %c0_314 = arith.constant 0 : index
    %509 = vector.load %arg2[%c2_312, %c1_313, %c0_314] : memref<3x3x16xf32, #tpu.memory_space<vmem>>, vector<1x1x16xf32>
    %510 = vector.shape_cast %509 : vector<1x1x16xf32> to vector<1x1x1x16xf32>
    %511 = vector.broadcast %508 : vector<2x2x16x1xf32> to vector<2x2x16x16xf32>
    %512 = vector.broadcast %510 : vector<1x1x1x16xf32> to vector<2x2x16x16xf32>
    %513 = arith.mulf %511, %512 : vector<2x2x16x16xf32>
    %514 = arith.addf %507, %513 : vector<2x2x16x16xf32>
    %c0_315 = arith.constant 0 : index
    %c10_316 = arith.constant 10 : index
    %c2_317 = arith.constant 2 : index
    %515 = vector.load %arg16[%c0_315, %c10_316, %c2_317] : memref<2x18x18xf32, #tpu.memory_space<vmem>>, vector<2x4x16xf32>
    %516 = vector.shape_cast %515 : vector<2x4x16xf32> to vector<2x4x16x1xf32>
    %517 = vector.extract_strided_slice %516 {offsets = [0, 0, 0, 0], sizes = [2, 2, 16, 1], strides = [1, 1, 1, 1]} : vector<2x4x16x1xf32> to vector<2x2x16x1xf32>
    %c0_318 = arith.constant 0 : index
    %c2_319 = arith.constant 2 : index
    %c0_320 = arith.constant 0 : index
    %518 = vector.load %arg2[%c0_318, %c2_319, %c0_320] : memref<3x3x16xf32, #tpu.memory_space<vmem>>, vector<1x1x16xf32>
    %519 = vector.shape_cast %518 : vector<1x1x16xf32> to vector<1x1x1x16xf32>
    %520 = vector.broadcast %517 : vector<2x2x16x1xf32> to vector<2x2x16x16xf32>
    %521 = vector.broadcast %519 : vector<1x1x1x16xf32> to vector<2x2x16x16xf32>
    %522 = arith.mulf %520, %521 : vector<2x2x16x16xf32>
    %523 = arith.addf %514, %522 : vector<2x2x16x16xf32>
    %524 = vector.extract_strided_slice %516 {offsets = [0, 1, 0, 0], sizes = [2, 2, 16, 1], strides = [1, 1, 1, 1]} : vector<2x4x16x1xf32> to vector<2x2x16x1xf32>
    %c1_321 = arith.constant 1 : index
    %c2_322 = arith.constant 2 : index
    %c0_323 = arith.constant 0 : index
    %525 = vector.load %arg2[%c1_321, %c2_322, %c0_323] : memref<3x3x16xf32, #tpu.memory_space<vmem>>, vector<1x1x16xf32>
    %526 = vector.shape_cast %525 : vector<1x1x16xf32> to vector<1x1x1x16xf32>
    %527 = vector.broadcast %524 : vector<2x2x16x1xf32> to vector<2x2x16x16xf32>
    %528 = vector.broadcast %526 : vector<1x1x1x16xf32> to vector<2x2x16x16xf32>
    %529 = arith.mulf %527, %528 : vector<2x2x16x16xf32>
    %530 = arith.addf %523, %529 : vector<2x2x16x16xf32>
    %531 = vector.extract_strided_slice %516 {offsets = [0, 2, 0, 0], sizes = [2, 2, 16, 1], strides = [1, 1, 1, 1]} : vector<2x4x16x1xf32> to vector<2x2x16x1xf32>
    %c2_324 = arith.constant 2 : index
    %c2_325 = arith.constant 2 : index
    %c0_326 = arith.constant 0 : index
    %532 = vector.load %arg2[%c2_324, %c2_325, %c0_326] : memref<3x3x16xf32, #tpu.memory_space<vmem>>, vector<1x1x16xf32>
    %533 = vector.shape_cast %532 : vector<1x1x16xf32> to vector<1x1x1x16xf32>
    %534 = vector.broadcast %531 : vector<2x2x16x1xf32> to vector<2x2x16x16xf32>
    %535 = vector.broadcast %533 : vector<1x1x1x16xf32> to vector<2x2x16x16xf32>
    %536 = arith.mulf %534, %535 : vector<2x2x16x16xf32>
    %537 = arith.addf %530, %536 : vector<2x2x16x16xf32>
    %c0_327 = arith.constant 0 : index
    %c0_328 = arith.constant 0 : index
    %538 = vector.load %arg3[%c0_327, %c0_328] : memref<1x16xf32, #tpu.memory_space<vmem>>, vector<1x16xf32>
    %539 = vector.shape_cast %538 : vector<1x16xf32> to vector<1x1x1x16xf32>
    %540 = vector.broadcast %539 : vector<1x1x1x16xf32> to vector<2x2x16x16xf32>
    %541 = arith.mulf %537, %540 : vector<2x2x16x16xf32>
    %c0_329 = arith.constant 0 : index
    %c0_330 = arith.constant 0 : index
    %542 = vector.load %arg4[%c0_329, %c0_330] : memref<1x16xf32, #tpu.memory_space<vmem>>, vector<1x16xf32>
    %543 = vector.shape_cast %542 : vector<1x16xf32> to vector<1x1x1x16xf32>
    %544 = vector.broadcast %543 : vector<1x1x1x16xf32> to vector<2x2x16x16xf32>
    %545 = arith.addf %541, %544 : vector<2x2x16x16xf32>
    %cst_331 = arith.constant 0.000000e+00 : f32
    %546 = vector.broadcast %cst_331 : f32 to vector<2x2x16x16xf32>
    %547 = arith.maximumf %545, %546 : vector<2x2x16x16xf32>
    %cst_332 = arith.constant dense<0xFF800000> : vector<2x16x16xf32>
    %548 = vector.multi_reduction <maximumf>, %547, %cst_332 [1] : vector<2x2x16x16xf32> to vector<2x16x16xf32>
    %549 = vector.shape_cast %548 : vector<2x16x16xf32> to vector<2x8x2x16xf32>
    %cst_333 = arith.constant dense<0xFF800000> : vector<2x8x16xf32>
    %550 = vector.multi_reduction <maximumf>, %549, %cst_333 [2] : vector<2x8x2x16xf32> to vector<2x8x16xf32>
    %c0_334 = arith.constant 0 : index
    %c6_335 = arith.constant 6 : index
    %c1_336 = arith.constant 1 : index
    %c0_337 = arith.constant 0 : index
    %551 = vector.load %arg17[%c0_334, %c6_335, %c1_336, %c0_337] : memref<2x10x10x16xf32, #tpu.memory_space<vmem>>, vector<2x1x8x16xf32>
    %552 = vector.shape_cast %551 : vector<2x1x8x16xf32> to vector<2x8x16xf32>
    %553 = vector.shape_cast %550 : vector<2x8x16xf32> to vector<2x1x8x16xf32>
    tpu.vector_store %arg17[%c0_334, %c6_335, %c1_336, %c0_337], %553 {strides = array<i32>} : memref<2x10x10x16xf32, #tpu.memory_space<vmem>>, vector<2x1x8x16xf32>,
    %cst_338 = arith.constant 0.000000e+00 : f32
    %554 = vector.broadcast %cst_338 : f32 to vector<2x2x16x16xf32>
    %c0_339 = arith.constant 0 : index
    %c12 = arith.constant 12 : index
    %c0_340 = arith.constant 0 : index
    %555 = vector.load %arg16[%c0_339, %c12, %c0_340] : memref<2x18x18xf32, #tpu.memory_space<vmem>>, vector<2x4x16xf32>
    %556 = vector.shape_cast %555 : vector<2x4x16xf32> to vector<2x4x16x1xf32>
    %557 = vector.extract_strided_slice %556 {offsets = [0, 0, 0, 0], sizes = [2, 2, 16, 1], strides = [1, 1, 1, 1]} : vector<2x4x16x1xf32> to vector<2x2x16x1xf32>
    %c0_341 = arith.constant 0 : index
    %c0_342 = arith.constant 0 : index
    %c0_343 = arith.constant 0 : index
    %558 = vector.load %arg2[%c0_341, %c0_342, %c0_343] : memref<3x3x16xf32, #tpu.memory_space<vmem>>, vector<1x1x16xf32>
    %559 = vector.shape_cast %558 : vector<1x1x16xf32> to vector<1x1x1x16xf32>
    %560 = vector.broadcast %557 : vector<2x2x16x1xf32> to vector<2x2x16x16xf32>
    %561 = vector.broadcast %559 : vector<1x1x1x16xf32> to vector<2x2x16x16xf32>
    %562 = arith.mulf %560, %561 : vector<2x2x16x16xf32>
    %563 = arith.addf %554, %562 : vector<2x2x16x16xf32>
    %564 = vector.extract_strided_slice %556 {offsets = [0, 1, 0, 0], sizes = [2, 2, 16, 1], strides = [1, 1, 1, 1]} : vector<2x4x16x1xf32> to vector<2x2x16x1xf32>
    %c1_344 = arith.constant 1 : index
    %c0_345 = arith.constant 0 : index
    %c0_346 = arith.constant 0 : index
    %565 = vector.load %arg2[%c1_344, %c0_345, %c0_346] : memref<3x3x16xf32, #tpu.memory_space<vmem>>, vector<1x1x16xf32>
    %566 = vector.shape_cast %565 : vector<1x1x16xf32> to vector<1x1x1x16xf32>
    %567 = vector.broadcast %564 : vector<2x2x16x1xf32> to vector<2x2x16x16xf32>
    %568 = vector.broadcast %566 : vector<1x1x1x16xf32> to vector<2x2x16x16xf32>
    %569 = arith.mulf %567, %568 : vector<2x2x16x16xf32>
    %570 = arith.addf %563, %569 : vector<2x2x16x16xf32>
    %571 = vector.extract_strided_slice %556 {offsets = [0, 2, 0, 0], sizes = [2, 2, 16, 1], strides = [1, 1, 1, 1]} : vector<2x4x16x1xf32> to vector<2x2x16x1xf32>
    %c2_347 = arith.constant 2 : index
    %c0_348 = arith.constant 0 : index
    %c0_349 = arith.constant 0 : index
    %572 = vector.load %arg2[%c2_347, %c0_348, %c0_349] : memref<3x3x16xf32, #tpu.memory_space<vmem>>, vector<1x1x16xf32>
    %573 = vector.shape_cast %572 : vector<1x1x16xf32> to vector<1x1x1x16xf32>
    %574 = vector.broadcast %571 : vector<2x2x16x1xf32> to vector<2x2x16x16xf32>
    %575 = vector.broadcast %573 : vector<1x1x1x16xf32> to vector<2x2x16x16xf32>
    %576 = arith.mulf %574, %575 : vector<2x2x16x16xf32>
    %577 = arith.addf %570, %576 : vector<2x2x16x16xf32>
    %c0_350 = arith.constant 0 : index
    %c12_351 = arith.constant 12 : index
    %c1_352 = arith.constant 1 : index
    %578 = vector.load %arg16[%c0_350, %c12_351, %c1_352] : memref<2x18x18xf32, #tpu.memory_space<vmem>>, vector<2x4x16xf32>
    %579 = vector.shape_cast %578 : vector<2x4x16xf32> to vector<2x4x16x1xf32>
    %580 = vector.extract_strided_slice %579 {offsets = [0, 0, 0, 0], sizes = [2, 2, 16, 1], strides = [1, 1, 1, 1]} : vector<2x4x16x1xf32> to vector<2x2x16x1xf32>
    %c0_353 = arith.constant 0 : index
    %c1_354 = arith.constant 1 : index
    %c0_355 = arith.constant 0 : index
    %581 = vector.load %arg2[%c0_353, %c1_354, %c0_355] : memref<3x3x16xf32, #tpu.memory_space<vmem>>, vector<1x1x16xf32>
    %582 = vector.shape_cast %581 : vector<1x1x16xf32> to vector<1x1x1x16xf32>
    %583 = vector.broadcast %580 : vector<2x2x16x1xf32> to vector<2x2x16x16xf32>
    %584 = vector.broadcast %582 : vector<1x1x1x16xf32> to vector<2x2x16x16xf32>
    %585 = arith.mulf %583, %584 : vector<2x2x16x16xf32>
    %586 = arith.addf %577, %585 : vector<2x2x16x16xf32>
    %587 = vector.extract_strided_slice %579 {offsets = [0, 1, 0, 0], sizes = [2, 2, 16, 1], strides = [1, 1, 1, 1]} : vector<2x4x16x1xf32> to vector<2x2x16x1xf32>
    %c1_356 = arith.constant 1 : index
    %c1_357 = arith.constant 1 : index
    %c0_358 = arith.constant 0 : index
    %588 = vector.load %arg2[%c1_356, %c1_357, %c0_358] : memref<3x3x16xf32, #tpu.memory_space<vmem>>, vector<1x1x16xf32>
    %589 = vector.shape_cast %588 : vector<1x1x16xf32> to vector<1x1x1x16xf32>
    %590 = vector.broadcast %587 : vector<2x2x16x1xf32> to vector<2x2x16x16xf32>
    %591 = vector.broadcast %589 : vector<1x1x1x16xf32> to vector<2x2x16x16xf32>
    %592 = arith.mulf %590, %591 : vector<2x2x16x16xf32>
    %593 = arith.addf %586, %592 : vector<2x2x16x16xf32>
    %594 = vector.extract_strided_slice %579 {offsets = [0, 2, 0, 0], sizes = [2, 2, 16, 1], strides = [1, 1, 1, 1]} : vector<2x4x16x1xf32> to vector<2x2x16x1xf32>
    %c2_359 = arith.constant 2 : index
    %c1_360 = arith.constant 1 : index
    %c0_361 = arith.constant 0 : index
    %595 = vector.load %arg2[%c2_359, %c1_360, %c0_361] : memref<3x3x16xf32, #tpu.memory_space<vmem>>, vector<1x1x16xf32>
    %596 = vector.shape_cast %595 : vector<1x1x16xf32> to vector<1x1x1x16xf32>
    %597 = vector.broadcast %594 : vector<2x2x16x1xf32> to vector<2x2x16x16xf32>
    %598 = vector.broadcast %596 : vector<1x1x1x16xf32> to vector<2x2x16x16xf32>
    %599 = arith.mulf %597, %598 : vector<2x2x16x16xf32>
    %600 = arith.addf %593, %599 : vector<2x2x16x16xf32>
    %c0_362 = arith.constant 0 : index
    %c12_363 = arith.constant 12 : index
    %c2_364 = arith.constant 2 : index
    %601 = vector.load %arg16[%c0_362, %c12_363, %c2_364] : memref<2x18x18xf32, #tpu.memory_space<vmem>>, vector<2x4x16xf32>
    %602 = vector.shape_cast %601 : vector<2x4x16xf32> to vector<2x4x16x1xf32>
    %603 = vector.extract_strided_slice %602 {offsets = [0, 0, 0, 0], sizes = [2, 2, 16, 1], strides = [1, 1, 1, 1]} : vector<2x4x16x1xf32> to vector<2x2x16x1xf32>
    %c0_365 = arith.constant 0 : index
    %c2_366 = arith.constant 2 : index
    %c0_367 = arith.constant 0 : index
    %604 = vector.load %arg2[%c0_365, %c2_366, %c0_367] : memref<3x3x16xf32, #tpu.memory_space<vmem>>, vector<1x1x16xf32>
    %605 = vector.shape_cast %604 : vector<1x1x16xf32> to vector<1x1x1x16xf32>
    %606 = vector.broadcast %603 : vector<2x2x16x1xf32> to vector<2x2x16x16xf32>
    %607 = vector.broadcast %605 : vector<1x1x1x16xf32> to vector<2x2x16x16xf32>
    %608 = arith.mulf %606, %607 : vector<2x2x16x16xf32>
    %609 = arith.addf %600, %608 : vector<2x2x16x16xf32>
    %610 = vector.extract_strided_slice %602 {offsets = [0, 1, 0, 0], sizes = [2, 2, 16, 1], strides = [1, 1, 1, 1]} : vector<2x4x16x1xf32> to vector<2x2x16x1xf32>
    %c1_368 = arith.constant 1 : index
    %c2_369 = arith.constant 2 : index
    %c0_370 = arith.constant 0 : index
    %611 = vector.load %arg2[%c1_368, %c2_369, %c0_370] : memref<3x3x16xf32, #tpu.memory_space<vmem>>, vector<1x1x16xf32>
    %612 = vector.shape_cast %611 : vector<1x1x16xf32> to vector<1x1x1x16xf32>
    %613 = vector.broadcast %610 : vector<2x2x16x1xf32> to vector<2x2x16x16xf32>
    %614 = vector.broadcast %612 : vector<1x1x1x16xf32> to vector<2x2x16x16xf32>
    %615 = arith.mulf %613, %614 : vector<2x2x16x16xf32>
    %616 = arith.addf %609, %615 : vector<2x2x16x16xf32>
    %617 = vector.extract_strided_slice %602 {offsets = [0, 2, 0, 0], sizes = [2, 2, 16, 1], strides = [1, 1, 1, 1]} : vector<2x4x16x1xf32> to vector<2x2x16x1xf32>
    %c2_371 = arith.constant 2 : index
    %c2_372 = arith.constant 2 : index
    %c0_373 = arith.constant 0 : index
    %618 = vector.load %arg2[%c2_371, %c2_372, %c0_373] : memref<3x3x16xf32, #tpu.memory_space<vmem>>, vector<1x1x16xf32>
    %619 = vector.shape_cast %618 : vector<1x1x16xf32> to vector<1x1x1x16xf32>
    %620 = vector.broadcast %617 : vector<2x2x16x1xf32> to vector<2x2x16x16xf32>
    %621 = vector.broadcast %619 : vector<1x1x1x16xf32> to vector<2x2x16x16xf32>
    %622 = arith.mulf %620, %621 : vector<2x2x16x16xf32>
    %623 = arith.addf %616, %622 : vector<2x2x16x16xf32>
    %c0_374 = arith.constant 0 : index
    %c0_375 = arith.constant 0 : index
    %624 = vector.load %arg3[%c0_374, %c0_375] : memref<1x16xf32, #tpu.memory_space<vmem>>, vector<1x16xf32>
    %625 = vector.shape_cast %624 : vector<1x16xf32> to vector<1x1x1x16xf32>
    %626 = vector.broadcast %625 : vector<1x1x1x16xf32> to vector<2x2x16x16xf32>
    %627 = arith.mulf %623, %626 : vector<2x2x16x16xf32>
    %c0_376 = arith.constant 0 : index
    %c0_377 = arith.constant 0 : index
    %628 = vector.load %arg4[%c0_376, %c0_377] : memref<1x16xf32, #tpu.memory_space<vmem>>, vector<1x16xf32>
    %629 = vector.shape_cast %628 : vector<1x16xf32> to vector<1x1x1x16xf32>
    %630 = vector.broadcast %629 : vector<1x1x1x16xf32> to vector<2x2x16x16xf32>
    %631 = arith.addf %627, %630 : vector<2x2x16x16xf32>
    %cst_378 = arith.constant 0.000000e+00 : f32
    %632 = vector.broadcast %cst_378 : f32 to vector<2x2x16x16xf32>
    %633 = arith.maximumf %631, %632 : vector<2x2x16x16xf32>
    %cst_379 = arith.constant dense<0xFF800000> : vector<2x16x16xf32>
    %634 = vector.multi_reduction <maximumf>, %633, %cst_379 [1] : vector<2x2x16x16xf32> to vector<2x16x16xf32>
    %635 = vector.shape_cast %634 : vector<2x16x16xf32> to vector<2x8x2x16xf32>
    %cst_380 = arith.constant dense<0xFF800000> : vector<2x8x16xf32>
    %636 = vector.multi_reduction <maximumf>, %635, %cst_380 [2] : vector<2x8x2x16xf32> to vector<2x8x16xf32>
    %c0_381 = arith.constant 0 : index
    %c7 = arith.constant 7 : index
    %c1_382 = arith.constant 1 : index
    %c0_383 = arith.constant 0 : index
    %637 = vector.load %arg17[%c0_381, %c7, %c1_382, %c0_383] : memref<2x10x10x16xf32, #tpu.memory_space<vmem>>, vector<2x1x8x16xf32>
    %638 = vector.shape_cast %637 : vector<2x1x8x16xf32> to vector<2x8x16xf32>
    %639 = vector.shape_cast %636 : vector<2x8x16xf32> to vector<2x1x8x16xf32>
    tpu.vector_store %arg17[%c0_381, %c7, %c1_382, %c0_383], %639 {strides = array<i32>} : memref<2x10x10x16xf32, #tpu.memory_space<vmem>>, vector<2x1x8x16xf32>,
    %cst_384 = arith.constant 0.000000e+00 : f32
    %640 = vector.broadcast %cst_384 : f32 to vector<2x2x16x16xf32>
    %c0_385 = arith.constant 0 : index
    %c14 = arith.constant 14 : index
    %c0_386 = arith.constant 0 : index
    %641 = vector.load %arg16[%c0_385, %c14, %c0_386] : memref<2x18x18xf32, #tpu.memory_space<vmem>>, vector<2x4x16xf32>
    %642 = vector.shape_cast %641 : vector<2x4x16xf32> to vector<2x4x16x1xf32>
    %643 = vector.extract_strided_slice %642 {offsets = [0, 0, 0, 0], sizes = [2, 2, 16, 1], strides = [1, 1, 1, 1]} : vector<2x4x16x1xf32> to vector<2x2x16x1xf32>
    %c0_387 = arith.constant 0 : index
    %c0_388 = arith.constant 0 : index
    %c0_389 = arith.constant 0 : index
    %644 = vector.load %arg2[%c0_387, %c0_388, %c0_389] : memref<3x3x16xf32, #tpu.memory_space<vmem>>, vector<1x1x16xf32>
    %645 = vector.shape_cast %644 : vector<1x1x16xf32> to vector<1x1x1x16xf32>
    %646 = vector.broadcast %643 : vector<2x2x16x1xf32> to vector<2x2x16x16xf32>
    %647 = vector.broadcast %645 : vector<1x1x1x16xf32> to vector<2x2x16x16xf32>
    %648 = arith.mulf %646, %647 : vector<2x2x16x16xf32>
    %649 = arith.addf %640, %648 : vector<2x2x16x16xf32>
    %650 = vector.extract_strided_slice %642 {offsets = [0, 1, 0, 0], sizes = [2, 2, 16, 1], strides = [1, 1, 1, 1]} : vector<2x4x16x1xf32> to vector<2x2x16x1xf32>
    %c1_390 = arith.constant 1 : index
    %c0_391 = arith.constant 0 : index
    %c0_392 = arith.constant 0 : index
    %651 = vector.load %arg2[%c1_390, %c0_391, %c0_392] : memref<3x3x16xf32, #tpu.memory_space<vmem>>, vector<1x1x16xf32>
    %652 = vector.shape_cast %651 : vector<1x1x16xf32> to vector<1x1x1x16xf32>
    %653 = vector.broadcast %650 : vector<2x2x16x1xf32> to vector<2x2x16x16xf32>
    %654 = vector.broadcast %652 : vector<1x1x1x16xf32> to vector<2x2x16x16xf32>
    %655 = arith.mulf %653, %654 : vector<2x2x16x16xf32>
    %656 = arith.addf %649, %655 : vector<2x2x16x16xf32>
    %657 = vector.extract_strided_slice %642 {offsets = [0, 2, 0, 0], sizes = [2, 2, 16, 1], strides = [1, 1, 1, 1]} : vector<2x4x16x1xf32> to vector<2x2x16x1xf32>
    %c2_393 = arith.constant 2 : index
    %c0_394 = arith.constant 0 : index
    %c0_395 = arith.constant 0 : index
    %658 = vector.load %arg2[%c2_393, %c0_394, %c0_395] : memref<3x3x16xf32, #tpu.memory_space<vmem>>, vector<1x1x16xf32>
    %659 = vector.shape_cast %658 : vector<1x1x16xf32> to vector<1x1x1x16xf32>
    %660 = vector.broadcast %657 : vector<2x2x16x1xf32> to vector<2x2x16x16xf32>
    %661 = vector.broadcast %659 : vector<1x1x1x16xf32> to vector<2x2x16x16xf32>
    %662 = arith.mulf %660, %661 : vector<2x2x16x16xf32>
    %663 = arith.addf %656, %662 : vector<2x2x16x16xf32>
    %c0_396 = arith.constant 0 : index
    %c14_397 = arith.constant 14 : index
    %c1_398 = arith.constant 1 : index
    %664 = vector.load %arg16[%c0_396, %c14_397, %c1_398] : memref<2x18x18xf32, #tpu.memory_space<vmem>>, vector<2x4x16xf32>
    %665 = vector.shape_cast %664 : vector<2x4x16xf32> to vector<2x4x16x1xf32>
    %666 = vector.extract_strided_slice %665 {offsets = [0, 0, 0, 0], sizes = [2, 2, 16, 1], strides = [1, 1, 1, 1]} : vector<2x4x16x1xf32> to vector<2x2x16x1xf32>
    %c0_399 = arith.constant 0 : index
    %c1_400 = arith.constant 1 : index
    %c0_401 = arith.constant 0 : index
    %667 = vector.load %arg2[%c0_399, %c1_400, %c0_401] : memref<3x3x16xf32, #tpu.memory_space<vmem>>, vector<1x1x16xf32>
    %668 = vector.shape_cast %667 : vector<1x1x16xf32> to vector<1x1x1x16xf32>
    %669 = vector.broadcast %666 : vector<2x2x16x1xf32> to vector<2x2x16x16xf32>
    %670 = vector.broadcast %668 : vector<1x1x1x16xf32> to vector<2x2x16x16xf32>
    %671 = arith.mulf %669, %670 : vector<2x2x16x16xf32>
    %672 = arith.addf %663, %671 : vector<2x2x16x16xf32>
    %673 = vector.extract_strided_slice %665 {offsets = [0, 1, 0, 0], sizes = [2, 2, 16, 1], strides = [1, 1, 1, 1]} : vector<2x4x16x1xf32> to vector<2x2x16x1xf32>
    %c1_402 = arith.constant 1 : index
    %c1_403 = arith.constant 1 : index
    %c0_404 = arith.constant 0 : index
    %674 = vector.load %arg2[%c1_402, %c1_403, %c0_404] : memref<3x3x16xf32, #tpu.memory_space<vmem>>, vector<1x1x16xf32>
    %675 = vector.shape_cast %674 : vector<1x1x16xf32> to vector<1x1x1x16xf32>
    %676 = vector.broadcast %673 : vector<2x2x16x1xf32> to vector<2x2x16x16xf32>
    %677 = vector.broadcast %675 : vector<1x1x1x16xf32> to vector<2x2x16x16xf32>
    %678 = arith.mulf %676, %677 : vector<2x2x16x16xf32>
    %679 = arith.addf %672, %678 : vector<2x2x16x16xf32>
    %680 = vector.extract_strided_slice %665 {offsets = [0, 2, 0, 0], sizes = [2, 2, 16, 1], strides = [1, 1, 1, 1]} : vector<2x4x16x1xf32> to vector<2x2x16x1xf32>
    %c2_405 = arith.constant 2 : index
    %c1_406 = arith.constant 1 : index
    %c0_407 = arith.constant 0 : index
    %681 = vector.load %arg2[%c2_405, %c1_406, %c0_407] : memref<3x3x16xf32, #tpu.memory_space<vmem>>, vector<1x1x16xf32>
    %682 = vector.shape_cast %681 : vector<1x1x16xf32> to vector<1x1x1x16xf32>
    %683 = vector.broadcast %680 : vector<2x2x16x1xf32> to vector<2x2x16x16xf32>
    %684 = vector.broadcast %682 : vector<1x1x1x16xf32> to vector<2x2x16x16xf32>
    %685 = arith.mulf %683, %684 : vector<2x2x16x16xf32>
    %686 = arith.addf %679, %685 : vector<2x2x16x16xf32>
    %c0_408 = arith.constant 0 : index
    %c14_409 = arith.constant 14 : index
    %c2_410 = arith.constant 2 : index
    %687 = vector.load %arg16[%c0_408, %c14_409, %c2_410] : memref<2x18x18xf32, #tpu.memory_space<vmem>>, vector<2x4x16xf32>
    %688 = vector.shape_cast %687 : vector<2x4x16xf32> to vector<2x4x16x1xf32>
    %689 = vector.extract_strided_slice %688 {offsets = [0, 0, 0, 0], sizes = [2, 2, 16, 1], strides = [1, 1, 1, 1]} : vector<2x4x16x1xf32> to vector<2x2x16x1xf32>
    %c0_411 = arith.constant 0 : index
    %c2_412 = arith.constant 2 : index
    %c0_413 = arith.constant 0 : index
    %690 = vector.load %arg2[%c0_411, %c2_412, %c0_413] : memref<3x3x16xf32, #tpu.memory_space<vmem>>, vector<1x1x16xf32>
    %691 = vector.shape_cast %690 : vector<1x1x16xf32> to vector<1x1x1x16xf32>
    %692 = vector.broadcast %689 : vector<2x2x16x1xf32> to vector<2x2x16x16xf32>
    %693 = vector.broadcast %691 : vector<1x1x1x16xf32> to vector<2x2x16x16xf32>
    %694 = arith.mulf %692, %693 : vector<2x2x16x16xf32>
    %695 = arith.addf %686, %694 : vector<2x2x16x16xf32>
    %696 = vector.extract_strided_slice %688 {offsets = [0, 1, 0, 0], sizes = [2, 2, 16, 1], strides = [1, 1, 1, 1]} : vector<2x4x16x1xf32> to vector<2x2x16x1xf32>
    %c1_414 = arith.constant 1 : index
    %c2_415 = arith.constant 2 : index
    %c0_416 = arith.constant 0 : index
    %697 = vector.load %arg2[%c1_414, %c2_415, %c0_416] : memref<3x3x16xf32, #tpu.memory_space<vmem>>, vector<1x1x16xf32>
    %698 = vector.shape_cast %697 : vector<1x1x16xf32> to vector<1x1x1x16xf32>
    %699 = vector.broadcast %696 : vector<2x2x16x1xf32> to vector<2x2x16x16xf32>
    %700 = vector.broadcast %698 : vector<1x1x1x16xf32> to vector<2x2x16x16xf32>
    %701 = arith.mulf %699, %700 : vector<2x2x16x16xf32>
    %702 = arith.addf %695, %701 : vector<2x2x16x16xf32>
    %703 = vector.extract_strided_slice %688 {offsets = [0, 2, 0, 0], sizes = [2, 2, 16, 1], strides = [1, 1, 1, 1]} : vector<2x4x16x1xf32> to vector<2x2x16x1xf32>
    %c2_417 = arith.constant 2 : index
    %c2_418 = arith.constant 2 : index
    %c0_419 = arith.constant 0 : index
    %704 = vector.load %arg2[%c2_417, %c2_418, %c0_419] : memref<3x3x16xf32, #tpu.memory_space<vmem>>, vector<1x1x16xf32>
    %705 = vector.shape_cast %704 : vector<1x1x16xf32> to vector<1x1x1x16xf32>
    %706 = vector.broadcast %703 : vector<2x2x16x1xf32> to vector<2x2x16x16xf32>
    %707 = vector.broadcast %705 : vector<1x1x1x16xf32> to vector<2x2x16x16xf32>
    %708 = arith.mulf %706, %707 : vector<2x2x16x16xf32>
    %709 = arith.addf %702, %708 : vector<2x2x16x16xf32>
    %c0_420 = arith.constant 0 : index
    %c0_421 = arith.constant 0 : index
    %710 = vector.load %arg3[%c0_420, %c0_421] : memref<1x16xf32, #tpu.memory_space<vmem>>, vector<1x16xf32>
    %711 = vector.shape_cast %710 : vector<1x16xf32> to vector<1x1x1x16xf32>
    %712 = vector.broadcast %711 : vector<1x1x1x16xf32> to vector<2x2x16x16xf32>
    %713 = arith.mulf %709, %712 : vector<2x2x16x16xf32>
    %c0_422 = arith.constant 0 : index
    %c0_423 = arith.constant 0 : index
    %714 = vector.load %arg4[%c0_422, %c0_423] : memref<1x16xf32, #tpu.memory_space<vmem>>, vector<1x16xf32>
    %715 = vector.shape_cast %714 : vector<1x16xf32> to vector<1x1x1x16xf32>
    %716 = vector.broadcast %715 : vector<1x1x1x16xf32> to vector<2x2x16x16xf32>
    %717 = arith.addf %713, %716 : vector<2x2x16x16xf32>
    %cst_424 = arith.constant 0.000000e+00 : f32
    %718 = vector.broadcast %cst_424 : f32 to vector<2x2x16x16xf32>
    %719 = arith.maximumf %717, %718 : vector<2x2x16x16xf32>
    %cst_425 = arith.constant dense<0xFF800000> : vector<2x16x16xf32>
    %720 = vector.multi_reduction <maximumf>, %719, %cst_425 [1] : vector<2x2x16x16xf32> to vector<2x16x16xf32>
    %721 = vector.shape_cast %720 : vector<2x16x16xf32> to vector<2x8x2x16xf32>
    %cst_426 = arith.constant dense<0xFF800000> : vector<2x8x16xf32>
    %722 = vector.multi_reduction <maximumf>, %721, %cst_426 [2] : vector<2x8x2x16xf32> to vector<2x8x16xf32>
    %c0_427 = arith.constant 0 : index
    %c8_428 = arith.constant 8 : index
    %c1_429 = arith.constant 1 : index
    %c0_430 = arith.constant 0 : index
    %723 = vector.load %arg17[%c0_427, %c8_428, %c1_429, %c0_430] : memref<2x10x10x16xf32, #tpu.memory_space<vmem>>, vector<2x1x8x16xf32>
    %724 = vector.shape_cast %723 : vector<2x1x8x16xf32> to vector<2x8x16xf32>
    %725 = vector.shape_cast %722 : vector<2x8x16xf32> to vector<2x1x8x16xf32>
    tpu.vector_store %arg17[%c0_427, %c8_428, %c1_429, %c0_430], %725 {strides = array<i32>} : memref<2x10x10x16xf32, #tpu.memory_space<vmem>>, vector<2x1x8x16xf32>,
    %cst_431 = arith.constant 0.000000e+00 : f32
    %726 = vector.broadcast %cst_431 : f32 to vector<128x32xf32>
    %c0_432 = arith.constant 0 : index
    %c0_433 = arith.constant 0 : index
    %c0_434 = arith.constant 0 : index
    %c0_435 = arith.constant 0 : index
    %727 = vector.load %arg17[%c0_432, %c0_433, %c0_434, %c0_435] : memref<2x10x10x16xf32, #tpu.memory_space<vmem>>, vector<2x10x8x16xf32>
    %728 = vector.extract_strided_slice %727 {offsets = [0, 0, 0, 0], sizes = [2, 8, 8, 16], strides = [1, 1, 1, 1]} : vector<2x10x8x16xf32> to vector<2x8x8x16xf32>
    %729 = vector.shape_cast %728 : vector<2x8x8x16xf32> to vector<128x16xf32>
    %c0_436 = arith.constant 0 : index
    %c0_437 = arith.constant 0 : index
    %c0_438 = arith.constant 0 : index
    %c0_439 = arith.constant 0 : index
    %730 = vector.load %arg5[%c0_436, %c0_437, %c0_438, %c0_439] : memref<3x3x16x32xf32, #tpu.memory_space<vmem>>, vector<1x1x16x32xf32>
    %731 = vector.shape_cast %730 : vector<1x1x16x32xf32> to vector<16x32xf32>
    %cst_440 = arith.constant dense<0.000000e+00> : vector<128x32xf32>
    %732 = tpu.matmul %729, %731, %cst_440 {dimension_numbers = #tpu.dot_dimension_numbers<[1], [0], [0], [1], [0, 0, 1, 1], [], []>} : vector<128x16xf32>, vector<16x32xf32>, vector<128x32xf32> -> vector<128x32xf32>
    %733 = arith.addf %726, %732 : vector<128x32xf32>
    %734 = vector.extract_strided_slice %727 {offsets = [0, 1, 0, 0], sizes = [2, 8, 8, 16], strides = [1, 1, 1, 1]} : vector<2x10x8x16xf32> to vector<2x8x8x16xf32>
    %735 = vector.shape_cast %734 : vector<2x8x8x16xf32> to vector<128x16xf32>
    %c1_441 = arith.constant 1 : index
    %c0_442 = arith.constant 0 : index
    %c0_443 = arith.constant 0 : index
    %c0_444 = arith.constant 0 : index
    %736 = vector.load %arg5[%c1_441, %c0_442, %c0_443, %c0_444] : memref<3x3x16x32xf32, #tpu.memory_space<vmem>>, vector<1x1x16x32xf32>
    %737 = vector.shape_cast %736 : vector<1x1x16x32xf32> to vector<16x32xf32>
    %cst_445 = arith.constant dense<0.000000e+00> : vector<128x32xf32>
    %738 = tpu.matmul %735, %737, %cst_445 {dimension_numbers = #tpu.dot_dimension_numbers<[1], [0], [0], [1], [0, 0, 1, 1], [], []>} : vector<128x16xf32>, vector<16x32xf32>, vector<128x32xf32> -> vector<128x32xf32>
    %739 = arith.addf %733, %738 : vector<128x32xf32>
    %740 = vector.extract_strided_slice %727 {offsets = [0, 2, 0, 0], sizes = [2, 8, 8, 16], strides = [1, 1, 1, 1]} : vector<2x10x8x16xf32> to vector<2x8x8x16xf32>
    %741 = vector.shape_cast %740 : vector<2x8x8x16xf32> to vector<128x16xf32>
    %c2_446 = arith.constant 2 : index
    %c0_447 = arith.constant 0 : index
    %c0_448 = arith.constant 0 : index
    %c0_449 = arith.constant 0 : index
    %742 = vector.load %arg5[%c2_446, %c0_447, %c0_448, %c0_449] : memref<3x3x16x32xf32, #tpu.memory_space<vmem>>, vector<1x1x16x32xf32>
    %743 = vector.shape_cast %742 : vector<1x1x16x32xf32> to vector<16x32xf32>
    %cst_450 = arith.constant dense<0.000000e+00> : vector<128x32xf32>
    %744 = tpu.matmul %741, %743, %cst_450 {dimension_numbers = #tpu.dot_dimension_numbers<[1], [0], [0], [1], [0, 0, 1, 1], [], []>} : vector<128x16xf32>, vector<16x32xf32>, vector<128x32xf32> -> vector<128x32xf32>
    %745 = arith.addf %739, %744 : vector<128x32xf32>
    %c0_451 = arith.constant 0 : index
    %c0_452 = arith.constant 0 : index
    %c1_453 = arith.constant 1 : index
    %c0_454 = arith.constant 0 : index
    %746 = vector.load %arg17[%c0_451, %c0_452, %c1_453, %c0_454] : memref<2x10x10x16xf32, #tpu.memory_space<vmem>>, vector<2x10x8x16xf32>
    %747 = vector.extract_strided_slice %746 {offsets = [0, 0, 0, 0], sizes = [2, 8, 8, 16], strides = [1, 1, 1, 1]} : vector<2x10x8x16xf32> to vector<2x8x8x16xf32>
    %748 = vector.shape_cast %747 : vector<2x8x8x16xf32> to vector<128x16xf32>
    %c0_455 = arith.constant 0 : index
    %c1_456 = arith.constant 1 : index
    %c0_457 = arith.constant 0 : index
    %c0_458 = arith.constant 0 : index
    %749 = vector.load %arg5[%c0_455, %c1_456, %c0_457, %c0_458] : memref<3x3x16x32xf32, #tpu.memory_space<vmem>>, vector<1x1x16x32xf32>
    %750 = vector.shape_cast %749 : vector<1x1x16x32xf32> to vector<16x32xf32>
    %cst_459 = arith.constant dense<0.000000e+00> : vector<128x32xf32>
    %751 = tpu.matmul %748, %750, %cst_459 {dimension_numbers = #tpu.dot_dimension_numbers<[1], [0], [0], [1], [0, 0, 1, 1], [], []>} : vector<128x16xf32>, vector<16x32xf32>, vector<128x32xf32> -> vector<128x32xf32>
    %752 = arith.addf %745, %751 : vector<128x32xf32>
    %753 = vector.extract_strided_slice %746 {offsets = [0, 1, 0, 0], sizes = [2, 8, 8, 16], strides = [1, 1, 1, 1]} : vector<2x10x8x16xf32> to vector<2x8x8x16xf32>
    %754 = vector.shape_cast %753 : vector<2x8x8x16xf32> to vector<128x16xf32>
    %c1_460 = arith.constant 1 : index
    %c1_461 = arith.constant 1 : index
    %c0_462 = arith.constant 0 : index
    %c0_463 = arith.constant 0 : index
    %755 = vector.load %arg5[%c1_460, %c1_461, %c0_462, %c0_463] : memref<3x3x16x32xf32, #tpu.memory_space<vmem>>, vector<1x1x16x32xf32>
    %756 = vector.shape_cast %755 : vector<1x1x16x32xf32> to vector<16x32xf32>
    %cst_464 = arith.constant dense<0.000000e+00> : vector<128x32xf32>
    %757 = tpu.matmul %754, %756, %cst_464 {dimension_numbers = #tpu.dot_dimension_numbers<[1], [0], [0], [1], [0, 0, 1, 1], [], []>} : vector<128x16xf32>, vector<16x32xf32>, vector<128x32xf32> -> vector<128x32xf32>
    %758 = arith.addf %752, %757 : vector<128x32xf32>
    %759 = vector.extract_strided_slice %746 {offsets = [0, 2, 0, 0], sizes = [2, 8, 8, 16], strides = [1, 1, 1, 1]} : vector<2x10x8x16xf32> to vector<2x8x8x16xf32>
    %760 = vector.shape_cast %759 : vector<2x8x8x16xf32> to vector<128x16xf32>
    %c2_465 = arith.constant 2 : index
    %c1_466 = arith.constant 1 : index
    %c0_467 = arith.constant 0 : index
    %c0_468 = arith.constant 0 : index
    %761 = vector.load %arg5[%c2_465, %c1_466, %c0_467, %c0_468] : memref<3x3x16x32xf32, #tpu.memory_space<vmem>>, vector<1x1x16x32xf32>
    %762 = vector.shape_cast %761 : vector<1x1x16x32xf32> to vector<16x32xf32>
    %cst_469 = arith.constant dense<0.000000e+00> : vector<128x32xf32>
    %763 = tpu.matmul %760, %762, %cst_469 {dimension_numbers = #tpu.dot_dimension_numbers<[1], [0], [0], [1], [0, 0, 1, 1], [], []>} : vector<128x16xf32>, vector<16x32xf32>, vector<128x32xf32> -> vector<128x32xf32>
    %764 = arith.addf %758, %763 : vector<128x32xf32>
    %c0_470 = arith.constant 0 : index
    %c0_471 = arith.constant 0 : index
    %c2_472 = arith.constant 2 : index
    %c0_473 = arith.constant 0 : index
    %765 = vector.load %arg17[%c0_470, %c0_471, %c2_472, %c0_473] : memref<2x10x10x16xf32, #tpu.memory_space<vmem>>, vector<2x10x8x16xf32>
    %766 = vector.extract_strided_slice %765 {offsets = [0, 0, 0, 0], sizes = [2, 8, 8, 16], strides = [1, 1, 1, 1]} : vector<2x10x8x16xf32> to vector<2x8x8x16xf32>
    %767 = vector.shape_cast %766 : vector<2x8x8x16xf32> to vector<128x16xf32>
    %c0_474 = arith.constant 0 : index
    %c2_475 = arith.constant 2 : index
    %c0_476 = arith.constant 0 : index
    %c0_477 = arith.constant 0 : index
    %768 = vector.load %arg5[%c0_474, %c2_475, %c0_476, %c0_477] : memref<3x3x16x32xf32, #tpu.memory_space<vmem>>, vector<1x1x16x32xf32>
    %769 = vector.shape_cast %768 : vector<1x1x16x32xf32> to vector<16x32xf32>
    %cst_478 = arith.constant dense<0.000000e+00> : vector<128x32xf32>
    %770 = tpu.matmul %767, %769, %cst_478 {dimension_numbers = #tpu.dot_dimension_numbers<[1], [0], [0], [1], [0, 0, 1, 1], [], []>} : vector<128x16xf32>, vector<16x32xf32>, vector<128x32xf32> -> vector<128x32xf32>
    %771 = arith.addf %764, %770 : vector<128x32xf32>
    %772 = vector.extract_strided_slice %765 {offsets = [0, 1, 0, 0], sizes = [2, 8, 8, 16], strides = [1, 1, 1, 1]} : vector<2x10x8x16xf32> to vector<2x8x8x16xf32>
    %773 = vector.shape_cast %772 : vector<2x8x8x16xf32> to vector<128x16xf32>
    %c1_479 = arith.constant 1 : index
    %c2_480 = arith.constant 2 : index
    %c0_481 = arith.constant 0 : index
    %c0_482 = arith.constant 0 : index
    %774 = vector.load %arg5[%c1_479, %c2_480, %c0_481, %c0_482] : memref<3x3x16x32xf32, #tpu.memory_space<vmem>>, vector<1x1x16x32xf32>
    %775 = vector.shape_cast %774 : vector<1x1x16x32xf32> to vector<16x32xf32>
    %cst_483 = arith.constant dense<0.000000e+00> : vector<128x32xf32>
    %776 = tpu.matmul %773, %775, %cst_483 {dimension_numbers = #tpu.dot_dimension_numbers<[1], [0], [0], [1], [0, 0, 1, 1], [], []>} : vector<128x16xf32>, vector<16x32xf32>, vector<128x32xf32> -> vector<128x32xf32>
    %777 = arith.addf %771, %776 : vector<128x32xf32>
    %778 = vector.extract_strided_slice %765 {offsets = [0, 2, 0, 0], sizes = [2, 8, 8, 16], strides = [1, 1, 1, 1]} : vector<2x10x8x16xf32> to vector<2x8x8x16xf32>
    %779 = vector.shape_cast %778 : vector<2x8x8x16xf32> to vector<128x16xf32>
    %c2_484 = arith.constant 2 : index
    %c2_485 = arith.constant 2 : index
    %c0_486 = arith.constant 0 : index
    %c0_487 = arith.constant 0 : index
    %780 = vector.load %arg5[%c2_484, %c2_485, %c0_486, %c0_487] : memref<3x3x16x32xf32, #tpu.memory_space<vmem>>, vector<1x1x16x32xf32>
    %781 = vector.shape_cast %780 : vector<1x1x16x32xf32> to vector<16x32xf32>
    %cst_488 = arith.constant dense<0.000000e+00> : vector<128x32xf32>
    %782 = tpu.matmul %779, %781, %cst_488 {dimension_numbers = #tpu.dot_dimension_numbers<[1], [0], [0], [1], [0, 0, 1, 1], [], []>} : vector<128x16xf32>, vector<16x32xf32>, vector<128x32xf32> -> vector<128x32xf32>
    %783 = arith.addf %777, %782 : vector<128x32xf32>
    %c0_489 = arith.constant 0 : index
    %c0_490 = arith.constant 0 : index
    %784 = vector.load %arg6[%c0_489, %c0_490] : memref<1x32xf32, #tpu.memory_space<vmem>>, vector<1x32xf32>
    %785 = vector.broadcast %784 : vector<1x32xf32> to vector<128x32xf32>
    %786 = arith.mulf %783, %785 : vector<128x32xf32>
    %c0_491 = arith.constant 0 : index
    %c0_492 = arith.constant 0 : index
    %787 = vector.load %arg7[%c0_491, %c0_492] : memref<1x32xf32, #tpu.memory_space<vmem>>, vector<1x32xf32>
    %788 = vector.broadcast %787 : vector<1x32xf32> to vector<128x32xf32>
    %789 = arith.addf %786, %788 : vector<128x32xf32>
    %cst_493 = arith.constant 0.000000e+00 : f32
    %790 = vector.broadcast %cst_493 : f32 to vector<128x32xf32>
    %791 = arith.maximumf %789, %790 : vector<128x32xf32>
    %792 = vector.shape_cast %791 : vector<128x32xf32> to vector<2x8x8x32xf32>
    %793 = vector.shape_cast %792 : vector<2x8x8x32xf32> to vector<2x4x2x8x32xf32>
    %cst_494 = arith.constant dense<0xFF800000> : vector<2x4x8x32xf32>
    %794 = vector.multi_reduction <maximumf>, %793, %cst_494 [2] : vector<2x4x2x8x32xf32> to vector<2x4x8x32xf32>
    %795 = vector.shape_cast %794 : vector<2x4x8x32xf32> to vector<2x4x4x2x32xf32>
    %cst_495 = arith.constant dense<0xFF800000> : vector<2x4x4x32xf32>
    %796 = vector.multi_reduction <maximumf>, %795, %cst_495 [3] : vector<2x4x4x2x32xf32> to vector<2x4x4x32xf32>
    %c0_496 = arith.constant 0 : index
    %c1_497 = arith.constant 1 : index
    %c1_498 = arith.constant 1 : index
    %c0_499 = arith.constant 0 : index
    %797 = vector.load %arg18[%c0_496, %c1_497, %c1_498, %c0_499] : memref<2x6x6x32xf32, #tpu.memory_space<vmem>>, vector<2x4x4x32xf32>
    tpu.vector_store %arg18[%c0_496, %c1_497, %c1_498, %c0_499], %796 {strides = array<i32>} : memref<2x6x6x32xf32, #tpu.memory_space<vmem>>, vector<2x4x4x32xf32>,
    %cst_500 = arith.constant 0.000000e+00 : f32
    %798 = vector.broadcast %cst_500 : f32 to vector<2x4x4x32xf32>
    %c0_501 = arith.constant 0 : index
    %c0_502 = arith.constant 0 : index
    %c0_503 = arith.constant 0 : index
    %c0_504 = arith.constant 0 : index
    %799 = vector.load %arg18[%c0_501, %c0_502, %c0_503, %c0_504] : memref<2x6x6x32xf32, #tpu.memory_space<vmem>>, vector<2x6x4x32xf32>
    %800 = vector.extract_strided_slice %799 {offsets = [0, 0, 0, 0], sizes = [2, 4, 4, 32], strides = [1, 1, 1, 1]} : vector<2x6x4x32xf32> to vector<2x4x4x32xf32>
    %c0_505 = arith.constant 0 : index
    %c0_506 = arith.constant 0 : index
    %c0_507 = arith.constant 0 : index
    %801 = vector.load %arg8[%c0_505, %c0_506, %c0_507] : memref<3x3x32xf32, #tpu.memory_space<vmem>>, vector<1x1x32xf32>
    %802 = vector.shape_cast %801 : vector<1x1x32xf32> to vector<1x1x1x32xf32>
    %803 = vector.broadcast %802 : vector<1x1x1x32xf32> to vector<2x4x4x32xf32>
    %804 = arith.mulf %800, %803 : vector<2x4x4x32xf32>
    %805 = arith.addf %798, %804 : vector<2x4x4x32xf32>
    %806 = vector.extract_strided_slice %799 {offsets = [0, 1, 0, 0], sizes = [2, 4, 4, 32], strides = [1, 1, 1, 1]} : vector<2x6x4x32xf32> to vector<2x4x4x32xf32>
    %c1_508 = arith.constant 1 : index
    %c0_509 = arith.constant 0 : index
    %c0_510 = arith.constant 0 : index
    %807 = vector.load %arg8[%c1_508, %c0_509, %c0_510] : memref<3x3x32xf32, #tpu.memory_space<vmem>>, vector<1x1x32xf32>
    %808 = vector.shape_cast %807 : vector<1x1x32xf32> to vector<1x1x1x32xf32>
    %809 = vector.broadcast %808 : vector<1x1x1x32xf32> to vector<2x4x4x32xf32>
    %810 = arith.mulf %806, %809 : vector<2x4x4x32xf32>
    %811 = arith.addf %805, %810 : vector<2x4x4x32xf32>
    %812 = vector.extract_strided_slice %799 {offsets = [0, 2, 0, 0], sizes = [2, 4, 4, 32], strides = [1, 1, 1, 1]} : vector<2x6x4x32xf32> to vector<2x4x4x32xf32>
    %c2_511 = arith.constant 2 : index
    %c0_512 = arith.constant 0 : index
    %c0_513 = arith.constant 0 : index
    %813 = vector.load %arg8[%c2_511, %c0_512, %c0_513] : memref<3x3x32xf32, #tpu.memory_space<vmem>>, vector<1x1x32xf32>
    %814 = vector.shape_cast %813 : vector<1x1x32xf32> to vector<1x1x1x32xf32>
    %815 = vector.broadcast %814 : vector<1x1x1x32xf32> to vector<2x4x4x32xf32>
    %816 = arith.mulf %812, %815 : vector<2x4x4x32xf32>
    %817 = arith.addf %811, %816 : vector<2x4x4x32xf32>
    %c0_514 = arith.constant 0 : index
    %c0_515 = arith.constant 0 : index
    %c1_516 = arith.constant 1 : index
    %c0_517 = arith.constant 0 : index
    %818 = vector.load %arg18[%c0_514, %c0_515, %c1_516, %c0_517] : memref<2x6x6x32xf32, #tpu.memory_space<vmem>>, vector<2x6x4x32xf32>
    %819 = vector.extract_strided_slice %818 {offsets = [0, 0, 0, 0], sizes = [2, 4, 4, 32], strides = [1, 1, 1, 1]} : vector<2x6x4x32xf32> to vector<2x4x4x32xf32>
    %c0_518 = arith.constant 0 : index
    %c1_519 = arith.constant 1 : index
    %c0_520 = arith.constant 0 : index
    %820 = vector.load %arg8[%c0_518, %c1_519, %c0_520] : memref<3x3x32xf32, #tpu.memory_space<vmem>>, vector<1x1x32xf32>
    %821 = vector.shape_cast %820 : vector<1x1x32xf32> to vector<1x1x1x32xf32>
    %822 = vector.broadcast %821 : vector<1x1x1x32xf32> to vector<2x4x4x32xf32>
    %823 = arith.mulf %819, %822 : vector<2x4x4x32xf32>
    %824 = arith.addf %817, %823 : vector<2x4x4x32xf32>
    %825 = vector.extract_strided_slice %818 {offsets = [0, 1, 0, 0], sizes = [2, 4, 4, 32], strides = [1, 1, 1, 1]} : vector<2x6x4x32xf32> to vector<2x4x4x32xf32>
    %c1_521 = arith.constant 1 : index
    %c1_522 = arith.constant 1 : index
    %c0_523 = arith.constant 0 : index
    %826 = vector.load %arg8[%c1_521, %c1_522, %c0_523] : memref<3x3x32xf32, #tpu.memory_space<vmem>>, vector<1x1x32xf32>
    %827 = vector.shape_cast %826 : vector<1x1x32xf32> to vector<1x1x1x32xf32>
    %828 = vector.broadcast %827 : vector<1x1x1x32xf32> to vector<2x4x4x32xf32>
    %829 = arith.mulf %825, %828 : vector<2x4x4x32xf32>
    %830 = arith.addf %824, %829 : vector<2x4x4x32xf32>
    %831 = vector.extract_strided_slice %818 {offsets = [0, 2, 0, 0], sizes = [2, 4, 4, 32], strides = [1, 1, 1, 1]} : vector<2x6x4x32xf32> to vector<2x4x4x32xf32>
    %c2_524 = arith.constant 2 : index
    %c1_525 = arith.constant 1 : index
    %c0_526 = arith.constant 0 : index
    %832 = vector.load %arg8[%c2_524, %c1_525, %c0_526] : memref<3x3x32xf32, #tpu.memory_space<vmem>>, vector<1x1x32xf32>
    %833 = vector.shape_cast %832 : vector<1x1x32xf32> to vector<1x1x1x32xf32>
    %834 = vector.broadcast %833 : vector<1x1x1x32xf32> to vector<2x4x4x32xf32>
    %835 = arith.mulf %831, %834 : vector<2x4x4x32xf32>
    %836 = arith.addf %830, %835 : vector<2x4x4x32xf32>
    %c0_527 = arith.constant 0 : index
    %c0_528 = arith.constant 0 : index
    %c2_529 = arith.constant 2 : index
    %c0_530 = arith.constant 0 : index
    %837 = vector.load %arg18[%c0_527, %c0_528, %c2_529, %c0_530] : memref<2x6x6x32xf32, #tpu.memory_space<vmem>>, vector<2x6x4x32xf32>
    %838 = vector.extract_strided_slice %837 {offsets = [0, 0, 0, 0], sizes = [2, 4, 4, 32], strides = [1, 1, 1, 1]} : vector<2x6x4x32xf32> to vector<2x4x4x32xf32>
    %c0_531 = arith.constant 0 : index
    %c2_532 = arith.constant 2 : index
    %c0_533 = arith.constant 0 : index
    %839 = vector.load %arg8[%c0_531, %c2_532, %c0_533] : memref<3x3x32xf32, #tpu.memory_space<vmem>>, vector<1x1x32xf32>
    %840 = vector.shape_cast %839 : vector<1x1x32xf32> to vector<1x1x1x32xf32>
    %841 = vector.broadcast %840 : vector<1x1x1x32xf32> to vector<2x4x4x32xf32>
    %842 = arith.mulf %838, %841 : vector<2x4x4x32xf32>
    %843 = arith.addf %836, %842 : vector<2x4x4x32xf32>
    %844 = vector.extract_strided_slice %837 {offsets = [0, 1, 0, 0], sizes = [2, 4, 4, 32], strides = [1, 1, 1, 1]} : vector<2x6x4x32xf32> to vector<2x4x4x32xf32>
    %c1_534 = arith.constant 1 : index
    %c2_535 = arith.constant 2 : index
    %c0_536 = arith.constant 0 : index
    %845 = vector.load %arg8[%c1_534, %c2_535, %c0_536] : memref<3x3x32xf32, #tpu.memory_space<vmem>>, vector<1x1x32xf32>
    %846 = vector.shape_cast %845 : vector<1x1x32xf32> to vector<1x1x1x32xf32>
    %847 = vector.broadcast %846 : vector<1x1x1x32xf32> to vector<2x4x4x32xf32>
    %848 = arith.mulf %844, %847 : vector<2x4x4x32xf32>
    %849 = arith.addf %843, %848 : vector<2x4x4x32xf32>
    %850 = vector.extract_strided_slice %837 {offsets = [0, 2, 0, 0], sizes = [2, 4, 4, 32], strides = [1, 1, 1, 1]} : vector<2x6x4x32xf32> to vector<2x4x4x32xf32>
    %c2_537 = arith.constant 2 : index
    %c2_538 = arith.constant 2 : index
    %c0_539 = arith.constant 0 : index
    %851 = vector.load %arg8[%c2_537, %c2_538, %c0_539] : memref<3x3x32xf32, #tpu.memory_space<vmem>>, vector<1x1x32xf32>
    %852 = vector.shape_cast %851 : vector<1x1x32xf32> to vector<1x1x1x32xf32>
    %853 = vector.broadcast %852 : vector<1x1x1x32xf32> to vector<2x4x4x32xf32>
    %854 = arith.mulf %850, %853 : vector<2x4x4x32xf32>
    %855 = arith.addf %849, %854 : vector<2x4x4x32xf32>
    %c0_540 = arith.constant 0 : index
    %c0_541 = arith.constant 0 : index
    %856 = vector.load %arg9[%c0_540, %c0_541] : memref<1x32xf32, #tpu.memory_space<vmem>>, vector<1x32xf32>
    %857 = vector.shape_cast %856 : vector<1x32xf32> to vector<1x1x1x32xf32>
    %858 = vector.broadcast %857 : vector<1x1x1x32xf32> to vector<2x4x4x32xf32>
    %859 = arith.addf %855, %858 : vector<2x4x4x32xf32>
    %860 = vector.shape_cast %859 : vector<2x4x4x32xf32> to vector<32x32xf32>
    %c0_542 = arith.constant 0 : index
    %c0_543 = arith.constant 0 : index
    %861 = vector.load %arg10[%c0_542, %c0_543] : memref<32x64xf32, #tpu.memory_space<vmem>>, vector<32x64xf32>
    %cst_544 = arith.constant dense<0.000000e+00> : vector<32x64xf32>
    %862 = tpu.matmul %860, %861, %cst_544 {dimension_numbers = #tpu.dot_dimension_numbers<[1], [0], [0], [1], [0, 0, 1, 1], [], []>} : vector<32x32xf32>, vector<32x64xf32>, vector<32x64xf32> -> vector<32x64xf32>
    %c0_545 = arith.constant 0 : index
    %c0_546 = arith.constant 0 : index
    %863 = vector.load %arg11[%c0_545, %c0_546] : memref<1x64xf32, #tpu.memory_space<vmem>>, vector<1x64xf32>
    %864 = vector.broadcast %863 : vector<1x64xf32> to vector<32x64xf32>
    %865 = arith.mulf %862, %864 : vector<32x64xf32>
    %c0_547 = arith.constant 0 : index
    %c0_548 = arith.constant 0 : index
    %866 = vector.load %arg12[%c0_547, %c0_548] : memref<1x64xf32, #tpu.memory_space<vmem>>, vector<1x64xf32>
    %867 = vector.broadcast %866 : vector<1x64xf32> to vector<32x64xf32>
    %868 = arith.addf %865, %867 : vector<32x64xf32>
    %cst_549 = arith.constant 0.000000e+00 : f32
    %869 = vector.broadcast %cst_549 : f32 to vector<32x64xf32>
    %870 = arith.maximumf %868, %869 : vector<32x64xf32>
    %871 = vector.shape_cast %870 : vector<32x64xf32> to vector<2x4x4x64xf32>
    %872 = vector.shape_cast %871 : vector<2x4x4x64xf32> to vector<2x2x2x4x64xf32>
    %cst_550 = arith.constant dense<0xFF800000> : vector<2x2x4x64xf32>
    %873 = vector.multi_reduction <maximumf>, %872, %cst_550 [2] : vector<2x2x2x4x64xf32> to vector<2x2x4x64xf32>
    %874 = vector.shape_cast %873 : vector<2x2x4x64xf32> to vector<2x2x2x2x64xf32>
    %cst_551 = arith.constant dense<0xFF800000> : vector<2x2x2x64xf32>
    %875 = vector.multi_reduction <maximumf>, %874, %cst_551 [3] : vector<2x2x2x2x64xf32> to vector<2x2x2x64xf32>
    %876 = vector.extract_strided_slice %875 {offsets = [0, 0, 0, 0], sizes = [2, 1, 1, 64], strides = [1, 1, 1, 1]} : vector<2x2x2x64xf32> to vector<2x1x1x64xf32>
    %877 = vector.shape_cast %876 : vector<2x1x1x64xf32> to vector<2x64xf32>
    %878 = vector.extract_strided_slice %875 {offsets = [0, 0, 1, 0], sizes = [2, 1, 1, 64], strides = [1, 1, 1, 1]} : vector<2x2x2x64xf32> to vector<2x1x1x64xf32>
    %879 = vector.shape_cast %878 : vector<2x1x1x64xf32> to vector<2x64xf32>
    %880 = vector.extract_strided_slice %875 {offsets = [0, 1, 0, 0], sizes = [2, 1, 1, 64], strides = [1, 1, 1, 1]} : vector<2x2x2x64xf32> to vector<2x1x1x64xf32>
    %881 = vector.shape_cast %880 : vector<2x1x1x64xf32> to vector<2x64xf32>
    %882 = vector.extract_strided_slice %875 {offsets = [0, 1, 1, 0], sizes = [2, 1, 1, 64], strides = [1, 1, 1, 1]} : vector<2x2x2x64xf32> to vector<2x1x1x64xf32>
    %883 = vector.shape_cast %882 : vector<2x1x1x64xf32> to vector<2x64xf32>
    %884 = tpu.concatenate %877, %879, %881, %883 in 1 : vector<2x64xf32>, vector<2x64xf32>, vector<2x64xf32>, vector<2x64xf32> -> vector<2x256xf32>
    %c0_552 = arith.constant 0 : index
    %c0_553 = arith.constant 0 : index
    %885 = vector.load %arg13[%c0_552, %c0_553] : memref<256x128xf32, #tpu.memory_space<vmem>>, vector<256x128xf32>
    %cst_554 = arith.constant dense<0.000000e+00> : vector<2x128xf32>
    %886 = tpu.matmul %884, %885, %cst_554 {dimension_numbers = #tpu.dot_dimension_numbers<[1], [0], [0], [1], [0, 0, 1, 1], [], []>} : vector<2x256xf32>, vector<256x128xf32>, vector<2x128xf32> -> vector<2x128xf32>
    %c0_555 = arith.constant 0 : index
    %c0_556 = arith.constant 0 : index
    %887 = vector.load %arg14[%c0_555, %c0_556] : memref<1x128xf32, #tpu.memory_space<vmem>>, vector<1x128xf32>
    %888 = vector.broadcast %887 : vector<1x128xf32> to vector<2x128xf32>
    %889 = arith.addf %886, %888 : vector<2x128xf32>
    %c0_557 = arith.constant 0 : index
    %c0_558 = arith.constant 0 : index
    %890 = vector.load %arg15[%c0_557, %c0_558] : memref<2x128xf32, #tpu.memory_space<vmem>>, vector<2x128xf32>
    tpu.vector_store %arg15[%c0_557, %c0_558], %889 {strides = array<i32>} : memref<2x128xf32, #tpu.memory_space<vmem>>, vector<2x128xf32>,
    return
  }
  func.func @transform_0(%arg0: i32) -> (i32, i32, i32) {
    %c0_i32 = arith.constant 0 : i32
    %c0_i32_0 = arith.constant 0 : i32
    %c0_i32_1 = arith.constant 0 : i32
    return %arg0, %c0_i32, %c0_i32_0 : i32, i32, i32
  }
  func.func @transform_1(%arg0: i32) -> (i32, i32, i32) {
    %c0_i32 = arith.constant 0 : i32
    %c0_i32_0 = arith.constant 0 : i32
    %c0_i32_1 = arith.constant 0 : i32
    %c0_i32_2 = arith.constant 0 : i32
    return %c0_i32, %c0_i32_0, %c0_i32_1 : i32, i32, i32
  }
  func.func @transform_2(%arg0: i32) -> (i32, i32) {
    %c0_i32 = arith.constant 0 : i32
    %c0_i32_0 = arith.constant 0 : i32
    %c0_i32_1 = arith.constant 0 : i32
    return %c0_i32, %c0_i32_0 : i32, i32
  }
  func.func @transform_3(%arg0: i32) -> (i32, i32) {
    %c0_i32 = arith.constant 0 : i32
    %c0_i32_0 = arith.constant 0 : i32
    %c0_i32_1 = arith.constant 0 : i32
    return %c0_i32, %c0_i32_0 : i32, i32
  }
  func.func @transform_4(%arg0: i32) -> (i32, i32, i32, i32) {
    %c0_i32 = arith.constant 0 : i32
    %c0_i32_0 = arith.constant 0 : i32
    %c0_i32_1 = arith.constant 0 : i32
    %c0_i32_2 = arith.constant 0 : i32
    %c0_i32_3 = arith.constant 0 : i32
    return %c0_i32, %c0_i32_0, %c0_i32_1, %c0_i32_2 : i32, i32, i32, i32
  }
  func.func @transform_5(%arg0: i32) -> (i32, i32) {
    %c0_i32 = arith.constant 0 : i32
    %c0_i32_0 = arith.constant 0 : i32
    %c0_i32_1 = arith.constant 0 : i32
    return %c0_i32, %c0_i32_0 : i32, i32
  }
  func.func @transform_6(%arg0: i32) -> (i32, i32) {
    %c0_i32 = arith.constant 0 : i32
    %c0_i32_0 = arith.constant 0 : i32
    %c0_i32_1 = arith.constant 0 : i32
    return %c0_i32, %c0_i32_0 : i32, i32
  }
  func.func @transform_7(%arg0: i32) -> (i32, i32, i32) {
    %c0_i32 = arith.constant 0 : i32
    %c0_i32_0 = arith.constant 0 : i32
    %c0_i32_1 = arith.constant 0 : i32
    %c0_i32_2 = arith.constant 0 : i32
    return %c0_i32, %c0_i32_0, %c0_i32_1 : i32, i32, i32
  }
  func.func @transform_8(%arg0: i32) -> (i32, i32) {
    %c0_i32 = arith.constant 0 : i32
    %c0_i32_0 = arith.constant 0 : i32
    %c0_i32_1 = arith.constant 0 : i32
    return %c0_i32, %c0_i32_0 : i32, i32
  }
  func.func @transform_9(%arg0: i32) -> (i32, i32) {
    %c0_i32 = arith.constant 0 : i32
    %c0_i32_0 = arith.constant 0 : i32
    %c0_i32_1 = arith.constant 0 : i32
    return %c0_i32, %c0_i32_0 : i32, i32
  }
  func.func @transform_10(%arg0: i32) -> (i32, i32) {
    %c0_i32 = arith.constant 0 : i32
    %c0_i32_0 = arith.constant 0 : i32
    %c0_i32_1 = arith.constant 0 : i32
    return %c0_i32, %c0_i32_0 : i32, i32
  }
  func.func @transform_11(%arg0: i32) -> (i32, i32) {
    %c0_i32 = arith.constant 0 : i32
    %c0_i32_0 = arith.constant 0 : i32
    %c0_i32_1 = arith.constant 0 : i32
    return %c0_i32, %c0_i32_0 : i32, i32
  }
  func.func @transform_12(%arg0: i32) -> (i32, i32) {
    %c0_i32 = arith.constant 0 : i32
    %c0_i32_0 = arith.constant 0 : i32
    %c0_i32_1 = arith.constant 0 : i32
    return %c0_i32, %c0_i32_0 : i32, i32
  }
  func.func @transform_13(%arg0: i32) -> (i32, i32) {
    %c0_i32 = arith.constant 0 : i32
    %c0_i32_0 = arith.constant 0 : i32
    %c0_i32_1 = arith.constant 0 : i32
    return %c0_i32, %c0_i32_0 : i32, i32
  }
  func.func @transform_14(%arg0: i32) -> (i32, i32) {
    %c0_i32 = arith.constant 0 : i32
    %c0_i32_0 = arith.constant 0 : i32
    return %arg0, %c0_i32 : i32, i32
  }
}

</mosaic_0001>

<bundles_post_ra>
// kernel: compact_student_net.1
= control target key start
LH: loop header
LB: loop body
LE: loop exit
PB: predicated region body
PF: predicated region fallthrough
CT: control target
= control target key end

     0   :  { %vm48_vm0 = vcmask 139264   ;;  %s9742_s17 = smov 1   ;;  %vm53_vm1 = vcmask 7168   ;;  %vm61_vm2 = vcmask 146568   ;;  %vm56_vm3 = vcmask 1024   ;;  %s15250_s0 = inlined_call_operand.vmem [shape: f32[2,16,16], index: 0, kind: input, shape index: {}]   ;;  %s15251_s1 = inlined_call_operand.vmem [shape: f32[3,3,16], index: 1, kind: input, shape index: {}]   ;;  %s15252_s2 = inlined_call_operand.vmem [shape: f32[1,16], index: 2, kind: input, shape index: {}]   ;;  %s15253_s3 = inlined_call_operand.vmem [shape: f32[1,16], index: 3, kind: input, shape index: {}]   ;;  %s15254_s4 = inlined_call_operand.vmem [shape: f32[3,3,16,32], index: 4, kind: input, shape index: {}]   ;;  %s15255_s5 = inlined_call_operand.vmem [shape: f32[1,32], index: 5, kind: input, shape index: {}]   ;;  %s15256_s6 = inlined_call_operand.vmem [shape: f32[1,32], index: 6, kind: input, shape index: {}]   ;;  %s15257_s7 = inlined_call_operand.vmem [shape: f32[3,3,32], index: 7, kind: input, shape index: {}]   ;;  %s15258_s8 = inlined_call_operand.vmem [shape: f32[1,32], index: 8, kind: input, shape index: {}]   ;;  %s15259_s9 = inlined_call_operand.vmem [shape: f32[32,64], index: 9, kind: input, shape index: {}]   ;;  %s15260_s10 = inlined_call_operand.vmem [shape: f32[1,64], index: 10, kind: input, shape index: {}]   ;;  %s15261_s11 = inlined_call_operand.vmem [shape: f32[1,64], index: 11, kind: input, shape index: {}]   ;;  %s15262_s12 = inlined_call_operand.vmem [shape: f32[256,128], index: 12, kind: input, shape index: {}]   ;;  %s15263_s13 = inlined_call_operand.vmem [shape: f32[1,128], index: 13, kind: input, shape index: {}]   ;;  %s15264_s14 = inlined_call_operand.hbm [shape: f32[2,128], index: 14, kind: output, shape index: {}]  }
   0x1   :  { %v152_v0 = vld [vmem:[%s15250_s0] sm:$0xff]  ;;  %v154_v1 = vld [vmem:[%s15250_s0 + $0x10] sm:$0xff]  ;;  %v153_v2 = vld [vmem:[%s15250_s0 + $0x8] sm:$0xff]  ;;  %v15265_v3 = vmov 0.0   ;;  %vm64_vm4 = vcmask 140424  }
   0x2   :  { %160 = vrot.lane.b32.xlu0 %v152_v0, %s9742_s17  ;;  %164 = vrot.lane.b32.xlu1 %v154_v1, %s9742_s17  ;;  %49 = vst.msk [vmem:[#allocation2] sm:$0x1] %vm48_vm0, %v15265_v3  ;;  %50 = vst.msk [vmem:[#allocation2 + $0x18] sm:$0x1] %vm48_vm0, %v15265_v3  ;;  %v155_v4 = vld [vmem:[%s15250_s0 + $0x18] sm:$0xff] }
   0x3   :  { %55 = vst.msk [vmem:[#allocation2 + $0x8] sm:$0xff] %vm53_vm1, %v15265_v3  ;;  %59 = vst.msk [vmem:[#allocation2 + $0x20] sm:$0xff] %vm53_vm1, %v15265_v3 }
   0x4   :  { %51 = vst.msk [vmem:[#allocation2 + $0x11] sm:$0x1] %vm48_vm0, %v15265_v3  ;;  %52 = vst.msk [vmem:[#allocation2 + $0x29] sm:$0x1] %vm48_vm0, %v15265_v3 }
   0x5   :  { %19 = vsyncpa [#allocation6], 0  ;;  %54 = vst.msk [vmem:[#allocation2] sm:$0xff] %vm53_vm1, %v15265_v3  ;;  %v179_v5 = vlaneseq  ;;  %vm172_vm5 = vcmask 138248   ;;  %vm69_vm6 = vcmask 130048   ;;  %vm71_vm7 = vcmask 123904  }
   0x6   :  { %63 = vst.msk [vmem:[#allocation2 + $0x8] sm:$0xff] %vm61_vm2, %v15265_v3  ;;  %67 = vst.msk [vmem:[#allocation2 + $0x20] sm:$0xff] %vm61_vm2, %v15265_v3  ;;  %162 = vrot.lane.b32.xlu0 %v153_v2, %s9742_s17  ;;  %166 = vrot.lane.b32.xlu1 %v155_v4, %s9742_s17  ;;  %vm80_vm8 = vcmask 122880   ;;  %vm852_vm9 = vcmask 1041409   ;;  %vm854_vm10 = vcmask 1042434   ;;  %vm856_vm11 = vcmask 1043459  }
   0x7   :  { %58 = vst.msk [vmem:[#allocation2 + $0x18] sm:$0xff] %vm53_vm1, %v15265_v3  ;;  %v9860_v8 = vshrl.u32 %v179_v5, 7  ;;  %vm858_vm12 = vcmask 1044484   ;;  %vm860_vm13 = vcmask 1045509   ;;  %vm862_vm14 = vcmask 1046534  }
   0x8   :  { %57 = vst.msk [vmem:[#allocation2 + $0x10] sm:$0x3] %vm56_vm3, %v15265_v3  ;;  %60 = vst.msk [vmem:[#allocation2 + $0x28] sm:$0x3] %vm56_vm3, %v15265_v3  ;;  %vm864_vm15 = vcmask 1047559   ;;  %vm121_vm0 = vcmask 259072  }
   0x9   :  { %62 = vst.msk [vmem:[#allocation2] sm:$0xff] %vm61_vm2, %v15265_v3  ;;  %66 = vst.msk [vmem:[#allocation2 + $0x18] sm:$0xff] %vm61_vm2, %v15265_v3  ;;  %v9863_v11 = vsub.s32 1, %v9860_v8  ;;  %v9866_v12 = vsub.s32 0, %v9860_v8  ;;  %v9875_v16 = vsub.s32 2, %v9860_v8  ;;  %v9894_v22 = vsub.s32 3, %v9860_v8 }
   0xa   :  { %65 = vst.msk [vmem:[#allocation2 + $0x10] sm:$0x3] %vm64_vm4, %v15265_v3  ;;  %68 = vst.msk [vmem:[#allocation2 + $0x28] sm:$0x3] %vm64_vm4, %v15265_v3  ;;  %vm127_vm1 = vcmask 253952   ;;  %vm7467_vm2 = vcmask 261120  }
   0xb   :  { %70 = vst.msk [vmem:[#allocation3] sm:$0xff] %vm69_vm6, %v15265_v3  ;;  %73 = vst.msk [vmem:[#allocation3 + $0xa0] sm:$0xff] %vm69_vm6, %v15265_v3  ;;  %vm7668_vm3 = vcmask 254976   ;;  %vm7958_vm4 = vcmask 257024  }
   0xc   :  { %76 = vst.msk [vmem:[#allocation3 + $0x90] sm:$0xff] %vm69_vm6, %v15265_v3  ;;  %78 = vst.msk [vmem:[#allocation3 + $0x130] sm:$0xff] %vm69_vm6, %v15265_v3 }
  0x74   :  { %v161_v6 = vpop.permute.xlu0 %160  ;;  %v165_v7 = vpop.permute.xlu1 %164 }
  0x75   :  { %173 = vst.msk [vmem:[#allocation2 + $0x1] sm:$0xff] %vm172_vm5, %v161_v6  ;;  %175 = vst.msk [vmem:[#allocation2 + $0x19] sm:$0xff] %vm172_vm5, %v165_v7 }
  0x78   :  { %v163_v9 = vpop.permute.xlu0 %162  ;;  %v167_v10 = vpop.permute.xlu1 %166 }
  0x79   :  { %174 = vst.msk [vmem:[#allocation2 + $0x9] sm:$0xff] %vm172_vm5, %v163_v9  ;;  %176 = vst.msk [vmem:[#allocation2 + $0x21] sm:$0xff] %vm172_vm5, %v167_v10  ;;  %vm8356_vm5 = vcmask 519168  }
  0x7c   :  { %v177_v13 = vld [vmem:[#allocation2] sm:$0xf]  ;;  %v1570_v25 = vld [vmem:[#allocation2 + $0x4] sm:$0xf] }
  0x7d   :  { %v9869_v14 = vrot.slane %v177_v13, %v9863_v11  ;;  %v9872_v15 = vrot.slane %v177_v13, %v9866_v12  ;;  %v878_v17 = vld [vmem:[#allocation2 + $0x2] sm:$0xf]  ;;  %v9883_v19 = vrot.slane %v177_v13, %v9875_v16  ;;  %v9902_v24 = vrot.slane %v177_v13, %v9894_v22 }
  0x7e   :  { %v9880_v18 = vrot.slane %v878_v17, %v9866_v12  ;;  %v9888_v20 = vrot.slane %v878_v17, %v9875_v16  ;;  %v9891_v21 = vrot.slane %v878_v17, %v9863_v11  ;;  %v9899_v23 = vrot.slane %v878_v17, %v9894_v22 }
  0x7f   :  { %195 = vbcast.lane.b32.xlu1 %v9869_v14, 256  ;;  %184 = vbcast.lane.b32.xlu0 %v9872_v15, 256  ;;  %v9911_v26 = vrot.slane %v1570_v25, %v9866_v12  ;;  %v9916_v27 = vrot.slane %v1570_v25, %v9875_v16  ;;  %v9919_v28 = vrot.slane %v1570_v25, %v9863_v11 }
  0x80   :  { %v2262_v29 = vld [vmem:[#allocation2 + $0x6] sm:$0xf]  ;;  %v9943_v33 = vrot.slane %v1570_v25, %v9894_v22  ;;  %v3646_v39 = vld [vmem:[#allocation2 + $0xa] sm:$0xf] }
  0x81   :  { %v9928_v30 = vrot.slane %v2262_v29, %v9866_v12  ;;  %v9933_v31 = vrot.slane %v2262_v29, %v9875_v16  ;;  %v9936_v32 = vrot.slane %v2262_v29, %v9863_v11  ;;  %v9948_v34 = vrot.slane %v2262_v29, %v9894_v22  ;;  %v2954_v35 = vld [vmem:[#allocation2 + $0x8] sm:$0xf]  ;;  %v10058_v61 = vld [vmem:[#allocation2 + $0xc] sm:$0xf] }
  0x82   :  { %v9961_v36 = vrot.slane %v2954_v35, %v9863_v11  ;;  %v9964_v37 = vrot.slane %v2954_v35, %v9866_v12  ;;  %v9969_v38 = vrot.slane %v2954_v35, %v9875_v16  ;;  %v9980_v40 = vrot.slane %v3646_v39, %v9866_v12 }
  0x83   :  { %885 = vbcast.lane.b32.xlu1 %v9880_v18, 256  ;;  %206 = vbcast.lane.b32.xlu0 %v9883_v19, 256  ;;  %15518 = vst [vmem:[#allocation8_spill] sm:$0xff] %v9948_v34  ;;  %v9985_v41 = vrot.slane %v3646_v39, %v9875_v16  ;;  %v9988_v42 = vrot.slane %v3646_v39, %v9863_v11 }
  0x84   :  { %15519 = vst [vmem:[#allocation9_spill] sm:$0xff] %v9961_v36  ;;  %15520 = vst [vmem:[#allocation10_spill] sm:$0xff] %v9964_v37  ;;  %v9997_v43 = vrot.slane %v2954_v35, %v9894_v22  ;;  %v10026_v50 = vrot.slane %v3646_v39, %v9894_v22  ;;  %v10068_v0 = vrot.slane %v10058_v61, %v9863_v11  ;;  %v5030_v35 = vld [vmem:[#allocation2 + $0xe] sm:$0xf] }
  0x85   :  { %15521 = vst [vmem:[#allocation11_spill] sm:$0xff] %v9969_v38  ;;  %15522 = vst [vmem:[#allocation12_spill] sm:$0xff] %v9980_v40  ;;  %v10072_v1 = vrot.slane %v10058_v61, %v9866_v12  ;;  %v10082_v5 = vrot.slane %v10058_v61, %v9875_v16 }
  0x86   :  { %15523 = vst [vmem:[#allocation13_spill] sm:$0xff] %v9985_v41  ;;  %15524 = vst [vmem:[#allocation14_spill] sm:$0xff] %v9988_v42 }
  0x87   :  { %907 = vbcast.lane.b32.xlu1 %v9888_v20, 256  ;;  %896 = vbcast.lane.b32.xlu0 %v9891_v21, 256  ;;  %15525 = vst [vmem:[#allocation15_spill] sm:$0xff] %v9997_v43  ;;  %15526 = vst [vmem:[#allocation16_spill] sm:$0xff] %v10026_v50 }
  0x88   :  { %15532 = vst [vmem:[#allocation22_spill] sm:$0xff] %v10068_v0  ;;  %15533 = vst [vmem:[#allocation23_spill] sm:$0xff] %v10072_v1 }
  0x89   :  { %15536 = vst [vmem:[#allocation26_spill] sm:$0xff] %v10082_v5 }
  0x8b   :  { %918 = vbcast.lane.b32.xlu1 %v9899_v23, 256  ;;  %217 = vbcast.lane.b32.xlu0 %v9902_v24, 256 }
  0x8f   :  { %199 = vbcast.lane.b32.xlu1 %v9869_v14, 264  ;;  %188 = vbcast.lane.b32.xlu0 %v9872_v15, 264 }
  0x93   :  { %334 = vbcast.lane.b32.xlu1 %v9872_v15, 257  ;;  %210 = vbcast.lane.b32.xlu0 %v9883_v19, 264 }
  0x97   :  { %1577 = vbcast.lane.b32.xlu1 %v9911_v26, 256  ;;  %342 = vbcast.lane.b32.xlu0 %v9869_v14, 257 }
  0x9b   :  { %1599 = vbcast.lane.b32.xlu1 %v9916_v27, 256  ;;  %1588 = vbcast.lane.b32.xlu0 %v9919_v28, 256 }
  0x9f   :  { %900 = vbcast.lane.b32.xlu1 %v9891_v21, 264  ;;  %889 = vbcast.lane.b32.xlu0 %v9880_v18, 264 }
  0xa3   :  { %1033 = vbcast.lane.b32.xlu1 %v9880_v18, 257  ;;  %911 = vbcast.lane.b32.xlu0 %v9888_v20, 264 }
  0xa7   :  { %2269 = vbcast.lane.b32.xlu1 %v9928_v30, 256  ;;  %1041 = vbcast.lane.b32.xlu0 %v9891_v21, 257 }
  0xab   :  { %2291 = vbcast.lane.b32.xlu1 %v9933_v31, 256  ;;  %2280 = vbcast.lane.b32.xlu0 %v9936_v32, 256 }
  0xaf   :  { %350 = vbcast.lane.b32.xlu1 %v9883_v19, 257  ;;  %221 = vbcast.lane.b32.xlu0 %v9902_v24, 264 }
  0xb3   :  { %922 = vbcast.lane.b32.xlu1 %v9899_v23, 264  ;;  %1610 = vbcast.lane.b32.xlu0 %v9943_v33, 256 }
  0xb7   :  { %2302 = vbcast.lane.b32.xlu1 %v9948_v34, 256  ;;  %1049 = vbcast.lane.b32.xlu0 %v9888_v20, 257 }
  0xbb   :  { %346 = vbcast.lane.b32.xlu1 %v9869_v14, 265  ;;  %338 = vbcast.lane.b32.xlu0 %v9872_v15, 265 }
  0xbf   :  { %1581 = vbcast.lane.b32.xlu1 %v9911_v26, 264  ;;  %358 = vbcast.lane.b32.xlu0 %v9902_v24, 257 }
  0xc3   :  { %1603 = vbcast.lane.b32.xlu1 %v9916_v27, 264  ;;  %1592 = vbcast.lane.b32.xlu0 %v9919_v28, 264 }
  0xc7   :  { %1733 = vbcast.lane.b32.xlu1 %v9919_v28, 257  ;;  %1725 = vbcast.lane.b32.xlu0 %v9911_v26, 257 }
  0xcb   :  { %2972 = vbcast.lane.b32.xlu1 %v9961_v36, 256  ;;  %2961 = vbcast.lane.b32.xlu0 %v9964_v37, 256 }
  0xcf   :  { %1037 = vbcast.lane.b32.xlu1 %v9880_v18, 265  ;;  %2983 = vbcast.lane.b32.xlu0 %v9969_v38, 256 }
  0xd3   :  { %1057 = vbcast.lane.b32.xlu1 %v9899_v23, 257  ;;  %1045 = vbcast.lane.b32.xlu0 %v9891_v21, 265 }
  0xd7   :  { %2284 = vbcast.lane.b32.xlu1 %v9936_v32, 264  ;;  %2273 = vbcast.lane.b32.xlu0 %v9928_v30, 264 }
  0xdb   :  { %2417 = vbcast.lane.b32.xlu1 %v9928_v30, 257  ;;  %2295 = vbcast.lane.b32.xlu0 %v9933_v31, 264 }
  0xdf   :  { %3653 = vbcast.lane.b32.xlu1 %v9980_v40, 256  ;;  %2425 = vbcast.lane.b32.xlu0 %v9936_v32, 257 }
  0xe3   :  { %3675 = vbcast.lane.b32.xlu1 %v9985_v41, 256  ;;  %3664 = vbcast.lane.b32.xlu0 %v9988_v42, 256 }
  0xe7   :  { %461 = vbcast.lane.b32.xlu1 %v9872_v15, 258  ;;  %354 = vbcast.lane.b32.xlu0 %v9883_v19, 265 }
  0xeb   :  { %1614 = vbcast.lane.b32.xlu1 %v9943_v33, 264  ;;  %469 = vbcast.lane.b32.xlu0 %v9869_v14, 258 }
  0xef   :  { %2994 = vbcast.lane.b32.xlu1 %v9997_v43, 256  ;;  %1741 = vbcast.lane.b32.xlu0 %v9916_v27, 257 }
  0xf1   :  { %v10001_v44 = vpop.permute.xlu1 %195  ;;  %v10003_v45 = vpop.permute.xlu0 %184 }
  0xf3   :  { %1160 = vbcast.lane.b32.xlu1 %v9880_v18, 258  ;;  %1053 = vbcast.lane.b32.xlu0 %v9888_v20, 265 }
  0xf5   :  { %v10015_v46 = vpop.permute.xlu1 %885  ;;  %v10017_v47 = vpop.permute.xlu0 %206 }
  0xf7   :  { %2306 = vbcast.lane.b32.xlu1 %v9948_v34, 264  ;;  %1168 = vbcast.lane.b32.xlu0 %v9891_v21, 258 }
  0xf9   :  { %v10021_v48 = vpop.permute.xlu1 %907  ;;  %v10023_v49 = vpop.permute.xlu0 %896 }
  0xfb   :  { %3686 = vbcast.lane.b32.xlu1 %v10026_v50, 256  ;;  %2433 = vbcast.lane.b32.xlu0 %v9933_v31, 257 }
  0xfd   :  { %v10030_v51 = vpop.permute.xlu1 %918  ;;  %v10032_v52 = vpop.permute.xlu0 %217 }
  0xff   :  { %477 = vbcast.lane.b32.xlu1 %v9883_v19, 258  ;;  %362 = vbcast.lane.b32.xlu0 %v9902_v24, 265 }
 0x101   :  { %v10036_v53 = vpop.permute.xlu1 %199  ;;  %v10038_v54 = vpop.permute.xlu0 %188 }
 0x103   :  { %1737 = vbcast.lane.b32.xlu1 %v9919_v28, 265  ;;  %1729 = vbcast.lane.b32.xlu0 %v9911_v26, 265 }
 0x105   :  { %v10042_v55 = vpop.permute.xlu1 %334  ;;  %v10044_v56 = vpop.permute.xlu0 %210 }
 0x107   :  { %2965 = vbcast.lane.b32.xlu1 %v9964_v37, 264  ;;  %1749 = vbcast.lane.b32.xlu0 %v9943_v33, 257 }
 0x109   :  { %v10048_v57 = vpop.permute.xlu1 %1577  ;;  %v10050_v58 = vpop.permute.xlu0 %342 }
 0x10a   :  { %15527 = vst [vmem:[#allocation17_spill] sm:$0xff] %v10048_v57 }
 0x10b   :  { %2987 = vbcast.lane.b32.xlu1 %v9969_v38, 264  ;;  %2976 = vbcast.lane.b32.xlu0 %v9961_v36, 264 }
 0x10d   :  { %v10054_v59 = vpop.permute.xlu1 %1599  ;;  %v10056_v60 = vpop.permute.xlu0 %1588 }
 0x10e   :  { %15528 = vst [vmem:[#allocation18_spill] sm:$0xff] %v10054_v59  ;;  %15529 = vst [vmem:[#allocation19_spill] sm:$0xff] %v10056_v60 }
 0x10f   :  { %3117 = vbcast.lane.b32.xlu1 %v9961_v36, 257  ;;  %3109 = vbcast.lane.b32.xlu0 %v9964_v37, 257 }
 0x111   :  { %v10062_v62 = vpop.permute.xlu1 %900  ;;  %v10064_v63 = vpop.permute.xlu0 %889 }
 0x112   :  { %15530 = vst [vmem:[#allocation20_spill] sm:$0xff] %v10062_v62  ;;  %15531 = vst [vmem:[#allocation21_spill] sm:$0xff] %v10064_v63  ;;  %v879_v62 = vld [vmem:[#allocation2 + $0x1a] sm:$0xf] }
 0x113   :  { %4356 = vbcast.lane.b32.xlu1 %v10068_v0, 256  ;;  %4345 = vbcast.lane.b32.xlu0 %v10072_v1, 256  ;;  %v10273_v59 = vrot.slane %v879_v62, %v9875_v16 }
 0x115   :  { %v10076_v2 = vpop.permute.xlu1 %1033  ;;  %v10078_v4 = vpop.permute.xlu0 %911  ;;  %15591 = vst [vmem:[#allocation80_spill] sm:$0xff] %v10273_v59 }
 0x116   :  { %15534 = vst [vmem:[#allocation24_spill] sm:$0xff] %v10076_v2  ;;  %15535 = vst [vmem:[#allocation25_spill] sm:$0xff] %v10078_v4 }
 0x117   :  { %1061 = vbcast.lane.b32.xlu1 %v9899_v23, 265  ;;  %4367 = vbcast.lane.b32.xlu0 %v10082_v5, 256 }
 0x119   :  { %v10086_v6 = vpop.permute.xlu1 %2269  ;;  %v10088_v7 = vpop.permute.xlu0 %1041 }
 0x11a   :  { %15537 = vst [vmem:[#allocation27_spill] sm:$0xff] %v10086_v6  ;;  %15538 = vst [vmem:[#allocation28_spill] sm:$0xff] %v10088_v7  ;;  %v10127_v6 = vrot.slane %v5030_v35, %v9863_v11 }
 0x11b   :  { %2421 = vbcast.lane.b32.xlu1 %v9928_v30, 265  ;;  %1176 = vbcast.lane.b32.xlu0 %v9888_v20, 258 }
 0x11c   :  { %15550 = vst [vmem:[#allocation40_spill] sm:$0xff] %v10127_v6 }
 0x11d   :  { %v10092_v9 = vpop.permute.xlu1 %2291  ;;  %v10094_v10 = vpop.permute.xlu0 %2280 }
 0x11e   :  { %15539 = vst [vmem:[#allocation29_spill] sm:$0xff] %v10092_v9  ;;  %15540 = vst [vmem:[#allocation30_spill] sm:$0xff] %v10094_v10  ;;  %v10115_v9 = vrot.slane %v5030_v35, %v9866_v12 }
 0x11f   :  { %2441 = vbcast.lane.b32.xlu1 %v9948_v34, 257  ;;  %2429 = vbcast.lane.b32.xlu0 %v9936_v32, 265 }
 0x120   :  { %15546 = vst [vmem:[#allocation36_spill] sm:$0xff] %v10115_v9 }
 0x121   :  { %v10098_v13 = vpop.permute.xlu1 %350  ;;  %v10100_v17 = vpop.permute.xlu0 %221 }
 0x122   :  { %15541 = vst [vmem:[#allocation31_spill] sm:$0xff] %v10100_v17  ;;  %v10124_v17 = vrot.slane %v5030_v35, %v9875_v16 }
 0x123   :  { %3668 = vbcast.lane.b32.xlu1 %v9988_v42, 264  ;;  %3657 = vbcast.lane.b32.xlu0 %v9980_v40, 264 }
 0x124   :  { %15549 = vst [vmem:[#allocation39_spill] sm:$0xff] %v10124_v17 }
 0x125   :  { %v10104_v25 = vpop.permute.xlu1 %922  ;;  %v10106_v29 = vpop.permute.xlu0 %1610 }
 0x126   :  { %15542 = vst [vmem:[#allocation32_spill] sm:$0xff] %v10104_v25  ;;  %15543 = vst [vmem:[#allocation33_spill] sm:$0xff] %v10106_v29 }
 0x127   :  { %3801 = vbcast.lane.b32.xlu1 %v9980_v40, 257  ;;  %3679 = vbcast.lane.b32.xlu0 %v9985_v41, 264 }
 0x129   :  { %v10110_v39 = vpop.permute.xlu1 %2302  ;;  %v10112_v3 = vpop.permute.xlu0 %1049 }
 0x12a   :  { %15544 = vst [vmem:[#allocation34_spill] sm:$0xff] %v10110_v39  ;;  %15545 = vst [vmem:[#allocation35_spill] sm:$0xff] %v10112_v3  ;;  %v15551_v39 = vmov 0.0  }
 0x12b   :  { %5037 = vbcast.lane.b32.xlu1 %v10115_v9, 256  ;;  %3809 = vbcast.lane.b32.xlu0 %v9988_v42, 257  ;;  %72 = vst.msk [vmem:[#allocation3 + $0x8] sm:$0x3] %vm71_vm7, %v15551_v39  ;;  %74 = vst.msk [vmem:[#allocation3 + $0xa8] sm:$0x3] %vm71_vm7, %v15551_v39 }
 0x12c   :  { %77 = vst.msk [vmem:[#allocation3 + $0x98] sm:$0x3] %vm71_vm7, %v15551_v39  ;;  %79 = vst.msk [vmem:[#allocation3 + $0x138] sm:$0x3] %vm71_vm7, %v15551_v39 }
 0x12d   :  { %v10119_v25 = vpop.permute.xlu1 %346  ;;  %v10121_v29 = vpop.permute.xlu0 %338  ;;  %82 = vst.msk [vmem:[#allocation3 + $0x10] sm:$0x1] %vm80_vm8, %v15551_v39  ;;  %81 = vst.msk [vmem:[#allocation3] sm:$0x1] %vm80_vm8, %v15551_v39 }
 0x12e   :  { %15547 = vst [vmem:[#allocation37_spill] sm:$0xff] %v10119_v25  ;;  %15548 = vst [vmem:[#allocation38_spill] sm:$0xff] %v10121_v29 }
 0x12f   :  { %5059 = vbcast.lane.b32.xlu1 %v10124_v17, 256  ;;  %5048 = vbcast.lane.b32.xlu0 %v10127_v6, 256  ;;  %83 = vst.msk [vmem:[#allocation3 + $0x20] sm:$0x1] %vm80_vm8, %v15551_v39  ;;  %84 = vst.msk [vmem:[#allocation3 + $0x30] sm:$0x1] %vm80_vm8, %v15551_v39 }
 0x130   :  { %85 = vst.msk [vmem:[#allocation3 + $0x40] sm:$0x1] %vm80_vm8, %v15551_v39  ;;  %86 = vst.msk [vmem:[#allocation3 + $0x50] sm:$0x1] %vm80_vm8, %v15551_v39 }
 0x131   :  { %v10139_v25 = vpop.permute.xlu1 %1581  ;;  %v10141_v3 = vpop.permute.xlu0 %358  ;;  %87 = vst.msk [vmem:[#allocation3 + $0x60] sm:$0x1] %vm80_vm8, %v15551_v39  ;;  %88 = vst.msk [vmem:[#allocation3 + $0x70] sm:$0x1] %vm80_vm8, %v15551_v39 }
 0x132   :  { %15552 = vst [vmem:[#allocation41_spill] sm:$0xff] %v10139_v25  ;;  %89 = vst.msk [vmem:[#allocation3 + $0x80] sm:$0x1] %vm80_vm8, %v15551_v39 }
 0x133   :  { %473 = vbcast.lane.b32.xlu1 %v9869_v14, 266  ;;  %465 = vbcast.lane.b32.xlu0 %v9872_v15, 266  ;;  %90 = vst.msk [vmem:[#allocation3 + $0x90] sm:$0x1] %vm80_vm8, %v15551_v39  ;;  %91 = vst.msk [vmem:[#allocation3 + $0xa0] sm:$0x1] %vm80_vm8, %v15551_v39 }
 0x134   :  { %92 = vst.msk [vmem:[#allocation3 + $0xb0] sm:$0x1] %vm80_vm8, %v15551_v39  ;;  %93 = vst.msk [vmem:[#allocation3 + $0xc0] sm:$0x1] %vm80_vm8, %v15551_v39 }
 0x135   :  { %v10145_v29 = vpop.permute.xlu1 %1603  ;;  %v10147_v7 = vpop.permute.xlu0 %1592  ;;  %94 = vst.msk [vmem:[#allocation3 + $0xd0] sm:$0x1] %vm80_vm8, %v15551_v39  ;;  %95 = vst.msk [vmem:[#allocation3 + $0xe0] sm:$0x1] %vm80_vm8, %v15551_v39 }
 0x136   :  { %15553 = vst [vmem:[#allocation42_spill] sm:$0xff] %v10145_v29  ;;  %15554 = vst [vmem:[#allocation43_spill] sm:$0xff] %v10147_v7 }
 0x137   :  { %1745 = vbcast.lane.b32.xlu1 %v9916_v27, 265  ;;  %485 = vbcast.lane.b32.xlu0 %v9902_v24, 258  ;;  %96 = vst.msk [vmem:[#allocation3 + $0xf0] sm:$0x1] %vm80_vm8, %v15551_v39  ;;  %97 = vst.msk [vmem:[#allocation3 + $0x100] sm:$0x1] %vm80_vm8, %v15551_v39 }
 0x138   :  { %98 = vst.msk [vmem:[#allocation3 + $0x110] sm:$0x1] %vm80_vm8, %v15551_v39  ;;  %99 = vst.msk [vmem:[#allocation3 + $0x120] sm:$0x1] %vm80_vm8, %v15551_v39 }
 0x139   :  { %v10151_v4 = vpop.permute.xlu1 %1733  ;;  %v10153_v10 = vpop.permute.xlu0 %1725  ;;  %100 = vst.msk [vmem:[#allocation3 + $0x130] sm:$0x1] %vm80_vm8, %v15551_v39  ;;  %101 = vst.msk [vmem:[#allocation3 + $0x9] sm:$0x1] %vm80_vm8, %v15551_v39 }
 0x13a   :  { %15555 = vst [vmem:[#allocation44_spill] sm:$0xff] %v10151_v4  ;;  %15556 = vst [vmem:[#allocation45_spill] sm:$0xff] %v10153_v10  ;;  %v10169_v4 = vrot.slane %v10058_v61, %v9894_v22 }
 0x13b   :  { %1860 = vbcast.lane.b32.xlu1 %v9919_v28, 258  ;;  %1852 = vbcast.lane.b32.xlu0 %v9911_v26, 258  ;;  %102 = vst.msk [vmem:[#allocation3 + $0x19] sm:$0x1] %vm80_vm8, %v15551_v39  ;;  %103 = vst.msk [vmem:[#allocation3 + $0x29] sm:$0x1] %vm80_vm8, %v15551_v39 }
 0x13c   :  { %15561 = vst [vmem:[#allocation50_spill] sm:$0xff] %v10169_v4  ;;  %104 = vst.msk [vmem:[#allocation3 + $0x39] sm:$0x1] %vm80_vm8, %v15551_v39 }
 0x13d   :  { %v10157_v25 = vpop.permute.xlu1 %2972  ;;  %v10159_v14 = vpop.permute.xlu0 %2961  ;;  %105 = vst.msk [vmem:[#allocation3 + $0x49] sm:$0x1] %vm80_vm8, %v15551_v39  ;;  %106 = vst.msk [vmem:[#allocation3 + $0x59] sm:$0x1] %vm80_vm8, %v15551_v39 }
 0x13e   :  { %15557 = vst [vmem:[#allocation46_spill] sm:$0xff] %v10157_v25  ;;  %15558 = vst [vmem:[#allocation47_spill] sm:$0xff] %v10159_v14 }
 0x13f   :  { %3125 = vbcast.lane.b32.xlu1 %v9969_v38, 257  ;;  %2998 = vbcast.lane.b32.xlu0 %v9997_v43, 264  ;;  %107 = vst.msk [vmem:[#allocation3 + $0x69] sm:$0x1] %vm80_vm8, %v15551_v39  ;;  %108 = vst.msk [vmem:[#allocation3 + $0x79] sm:$0x1] %vm80_vm8, %v15551_v39 }
 0x140   :  { %109 = vst.msk [vmem:[#allocation3 + $0x89] sm:$0x1] %vm80_vm8, %v15551_v39  ;;  %110 = vst.msk [vmem:[#allocation3 + $0x99] sm:$0x1] %vm80_vm8, %v15551_v39 }
 0x141   :  { %v10163_v15 = vpop.permute.xlu1 %1037  ;;  %v10165_v29 = vpop.permute.xlu0 %2983  ;;  %111 = vst.msk [vmem:[#allocation3 + $0xa9] sm:$0x1] %vm80_vm8, %v15551_v39  ;;  %112 = vst.msk [vmem:[#allocation3 + $0xb9] sm:$0x1] %vm80_vm8, %v15551_v39 }
 0x142   :  { %15559 = vst [vmem:[#allocation48_spill] sm:$0xff] %v10163_v15  ;;  %15560 = vst [vmem:[#allocation49_spill] sm:$0xff] %v10165_v29 }
 0x143   :  { %1164 = vbcast.lane.b32.xlu1 %v9880_v18, 266  ;;  %4378 = vbcast.lane.b32.xlu0 %v10169_v4, 256  ;;  %113 = vst.msk [vmem:[#allocation3 + $0xc9] sm:$0x1] %vm80_vm8, %v15551_v39  ;;  %114 = vst.msk [vmem:[#allocation3 + $0xd9] sm:$0x1] %vm80_vm8, %v15551_v39 }
 0x144   :  { %115 = vst.msk [vmem:[#allocation3 + $0xe9] sm:$0x1] %vm80_vm8, %v15551_v39  ;;  %116 = vst.msk [vmem:[#allocation3 + $0xf9] sm:$0x1] %vm80_vm8, %v15551_v39 }
 0x145   :  { %v10173_v10 = vpop.permute.xlu1 %1057  ;;  %v10175_v25 = vpop.permute.xlu0 %1045  ;;  %117 = vst.msk [vmem:[#allocation3 + $0x109] sm:$0x1] %vm80_vm8, %v15551_v39  ;;  %118 = vst.msk [vmem:[#allocation3 + $0x119] sm:$0x1] %vm80_vm8, %v15551_v39 }
 0x146   :  { %15562 = vst [vmem:[#allocation51_spill] sm:$0xff] %v10173_v10  ;;  %15563 = vst [vmem:[#allocation52_spill] sm:$0xff] %v10175_v25 }
 0x147   :  { %1184 = vbcast.lane.b32.xlu1 %v9899_v23, 258  ;;  %1172 = vbcast.lane.b32.xlu0 %v9891_v21, 266  ;;  %v10196_v21 = vrot.slane %v5030_v35, %v9894_v22  ;;  %119 = vst.msk [vmem:[#allocation3 + $0x129] sm:$0x1] %vm80_vm8, %v15551_v39  ;;  %120 = vst.msk [vmem:[#allocation3 + $0x139] sm:$0x1] %vm80_vm8, %v15551_v39 }
 0x149   :  { %v10179_v14 = vpop.permute.xlu1 %2284  ;;  %v10181_v15 = vpop.permute.xlu0 %2273  ;;  %15570 = vst [vmem:[#allocation59_spill] sm:$0xff] %v10196_v21 }
 0x14a   :  { %15564 = vst [vmem:[#allocation53_spill] sm:$0xff] %v10179_v14  ;;  %15565 = vst [vmem:[#allocation54_spill] sm:$0xff] %v10181_v15  ;;  %v10198_v15 = vld [vmem:[#allocation2 + $0x18] sm:$0xf] }
 0x14b   :  { %2544 = vbcast.lane.b32.xlu1 %v9928_v30, 258  ;;  %2437 = vbcast.lane.b32.xlu0 %v9933_v31, 265  ;;  %v10208_v14 = vrot.slane %v10198_v15, %v9863_v11 }
 0x14d   :  { %v10185_v61 = vpop.permute.xlu1 %2417  ;;  %v10187_v18 = vpop.permute.xlu0 %2295  ;;  %15573 = vst [vmem:[#allocation62_spill] sm:$0xff] %v10208_v14 }
 0x14e   :  { %15566 = vst [vmem:[#allocation55_spill] sm:$0xff] %v10185_v61  ;;  %15567 = vst [vmem:[#allocation56_spill] sm:$0xff] %v10187_v18 }
 0x14f   :  { %3690 = vbcast.lane.b32.xlu1 %v10026_v50, 264  ;;  %2552 = vbcast.lane.b32.xlu0 %v9936_v32, 258 }
 0x151   :  { %v10191_v25 = vpop.permute.xlu1 %3653  ;;  %v10193_v29 = vpop.permute.xlu0 %2425 }
 0x152   :  { %15568 = vst [vmem:[#allocation57_spill] sm:$0xff] %v10191_v25  ;;  %15569 = vst [vmem:[#allocation58_spill] sm:$0xff] %v10193_v29  ;;  %v10212_v29 = vrot.slane %v10198_v15, %v9866_v12 }
 0x153   :  { %5070 = vbcast.lane.b32.xlu1 %v10196_v21, 256  ;;  %3817 = vbcast.lane.b32.xlu0 %v9985_v41, 257 }
 0x154   :  { %15574 = vst [vmem:[#allocation63_spill] sm:$0xff] %v10212_v29 }
 0x155   :  { %v10202_v61 = vpop.permute.xlu1 %3675  ;;  %v10204_v18 = vpop.permute.xlu0 %3664 }
 0x156   :  { %15571 = vst [vmem:[#allocation60_spill] sm:$0xff] %v10202_v61  ;;  %15572 = vst [vmem:[#allocation61_spill] sm:$0xff] %v10204_v18  ;;  %v10222_v61 = vrot.slane %v10198_v15, %v9875_v16 }
 0x157   :  { %239 = vbcast.lane.b32.xlu1 %v10208_v14, 256  ;;  %228 = vbcast.lane.b32.xlu0 %v10212_v29, 256 }
 0x158   :  { %15576 = vst [vmem:[#allocation65_spill] sm:$0xff] %v10222_v61 }
 0x159   :  { %v10216_v35 = vpop.permute.xlu1 %461  ;;  %v10218_v25 = vpop.permute.xlu0 %354 }
 0x15a   :  { %15575 = vst [vmem:[#allocation64_spill] sm:$0xff] %v10218_v25 }
 0x15b   :  { %481 = vbcast.lane.b32.xlu1 %v9883_v19, 266  ;;  %250 = vbcast.lane.b32.xlu0 %v10222_v61, 256 }
 0x15d   :  { %v10226_v18 = vpop.permute.xlu1 %1614  ;;  %v10228_v10 = vpop.permute.xlu0 %469 }
 0x15e   :  { %15577 = vst [vmem:[#allocation66_spill] sm:$0xff] %v10226_v18 }
 0x15f   :  { %1868 = vbcast.lane.b32.xlu1 %v9916_v27, 258  ;;  %1753 = vbcast.lane.b32.xlu0 %v9943_v33, 265 }
 0x161   :  { %v10232_v7 = vpop.permute.xlu1 %2994  ;;  %v10234_v2 = vpop.permute.xlu0 %1741 }
 0x162   :  { %15578 = vst [vmem:[#allocation67_spill] sm:$0xff] %v10232_v7  ;;  %15579 = vst [vmem:[#allocation68_spill] sm:$0xff] %v10234_v2 }
 0x163   :  { %3121 = vbcast.lane.b32.xlu1 %v9961_v36, 265  ;;  %3113 = vbcast.lane.b32.xlu0 %v9964_v37, 265 }
 0x165   :  { %v10238_v25 = vpop.permute.xlu1 %1160  ;;  %v10240_v19 = vpop.permute.xlu0 %1053 }
 0x166   :  { %15580 = vst [vmem:[#allocation69_spill] sm:$0xff] %v10238_v25  ;;  %15581 = vst [vmem:[#allocation70_spill] sm:$0xff] %v10240_v19 }
 0x167   :  { %4349 = vbcast.lane.b32.xlu1 %v10072_v1, 264  ;;  %3133 = vbcast.lane.b32.xlu0 %v9997_v43, 257 }
 0x169   :  { %v10244_v18 = vpop.permute.xlu1 %2306  ;;  %v10246_v63 = vpop.permute.xlu0 %1168 }
 0x16a   :  { %15582 = vst [vmem:[#allocation71_spill] sm:$0xff] %v10244_v18  ;;  %15583 = vst [vmem:[#allocation72_spill] sm:$0xff] %v10246_v63  ;;  %v10261_v18 = vrot.slane %v879_v62, %v9863_v11  ;;  %v10264_v63 = vrot.slane %v879_v62, %v9866_v12 }
 0x16b   :  { %4371 = vbcast.lane.b32.xlu1 %v10082_v5, 264  ;;  %4360 = vbcast.lane.b32.xlu0 %v10068_v0, 264 }
 0x16c   :  { %15587 = vst [vmem:[#allocation76_spill] sm:$0xff] %v10261_v18  ;;  %15588 = vst [vmem:[#allocation77_spill] sm:$0xff] %v10264_v63 }
 0x16d   :  { %v10250_v2 = vpop.permute.xlu1 %3686  ;;  %v10252_v7 = vpop.permute.xlu0 %2433 }
 0x16e   :  { %15584 = vst [vmem:[#allocation73_spill] sm:$0xff] %v10250_v2  ;;  %15585 = vst [vmem:[#allocation74_spill] sm:$0xff] %v10252_v7 }
 0x16f   :  { %4501 = vbcast.lane.b32.xlu1 %v10068_v0, 257  ;;  %4493 = vbcast.lane.b32.xlu0 %v10072_v1, 257 }
 0x171   :  { %v10256_v19 = vpop.permute.xlu1 %477  ;;  %v10258_v25 = vpop.permute.xlu0 %362 }
 0x172   :  { %15586 = vst [vmem:[#allocation75_spill] sm:$0xff] %v10258_v25 }
 0x173   :  { %940 = vbcast.lane.b32.xlu1 %v10261_v18, 256  ;;  %929 = vbcast.lane.b32.xlu0 %v10264_v63, 256 }
 0x175   :  { %v10268_v7 = vpop.permute.xlu1 %1737  ;;  %v10270_v2 = vpop.permute.xlu0 %1729 }
 0x176   :  { %15589 = vst [vmem:[#allocation78_spill] sm:$0xff] %v10268_v7  ;;  %15590 = vst [vmem:[#allocation79_spill] sm:$0xff] %v10270_v2 }
 0x177   :  { %1180 = vbcast.lane.b32.xlu1 %v9888_v20, 266  ;;  %951 = vbcast.lane.b32.xlu0 %v10273_v59, 256 }
 0x179   :  { %v10277_v25 = vpop.permute.xlu1 %2965  ;;  %v10279_v57 = vpop.permute.xlu0 %1749 }
 0x17a   :  { %15592 = vst [vmem:[#allocation81_spill] sm:$0xff] %v10277_v25  ;;  %15593 = vst [vmem:[#allocation82_spill] sm:$0xff] %v10279_v57 }
 0x17b   :  { %2560 = vbcast.lane.b32.xlu1 %v9933_v31, 258  ;;  %2445 = vbcast.lane.b32.xlu0 %v9948_v34, 265 }
 0x17d   :  { %v10283_v60 = vpop.permute.xlu1 %2987  ;;  %v10285_v7 = vpop.permute.xlu0 %2976 }
 0x17e   :  { %15594 = vst [vmem:[#allocation83_spill] sm:$0xff] %v10283_v60  ;;  %15595 = vst [vmem:[#allocation84_spill] sm:$0xff] %v10285_v7 }
 0x17f   :  { %3813 = vbcast.lane.b32.xlu1 %v9988_v42, 265  ;;  %3805 = vbcast.lane.b32.xlu0 %v9980_v40, 265 }
 0x181   :  { %v10289_v2 = vpop.permute.xlu1 %3117  ;;  %v10291_v20 = vpop.permute.xlu0 %3109 }
 0x182   :  { %15596 = vst [vmem:[#allocation85_spill] sm:$0xff] %v10289_v2  ;;  %15597 = vst [vmem:[#allocation86_spill] sm:$0xff] %v10291_v20 }
 0x183   :  { %5041 = vbcast.lane.b32.xlu1 %v10115_v9, 264  ;;  %3825 = vbcast.lane.b32.xlu0 %v10026_v50, 257 }
 0x185   :  { %v10295_v25 = vpop.permute.xlu1 %4356  ;;  %v10297_v57 = vpop.permute.xlu0 %4345 }
 0x186   :  { %15598 = vst [vmem:[#allocation87_spill] sm:$0xff] %v10295_v25  ;;  %15599 = vst [vmem:[#allocation88_spill] sm:$0xff] %v10297_v57  ;;  %v10313_v25 = vrot.slane %v10198_v15, %v9894_v22 }
 0x187   :  { %5063 = vbcast.lane.b32.xlu1 %v10124_v17, 264  ;;  %5052 = vbcast.lane.b32.xlu0 %v10127_v6, 264 }
 0x188   :  { %15603 = vst [vmem:[#allocation92_spill] sm:$0xff] %v10313_v25 }
 0x189   :  { %v10301_v7 = vpop.permute.xlu1 %1061  ;;  %v10303_v60 = vpop.permute.xlu0 %4367 }
 0x18a   :  { %15600 = vst [vmem:[#allocation89_spill] sm:$0xff] %v10301_v7  ;;  %15601 = vst [vmem:[#allocation90_spill] sm:$0xff] %v10303_v60 }
 0x18b   :  { %5193 = vbcast.lane.b32.xlu1 %v10127_v6, 257  ;;  %5185 = vbcast.lane.b32.xlu0 %v10115_v9, 257 }
 0x18d   :  { %v10307_v2 = vpop.permute.xlu1 %2421  ;;  %v10309_v20 = vpop.permute.xlu0 %1176 }
 0x18e   :  { %15602 = vst [vmem:[#allocation91_spill] sm:$0xff] %v10307_v2 }
 0x18f   :  { %489 = vbcast.lane.b32.xlu1 %v9902_v24, 266  ;;  %261 = vbcast.lane.b32.xlu0 %v10313_v25, 256 }
 0x191   :  { %v10317_v57 = vpop.permute.xlu1 %2441  ;;  %v10319_v7 = vpop.permute.xlu0 %2429 }
 0x192   :  { %15604 = vst [vmem:[#allocation93_spill] sm:$0xff] %v10317_v57  ;;  %15605 = vst [vmem:[#allocation94_spill] sm:$0xff] %v10319_v7 }
 0x193   :  { %1864 = vbcast.lane.b32.xlu1 %v9919_v28, 266  ;;  %1856 = vbcast.lane.b32.xlu0 %v9911_v26, 266 }
 0x195   :  { %v10323_v60 = vpop.permute.xlu1 %3668  ;;  %v10325_v2 = vpop.permute.xlu0 %3657 }
 0x196   :  { %15606 = vst [vmem:[#allocation95_spill] sm:$0xff] %v10323_v60  ;;  %15607 = vst [vmem:[#allocation96_spill] sm:$0xff] %v10325_v2  ;;  %v1571_v60 = vld [vmem:[#allocation2 + $0x1c] sm:$0xf] }
 0x197   :  { %3129 = vbcast.lane.b32.xlu1 %v9969_v38, 265  ;;  %1876 = vbcast.lane.b32.xlu0 %v9943_v33, 258 }
 0x199   :  { %v10329_v15 = vpop.permute.xlu1 %3801  ;;  %v10331_v24 = vpop.permute.xlu0 %3679 }
 0x19a   :  { %15608 = vst [vmem:[#allocation97_spill] sm:$0xff] %v10329_v15  ;;  %15609 = vst [vmem:[#allocation98_spill] sm:$0xff] %v10331_v24  ;;  %v10346_v15 = vrot.slane %v879_v62, %v9894_v22 }
 0x19b   :  { %3244 = vbcast.lane.b32.xlu1 %v9961_v36, 258  ;;  %3236 = vbcast.lane.b32.xlu0 %v9964_v37, 258  ;;  %v10558_v36 = vld [vmem:[%s15251_s1 + $0x5] ss:$0 sm:$0xff] }
 0x19c   :  { %15614 = vst [vmem:[#allocation103_spill] sm:$0xff] %v10346_v15 }
 0x19d   :  { %v10335_v7 = vpop.permute.xlu1 %5037  ;;  %v10337_v28 = vpop.permute.xlu0 %3809 }
 0x19e   :  { %15610 = vst [vmem:[#allocation99_spill] sm:$0xff] %v10335_v7  ;;  %15611 = vst [vmem:[#allocation100_spill] sm:$0xff] %v10337_v28 }
 0x19f   :  { %4509 = vbcast.lane.b32.xlu1 %v10082_v5, 257  ;;  %4382 = vbcast.lane.b32.xlu0 %v10169_v4, 264 }
 0x1a1   :  { %v10341_v26 = vpop.permute.xlu1 %5059  ;;  %v10343_v2 = vpop.permute.xlu0 %5048 }
 0x1a2   :  { %15612 = vst [vmem:[#allocation101_spill] sm:$0xff] %v10341_v26  ;;  %15613 = vst [vmem:[#allocation102_spill] sm:$0xff] %v10343_v2 }
 0x1a3   :  { %1188 = vbcast.lane.b32.xlu1 %v9899_v23, 266  ;;  %962 = vbcast.lane.b32.xlu0 %v10346_v15, 256 }
 0x1a5   :  { %v10350_v24 = vpop.permute.xlu1 %473  ;;  %v10352_v7 = vpop.permute.xlu0 %465 }
 0x1a6   :  { %15615 = vst [vmem:[#allocation104_spill] sm:$0xff] %v10350_v24 }
 0x1a7   :  { %2556 = vbcast.lane.b32.xlu1 %v9936_v32, 266  ;;  %2548 = vbcast.lane.b32.xlu0 %v9928_v30, 266 }
 0x1a9   :  { %v10356_v28 = vpop.permute.xlu1 %1745  ;;  %v10358_v26 = vpop.permute.xlu0 %485 }
 0x1aa   :  { %15616 = vst [vmem:[#allocation105_spill] sm:$0xff] %v10356_v28 }
 0x1ab   :  { %3821 = vbcast.lane.b32.xlu1 %v9985_v41, 265  ;;  %2568 = vbcast.lane.b32.xlu0 %v9948_v34, 258 }
 0x1ad   :  { %v10362_v62 = vpop.permute.xlu1 %1860  ;;  %v10364_v23 = vpop.permute.xlu0 %1852 }
 0x1ae   :  { %15617 = vst [vmem:[#allocation106_spill] sm:$0xff] %v10362_v62  ;;  %15618 = vst [vmem:[#allocation107_spill] sm:$0xff] %v10364_v23  ;;  %v10471_v23 = vrot.slane %v1571_v60, %v9866_v12 }
 0x1af   :  { %3936 = vbcast.lane.b32.xlu1 %v9988_v42, 258  ;;  %3928 = vbcast.lane.b32.xlu0 %v9980_v40, 258 }
 0x1b0   :  { %15626 = vst [vmem:[#allocation115_spill] sm:$0xff] %v10471_v23 }
 0x1b1   :  { %v10368_v32 = vpop.permute.xlu1 %3125  ;;  %v10370_v30 = vpop.permute.xlu0 %2998 }
 0x1b2   :  { %15619 = vst [vmem:[#allocation108_spill] sm:$0xff] %v10368_v32  ;;  %15620 = vst [vmem:[#allocation109_spill] sm:$0xff] %v10370_v30 }
 0x1b3   :  { %5201 = vbcast.lane.b32.xlu1 %v10124_v17, 257  ;;  %5074 = vbcast.lane.b32.xlu0 %v10196_v21, 264 }
 0x1b5   :  { %v10454_v30 = vpop.permute.xlu1 %1164  ;;  %v10456_v32 = vpop.permute.xlu0 %4378 }
 0x1b6   :  { %15621 = vst [vmem:[#allocation110_spill] sm:$0xff] %v10454_v30  ;;  %15622 = vst [vmem:[#allocation111_spill] sm:$0xff] %v10456_v32  ;;  %v9744_v32 = vmov 1983009808   ;;  %v2955_v30 = vld [vmem:[#allocation2 + $0x20] sm:$0xf] }
 0x1b7   :  { %243 = vbcast.lane.b32.xlu1 %v10208_v14, 264  ;;  %232 = vbcast.lane.b32.xlu0 %v10212_v29, 264  ;;  %v642_v62 = vunpack.c.l.s4 %v9744_v32  ;;  %v10494_v32 = vld [vmem:[%s15251_s1 + $0x4] ss:$0 sm:$0xff] }
 0x1b9   :  { %v10460_v28 = vpop.permute.xlu1 %1184  ;;  %v10462_v2 = vpop.permute.xlu0 %1172 }
 0x1ba   :  { %15623 = vst [vmem:[#allocation112_spill] sm:$0xff] %v10462_v2  ;;  %v10510_v2 = vld [vmem:[%s15251_s1 + $0x8] ss:$0 sm:$0xff] }
 0x1bb   :  { %366 = vbcast.lane.b32.xlu1 %v10212_v29, 257  ;;  %254 = vbcast.lane.b32.xlu0 %v10222_v61, 264  ;;  %v10480_v29 = vrot.slane %v1571_v60, %v9875_v16 }
 0x1bd   :  { %v10466_v39 = vpop.permute.xlu1 %2544  ;;  %v10468_v57 = vpop.permute.xlu0 %2437  ;;  %15629 = vst [vmem:[#allocation118_spill] sm:$0xff] %v10480_v29 }
 0x1be   :  { %15624 = vst [vmem:[#allocation113_spill] sm:$0xff] %v10466_v39  ;;  %15625 = vst [vmem:[#allocation114_spill] sm:$0xff] %v10468_v57  ;;  %v10483_v39 = vrot.slane %v1571_v60, %v9863_v11  ;;  %v643_v57 = vunpack.c.0.s8 %v642_v62  ;;  %v2263_v62 = vld [vmem:[#allocation2 + $0x1e] sm:$0xf] }
 0x1bf   :  { %1621 = vbcast.lane.b32.xlu1 %v10471_v23, 256  ;;  %374 = vbcast.lane.b32.xlu0 %v10208_v14, 257  ;;  %v10489_v23 = vld [vmem:[%s15251_s1] ss:$0 sm:$0xff]  ;;  %v294_v14 = vmul.f32 %v10494_v32, %v10001_v44  ;;  %v10553_v37 = vrot.slane %v2263_v62, %v9894_v22 }
 0x1c0   :  { %15630 = vst [vmem:[#allocation119_spill] sm:$0xff] %v10483_v39  ;;  %v272_v42 = vmul.f32 %v10489_v23, %v10003_v45  ;;  %v10524_v45 = vld [vmem:[%s15251_s1 + $0x1] ss:$0 sm:$0xff] }
 0x1c1   :  { %v10475_v17 = vpop.permute.xlu1 %3690  ;;  %v10477_v40 = vpop.permute.xlu0 %2552  ;;  %v403_v5 = vmul.f32 %v10524_v45, %v10050_v58  ;;  %15640 = vst [vmem:[#allocation129_spill] sm:$0xff] %v10553_v37 }
 0x1c2   :  { %15627 = vst [vmem:[#allocation116_spill] sm:$0xff] %v10475_v17  ;;  %15628 = vst [vmem:[#allocation117_spill] sm:$0xff] %v10477_v40  ;;  %v302_v24 = vadd.f32 %v294_v14, %v272_v42  ;;  %v401_v42 = vmul.f32 %v10524_v45, %v10042_v55  ;;  %v424_v14 = vmul.f32 %v10558_v36, %v10098_v13 }
 0x1c3   :  { %1643 = vbcast.lane.b32.xlu1 %v10480_v29, 256  ;;  %1632 = vbcast.lane.b32.xlu0 %v10483_v39, 256  ;;  %v296_v29 = vmul.f32 %v10494_v32, %v10017_v47  ;;  %v318_v39 = vmul.f32 %v10510_v2, %v10032_v52  ;;  %v10537_v52 = vrot.slane %v2263_v62, %v9863_v11 }
 0x1c5   :  { %v10497_v40 = vpop.permute.xlu1 %5070  ;;  %v10499_v17 = vpop.permute.xlu0 %3817  ;;  %15638 = vst [vmem:[#allocation127_spill] sm:$0xff] %v10537_v52 }
 0x1c6   :  { %15631 = vst [vmem:[#allocation120_spill] sm:$0xff] %v10497_v40  ;;  %15632 = vst [vmem:[#allocation121_spill] sm:$0xff] %v10499_v17  ;;  %v10514_v40 = vsub.s32 %v643_v57, %v9860_v8  ;;  %v274_v17 = vmul.f32 %v10489_v23, %v10001_v44  ;;  %v10531_v8 = vrot.slane %v2263_v62, %v9866_v12  ;;  %v8753_v57 = vld [vmem:[%s15254_s4 + $0x30] sm:$0xff] }
 0x1c7   :  { %3137 = vbcast.lane.b32.xlu1 %v9997_v43, 265  ;;  %1872 = vbcast.lane.b32.xlu0 %v9916_v27, 266  ;;  %v10534_v44 = vrot.slane %v2263_v62, %v9875_v16  ;;  %v10540_v27 = vrot.slane %v1571_v60, %v9894_v22  ;;  %v316_v43 = vmul.f32 %v10510_v2, %v10017_v47  ;;  %v3647_v60 = vld [vmem:[#allocation2 + $0x22] sm:$0xf] }
 0x1c8   :  { %15633 = vst [vmem:[#allocation122_spill] sm:$0xff] %v10514_v40  ;;  %15636 = vst [vmem:[#allocation125_spill] sm:$0xff] %v10531_v8  ;;  %v10565_v47 = vrot.slane %v2955_v30, %v9866_v12  ;;  %v10588_v55 = vrot.slane %v3647_v60, %v9866_v12 }
 0x1c9   :  { %v10526_v34 = vpop.permute.xlu1 %239  ;;  %v10528_v15 = vpop.permute.xlu0 %228  ;;  %15637 = vst [vmem:[#allocation126_spill] sm:$0xff] %v10534_v44  ;;  %15639 = vst [vmem:[#allocation128_spill] sm:$0xff] %v10540_v27 }
 0x1ca   :  { %15634 = vst [vmem:[#allocation123_spill] sm:$0xff] %v10526_v34  ;;  %15635 = vst [vmem:[#allocation124_spill] sm:$0xff] %v10528_v15  ;;  %v8754_v15 = vld [vmem:[%s15254_s4 + $0x38] sm:$0xff]  ;;  %v304_v34 = vadd.f32 %v296_v29, %v274_v17  ;;  %v10562_v17 = vrot.slane %v2955_v30, %v9863_v11  ;;  %v10568_v29 = vrot.slane %v2955_v30, %v9875_v16 }
 0x1cb   :  { %4497 = vbcast.lane.b32.xlu1 %v10072_v1, 265  ;;  %15642 = vst [vmem:[#allocation131_spill] sm:$0xff] %v10565_v47  ;;  %3252 = vbcast.lane.b32.xlu0 %v9969_v38, 258  ;;  %v9409_v37 = vpack.c.bf16 %v8754_v15, %v8753_v57  ;;  %v4339_v1 = vld [vmem:[#allocation2 + $0x24] sm:$0xf]  ;;  %15647 = vst [vmem:[#allocation136_spill] sm:$0xff] %v10588_v55  ;;  %v10594_v15 = vrot.slane %v2955_v30, %v9894_v22 }
 0x1cc   :  { %15641 = vst [vmem:[#allocation130_spill] sm:$0xff] %v10562_v17  ;;  %15643 = vst [vmem:[#allocation132_spill] sm:$0xff] %v10568_v29  ;;  %v326_v62 = vadd.f32 %v318_v39, %v304_v34  ;;  %v10578_v17 = vld [vmem:[%s15251_s1 + $0x9] ss:$0 sm:$0xff]  ;;  %v10585_v34 = vrot.slane %v3647_v60, %v9863_v11  ;;  %v10591_v39 = vrot.slane %v3647_v60, %v9875_v16 }
 0x1cd   :  { %v10580_v47 = vpop.permute.xlu1 %481  ;;  %v10582_v27 = vpop.permute.xlu0 %250  ;;  %15649 = vst [vmem:[#allocation138_spill] sm:$0xff] %v10594_v15  ;;  %v324_v57 = vadd.f32 %v316_v43, %v302_v24  ;;  %v422_v38 = vmul.f32 %v10558_v36, %v10050_v58  ;;  %9410 = vmatprep.subr.bf16.mxu1 %v9409_v37  ;;  %v10609_v43 = vrot.slane %v3647_v60, %v9894_v22 }
 0x1ce   :  { %15644 = vst [vmem:[#allocation133_spill] sm:$0xff] %v10580_v47  ;;  %15645 = vst [vmem:[#allocation134_spill] sm:$0xff] %v10582_v27  ;;  %v411_v29 = vadd.f32 %v403_v5, %v326_v62  ;;  %v445_v27 = vmul.f32 %v10578_v17, %v10141_v3  ;;  %v5031_v47 = vld [vmem:[#allocation2 + $0x26] sm:$0xf]  ;;  %9412 = vmatpush3.bf16.msra.mxu1 %v9409_v37  ;;  %v10612_v58 = vrot.slane %v4339_v1, %v9863_v11 }
 0x1cf   :  { %15646 = vst [vmem:[#allocation135_spill] sm:$0xff] %v10585_v34  ;;  %15648 = vst [vmem:[#allocation137_spill] sm:$0xff] %v10591_v39  ;;  %v994_v34 = vmul.f32 %v10494_v32, %v10023_v49  ;;  %v10605_v39 = vld [vmem:[%s15251_s1 + $0x2] ss:$0 sm:$0xff]  ;;  %4517 = vbcast.lane.b32.xlu1 %v10169_v4, 257  ;;  %v409_v3 = vadd.f32 %v401_v42, %v324_v57  ;;  %v443_v24 = vmul.f32 %v10578_v17, %v10098_v13 }
 0x1d0   :  { %15650 = vst [vmem:[#allocation139_spill] sm:$0xff] %v10609_v43  ;;  %15651 = vst [vmem:[#allocation140_spill] sm:$0xff] %v10612_v58  ;;  %v432_v5 = vadd.f32 %v424_v14, %v411_v29  ;;  %v530_v30 = vmul.f32 %v10605_v39, %v10228_v10  ;;  %4505 = vbcast.lane.b32.xlu0 %v10068_v0, 265  ;;  %v973_v62 = vmul.f32 %v10489_v23, %v10015_v46  ;;  %v10624_v37 = vld [vmem:[%s15251_s1 + $0x6] ss:$0 sm:$0xff] }
 0x1d1   :  { %v10626_v60 = vpop.permute.xlu1 %1868  ;;  %v10628_v42 = vpop.permute.xlu0 %1753  ;;  %v10631_v29 = vrot.slane %v4339_v1, %v9866_v12  ;;  %v10634_v13 = vrot.slane %v4339_v1, %v9875_v16  ;;  %v10637_v14 = vrot.slane %v5031_v47, %v9863_v11  ;;  %v430_v57 = vadd.f32 %v422_v38, %v409_v3  ;;  %v10650_v11 = vld [vmem:[%s15251_s1 + $0xa] ss:$0 sm:$0xff] }
 0x1d2   :  { %15652 = vst [vmem:[#allocation141_spill] sm:$0xff] %v10628_v42  ;;  %v453_v46 = vadd.f32 %v445_v27, %v432_v5  ;;  %v528_v58 = vmul.f32 %v10605_v39, %v10216_v35  ;;  %v551_v43 = vmul.f32 %v10624_v37, %v10256_v19  ;;  %v996_v15 = vmul.f32 %v10494_v32, %v10021_v48 }
 0x1d3   :  { %15653 = vst [vmem:[#allocation142_spill] sm:$0xff] %v10631_v29  ;;  %15654 = vst [vmem:[#allocation143_spill] sm:$0xff] %v10634_v13  ;;  %v975_v29 = vmul.f32 %v10489_v23, %v10023_v49  ;;  %v1002_v42 = vadd.f32 %v994_v34, %v973_v62  ;;  %944 = vbcast.lane.b32.xlu1 %v10261_v18, 264  ;;  %v10654_v38 = vrot.slane %v5031_v47, %v9866_v12 }
 0x1d4   :  { %15655 = vst [vmem:[#allocation144_spill] sm:$0xff] %v10637_v14  ;;  %v451_v35 = vadd.f32 %v443_v24, %v430_v57  ;;  %v538_v27 = vadd.f32 %v530_v30, %v453_v46  ;;  %v549_v3 = vmul.f32 %v10624_v37, %v10228_v10  ;;  %v572_v5 = vmul.f32 %v10650_v11, %v10358_v26  ;;  %v8824_v46 = vld [vmem:[%s15254_s4 + $0x48] sm:$0xff] }
 0x1d5   :  { %15656 = vst [vmem:[#allocation145_spill] sm:$0xff] %v10654_v38  ;;  %933 = vbcast.lane.b32.xlu0 %v10264_v63, 264  ;;  %v1015_v49 = vmul.f32 %v10510_v2, %v10021_v48  ;;  %v1017_v34 = vmul.f32 %v10510_v2, %v10030_v51  ;;  %v295_v12 = vmul.f32 %v10494_v32, %v10036_v53  ;;  %v10667_v62 = vpop.permute.xlu1 %3121  ;;  %v10669_v24 = vpop.permute.xlu0 %3113  ;;  %v8823_v51 = vld [vmem:[%s15254_s4 + $0x40] sm:$0xff] }
 0x1d6   :  { %15657 = vst [vmem:[#allocation146_spill] sm:$0xff] %v10667_v62  ;;  %15658 = vst [vmem:[#allocation147_spill] sm:$0xff] %v10669_v24  ;;  %v10672_v10 = vrot.slane %v5031_v47, %v9875_v16  ;;  %v273_v26 = vmul.f32 %v10489_v23, %v10038_v54  ;;  %v536_v30 = vadd.f32 %v528_v58, %v451_v35  ;;  %v15676_v62 = vld [vmem:[#allocation29_spill] sm:$0xff] }
 0x1d7   :  { %v559_v57 = vadd.f32 %v551_v43, %v538_v27  ;;  %v570_v48 = vmul.f32 %v10650_v11, %v10256_v19  ;;  %v1004_v38 = vadd.f32 %v996_v15, %v975_v29  ;;  %v1023_v14 = vadd.f32 %v1015_v49, %v1002_v42  ;;  %1065 = vbcast.lane.b32.xlu1 %v10264_v63, 257  ;;  %v15662_v29 = vld [vmem:[#allocation19_spill] sm:$0xff] }
 0x1d8   :  { %15659 = vst [vmem:[#allocation148_spill] sm:$0xff] %v10672_v10  ;;  %v10686_v16 = vrot.slane %v4339_v1, %v9894_v22  ;;  %v10689_v54 = vrot.slane %v5031_v47, %v9894_v22  ;;  %v297_v19 = vmul.f32 %v10494_v32, %v10044_v56  ;;  %v317_v43 = vmul.f32 %v10510_v2, %v10044_v56 }
 0x1d9   :  { %v557_v58 = vadd.f32 %v549_v3, %v536_v30  ;;  %v580_v35 = vadd.f32 %v572_v5, %v559_v57  ;;  %955 = vbcast.lane.b32.xlu0 %v10273_v59, 264  ;;  %v1025_v15 = vadd.f32 %v1017_v34, %v1004_v38  ;;  %v275_v42 = vmul.f32 %v10489_v23, %v10036_v53  ;;  %v10700_v27 = vpop.permute.xlu1 %4349  ;;  %v10702_v22 = vpop.permute.xlu0 %3133  ;;  %v15666_v3 = vld [vmem:[#allocation18_spill] sm:$0xff]  ;;  %v15667_v53 = vld [vmem:[#allocation20_spill] sm:$0xff]  ;;  %v15668_v57 = vld [vmem:[#allocation21_spill] sm:$0xff] }
 0x1da   :  { %15660 = vst [vmem:[#allocation149_spill] sm:$0xff] %v10686_v16  ;;  %15661 = vst [vmem:[#allocation150_spill] sm:$0xff] %v10689_v54  ;;  %v1686_v1 = vmul.f32 %v10494_v32, %v15662_v29  ;;  %v9425_v47 = vpack.c.bf16 %v8824_v46, %v8823_v51  ;;  %v303_v49 = vadd.f32 %v295_v12, %v273_v26  ;;  %v15665_v54 = vld [vmem:[#allocation17_spill] sm:$0xff] }
 0x1db   :  { %15663 = vst [vmem:[#allocation19_spill] sm:$0xff] %v10700_v27  ;;  %15664 = vst [vmem:[#allocation151_spill] sm:$0xff] %v10702_v22  ;;  %v1665_v56 = vmul.f32 %v10489_v23, %v15665_v54  ;;  %v1688_v5 = vmul.f32 %v10494_v32, %v15666_v3  ;;  %v578_v30 = vadd.f32 %v570_v48, %v557_v58  ;;  %v10717_v12 = vld [vmem:[%s15252_s2] ss:$0 sm:$0xff]  ;;  %2313 = vbcast.lane.b32.xlu1 %v10531_v8, 256  ;;  %v15669_v58 = vld [vmem:[#allocation24_spill] sm:$0xff] }
 0x1dc   :  { %v1667_v38 = vmul.f32 %v10489_v23, %v15662_v29  ;;  %v995_v34 = vmul.f32 %v10494_v32, %v15667_v53  ;;  %v974_v16 = vmul.f32 %v10489_v23, %v15668_v57  ;;  %9426 = vmatprep.subr.bf16.mxu0 %v9425_v47  ;;  %v305_v26 = vadd.f32 %v297_v19, %v275_v42  ;;  %v15670_v57 = vld [vmem:[#allocation30_spill] sm:$0xff]  ;;  %v15673_v19 = vld [vmem:[#allocation25_spill] sm:$0xff]  ;;  %v15674_v42 = vld [vmem:[#allocation28_spill] sm:$0xff] }
 0x1dd   :  { %v325_v51 = vadd.f32 %v317_v43, %v303_v49  ;;  %v595_v48 = vmul.f32 %v10717_v12, %v580_v35  ;;  %1073 = vbcast.lane.b32.xlu0 %v10261_v18, 257  ;;  %9428 = vmatpush3.bf16.msra.mxu0 %v9425_v47  ;;  %v1707_v46 = vmul.f32 %v10510_v2, %v15666_v3  ;;  %v10728_v13 = vpop.permute.xlu1 %4371  ;;  %v10730_v22 = vpop.permute.xlu0 %4360  ;;  %v10746_v27 = vld [vmem:[%s15253_s3] ss:$0 sm:$0xff] }
 0x1de   :  { %v1694_v54 = vadd.f32 %v1686_v1, %v1665_v56  ;;  %v1100_v29 = vmul.f32 %v10524_v45, %v15669_v58  ;;  %v2378_v10 = vmul.f32 %v10494_v32, %v15670_v57  ;;  %15671 = vst [vmem:[#allocation17_spill] sm:$0xff] %v10728_v13  ;;  %15672 = vst [vmem:[#allocation18_spill] sm:$0xff] %v10730_v22  ;;  %v15675_v58 = vld [vmem:[#allocation27_spill] sm:$0xff] }
 0x1df   :  { %v997_v43 = vmul.f32 %v10494_v32, %v15673_v19  ;;  %v1016_v35 = vmul.f32 %v10510_v2, %v15673_v19  ;;  %v1102_v47 = vmul.f32 %v10524_v45, %v15674_v42  ;;  %v593_v1 = vmul.f32 %v10717_v12, %v578_v30  ;;  %2335 = vbcast.lane.b32.xlu1 %v10534_v44, 256 }
 0x1e0   :  { %v1696_v49 = vadd.f32 %v1688_v5, %v1667_v38  ;;  %v976_v56 = vmul.f32 %v10489_v23, %v15667_v53  ;;  %v1003_v3 = vadd.f32 %v995_v34, %v974_v16  ;;  %v2357_v13 = vmul.f32 %v10489_v23, %v15675_v58  ;;  %v15677_v34 = vld [vmem:[#allocation31_spill] sm:$0xff] }
 0x1e1   :  { %v1121_v19 = vmul.f32 %v10558_v36, %v15674_v42  ;;  %v2380_v5 = vmul.f32 %v10494_v32, %v15676_v62  ;;  %v2359_v30 = vmul.f32 %v10489_v23, %v15670_v57  ;;  %v610_v16 = vadd.f32 %v10746_v27, %v595_v48  ;;  %2324 = vbcast.lane.b32.xlu0 %v10537_v52, 256  ;;  %v10759_v24 = vpop.permute.xlu1 %4501  ;;  %v10761_v55 = vpop.permute.xlu0 %4493  ;;  %v15680_v52 = vld [vmem:[#allocation32_spill] sm:$0xff] }
 0x1e2   :  { %v1108_v38 = vadd.f32 %v1100_v29, %v1023_v14  ;;  %v2386_v53 = vadd.f32 %v2378_v10, %v2357_v13  ;;  %v319_v58 = vmul.f32 %v10510_v2, %v15677_v34  ;;  %v1715_v22 = vadd.f32 %v1707_v46, %v1694_v54  ;;  %15678 = vst [vmem:[#allocation20_spill] sm:$0xff] %v10759_v24  ;;  %v15681_v14 = vld [vmem:[#allocation33_spill] sm:$0xff]  ;;  %v15682_v46 = vld [vmem:[#allocation38_spill] sm:$0xff]  ;;  %v15704_v24 = vld [vmem:[#allocation64_spill] sm:$0xff] }
 0x1e3   :  { %15679 = vst [vmem:[#allocation21_spill] sm:$0xff] %v10761_v55  ;;  %v1005_v42 = vadd.f32 %v997_v43, %v976_v56  ;;  %v10763_v44 = vadd.f32 %v1016_v35, %v1003_v3  ;;  %v1110_v8 = vadd.f32 %v1102_v47, %v1025_v15  ;;  %v608_v57 = vadd.f32 %v10746_v27, %v593_v1  ;;  %v15683_v35 = vld [vmem:[#allocation34_spill] sm:$0xff]  ;;  %v15684_v1 = vld [vmem:[#allocation35_spill] sm:$0xff] }
 0x1e4   :  { %v2399_v48 = vmul.f32 %v10510_v2, %v15676_v62  ;;  %v1018_v13 = vmul.f32 %v10510_v2, %v15680_v52  ;;  %v1709_v10 = vmul.f32 %v10510_v2, %v15681_v14  ;;  %v402_v54 = vmul.f32 %v10524_v45, %v15682_v46  ;;  %3829 = vbcast.lane.b32.xlu1 %v10026_v50, 265  ;;  %v15685_v56 = vld [vmem:[#allocation43_spill] sm:$0xff] }
 0x1e5   :  { %v1129_v29 = vadd.f32 %v1121_v19, %v1108_v38  ;;  %v2388_v43 = vadd.f32 %v2380_v5, %v2359_v30  ;;  %v2401_v15 = vmul.f32 %v10510_v2, %v15683_v35  ;;  %v618_v47 = vmax.f32 %v610_v16, 0.0  ;;  %2564 = vbcast.lane.b32.xlu0 %v9933_v31, 266  ;;  %v10784_v14 = vpop.permute.xlu1 %940  ;;  %v10786_v46 = vpop.permute.xlu0 %929  ;;  %v15688_v5 = vld [vmem:[#allocation37_spill] sm:$0xff] }
 0x1e6   :  { %v327_v62 = vadd.f32 %v319_v58, %v305_v26  ;;  %v1123_v52 = vmul.f32 %v10558_v36, %v15684_v1  ;;  %v1687_v3 = vmul.f32 %v10494_v32, %v15685_v56  ;;  %v10782_v34 = vadd.f32 %v2399_v48, %v2386_v53  ;;  %15686 = vst [vmem:[#allocation24_spill] sm:$0xff] %v10784_v14  ;;  %v15689_v31 = vld [vmem:[#allocation45_spill] sm:$0xff]  ;;  %v15691_v14 = vld [vmem:[#allocation42_spill] sm:$0xff] }
 0x1e7   :  { %15687 = vst [vmem:[#allocation30_spill] sm:$0xff] %v10786_v46  ;;  %v1142_v19 = vmul.f32 %v10578_v17, %v15684_v1  ;;  %v404_v30 = vmul.f32 %v10524_v45, %v15688_v5  ;;  %v1792_v26 = vmul.f32 %v10524_v45, %v15689_v31  ;;  %v616_v16 = vmax.f32 %v608_v57, 0.0  ;;  %v15690_v53 = vld [vmem:[#allocation41_spill] sm:$0xff]  ;;  %v15692_v57 = vld [vmem:[#allocation44_spill] sm:$0xff] }
 0x1e8   :  { %v10794_v38 = vadd.f32 %v1018_v13, %v1005_v42  ;;  %v1717_v58 = vadd.f32 %v1709_v10, %v1696_v49  ;;  %v410_v35 = vadd.f32 %v402_v54, %v325_v51  ;;  %v1666_v48 = vmul.f32 %v10489_v23, %v15690_v53  ;;  %5189 = vbcast.lane.b32.xlu1 %v10115_v9, 265 }
 0x1e9   :  { %v10799_v46 = vadd.f32 %v2401_v15, %v2388_v43  ;;  %v1689_v1 = vmul.f32 %v10494_v32, %v15691_v14  ;;  %v1668_v55 = vmul.f32 %v10489_v23, %v15685_v56  ;;  %v625_v31 = vsel %vm69_vm6, %v618_v47, -inf  ;;  %3944 = vbcast.lane.b32.xlu0 %v9985_v41, 258  ;;  %v10811_v10 = vpop.permute.xlu1 %1180  ;;  %v10813_v54 = vpop.permute.xlu0 %951 }
 0x1ea   :  { %v1131_v42 = vadd.f32 %v1123_v52, %v1110_v8  ;;  %v423_v51 = vmul.f32 %v10558_v36, %v15688_v5  ;;  %v1695_v49 = vadd.f32 %v1687_v3, %v1666_v48  ;;  %v1794_v13 = vmul.f32 %v10524_v45, %v15692_v57  ;;  %15693 = vst [vmem:[#allocation25_spill] sm:$0xff] %v10813_v54  ;;  %v15694_v52 = vld [vmem:[#allocation51_spill] sm:$0xff] }
 0x1eb   :  { %v1150_v43 = vadd.f32 %v1142_v19, %v1129_v29  ;;  %v10815_v15 = vadd.f32 %v404_v30, %v327_v62  ;;  %v1800_v56 = vadd.f32 %v1792_v26, %v1715_v22  ;;  %v624_v47 = vsel %vm69_vm6, %v616_v16, -inf  ;;  %v15695_v62 = vld [vmem:[#allocation46_spill] sm:$0xff]  ;;  %v15696_v19 = vld [vmem:[#allocation47_spill] sm:$0xff]  ;;  %v15697_v26 = vld [vmem:[#allocation48_spill] sm:$0xff] }
 0x1ec   :  { %v431_v53 = vadd.f32 %v423_v51, %v410_v35  ;;  %v1708_v8 = vmul.f32 %v10510_v2, %v15691_v14  ;;  %v1144_v3 = vmul.f32 %v10578_v17, %v15694_v52  ;;  %v626_v5 = vmax.f32 %v624_v47, %v625_v31  ;;  %5209 = vbcast.lane.b32.xlu1 %v10196_v21, 257  ;;  %v15698_v35 = vld [vmem:[#allocation72_spill] sm:$0xff]  ;;  %v15701_v52 = vld [vmem:[#allocation49_spill] sm:$0xff] }
 0x1ed   :  { %v10823_v48 = vadd.f32 %v1689_v1, %v1668_v55  ;;  %v1813_v29 = vmul.f32 %v10558_v36, %v15692_v57  ;;  %v3070_v22 = vmul.f32 %v10494_v32, %v15695_v62  ;;  %v3049_v30 = vmul.f32 %v10489_v23, %v15696_v19  ;;  %5197 = vbcast.lane.b32.xlu0 %v10127_v6, 265  ;;  %v10840_v31 = vpop.permute.xlu1 %2560  ;;  %v10842_v51 = vpop.permute.xlu0 %2445 }
 0x1ee   :  { %v10832_v14 = vadd.f32 %v1794_v13, %v1717_v58  ;;  %v1101_v16 = vmul.f32 %v10524_v45, %v15697_v26  ;;  %v1229_v55 = vmul.f32 %v10605_v39, %v15698_v35  ;;  %v10838_v1 = vadd.f32 %v1708_v8, %v1695_v49  ;;  %15699 = vst [vmem:[#allocation28_spill] sm:$0xff] %v10840_v31  ;;  %v15702_v13 = vld [vmem:[#allocation69_spill] sm:$0xff] }
 0x1ef   :  { %15700 = vst [vmem:[#allocation27_spill] sm:$0xff] %v10842_v51  ;;  %v10844_v57 = vadd.f32 %v1813_v29, %v1800_v56  ;;  %v3051_v47 = vmul.f32 %v10489_v23, %v15695_v62  ;;  %v3072_v58 = vmul.f32 %v10494_v32, %v15701_v52  ;;  %v1227_v19 = vmul.f32 %v10605_v39, %v15702_v13  ;;  %v15703_v62 = vld [vmem:[#allocation52_spill] sm:$0xff] }
 0x1f0   :  { %v1152_v26 = vadd.f32 %v1144_v3, %v1131_v42  ;;  %v1250_v49 = vmul.f32 %v10624_v37, %v10309_v20  ;;  %v640_v8 = vcombine.high %v626_v5, %v626_v5  ;;  %v647_v54 = vrot.slane %v626_v5, %v10514_v40  ;;  %382 = vbcast.lane.b32.xlu1 %v10222_v61, 257 }
 0x1f1   :  { %v3078_v56 = vadd.f32 %v3070_v22, %v3049_v30  ;;  %v3091_v29 = vmul.f32 %v10510_v2, %v15701_v52  ;;  %v1103_v51 = vmul.f32 %v10524_v45, %v15703_v62  ;;  %v444_v31 = vmul.f32 %v10578_v17, %v15704_v24  ;;  %265 = vbcast.lane.b32.xlu0 %v10313_v25, 264  ;;  %v10868_v30 = vpop.permute.xlu1 %3813  ;;  %v10870_v52 = vpop.permute.xlu0 %3805 }
 0x1f2   :  { %v1109_v42 = vadd.f32 %v1101_v16, %v10763_v44  ;;  %v1237_v3 = vadd.f32 %v1229_v55, %v1152_v26  ;;  %v1248_v5 = vmul.f32 %v10624_v37, %v15698_v35  ;;  %v1271_v22 = vmul.f32 %v10650_v11, %v10460_v28  ;;  %15705 = vst [vmem:[#allocation29_spill] sm:$0xff] %v10868_v30 }
 0x1f3   :  { %15706 = vst [vmem:[#allocation31_spill] sm:$0xff] %v10870_v52  ;;  %v10872_v13 = vadd.f32 %v3072_v58, %v3051_v47  ;;  %v1122_v61 = vmul.f32 %v10558_v36, %v15703_v62  ;;  %v1235_v21 = vadd.f32 %v1227_v19, %v1150_v43  ;;  %v529_v44 = vmul.f32 %v10605_v39, %v10352_v7  ;;  %v15708_v58 = vld [vmem:[#allocation53_spill] sm:$0xff]  ;;  %v15709_v62 = vld [vmem:[#allocation128_spill] sm:$0xff]  ;;  %v15710_v7 = vld [vmem:[#allocation54_spill] sm:$0xff] }
 0x1f4   :  { %v1258_v16 = vadd.f32 %v1250_v49, %v1237_v3  ;;  %v1269_v35 = vmul.f32 %v10650_v11, %v10309_v20  ;;  %v654_v55 = vrot.slane %v640_v8, %v10514_v40  ;;  %v655_v28 = vcombine.high %v647_v54, %v647_v54  ;;  %1880 = vbcast.lane.b32.xlu1 %v9943_v33, 266  ;;  %v15711_v20 = vld [vmem:[#allocation55_spill] sm:$0xff] }
 0x1f5   :  { %v10882_v26 = vadd.f32 %v3091_v29, %v3078_v56  ;;  %v10885_v47 = vadd.f32 %v1103_v51, %v10794_v38  ;;  %v2379_v43 = vmul.f32 %v10494_v32, %v15708_v58  ;;  %v452_v19 = vadd.f32 %v444_v31, %v431_v53  ;;  %1654 = vbcast.lane.b32.xlu0 %v15709_v62, 256  ;;  %v10894_v33 = vpop.permute.xlu1 %5041  ;;  %v10896_v56 = vpop.permute.xlu0 %3825  ;;  %v15714_v53 = vld [vmem:[#allocation56_spill] sm:$0xff] }
 0x1f6   :  { %v2358_v49 = vmul.f32 %v10489_v23, %v15710_v7  ;;  %v2484_v8 = vmul.f32 %v10524_v45, %v15711_v20  ;;  %v1256_v3 = vadd.f32 %v1248_v5, %v1235_v21  ;;  %v1279_v30 = vadd.f32 %v1271_v22, %v1258_v16  ;;  %15712 = vst [vmem:[#allocation33_spill] sm:$0xff] %v10894_v33  ;;  %v15715_v5 = vld [vmem:[#allocation9_spill] sm:$0xff]  ;;  %v15721_v33 = vld [vmem:[#allocation75_spill] sm:$0xff] }
 0x1f7   :  { %15707 = vst [vmem:[#allocation32_spill] sm:$0xff] %v10882_v26  ;;  %15713 = vst [vmem:[#allocation38_spill] sm:$0xff] %v10896_v56  ;;  %v10898_v38 = vadd.f32 %v1122_v61, %v1109_v42  ;;  %v2360_v51 = vmul.f32 %v10489_v23, %v15708_v58  ;;  %v2381_v31 = vmul.f32 %v10494_v32, %v15714_v53  ;;  %v731_v21 = vsel %vm71_vm7, %v655_v28, -inf  ;;  %v15716_v42 = vld [vmem:[#allocation104_spill] sm:$0xff]  ;;  %v15717_v58 = vld [vmem:[#allocation133_spill] sm:$0xff] }
 0x1f8   :  { %v537_v29 = vadd.f32 %v529_v44, %v452_v19  ;;  %v2400_v7 = vmul.f32 %v10510_v2, %v15714_v53  ;;  %v1277_v52 = vadd.f32 %v1269_v35, %v1256_v3  ;;  %v656_v20 = vcombine.high %v654_v55, %v654_v55  ;;  %3248 = vbcast.lane.b32.xlu1 %v15715_v5, 266  ;;  %v15718_v19 = vld [vmem:[#allocation10_spill] sm:$0xff] }
 0x1f9   :  { %v425_v61 = vmul.f32 %v10558_v36, %v15704_v24  ;;  %v550_v22 = vmul.f32 %v10624_v37, %v15716_v42  ;;  %v724_v16 = vsel %vm71_vm7, %v647_v54, -inf  ;;  %v571_v44 = vmul.f32 %v10650_v11, %v15717_v58  ;;  %3240 = vbcast.lane.b32.xlu0 %v15718_v19, 266  ;;  %v10919_v5 = vpop.permute.xlu1 %5063  ;;  %v10921_v24 = vpop.permute.xlu0 %5052  ;;  %v15724_v19 = vld [vmem:[#allocation15_spill] sm:$0xff] }
 0x1fa   :  { %v2387_v53 = vadd.f32 %v2379_v43, %v2358_v49  ;;  %v2492_v35 = vadd.f32 %v2484_v8, %v10782_v34  ;;  %v738_v28 = vsel %vm71_vm7, %v654_v55, -inf  ;;  %v1294_v3 = vmul.f32 %v10717_v12, %v1279_v30  ;;  %15719 = vst [vmem:[#allocation34_spill] sm:$0xff] %v10919_v5  ;;  %15720 = vst [vmem:[#allocation35_spill] sm:$0xff] %v10921_v24  ;;  %v15723_v49 = vld [vmem:[#allocation26_spill] sm:$0xff]  ;;  %v15730_v24 = vld [vmem:[#allocation60_spill] sm:$0xff] }
 0x1fb   :  { %v10923_v56 = vadd.f32 %v2381_v31, %v2360_v51  ;;  %v446_v54 = vmul.f32 %v10578_v17, %v15721_v33  ;;  %v558_v62 = vadd.f32 %v550_v22, %v537_v29  ;;  %v732_v41 = vrot.slane %v731_v21, 4  ;;  %v15725_v33 = vld [vmem:[#allocation57_spill] sm:$0xff] }
 0x1fc   :  { %v10927_v26 = vadd.f32 %v2400_v7, %v2387_v53  ;;  %v1292_v43 = vmul.f32 %v10717_v12, %v1277_v52  ;;  %v725_v34 = vrot.slane %v724_v16, 4  ;;  %v745_v55 = vsel %vm71_vm7, %v656_v20, -inf  ;;  %4513 = vbcast.lane.b32.xlu1 %v15723_v49, 265  ;;  %v15726_v7 = vld [vmem:[#allocation58_spill] sm:$0xff]  ;;  %v15727_v22 = vld [vmem:[#allocation61_spill] sm:$0xff] }
 0x1fd   :  { %v433_v30 = vadd.f32 %v425_v61, %v10815_v15  ;;  %v531_v8 = vmul.f32 %v10605_v39, %v15716_v42  ;;  %v739_v51 = vrot.slane %v738_v28, 4  ;;  %v579_v31 = vadd.f32 %v571_v44, %v558_v62  ;;  %3260 = vbcast.lane.b32.xlu0 %v15724_v19, 258  ;;  %v10943_v5 = vpop.permute.xlu1 %5193  ;;  %v10945_v15 = vpop.permute.xlu0 %5185 }
 0x1fe   :  { %15722 = vst [vmem:[#allocation43_spill] sm:$0xff] %v10927_v26  ;;  %v3741_v29 = vmul.f32 %v10489_v23, %v15725_v33  ;;  %v2486_v52 = vmul.f32 %v10524_v45, %v15726_v7  ;;  %v3762_v20 = vmul.f32 %v10494_v32, %v15727_v22  ;;  %v1309_v53 = vadd.f32 %v10746_v27, %v1294_v3 }
 0x1ff   :  { %15728 = vst [vmem:[#allocation37_spill] sm:$0xff] %v10943_v5  ;;  %15729 = vst [vmem:[#allocation45_spill] sm:$0xff] %v10945_v15  ;;  %v454_v61 = vadd.f32 %v446_v54, %v433_v30  ;;  %v733_v42 = vmax.f32 %v731_v21, %v732_v41  ;;  %v746_v62 = vrot.slane %v745_v55, 4  ;;  %v552_v44 = vmul.f32 %v10624_v37, %v15717_v58  ;;  %v15731_v30 = vld [vmem:[#allocation23_spill] sm:$0xff]  ;;  %v15732_v5 = vld [vmem:[#allocation66_spill] sm:$0xff] }
 0x200   :  { %v2505_v33 = vmul.f32 %v10558_v36, %v15726_v7  ;;  %v3764_v19 = vmul.f32 %v10494_v32, %v15730_v24  ;;  %v1307_v26 = vadd.f32 %v10746_v27, %v1292_v43  ;;  %v726_v63 = vmax.f32 %v724_v16, %v725_v34  ;;  %4628 = vbcast.lane.b32.xlu1 %v10068_v0, 258 }
 0x201   :  { %v3743_v3 = vmul.f32 %v10489_v23, %v15727_v22  ;;  %v539_v54 = vadd.f32 %v531_v8, %v454_v61  ;;  %v740_v41 = vmax.f32 %v738_v28, %v739_v51  ;;  %v594_v21 = vmul.f32 %v10717_v12, %v579_v31  ;;  %4620 = vbcast.lane.b32.xlu0 %v15731_v30, 258  ;;  %v490_v16 = vpop.permute.xlu1 %489  ;;  %v10964_v34 = vpop.permute.xlu0 %261 }
 0x202   :  { %v10960_v58 = vadd.f32 %v2486_v52, %v10799_v46  ;;  %v3770_v7 = vadd.f32 %v3762_v20, %v3741_v29  ;;  %v1710_v32 = vmul.f32 %v10510_v2, %v15732_v5  ;;  %v1317_v43 = vmax.f32 %v1309_v53, 0.0  ;;  %15733 = vst [vmem:[#allocation41_spill] sm:$0xff] %v10964_v34  ;;  %v15734_v20 = vld [vmem:[#allocation103_spill] sm:$0xff] }
 0x203   :  { %v734_v15 = vrot.slane %v733_v42, 2  ;;  %v747_v0 = vmax.f32 %v745_v55, %v746_v62  ;;  %v560_v23 = vadd.f32 %v552_v44, %v539_v54  ;;  %v573_v28 = vmul.f32 %v10650_v11, %v490_v16  ;;  %v15735_v55 = vld [vmem:[#allocation67_spill] sm:$0xff] }
 0x204   :  { %v10967_v8 = vadd.f32 %v2505_v33, %v2492_v35  ;;  %v3783_v51 = vmul.f32 %v10510_v2, %v15730_v24  ;;  %v1315_v46 = vmax.f32 %v1307_v26, 0.0  ;;  %v727_v31 = vrot.slane %v726_v63, 2  ;;  %1081 = vbcast.lane.b32.xlu1 %v10273_v59, 257  ;;  %v15736_v35 = vld [vmem:[#allocation70_spill] sm:$0xff] }
 0x205   :  { %v10972_v29 = vadd.f32 %v3764_v19, %v3743_v3  ;;  %v741_v5 = vrot.slane %v740_v41, 2  ;;  %v609_v52 = vadd.f32 %v10746_v27, %v594_v21  ;;  %v581_v22 = vadd.f32 %v573_v28, %v560_v23  ;;  %966 = vbcast.lane.b32.xlu0 %v15734_v20, 264  ;;  %v10983_v24 = vpop.permute.xlu1 %1864  ;;  %v10985_v19 = vpop.permute.xlu0 %1856  ;;  %v15739_v21 = vld [vmem:[#allocation68_spill] sm:$0xff] }
 0x206   :  { %v3093_v53 = vmul.f32 %v10510_v2, %v15735_v55  ;;  %v1124_v61 = vmul.f32 %v10558_v36, %v15736_v35  ;;  %v10980_v62 = vadd.f32 %v3783_v51, %v3770_v7  ;;  %v1324_v26 = vsel %vm69_vm6, %v1317_v43, -inf  ;;  %15737 = vst [vmem:[#allocation42_spill] sm:$0xff] %v10983_v24  ;;  %15738 = vst [vmem:[#allocation44_spill] sm:$0xff] %v10985_v19  ;;  %v15740_v28 = vld [vmem:[#allocation8_spill] sm:$0xff]  ;;  %v15758_v19 = vld [vmem:[#allocation115_spill] sm:$0xff] }
 0x207   :  { %v10988_v44 = vadd.f32 %v1710_v32, %v10823_v48  ;;  %v735_v33 = vmax.f32 %v733_v42, %v734_v15  ;;  %v748_v3 = vrot.slane %v747_v0, 2  ;;  %v596_v54 = vmul.f32 %v10717_v12, %v581_v22  ;;  %v15741_v42 = vld [vmem:[#allocation129_spill] sm:$0xff] }
 0x208   :  { %v1815_v16 = vmul.f32 %v10558_v36, %v15739_v21  ;;  %v1143_v7 = vmul.f32 %v10578_v17, %v15736_v35  ;;  %v1323_v23 = vsel %vm69_vm6, %v1315_v46, -inf  ;;  %v728_v43 = vmax.f32 %v726_v63, %v727_v31  ;;  %2572 = vbcast.lane.b32.xlu1 %v15740_v28, 266  ;;  %v15742_v35 = vld [vmem:[#allocation89_spill] sm:$0xff] }
 0x209   :  { %v742_v51 = vmax.f32 %v740_v41, %v741_v5  ;;  %v1325_v55 = vmax.f32 %v1323_v23, %v1324_v26  ;;  %v617_v48 = vmax.f32 %v609_v52, 0.0  ;;  %v611_v15 = vadd.f32 %v10746_v27, %v596_v54  ;;  %2346 = vbcast.lane.b32.xlu0 %v15741_v42, 256  ;;  %v11009_v31 = vpop.permute.xlu1 %3129  ;;  %v11011_v41 = vpop.permute.xlu0 %1876  ;;  %v15744_v26 = vld [vmem:[#allocation110_spill] sm:$0xff] }
 0x20a   :  { %v11000_v32 = vadd.f32 %v3093_v53, %v10872_v13  ;;  %v11004_v22 = vmul.f32 %v10578_v17, %v15739_v21  ;;  %v1132_v46 = vadd.f32 %v1124_v61, %v10885_v47  ;;  %v1145_v63 = vmul.f32 %v10578_v17, %v15742_v35  ;;  %15743 = vst [vmem:[#allocation51_spill] sm:$0xff] %v11009_v31  ;;  %v15745_v21 = vld [vmem:[#allocation112_spill] sm:$0xff]  ;;  %v15746_v61 = vld [vmem:[#allocation14_spill] sm:$0xff] }
 0x20b   :  { %v736_v5 = vrot.slane %v735_v33, 1  ;;  %v749_v52 = vmax.f32 %v747_v0, %v748_v3  ;;  %v1228_v54 = vmul.f32 %v10605_v39, %v15744_v26  ;;  %v619_v13 = vmax.f32 %v611_v15, 0.0  ;;  %v15747_v26 = vld [vmem:[#allocation12_spill] sm:$0xff] }
 0x20c   :  { %v1151_v53 = vadd.f32 %v1143_v7, %v10898_v38  ;;  %v729_v23 = vrot.slane %v728_v43, 1  ;;  %v1230_v28 = vmul.f32 %v10605_v39, %v15745_v21  ;;  %v1249_v47 = vmul.f32 %v10624_v37, %v15745_v21  ;;  %3940 = vbcast.lane.b32.xlu1 %v15746_v61, 266  ;;  %v15750_v61 = vld [vmem:[#allocation71_spill] sm:$0xff] }
 0x20d   :  { %v743_v35 = vrot.slane %v742_v51, 1  ;;  %v1346_v31 = vrot.slane %v1325_v55, %v10514_v40  ;;  %v627_v0 = vsel %vm69_vm6, %v617_v48, -inf  ;;  %v628_v3 = vsel %vm69_vm6, %v619_v13, -inf  ;;  %3932 = vbcast.lane.b32.xlu0 %v15747_v26, 266  ;;  %v11028_v42 = vpop.permute.xlu1 %3244  ;;  %v11030_v21 = vpop.permute.xlu0 %3236 }
 0x20e   :  { %v11026_v38 = vadd.f32 %v1815_v16, %v10832_v14  ;;  %v1153_v7 = vadd.f32 %v1145_v63, %v1132_v46  ;;  %v1339_v15 = vcombine.high %v1325_v55, %v1325_v55  ;;  %v629_v34 = vmax.f32 %v627_v0, %v628_v3  ;;  %15748 = vst [vmem:[#allocation46_spill] sm:$0xff] %v11028_v42  ;;  %v15751_v46 = vld [vmem:[#allocation39_spill] sm:$0xff] }
 0x20f   :  { %15749 = vst [vmem:[#allocation47_spill] sm:$0xff] %v11030_v21  ;;  %v11034_v59 = vmul.f32 %v10510_v2, %v15750_v61  ;;  %v737_v48 = vmax.f32 %v735_v33, %v736_v5  ;;  %v750_v24 = vrot.slane %v749_v52, 1  ;;  %v1236_v13 = vadd.f32 %v1228_v54, %v1151_v53  ;;  %v15755_v21 = vld [vmem:[#allocation62_spill] sm:$0xff] }
 0x210   :  { %v1238_v30 = vadd.f32 %v1230_v28, %v1153_v7  ;;  %v1270_v14 = vmul.f32 %v10650_v11, %v10811_v10  ;;  %v657_v16 = vcombine.high %v629_v34, %v629_v34  ;;  %v664_v55 = vrot.slane %v629_v34, %v10514_v40  ;;  %5205 = vbcast.lane.b32.xlu1 %v15751_v46, 265 }
 0x211   :  { %v730_v63 = vmax.f32 %v728_v43, %v729_v23  ;;  %v744_v0 = vmax.f32 %v742_v51, %v743_v35  ;;  %v1354_v3 = vcombine.high %v1346_v31, %v1346_v31  ;;  %v1257_v26 = vadd.f32 %v1249_v47, %v1236_v13  ;;  %3952 = vbcast.lane.b32.xlu0 %v10026_v50, 258  ;;  %v11044_v53 = vpop.permute.xlu1 %4509  ;;  %v11046_v28 = vpop.permute.xlu0 %4382 }
 0x212   :  { %v1353_v61 = vrot.slane %v1339_v15, %v10514_v40  ;;  %v671_v33 = vrot.slane %v657_v16, %v10514_v40  ;;  %v672_v5 = vcombine.high %v664_v55, %v664_v55  ;;  %v752_v54 = vsel %vm71_vm7, %v664_v55, -inf  ;;  %15752 = vst [vmem:[#allocation48_spill] sm:$0xff] %v11044_v53  ;;  %15753 = vst [vmem:[#allocation72_spill] sm:$0xff] %v11046_v28 }
 0x213   :  { %v751_v34 = vmax.f32 %v749_v52, %v750_v24  ;;  %v853_v7 = vsel %vm852_vm9, %v737_v48, %v730_v63  ;;  %v1251_v43 = vmul.f32 %v10624_v37, %v10811_v10  ;;  %v753_v51 = vrot.slane %v752_v54, 4 }
 0x214   :  { %v1278_v23 = vadd.f32 %v1270_v14, %v1257_v26  ;;  %v673_v47 = vcombine.high %v671_v33, %v671_v33  ;;  %v759_v35 = vsel %vm71_vm7, %v672_v5, -inf  ;;  %v766_v15 = vsel %vm71_vm7, %v671_v33, -inf  ;;  %5320 = vbcast.lane.b32.xlu1 %v10127_v6, 258 }
 0x215   :  { %v1430_v13 = vsel %vm71_vm7, %v1354_v3, -inf  ;;  %v754_v16 = vmax.f32 %v752_v54, %v753_v51  ;;  %v760_v24 = vrot.slane %v759_v35, 4  ;;  %v767_v52 = vrot.slane %v766_v15, 4  ;;  %5312 = vbcast.lane.b32.xlu0 %v10115_v9, 258  ;;  %v1189_v63 = vpop.permute.xlu1 %1188  ;;  %v11059_v26 = vpop.permute.xlu0 %962 }
 0x216   :  { %v1355_v48 = vcombine.high %v1353_v61, %v1353_v61  ;;  %v1423_v10 = vsel %vm71_vm7, %v1346_v31, -inf  ;;  %v1437_v14 = vsel %vm71_vm7, %v1353_v61, -inf  ;;  %v773_v55 = vsel %vm71_vm7, %v673_v47, -inf  ;;  %15754 = vst [vmem:[#allocation49_spill] sm:$0xff] %v11059_v26  ;;  %v15756_v47 = vld [vmem:[#allocation63_spill] sm:$0xff] }
 0x217   :  { %v755_v33 = vrot.slane %v754_v16, 2  ;;  %v761_v5 = vmax.f32 %v759_v35, %v760_v24  ;;  %v768_v28 = vmax.f32 %v766_v15, %v767_v52  ;;  %v774_v3 = vrot.slane %v773_v55, 4 }
 0x218   :  { %v1431_v54 = vrot.slane %v1430_v13, 4  ;;  %v1259_v51 = vadd.f32 %v1251_v43, %v1238_v30  ;;  %v1293_v53 = vmul.f32 %v10717_v12, %v1278_v23  ;;  %v1272_v6 = vmul.f32 %v10650_v11, %v1189_v63  ;;  %378 = vbcast.lane.b32.xlu1 %v15755_v21, 265 }
 0x219   :  { %v756_v31 = vmax.f32 %v754_v16, %v755_v33  ;;  %v762_v61 = vrot.slane %v761_v5, 2  ;;  %v769_v50 = vrot.slane %v768_v28, 2  ;;  %v775_v9 = vmax.f32 %v773_v55, %v774_v3  ;;  %370 = vbcast.lane.b32.xlu0 %v15756_v47, 265  ;;  %v11067_v24 = vpop.permute.xlu1 %2556  ;;  %v11069_v30 = vpop.permute.xlu0 %2548 }
 0x21a   :  { %v855_v26 = vsel %vm854_vm10, %v744_v0, %v853_v7  ;;  %v1424_v42 = vrot.slane %v1423_v10, 4  ;;  %v1444_v35 = vsel %vm71_vm7, %v1355_v48, -inf  ;;  %v1280_v15 = vadd.f32 %v1272_v6, %v1259_v51  ;;  %15757 = vst [vmem:[#allocation69_spill] sm:$0xff] %v11067_v24 }
 0x21b   :  { %v757_v43 = vrot.slane %v756_v31, 1  ;;  %v763_v23 = vmax.f32 %v761_v5, %v762_v61  ;;  %v770_v52 = vmax.f32 %v768_v28, %v769_v50  ;;  %v776_v63 = vrot.slane %v775_v9, 2 }
 0x21c   :  { %v1432_v16 = vmax.f32 %v1430_v13, %v1431_v54  ;;  %v1438_v33 = vrot.slane %v1437_v14, 4  ;;  %v1308_v55 = vadd.f32 %v10746_v27, %v1293_v53  ;;  %v1295_v3 = vmul.f32 %v10717_v12, %v1280_v15  ;;  %1625 = vbcast.lane.b32.xlu1 %v15758_v19, 264 }
 0x21d   :  { %v758_v0 = vmax.f32 %v756_v31, %v757_v43  ;;  %v764_v7 = vrot.slane %v763_v23, 1  ;;  %v771_v48 = vrot.slane %v770_v52, 1  ;;  %v777_v6 = vmax.f32 %v775_v9, %v776_v63  ;;  %390 = vbcast.lane.b32.xlu0 %v10313_v25, 257  ;;  %v11076_v28 = vpop.permute.xlu1 %3821  ;;  %v11078_v13 = vpop.permute.xlu0 %2568  ;;  %v15760_v31 = vld [vmem:[#allocation79_spill] sm:$0xff] }
 0x21e   :  { %v1425_v51 = vmax.f32 %v1423_v10, %v1424_v42  ;;  %v1445_v24 = vrot.slane %v1444_v35, 4  ;;  %v857_v50 = vsel %vm856_vm11, %v751_v34, %v855_v26  ;;  %15759 = vst [vmem:[#allocation52_spill] sm:$0xff] %v11076_v28  ;;  %v1793_v15 = vmul.f32 %v10524_v45, %v15760_v31  ;;  %v15761_v42 = vld [vmem:[#allocation118_spill] sm:$0xff]  ;;  %v15762_v28 = vld [vmem:[#allocation119_spill] sm:$0xff] }
 0x21f   :  { %v765_v53 = vmax.f32 %v763_v23, %v764_v7  ;;  %v772_v5 = vmax.f32 %v770_v52, %v771_v48  ;;  %v778_v54 = vrot.slane %v777_v6, 1  ;;  %v859_v61 = vsel %vm858_vm12, %v758_v0, %v857_v50  ;;  %v15763_v23 = vld [vmem:[#allocation73_spill] sm:$0xff]  ;;  %v15764_v0 = vld [vmem:[#allocation74_spill] sm:$0xff] }
 0x220   :  { %v1433_v9 = vrot.slane %v1432_v16, 2  ;;  %v1439_v43 = vmax.f32 %v1437_v14, %v1438_v33  ;;  %1647 = vbcast.lane.b32.xlu1 %v15761_v42, 264  ;;  %v1316_v10 = vmax.f32 %v1308_v55, 0.0  ;;  %v1310_v26 = vadd.f32 %v10746_v27, %v1295_v3 }
 0x221   :  { %v779_v63 = vmax.f32 %v777_v6, %v778_v54  ;;  %v861_v34 = vsel %vm860_vm13, %v765_v53, %v859_v61  ;;  %1636 = vbcast.lane.b32.xlu0 %v15762_v28, 264  ;;  %v3785_v52 = vmul.f32 %v10510_v2, %v15763_v23  ;;  %v2507_v7 = vmul.f32 %v10558_v36, %v15764_v0  ;;  %v11094_v48 = vpop.permute.xlu1 %3936  ;;  %v11096_v55 = vpop.permute.xlu0 %3928  ;;  %v15767_v54 = vld [vmem:[#allocation78_spill] sm:$0xff] }
 0x222   :  { %v2526_v14 = vmul.f32 %v10578_v17, %v15764_v0  ;;  %v863_v33 = vsel %vm862_vm14, %v772_v5, %v861_v34  ;;  %15765 = vst [vmem:[#allocation64_spill] sm:$0xff] %v11094_v48  ;;  %15766 = vst [vmem:[#allocation53_spill] sm:$0xff] %v11096_v55  ;;  %v1426_v6 = vrot.slane %v1425_v51, 2  ;;  %v1446_v50 = vmax.f32 %v1444_v35, %v1445_v24  ;;  %v15768_v5 = vld [vmem:[#allocation82_spill] sm:$0xff]  ;;  %v11141_v0 = vld [vmem:[%s15251_s1] ss:$0 sm:$0xff] }
 0x223   :  { %v865_v3 = vsel %vm864_vm15, %v779_v63, %v863_v33  ;;  %v1318_v53 = vmax.f32 %v1310_v26, 0.0  ;;  %v11101_v2 = vadd.f32 %v11004_v22, %v10844_v57  ;;  %v1795_v61 = vmul.f32 %v10524_v45, %v15767_v54  ;;  %v15774_v33 = vld [vmem:[#allocation83_spill] sm:$0xff] }
 0x224   :  { %v1801_v31 = vadd.f32 %v1793_v15, %v10838_v1  ;;  %v1440_v23 = vrot.slane %v1439_v43, 2  ;;  %876 = vst.msk [vmem:[#allocation3 + $0x11] sm:$0xff] %vm69_vm6, %v865_v3  ;;  %1765 = vbcast.lane.b32.xlu1 %v15762_v28, 257  ;;  %v1836_v35 = vmul.f32 %v10578_v17, %v15768_v5  ;;  %v1434_v24 = vmax.f32 %v1432_v16, %v1433_v9  ;;  %v15775_v3 = vld [vmem:[#allocation84_spill] sm:$0xff]  ;;  %v15778_v55 = vld [vmem:[#allocation11_spill] sm:$0xff] }
 0x225   :  { %v1326_v63 = vsel %vm69_vm6, %v1316_v10, -inf  ;;  %v1327_v34 = vsel %vm69_vm6, %v1318_v53, -inf  ;;  %1757 = vbcast.lane.b32.xlu0 %v15758_v19, 257  ;;  %v11115_v45 = vadd.f32 %v11034_v59, %v10923_v56  ;;  %v11118_v1 = vadd.f32 %v3785_v52, %v10972_v29  ;;  %v11122_v15 = vpop.permute.xlu1 %5201  ;;  %v11124_v17 = vpop.permute.xlu0 %5074  ;;  %v15771_v52 = vld [vmem:[#allocation130_spill] sm:$0xff] }
 0x226   :  { %v1814_v57 = vmul.f32 %v10558_v36, %v15767_v54  ;;  %v1328_v22 = vmax.f32 %v1326_v63, %v1327_v34  ;;  %15769 = vst [vmem:[#allocation54_spill] sm:$0xff] %v11122_v15  ;;  %15770 = vst [vmem:[#allocation55_spill] sm:$0xff] %v11124_v17  ;;  %v11127_v16 = vadd.f32 %v2507_v7, %v10960_v58  ;;  %v1447_v59 = vrot.slane %v1446_v50, 2  ;;  %v15772_v58 = vld [vmem:[#allocation81_spill] sm:$0xff] }
 0x227   :  { %v11130_v9 = vadd.f32 %v2526_v14, %v10967_v8  ;;  %v1427_v10 = vmax.f32 %v1425_v51, %v1426_v6  ;;  %v11133_v56 = vadd.f32 %v1795_v61, %v10988_v44  ;;  %v1441_v26 = vmax.f32 %v1439_v43, %v1440_v23  ;;  %v15773_v14 = vld [vmem:[#allocation131_spill] sm:$0xff]  ;;  %v11153_v43 = vld [vmem:[%s15251_s1 + $0x4] ss:$0 sm:$0xff] }
 0x228   :  { %v11135_v29 = vadd.f32 %v1814_v57, %v1801_v31  ;;  %v1356_v36 = vcombine.high %v1328_v22, %v1328_v22  ;;  %3016 = vbcast.lane.b32.xlu1 %v15771_v52, 256  ;;  %v3050_v8 = vmul.f32 %v11141_v0, %v15772_v58  ;;  %v11146_v51 = vadd.f32 %v1836_v35, %v11026_v38 }
 0x229   :  { %v1435_v7 = vrot.slane %v1434_v24, 1  ;;  %v1363_v44 = vrot.slane %v1328_v22, %v10514_v40  ;;  %3005 = vbcast.lane.b32.xlu0 %v15773_v14, 256  ;;  %v3073_v6 = vmul.f32 %v11153_v43, %v15774_v33  ;;  %v3052_v53 = vmul.f32 %v11141_v0, %v15775_v3  ;;  %v11162_v61 = vpop.permute.xlu1 %243  ;;  %v11164_v31 = vpop.permute.xlu0 %232 }
 0x22a   :  { %v3071_v38 = vmul.f32 %v11153_v43, %v15775_v3  ;;  %v1370_v54 = vrot.slane %v1356_v36, %v10514_v40  ;;  %15776 = vst [vmem:[#allocation56_spill] sm:$0xff] %v11162_v61  ;;  %15777 = vst [vmem:[#allocation9_spill] sm:$0xff] %v11164_v31  ;;  %v1428_v23 = vrot.slane %v1427_v10, 1  ;;  %v1448_v5 = vmax.f32 %v1446_v50, %v1447_v59  ;;  %v11173_v36 = vld [vmem:[%s15251_s1 + $0x8] ss:$0 sm:$0xff] }
 0x22b   :  { %v1371_v35 = vcombine.high %v1363_v44, %v1363_v44  ;;  %v1451_v63 = vsel %vm71_vm7, %v1363_v44, -inf  ;;  %v5723_v34 = vld [vmem:[#allocation3 + $0x10] sm:$0xff]  ;;  %v1442_v22 = vrot.slane %v1441_v26, 1  ;;  %v11177_v50 = vmul.f32 %v11173_v36, %v15774_v33 }
 0x22c   :  { %v6262_v57 = vld [vmem:[#allocation3 + $0x11] sm:$0xff]  ;;  %v1372_v58 = vcombine.high %v1370_v54, %v1370_v54  ;;  %v1452_v17 = vrot.slane %v1451_v63, 4  ;;  %v1465_v15 = vsel %vm71_vm7, %v1370_v54, -inf  ;;  %3256 = vbcast.lane.b32.xlu1 %v15778_v55, 266  ;;  %9147 = vmatprep.mubr.msk.f32.mxu1 %vm69_vm6, %v5723_v34  ;;  %v1436_v59 = vmax.f32 %v1434_v24, %v1435_v7  ;;  %v15779_v54 = vld [vmem:[#allocation132_spill] sm:$0xff] }
 0x22d   :  { %v1458_v44 = vsel %vm71_vm7, %v1371_v35, -inf  ;;  %v1466_v3 = vrot.slane %v1465_v15, 4  ;;  %9259 = vmatprep.mubr.msk.f32.mxu0 %vm69_vm6, %v6262_v57  ;;  %3027 = vbcast.lane.b32.xlu0 %v15779_v54, 256  ;;  %v11182_v55 = vadd.f32 %v3071_v38, %v3050_v8  ;;  %v11185_v48 = vpop.permute.xlu1 %366  ;;  %v11187_v52 = vpop.permute.xlu0 %254  ;;  %v1429_v33 = vmax.f32 %v1427_v10, %v1428_v23  ;;  %v15782_v8 = vld [vmem:[#allocation106_spill] sm:$0xff] }
 0x22e   :  { %v1453_v34 = vmax.f32 %v1451_v63, %v1452_v17  ;;  %v1459_v31 = vrot.slane %v1458_v44, 4  ;;  %v1472_v61 = vsel %vm71_vm7, %v1372_v58, -inf  ;;  %15780 = vst [vmem:[#allocation104_spill] sm:$0xff] %v11185_v48  ;;  %15781 = vst [vmem:[#allocation133_spill] sm:$0xff] %v11187_v52  ;;  %v1449_v14 = vrot.slane %v1448_v5, 1  ;;  %v15783_v10 = vld [vmem:[#allocation86_spill] sm:$0xff] }
 0x22f   :  { %v1467_v24 = vmax.f32 %v1465_v15, %v1466_v3  ;;  %v1473_v7 = vrot.slane %v1472_v61, 4  ;;  %v11189_v35 = vadd.f32 %v3073_v6, %v3052_v53  ;;  %v1443_v19 = vmax.f32 %v1441_v26, %v1442_v22  ;;  %v11199_v15 = vld [vmem:[%s15251_s1 + $0x1] ss:$0 sm:$0xff]  ;;  %v15784_v6 = vld [vmem:[#allocation107_spill] sm:$0xff] }
 0x230   :  { %v1454_v57 = vrot.slane %v1453_v34, 2  ;;  %v1460_v28 = vmax.f32 %v1458_v44, %v1459_v31  ;;  %4636 = vbcast.lane.b32.xlu1 %v15723_v49, 258  ;;  %v1921_v17 = vmul.f32 %v10605_v39, %v15782_v8  ;;  %v1551_v38 = vsel %vm852_vm9, %v1436_v59, %v1429_v33  ;;  %v15786_v59 = vld [vmem:[#allocation87_spill] sm:$0xff] }
 0x231   :  { %v1468_v63 = vrot.slane %v1467_v24, 2  ;;  %v1474_v58 = vmax.f32 %v1472_v61, %v1473_v7  ;;  %4521 = vbcast.lane.b32.xlu0 %v10169_v4, 265  ;;  %v3176_v26 = vmul.f32 %v11199_v15, %v15783_v10  ;;  %v1919_v53 = vmul.f32 %v10605_v39, %v15784_v6  ;;  %v11205_v22 = vpop.permute.xlu1 %1621  ;;  %v11209_v7 = vpop.permute.xlu0 %374  ;;  %v15788_v39 = vld [vmem:[#allocation88_spill] sm:$0xff] }
 0x232   :  { %v1455_v31 = vmax.f32 %v1453_v34, %v1454_v57  ;;  %v1461_v23 = vrot.slane %v1460_v28, 2  ;;  %15785 = vst [vmem:[#allocation10_spill] sm:$0xff] %v11205_v22  ;;  %v4454_v61 = vmul.f32 %v11153_v43, %v15786_v59  ;;  %v1450_v44 = vmax.f32 %v1448_v5, %v1449_v14  ;;  %15787 = vst [vmem:[#allocation75_spill] sm:$0xff] %v11209_v7  ;;  %v15789_v5 = vld [vmem:[#allocation77_spill] sm:$0xff] }
 0x233   :  { %v1469_v3 = vmax.f32 %v1467_v24, %v1468_v63  ;;  %v1475_v33 = vrot.slane %v1474_v58, 2  ;;  %v1552_v52 = vsel %vm854_vm10, %v1443_v19, %v1551_v38  ;;  %v1942_v10 = vmul.f32 %v10624_v37, %v10626_v60 }
 0x234   :  { %v1456_v48 = vrot.slane %v1455_v31, 1  ;;  %v1462_v49 = vmax.f32 %v1460_v28, %v1461_v23  ;;  %1077 = vbcast.lane.b32.xlu1 %v10261_v18, 265  ;;  %v4433_v34 = vmul.f32 %v11141_v0, %v15788_v39  ;;  %v1929_v57 = vadd.f32 %v1921_v17, %v11146_v51  ;;  %v11227_v28 = vld [vmem:[%s15251_s1 + $0x6] ss:$0 sm:$0xff] }
 0x235   :  { %v1470_v6 = vrot.slane %v1469_v3, 1  ;;  %v1476_v14 = vmax.f32 %v1474_v58, %v1475_v33  ;;  %1069 = vbcast.lane.b32.xlu0 %v15789_v5, 265  ;;  %v1927_v24 = vadd.f32 %v1919_v53, %v11101_v2  ;;  %v1963_v19 = vmul.f32 %v10650_v11, %v11011_v41  ;;  %v11222_v63 = vpop.permute.xlu1 %1643  ;;  %v11232_v2 = vpop.permute.xlu0 %1632  ;;  %v11237_v11 = vld [vmem:[%s15251_s1 + $0xa] ss:$0 sm:$0xff]  ;;  %v15792_v33 = vld [vmem:[#allocation125_spill] sm:$0xff] }
 0x236   :  { %v1457_v38 = vmax.f32 %v1455_v31, %v1456_v48  ;;  %v1463_v37 = vrot.slane %v1462_v49, 1  ;;  %15790 = vst [vmem:[#allocation57_spill] sm:$0xff] %v11222_v63  ;;  %v1940_v51 = vmul.f32 %v11227_v28, %v15782_v8  ;;  %v1553_v23 = vsel %vm856_vm11, %v1450_v44, %v1552_v52  ;;  %15791 = vst [vmem:[#allocation58_spill] sm:$0xff] %v11232_v2  ;;  %v15793_v8 = vld [vmem:[#allocation85_spill] sm:$0xff]  ;;  %v11248_v52 = vld [vmem:[%s15251_s1 + $0x5] ss:$0 sm:$0xff] }
 0x237   :  { %v1471_v17 = vmax.f32 %v1469_v3, %v1470_v6  ;;  %v1477_v58 = vrot.slane %v1476_v14, 1  ;;  %v1950_v53 = vadd.f32 %v1942_v10, %v1929_v57  ;;  %v1961_v41 = vmul.f32 %v11237_v11, %v10626_v60  ;;  %v15794_v10 = vld [vmem:[#allocation32_spill] sm:$0xff]  ;;  %v15797_v63 = vld [vmem:[#allocation91_spill] sm:$0xff] }
 0x238   :  { %v1464_v48 = vmax.f32 %v1462_v49, %v1463_v37  ;;  %v1554_v31 = vsel %vm858_vm12, %v1457_v38, %v1553_v23  ;;  %2317 = vbcast.lane.b32.xlu1 %v15792_v33, 264  ;;  %v3178_v3 = vmul.f32 %v11199_v15, %v15793_v8  ;;  %v3197_v44 = vmul.f32 %v11248_v52, %v15793_v8  ;;  %v15796_v23 = vld [vmem:[#allocation90_spill] sm:$0xff] }
 0x239   :  { %v3184_v39 = vadd.f32 %v3176_v26, %v15794_v10  ;;  %v1478_v57 = vmax.f32 %v1476_v14, %v1477_v58  ;;  %1089 = vbcast.lane.b32.xlu0 %v15734_v20, 257  ;;  %v4435_v60 = vmul.f32 %v11141_v0, %v15786_v59  ;;  %v1948_v49 = vadd.f32 %v1940_v51, %v1927_v24  ;;  %v11257_v37 = vpop.permute.xlu1 %3137  ;;  %v11266_v58 = vpop.permute.xlu0 %1872  ;;  %v11271_v24 = vld [vmem:[%s15251_s1 + $0x9] ss:$0 sm:$0xff] }
 0x23a   :  { %v1971_v6 = vadd.f32 %v1963_v19, %v1950_v53  ;;  %v1555_v38 = vsel %vm860_vm13, %v1464_v48, %v1554_v31  ;;  %15795 = vst [vmem:[#allocation61_spill] sm:$0xff] %v11257_v37  ;;  %v4456_v22 = vmul.f32 %v11153_v43, %v15796_v23  ;;  %v4475_v8 = vmul.f32 %v11173_v36, %v15796_v23  ;;  %v15798_v19 = vld [vmem:[#allocation93_spill] sm:$0xff]  ;;  %v15799_v31 = vld [vmem:[#allocation126_spill] sm:$0xff] }
 0x23b   :  { %v2485_v26 = vmul.f32 %v11199_v15, %v15797_v63  ;;  %v1556_v14 = vsel %vm862_vm14, %v1471_v17, %v1555_v38  ;;  %v4462_v59 = vadd.f32 %v4454_v61, %v4433_v34  ;;  %v2528_v51 = vmul.f32 %v11271_v24, %v15798_v19  ;;  %v15800_v10 = vld [vmem:[#allocation94_spill] sm:$0xff]  ;;  %v15801_v61 = vld [vmem:[#allocation95_spill] sm:$0xff]  ;;  %v15802_v38 = vld [vmem:[#allocation96_spill] sm:$0xff] }
 0x23c   :  { %v1969_v53 = vadd.f32 %v1961_v41, %v1948_v49  ;;  %v1557_v48 = vsel %vm864_vm15, %v1478_v57, %v1556_v14  ;;  %2339 = vbcast.lane.b32.xlu1 %v15799_v31, 264  ;;  %v2487_v63 = vmul.f32 %v11199_v15, %v15800_v10  ;;  %v2506_v17 = vmul.f32 %v11248_v52, %v15800_v10  ;;  %v15803_v19 = vld [vmem:[#allocation127_spill] sm:$0xff]  ;;  %v15804_v57 = vld [vmem:[#allocation97_spill] sm:$0xff] }
 0x23d   :  { %v3763_v34 = vmul.f32 %v11153_v43, %v15801_v61  ;;  %v3742_v23 = vmul.f32 %v11141_v0, %v15802_v38  ;;  %1568 = vst.msk [vmem:[#allocation3 + $0x21] sm:$0xff] %vm69_vm6, %v1557_v48  ;;  %2328 = vbcast.lane.b32.xlu0 %v15803_v19, 264  ;;  %v3186_v41 = vadd.f32 %v3178_v3, %v11000_v32  ;;  %v11295_v37 = vpop.permute.xlu1 %4497  ;;  %v15806_v48 = vld [vmem:[#allocation43_spill] sm:$0xff]  ;;  %v11302_v54 = vpop.permute.xlu0 %3252  ;;  %v15808_v3 = vld [vmem:[#allocation98_spill] sm:$0xff] }
 0x23e   :  { %v3868_v49 = vmul.f32 %v11199_v15, %v15804_v57  ;;  %v11292_v14 = vadd.f32 %v11177_v50, %v11182_v55  ;;  %v1986_v10 = vmul.f32 %v10717_v12, %v1971_v6  ;;  %15805 = vst [vmem:[#allocation60_spill] sm:$0xff] %v11295_v37  ;;  %v3205_v2 = vadd.f32 %v3197_v44, %v3184_v39  ;;  %v15809_v55 = vld [vmem:[#allocation102_spill] sm:$0xff]  ;;  %v15816_v37 = vld [vmem:[#allocation135_spill] sm:$0xff] }
 0x23f   :  { %v11297_v7 = vadd.f32 %v4456_v22, %v4435_v60  ;;  %v11299_v38 = vadd.f32 %v4475_v8, %v4462_v59  ;;  %v2493_v20 = vadd.f32 %v2485_v26, %v15806_v48  ;;  %15807 = vst [vmem:[#allocation66_spill] sm:$0xff] %v11302_v54  ;;  %v11305_v32 = vadd.f32 %v2528_v51, %v11127_v16  ;;  %v11314_v22 = vld [vmem:[%s15252_s2] ss:$0 sm:$0xff]  ;;  %v15810_v59 = vld [vmem:[#allocation99_spill] sm:$0xff] }
 0x240   :  { %v3765_v50 = vmul.f32 %v11153_v43, %v15808_v3  ;;  %v5146_v12 = vmul.f32 %v11153_v43, %v15809_v55  ;;  %v1984_v44 = vmul.f32 %v11314_v22, %v1969_v53  ;;  %2457 = vbcast.lane.b32.xlu1 %v15803_v19, 257  ;;  %v11319_v39 = vadd.f32 %v2487_v63, %v11115_v45  ;;  %v15815_v48 = vld [vmem:[#allocation105_spill] sm:$0xff] }
 0x241   :  { %v11321_v16 = vadd.f32 %v2506_v17, %v2493_v20  ;;  %v3744_v60 = vmul.f32 %v11141_v0, %v15801_v61  ;;  %v3771_v6 = vadd.f32 %v3763_v34, %v3742_v23  ;;  %2449 = vbcast.lane.b32.xlu0 %v15792_v33, 257  ;;  %v3876_v8 = vadd.f32 %v3868_v49, %v10980_v62  ;;  %v11332_v45 = vpop.permute.xlu1 %4517  ;;  %v15812_v20 = vld [vmem:[#allocation100_spill] sm:$0xff]  ;;  %v15813_v61 = vld [vmem:[#allocation101_spill] sm:$0xff] }
 0x242   :  { %v3784_v26 = vmul.f32 %v11173_v36, %v15808_v3  ;;  %v5125_v51 = vmul.f32 %v11141_v0, %v15810_v59  ;;  %v2001_v53 = vadd.f32 %v10746_v27, %v1986_v10  ;;  %15811 = vst [vmem:[#allocation67_spill] sm:$0xff] %v11332_v45  ;;  %v3870_v63 = vmul.f32 %v11199_v15, %v15812_v20  ;;  %v11342_v23 = vpop.permute.xlu0 %4505  ;;  %v15817_v33 = vld [vmem:[#allocation108_spill] sm:$0xff] }
 0x243   :  { %v3889_v17 = vmul.f32 %v11248_v52, %v15812_v20  ;;  %v5148_v34 = vmul.f32 %v11153_v43, %v15813_v61  ;;  %v5127_v62 = vmul.f32 %v11141_v0, %v15809_v55  ;;  %15814 = vst [vmem:[#allocation70_spill] sm:$0xff] %v11342_v23  ;;  %v3773_v57 = vadd.f32 %v3765_v50, %v3744_v60 }
 0x244   :  { %v5154_v49 = vadd.f32 %v5146_v12, %v5125_v51  ;;  %v1816_v10 = vmul.f32 %v11248_v52, %v15815_v48  ;;  %v1999_v3 = vadd.f32 %v10746_v27, %v1984_v44  ;;  %v5724_v59 = vld [vmem:[#allocation3 + $0x20] sm:$0xff]  ;;  %3708 = vbcast.lane.b32.xlu1 %v15816_v37, 256  ;;  %v1835_v20 = vmul.f32 %v11271_v24, %v15815_v48  ;;  %v15818_v12 = vld [vmem:[#allocation109_spill] sm:$0xff] }
 0x245   :  { %v6263_v45 = vld [vmem:[#allocation3 + $0x21] sm:$0xff]  ;;  %v3199_v19 = vmul.f32 %v11248_v52, %v15817_v33  ;;  %v3218_v55 = vmul.f32 %v11271_v24, %v15817_v33  ;;  %9148 = vmatmul.mubr.msk.f32.vlgmr.msra.gmra.mrb[0].mxu1 %vm69_vm6, %v5724_v59  ;;  %v11356_v50 = vadd.f32 %v3784_v26, %v3771_v6  ;;  %v5167_v27 = vmul.f32 %v11173_v36, %v15813_v61  ;;  %v11363_v48 = vpop.permute.xlu1 %944  ;;  %v15823_v61 = vld [vmem:[#allocation113_spill] sm:$0xff] }
 0x246   :  { %9260 = vmatmul.mubr.msk.f32.vlgmr.msra.gmra.mrb[0].mxu0 %vm69_vm6, %v6263_v45  ;;  %v3094_v44 = vmul.f32 %v11173_v36, %v15818_v12  ;;  %v2009_v60 = vmax.f32 %v2001_v53, 0.0  ;;  %v15819_v51 = vld [vmem:[#allocation136_spill] sm:$0xff]  ;;  %15820 = vst [vmem:[#allocation68_spill] sm:$0xff] %v11363_v48  ;;  %v3878_v23 = vadd.f32 %v3870_v63, %v11118_v1  ;;  %v3897_v33 = vadd.f32 %v3889_v17, %v3876_v8  ;;  %v15821_v59 = vld [vmem:[#allocation111_spill] sm:$0xff]  ;;  %v11376_v53 = vld [vmem:[%s15251_s1 + $0x2] ss:$0 sm:$0xff] }
 0x247   :  { %3697 = vbcast.lane.b32.xlu0 %v15819_v51, 256  ;;  %v5156_v37 = vadd.f32 %v5148_v34, %v5127_v62  ;;  %v4477_v45 = vmul.f32 %v11173_v36, %v15821_v59  ;;  %v11368_v6 = vpop.permute.xlu0 %933  ;;  %v11371_v26 = vadd.f32 %v1816_v10, %v11133_v56  ;;  %v2611_v12 = vmul.f32 %v11376_v53, %v15823_v61  ;;  %v15824_v8 = vld [vmem:[#allocation13_spill] sm:$0xff]  ;;  %v15826_v34 = vld [vmem:[#allocation114_spill] sm:$0xff] }
 0x248   :  { %15822 = vst [vmem:[#allocation8_spill] sm:$0xff] %v11368_v6  ;;  %v2007_v48 = vmax.f32 %v1999_v3, 0.0  ;;  %v11380_v1 = vadd.f32 %v5167_v27, %v5154_v49  ;;  %3948 = vbcast.lane.b32.xlu1 %v15824_v8, 266  ;;  %v11384_v63 = vadd.f32 %v1835_v20, %v11135_v29  ;;  %v11386_v17 = vadd.f32 %v3199_v19, %v3186_v41  ;;  %v15827_v3 = vld [vmem:[#allocation116_spill] sm:$0xff]  ;;  %v11400_v29 = vld [vmem:[%s15251_s1 + $0x9] ss:$0 sm:$0xff] }
 0x249   :  { %v11388_v56 = vadd.f32 %v3218_v55, %v3205_v2  ;;  %v2508_v62 = vmul.f32 %v11248_v52, %v15826_v34  ;;  %v3102_v10 = vadd.f32 %v3094_v44, %v11189_v35  ;;  %v2527_v59 = vmul.f32 %v11271_v24, %v15826_v34  ;;  %v15828_v2 = vld [vmem:[#allocation137_spill] sm:$0xff]  ;;  %v11404_v41 = vpop.permute.xlu1 %1065  ;;  %v15831_v44 = vld [vmem:[#allocation120_spill] sm:$0xff]  ;;  %v15833_v34 = vld [vmem:[#allocation123_spill] sm:$0xff] }
 0x24a   :  { %v3786_v49 = vmul.f32 %v11173_v36, %v15827_v3  ;;  %v2016_v19 = vsel %vm69_vm6, %v2009_v60, -inf  ;;  %15829 = vst [vmem:[#allocation110_spill] sm:$0xff] %v11404_v41  ;;  %v11407_v20 = vadd.f32 %v4477_v45, %v11297_v7  ;;  %v15830_v35 = vld [vmem:[#allocation117_spill] sm:$0xff]  ;;  %v5169_v61 = vmul.f32 %v11173_v36, %v15831_v44  ;;  %v15834_v41 = vld [vmem:[#allocation124_spill] sm:$0xff] }
 0x24b   :  { %15825 = vst [vmem:[#allocation89_spill] sm:$0xff] %v11388_v56  ;;  %3719 = vbcast.lane.b32.xlu0 %v15828_v2, 256  ;;  %v2613_v55 = vmul.f32 %v11376_v53, %v15830_v35  ;;  %v2632_v27 = vmul.f32 %v11227_v28, %v15830_v35  ;;  %v11415_v8 = vpop.permute.xlu0 %955  ;;  %v2619_v60 = vadd.f32 %v2611_v12, %v11130_v9  ;;  %v2015_v45 = vsel %vm69_vm6, %v2007_v48, -inf  ;;  %v15835_v35 = vld [vmem:[#allocation121_spill] sm:$0xff]  ;;  %v15842_v56 = vld [vmem:[#allocation18_spill] sm:$0xff] }
 0x24c   :  { %15832 = vst [vmem:[#allocation112_spill] sm:$0xff] %v11415_v8  ;;  %v298_v3 = vmul.f32 %v11153_v43, %v15833_v34  ;;  %v276_v7 = vmul.f32 %v11141_v0, %v15834_v41  ;;  %5328 = vbcast.lane.b32.xlu1 %v15751_v46, 258  ;;  %v11425_v6 = vadd.f32 %v2508_v62, %v11319_v39  ;;  %v15836_v41 = vld [vmem:[#allocation134_spill] sm:$0xff]  ;;  %v15837_v39 = vld [vmem:[#allocation59_spill] sm:$0xff] }
 0x24d   :  { %v3891_v44 = vmul.f32 %v11248_v52, %v15835_v35  ;;  %v3910_v8 = vmul.f32 %v11400_v29, %v15835_v35  ;;  %v2017_v9 = vmax.f32 %v2015_v45, %v2016_v19  ;;  %v11432_v12 = vadd.f32 %v2527_v59, %v11321_v16  ;;  %v11441_v62 = vpop.permute.xlu1 %2313  ;;  %v15839_v19 = vld [vmem:[#allocation147_spill] sm:$0xff]  ;;  %v15841_v45 = vld [vmem:[#allocation141_spill] sm:$0xff] }
 0x24e   :  { %v11434_v2 = vadd.f32 %v3786_v49, %v3773_v57  ;;  %v300_v48 = vmul.f32 %v11153_v43, %v15836_v41  ;;  %v320_v46 = vmul.f32 %v11173_v36, %v15836_v41  ;;  %15838 = vst [vmem:[#allocation14_spill] sm:$0xff] %v11441_v62  ;;  %v2621_v51 = vadd.f32 %v2613_v55, %v11305_v32  ;;  %v15844_v55 = vld [vmem:[#allocation146_spill] sm:$0xff] }
 0x24f   :  { %5213 = vbcast.lane.b32.xlu0 %v15837_v39, 265  ;;  %v2640_v54 = vadd.f32 %v2632_v27, %v2619_v60  ;;  %v11444_v35 = vadd.f32 %v5169_v61, %v5156_v37  ;;  %v3177_v16 = vmul.f32 %v11199_v15, %v15839_v19  ;;  %v11448_v57 = vpop.permute.xlu0 %1073  ;;  %v278_v59 = vmul.f32 %v11141_v0, %v15833_v34  ;;  %v11473_v19 = vld [vmem:[%s15251_s1 + $0x1] ss:$0 sm:$0xff] }
 0x250   :  { %15840 = vst [vmem:[#allocation12_spill] sm:$0xff] %v11448_v57  ;;  %v306_v49 = vadd.f32 %v298_v3, %v276_v7  ;;  %v1837_v41 = vmul.f32 %v11271_v24, %v15841_v45  ;;  %v4455_v62 = vmul.f32 %v11153_v43, %v15842_v56  ;;  %493 = vbcast.lane.b32.xlu1 %v15756_v47, 258  ;;  %v15846_v3 = vld [vmem:[#allocation19_spill] sm:$0xff] }
 0x251   :  { %v11457_v32 = vadd.f32 %v3891_v44, %v3878_v23  ;;  %v11459_v37 = vadd.f32 %v3910_v8, %v3897_v33  ;;  %v3179_v27 = vmul.f32 %v11199_v15, %v15844_v55  ;;  %v2038_v61 = vrot.slane %v2017_v9, %v10514_v40  ;;  %v15847_v23 = vld [vmem:[#allocation28_spill] sm:$0xff]  ;;  %v15848_v8 = vld [vmem:[#allocation65_spill] sm:$0xff]  ;;  %v11478_v44 = vpop.permute.xlu1 %2335 }
 0x252   :  { %v11464_v60 = vadd.f32 %v300_v48, %v278_v59  ;;  %v11466_v34 = vadd.f32 %v320_v46, %v306_v49  ;;  %v4434_v7 = vmul.f32 %v11141_v0, %v15846_v3  ;;  %v2653_v33 = vmul.f32 %v11237_v11, %v15847_v23  ;;  %15849 = vst [vmem:[#allocation73_spill] sm:$0xff] %v11478_v44  ;;  %v15850_v59 = vld [vmem:[#allocation151_spill] sm:$0xff]  ;;  %v15851_v49 = vld [vmem:[#allocation17_spill] sm:$0xff] }
 0x253   :  { %15843 = vst [vmem:[#allocation71_spill] sm:$0xff] %v11459_v37  ;;  %386 = vbcast.lane.b32.xlu0 %v15848_v8, 265  ;;  %v3185_v48 = vadd.f32 %v3177_v16, %v11292_v14  ;;  %v3220_v46 = vmul.f32 %v11271_v24, %v15850_v59  ;;  %v4457_v45 = vmul.f32 %v11153_v43, %v15851_v49  ;;  %v11487_v47 = vpop.permute.xlu0 %2324  ;;  %v15853_v14 = vld [vmem:[#allocation128_spill] sm:$0xff] }
 0x254   :  { %15845 = vst [vmem:[#allocation79_spill] sm:$0xff] %v11466_v34  ;;  %v4436_v3 = vmul.f32 %v11141_v0, %v15842_v56  ;;  %15852 = vst [vmem:[#allocation74_spill] sm:$0xff] %v11487_v47  ;;  %v11490_v57 = vadd.f32 %v1837_v41, %v11371_v26  ;;  %v4463_v34 = vadd.f32 %v4455_v62, %v4434_v7  ;;  %1658 = vbcast.lane.b32.xlu1 %v15853_v14, 264  ;;  %v11502_v56 = vld [vmem:[%s15251_s1 + $0x5] ss:$0 sm:$0xff]  ;;  %v15854_v47 = vld [vmem:[#allocation20_spill] sm:$0xff] }
 0x255   :  { %v2634_v44 = vmul.f32 %v11227_v28, %v15847_v23  ;;  %v2031_v37 = vcombine.high %v2017_v9, %v2017_v9  ;;  %v11495_v16 = vadd.f32 %v3179_v27, %v3102_v10  ;;  %v3198_v59 = vmul.f32 %v11248_v52, %v15844_v55  ;;  %v15855_v9 = vld [vmem:[#allocation21_spill] sm:$0xff]  ;;  %v15859_v8 = vld [vmem:[#allocation44_spill] sm:$0xff] }
 0x256   :  { %v4562_v26 = vmul.f32 %v11473_v19, %v15854_v47  ;;  %v2046_v62 = vcombine.high %v2038_v61, %v2038_v61  ;;  %v4476_v41 = vmul.f32 %v11173_v36, %v15851_v49  ;;  %v4560_v7 = vmul.f32 %v11473_v19, %v15855_v9  ;;  %v11513_v55 = vpop.permute.xlu1 %3829 }
 0x257   :  { %v2661_v10 = vadd.f32 %v2653_v33, %v2640_v54  ;;  %v2655_v27 = vmul.f32 %v11237_v11, %v11078_v13  ;;  %501 = vbcast.lane.b32.xlu0 %v15755_v21, 258  ;;  %15856 = vst [vmem:[#allocation78_spill] sm:$0xff] %v11513_v55  ;;  %v11515_v23 = vadd.f32 %v3198_v59, %v3185_v48  ;;  %v11524_v39 = vpop.permute.xlu0 %2564  ;;  %v15862_v48 = vld [vmem:[#allocation138_spill] sm:$0xff] }
 0x258   :  { %v11518_v14 = vadd.f32 %v3220_v46, %v11386_v17  ;;  %v11520_v25 = vadd.f32 %v4457_v45, %v4436_v3  ;;  %v1920_v49 = vmul.f32 %v11376_v53, %v15859_v8  ;;  %15860 = vst [vmem:[#allocation83_spill] sm:$0xff] %v11524_v39  ;;  %v4581_v54 = vmul.f32 %v11502_v56, %v15854_v47  ;;  %v15864_v46 = vld [vmem:[#allocation24_spill] sm:$0xff]  ;;  %v15865_v3 = vld [vmem:[#allocation30_spill] sm:$0xff] }
 0x259   :  { %v2642_v13 = vadd.f32 %v2634_v44, %v2621_v51  ;;  %v2045_v33 = vrot.slane %v2031_v37, %v10514_v40  ;;  %v11529_v9 = vadd.f32 %v4476_v41, %v4463_v34  ;;  %3038 = vbcast.lane.b32.xlu1 %v15862_v48, 256  ;;  %v11533_v17 = vadd.f32 %v4562_v26, %v11407_v20  ;;  %v15867_v44 = vld [vmem:[#allocation25_spill] sm:$0xff]  ;;  %v15870_v48 = vld [vmem:[#allocation23_spill] sm:$0xff] }
 0x25a   :  { %15857 = vst [vmem:[#allocation82_spill] sm:$0xff] %v11518_v14  ;;  %15858 = vst [vmem:[#allocation81_spill] sm:$0xff] %v11520_v25  ;;  %v998_v45 = vmul.f32 %v11153_v43, %v15864_v46  ;;  %v977_v8 = vmul.f32 %v11141_v0, %v15865_v3  ;;  %v2122_v59 = vsel %vm71_vm7, %v2046_v62, -inf  ;;  %v4568_v47 = vadd.f32 %v4560_v7, %v11299_v38  ;;  %v11545_v20 = vpop.permute.xlu1 %5189 }
 0x25b   :  { %15861 = vst [vmem:[#allocation84_spill] sm:$0xff] %v11529_v9  ;;  %15863 = vst [vmem:[#allocation11_spill] sm:$0xff] %v11533_v17  ;;  %v979_v51 = vmul.f32 %v11141_v0, %v15864_v46  ;;  %v2676_v37 = vmul.f32 %v11314_v22, %v2661_v10  ;;  %v2663_v34 = vadd.f32 %v2655_v27, %v2642_v13  ;;  %1773 = vbcast.lane.b32.xlu0 %v15761_v42, 257  ;;  %v11553_v7 = vpop.permute.xlu0 %3944  ;;  %v15869_v46 = vld [vmem:[#allocation31_spill] sm:$0xff] }
 0x25c   :  { %15866 = vst [vmem:[#allocation106_spill] sm:$0xff] %v11545_v20  ;;  %v1000_v26 = vmul.f32 %v11153_v43, %v15867_v44  ;;  %v1019_v41 = vmul.f32 %v11173_v36, %v15867_v44  ;;  %v1928_v62 = vadd.f32 %v1920_v49, %v11384_v63  ;;  %v2115_v38 = vsel %vm71_vm7, %v2038_v61, -inf  ;;  %15868 = vst [vmem:[#allocation86_spill] sm:$0xff] %v11553_v7  ;;  %v15871_v20 = vld [vmem:[#allocation27_spill] sm:$0xff]  ;;  %v15872_v44 = vld [vmem:[#allocation42_spill] sm:$0xff] }
 0x25d   :  { %v3869_v10 = vmul.f32 %v11199_v15, %v15869_v46  ;;  %v2047_v27 = vcombine.high %v2045_v33, %v2045_v33  ;;  %v2123_v13 = vrot.slane %v2122_v59, 4  ;;  %v2129_v3 = vsel %vm71_vm7, %v2045_v33, -inf  ;;  %4624 = vbcast.lane.b32.xlu1 %v15870_v48, 266  ;;  %v11568_v49 = vld [vmem:[%s15253_s3] ss:$0 sm:$0xff] }
 0x25e   :  { %v1006_v42 = vadd.f32 %v998_v45, %v977_v8  ;;  %v2529_v55 = vmul.f32 %v11271_v24, %v15871_v20  ;;  %v1941_v63 = vmul.f32 %v11227_v28, %v15872_v44  ;;  %v1962_v61 = vmul.f32 %v11237_v11, %v11266_v58  ;;  %v15873_v33 = vld [vmem:[#allocation29_spill] sm:$0xff]  ;;  %v15874_v20 = vld [vmem:[#allocation15_spill] sm:$0xff]  ;;  %v11575_v21 = vpop.permute.xlu1 %5209 }
 0x25f   :  { %v2691_v46 = vadd.f32 %v11568_v49, %v2676_v37  ;;  %v3871_v48 = vmul.f32 %v11199_v15, %v15873_v33  ;;  %v2116_v45 = vrot.slane %v2115_v38, 4  ;;  %v2678_v8 = vmul.f32 %v11314_v22, %v2663_v34  ;;  %3264 = vbcast.lane.b32.xlu0 %v15874_v20, 266  ;;  %v11581_v14 = vpop.permute.xlu0 %5197 }
 0x260   :  { %v11577_v9 = vadd.f32 %v4581_v54, %v4568_v47  ;;  %v11579_v7 = vadd.f32 %v1000_v26, %v979_v51  ;;  %v1949_v25 = vadd.f32 %v1941_v63, %v1928_v62  ;;  %v2130_v17 = vrot.slane %v2129_v3, 4  ;;  %v15879_v63 = vld [vmem:[#allocation35_spill] sm:$0xff] }
 0x261   :  { %v11583_v39 = vadd.f32 %v1019_v41, %v1006_v42  ;;  %v3877_v37 = vadd.f32 %v3869_v10, %v11356_v50  ;;  %v2124_v15 = vmax.f32 %v2122_v59, %v2123_v13  ;;  %v2136_v40 = vsel %vm71_vm7, %v2047_v27, -inf  ;;  %4644 = vbcast.lane.b32.xlu1 %v10169_v4, 258  ;;  %v15875_v41 = vld [vmem:[#allocation22_spill] sm:$0xff] }
 0x262   :  { %v11589_v34 = vadd.f32 %v2529_v55, %v11425_v6  ;;  %v3890_v54 = vmul.f32 %v11248_v52, %v15873_v33  ;;  %v1922_v47 = vmul.f32 %v11376_v53, %v15872_v44  ;;  %v1970_v51 = vadd.f32 %v1962_v61, %v1949_v25  ;;  %v11600_v62 = vpop.permute.xlu1 %382  ;;  %v15876_v6 = vld [vmem:[#allocation33_spill] sm:$0xff]  ;;  %v15880_v33 = vld [vmem:[#allocation34_spill] sm:$0xff] }
 0x263   :  { %v2699_v26 = vmax.f32 %v2691_v46, 0.0  ;;  %v11596_v42 = vadd.f32 %v3871_v48, %v11434_v2  ;;  %v2117_v50 = vmax.f32 %v2115_v38, %v2116_v45  ;;  %v2693_v59 = vadd.f32 %v11568_v49, %v2678_v8  ;;  %4632 = vbcast.lane.b32.xlu0 %v15875_v41, 266  ;;  %v11606_v25 = vpop.permute.xlu0 %265  ;;  %v15878_v2 = vld [vmem:[#allocation38_spill] sm:$0xff]  ;;  %v15881_v8 = vld [vmem:[#allocation45_spill] sm:$0xff]  ;;  %v15882_v41 = vld [vmem:[#allocation80_spill] sm:$0xff] }
 0x264   :  { %v5126_v55 = vmul.f32 %v11141_v0, %v15876_v6  ;;  %v2131_v10 = vmax.f32 %v2129_v3, %v2130_v17  ;;  %v2137_v27 = vrot.slane %v2136_v40, 4  ;;  %v1943_v13 = vmul.f32 %v11227_v28, %v11266_v58  ;;  %15877 = vst [vmem:[#allocation107_spill] sm:$0xff] %v11606_v25 }
 0x265   :  { %v11608_v44 = vadd.f32 %v3890_v54, %v3877_v37  ;;  %v3912_v38 = vmul.f32 %v11400_v29, %v15878_v2  ;;  %v5147_v61 = vmul.f32 %v11153_v43, %v15879_v63  ;;  %v2125_v46 = vrot.slane %v2124_v15, 2  ;;  %1192 = vbcast.lane.b32.xlu1 %v15789_v5, 258 }
 0x266   :  { %v5149_v17 = vmul.f32 %v11153_v43, %v15880_v33  ;;  %v5128_v3 = vmul.f32 %v11141_v0, %v15879_v63  ;;  %v1930_v58 = vadd.f32 %v1922_v47, %v11490_v57  ;;  %v1985_v48 = vmul.f32 %v11314_v22, %v1970_v51  ;;  %v1881_v6 = vpop.permute.xlu1 %1880  ;;  %v15884_v63 = vld [vmem:[#allocation129_spill] sm:$0xff] }
 0x267   :  { %v2707_v45 = vsel %vm69_vm6, %v2699_v26, -inf  ;;  %v5252_v20 = vmul.f32 %v11473_v19, %v15881_v8  ;;  %v2118_v37 = vrot.slane %v2117_v50, 2  ;;  %v2701_v54 = vmax.f32 %v2693_v59, 0.0  ;;  %1085 = vbcast.lane.b32.xlu0 %v15882_v41, 265  ;;  %v11626_v0 = vpop.permute.xlu0 %1654  ;;  %v15885_v8 = vld [vmem:[#allocation37_spill] sm:$0xff] }
 0x268   :  { %v2132_v2 = vrot.slane %v2131_v10, 2  ;;  %v2138_v5 = vmax.f32 %v2136_v40, %v2137_v27  ;;  %v1951_v43 = vadd.f32 %v1943_v13, %v1930_v58  ;;  %v1964_v4 = vmul.f32 %v11237_v11, %v1881_v6  ;;  %15883 = vst [vmem:[#allocation87_spill] sm:$0xff] %v11626_v0  ;;  %v15886_v6 = vld [vmem:[#allocation41_spill] sm:$0xff] }
 0x269   :  { %v11629_v57 = vadd.f32 %v3912_v38, %v11457_v32  ;;  %v5168_v47 = vmul.f32 %v11173_v36, %v15880_v33  ;;  %v5155_v51 = vadd.f32 %v5147_v61, %v5126_v55  ;;  %v2126_v26 = vmax.f32 %v2124_v15, %v2125_v46  ;;  %2350 = vbcast.lane.b32.xlu1 %v15884_v63, 264  ;;  %v15888_v55 = vld [vmem:[#allocation51_spill] sm:$0xff] }
 0x26a   :  { %v11634_v59 = vadd.f32 %v5149_v17, %v5128_v3  ;;  %v5254_v40 = vmul.f32 %v11473_v19, %v15885_v8  ;;  %v2000_v27 = vadd.f32 %v11568_v49, %v1985_v48  ;;  %v1972_v13 = vadd.f32 %v1964_v4, %v1951_v43  ;;  %v11644_v15 = vpop.permute.xlu1 %3248 }
 0x26b   :  { %v5260_v58 = vadd.f32 %v5252_v20, %v11380_v1  ;;  %v322_v32 = vmul.f32 %v11173_v36, %v15886_v6  ;;  %v2119_v38 = vmax.f32 %v2117_v50, %v2118_v37  ;;  %v2708_v33 = vsel %vm69_vm6, %v2701_v54, -inf  ;;  %1200 = vbcast.lane.b32.xlu0 %v10261_v18, 258  ;;  %15887 = vst [vmem:[#allocation88_spill] sm:$0xff] %v11644_v15  ;;  %v11649_v4 = vpop.permute.xlu0 %3240  ;;  %v15890_v37 = vld [vmem:[#allocation139_spill] sm:$0xff] }
 0x26c   :  { %v3200_v61 = vmul.f32 %v11248_v52, %v15888_v55  ;;  %v2133_v46 = vmax.f32 %v2131_v10, %v2132_v2  ;;  %v2139_v17 = vrot.slane %v2138_v5, 2  ;;  %v1987_v3 = vmul.f32 %v11314_v22, %v1972_v13  ;;  %15889 = vst [vmem:[#allocation85_spill] sm:$0xff] %v11649_v4  ;;  %v11661_v10 = vld [vmem:[%s15251_s1 + $0x2] ss:$0 sm:$0xff] }
 0x26d   :  { %v5273_v1 = vmul.f32 %v11502_v56, %v15885_v8  ;;  %v3219_v50 = vmul.f32 %v11271_v24, %v15888_v55  ;;  %v2127_v48 = vrot.slane %v2126_v26, 1  ;;  %v11655_v20 = vadd.f32 %v5168_v47, %v5155_v51  ;;  %3730 = vbcast.lane.b32.xlu1 %v15890_v37, 256 }
 0x26e   :  { %v2612_v54 = vmul.f32 %v11376_v53, %v11069_v30  ;;  %v2709_v2 = vmax.f32 %v2707_v45, %v2708_v33  ;;  %v2008_v43 = vmax.f32 %v2000_v27, 0.0  ;;  %v2002_v8 = vadd.f32 %v11568_v49, %v1987_v3  ;;  %v11675_v6 = vpop.permute.xlu1 %4513  ;;  %v15894_v3 = vld [vmem:[#allocation69_spill] sm:$0xff] }
 0x26f   :  { %v11667_v13 = vadd.f32 %v5254_v40, %v11444_v35  ;;  %v11669_v24 = vadd.f32 %v5273_v1, %v5260_v58  ;;  %v11672_v47 = vadd.f32 %v322_v32, %v11464_v60  ;;  %v2120_v51 = vrot.slane %v2119_v38, 1  ;;  %2465 = vbcast.lane.b32.xlu0 %v15799_v31, 257  ;;  %15891 = vst [vmem:[#allocation32_spill] sm:$0xff] %v11675_v6  ;;  %v11683_v35 = vld [vmem:[%s15251_s1 + $0x6] ss:$0 sm:$0xff]  ;;  %v11685_v27 = vpop.permute.xlu0 %3260 }
 0x270   :  { %v11678_v55 = vadd.f32 %v3200_v61, %v11495_v16  ;;  %v2134_v30 = vrot.slane %v2133_v46, 1  ;;  %v2140_v45 = vmax.f32 %v2138_v5, %v2139_v17  ;;  %v2010_v40 = vmax.f32 %v2002_v8, 0.0  ;;  %v15893_v32 = vld [vmem:[#allocation46_spill] sm:$0xff]  ;;  %v15895_v61 = vld [vmem:[#allocation36_spill] sm:$0xff] }
 0x271   :  { %v11688_v60 = vadd.f32 %v3219_v50, %v11515_v23  ;;  %v2128_v58 = vmax.f32 %v2126_v26, %v2127_v48  ;;  %v3305_v33 = vmul.f32 %v11661_v10, %v15893_v32  ;;  %v2614_v16 = vmul.f32 %v11376_v53, %v15894_v3  ;;  %5316 = vbcast.lane.b32.xlu1 %v15895_v61, 266  ;;  %v15896_v17 = vld [vmem:[#allocation122_spill] sm:$0xff]  ;;  %v15897_v48 = vld [vmem:[#allocation16_spill] sm:$0xff] }
 0x272   :  { %v2620_v5 = vadd.f32 %v2612_v54, %v11432_v12  ;;  %v2730_v1 = vrot.slane %v2709_v2, %v15896_v17  ;;  %v2018_v8 = vsel %vm69_vm6, %v2008_v43, -inf  ;;  %v2019_v37 = vsel %vm69_vm6, %v2010_v40, -inf  ;;  %v11704_v53 = vpop.permute.xlu1 %4628  ;;  %v15899_v12 = vld [vmem:[#allocation47_spill] sm:$0xff] }
 0x273   :  { %15892 = vst [vmem:[#allocation90_spill] sm:$0xff] %v11688_v60  ;;  %v2121_v31 = vmax.f32 %v2119_v38, %v2120_v51  ;;  %v11701_v23 = vmul.f32 %v11683_v35, %v15893_v32  ;;  %v2723_v26 = vcombine.high %v2709_v2, %v2709_v2  ;;  %v2020_v50 = vmax.f32 %v2018_v8, %v2019_v37  ;;  %v11712_v38 = vpop.permute.xlu0 %4620  ;;  %v15901_v40 = vld [vmem:[#allocation83_spill] sm:$0xff]  ;;  %v15904_v60 = vld [vmem:[#allocation40_spill] sm:$0xff] }
 0x274   :  { %3956 = vbcast.lane.b32.xlu0 %v15897_v48, 266  ;;  %15898 = vst [vmem:[#allocation91_spill] sm:$0xff] %v11704_v53  ;;  %v2135_v61 = vmax.f32 %v2133_v46, %v2134_v30  ;;  %v2141_v18 = vrot.slane %v2140_v45, 1  ;;  %v11708_v54 = vmul.f32 %v11661_v10, %v15899_v12  ;;  %v2633_v43 = vmul.f32 %v11227_v28, %v15894_v3  ;;  %v15902_v8 = vld [vmem:[#allocation59_spill] sm:$0xff]  ;;  %v15903_v46 = vld [vmem:[#allocation82_spill] sm:$0xff] }
 0x275   :  { %15900 = vst [vmem:[#allocation93_spill] sm:$0xff] %v11712_v38  ;;  %v2243_v51 = vsel %vm852_vm9, %v2128_v58, %v2121_v31  ;;  %v2654_v37 = vmul.f32 %v11237_v11, %v15901_v40  ;;  %v2048_v2 = vcombine.high %v2020_v50, %v2020_v50  ;;  %v2055_v32 = vrot.slane %v2020_v50, %v15896_v17 }
 0x276   :  { %5336 = vbcast.lane.b32.xlu1 %v15902_v8, 258  ;;  %v11720_v30 = vadd.f32 %v3305_v33, %v15903_v46  ;;  %v2622_v48 = vadd.f32 %v2614_v16, %v11589_v34  ;;  %v2641_v12 = vadd.f32 %v2633_v43, %v2620_v5  ;;  %v2738_v53 = vcombine.high %v2730_v1, %v2730_v1  ;;  %v11727_v15 = vpop.permute.xlu1 %1081 }
 0x277   :  { %v2737_v3 = vrot.slane %v2723_v26, %v15896_v17  ;;  %v2062_v6 = vrot.slane %v2048_v2, %v15896_v17  ;;  %v2063_v31 = vcombine.high %v2055_v32, %v2055_v32  ;;  %v2143_v58 = vsel %vm71_vm7, %v2055_v32, -inf  ;;  %15905 = vst [vmem:[#allocation94_spill] sm:$0xff] %v11727_v15  ;;  %v11732_v16 = vpop.permute.xlu0 %966  ;;  %v15907_v32 = vld [vmem:[#allocation65_spill] sm:$0xff] }
 0x278   :  { %5324 = vbcast.lane.b32.xlu0 %v15904_v60, 266  ;;  %v2142_v50 = vmax.f32 %v2140_v45, %v2141_v18  ;;  %v2244_v8 = vsel %vm854_vm10, %v2135_v61, %v2243_v51  ;;  %v2635_v33 = vmul.f32 %v11227_v28, %v15901_v40  ;;  %v2144_v34 = vrot.slane %v2143_v58, 4  ;;  %15906 = vst [vmem:[#allocation95_spill] sm:$0xff] %v11732_v16 }
 0x279   :  { %v2662_v5 = vadd.f32 %v2654_v37, %v2641_v12  ;;  %v2064_v26 = vcombine.high %v2062_v6, %v2062_v6  ;;  %v2150_v43 = vsel %vm71_vm7, %v2063_v31, -inf  ;;  %v2157_v2 = vsel %vm71_vm7, %v2062_v6, -inf  ;;  %v15908_v37 = vld [vmem:[#allocation92_spill] sm:$0xff] }
 0x27a   :  { %509 = vbcast.lane.b32.xlu1 %v15907_v32, 258  ;;  %v2814_v60 = vsel %vm71_vm7, %v2738_v53, -inf  ;;  %v2145_v46 = vmax.f32 %v2143_v58, %v2144_v34  ;;  %v2151_v18 = vrot.slane %v2150_v43, 4  ;;  %v2158_v45 = vrot.slane %v2157_v2, 4  ;;  %v2573_v12 = vpop.permute.xlu1 %2572 }
 0x27b   :  { %v2739_v61 = vcombine.high %v2737_v3, %v2737_v3  ;;  %v2807_v51 = vsel %vm71_vm7, %v2730_v1, -inf  ;;  %v2821_v28 = vsel %vm71_vm7, %v2737_v3, -inf  ;;  %v2164_v40 = vsel %vm71_vm7, %v2064_v26, -inf  ;;  %v11742_v32 = vpop.permute.xlu0 %2346  ;;  %v15910_v1 = vld [vmem:[#allocation119_spill] sm:$0xff] }
 0x27c   :  { %394 = vbcast.lane.b32.xlu0 %v15908_v37, 265  ;;  %v2146_v31 = vrot.slane %v2145_v46, 2  ;;  %v2152_v16 = vmax.f32 %v2150_v43, %v2151_v18  ;;  %v2159_v6 = vmax.f32 %v2157_v2, %v2158_v45  ;;  %v2165_v15 = vrot.slane %v2164_v40, 4  ;;  %15909 = vst [vmem:[#allocation96_spill] sm:$0xff] %v11742_v32  ;;  %v15911_v18 = vld [vmem:[#allocation115_spill] sm:$0xff] }
 0x27d   :  { %v2815_v53 = vrot.slane %v2814_v60, 4  ;;  %v2643_v58 = vadd.f32 %v2635_v33, %v2622_v48  ;;  %v2677_v34 = vmul.f32 %v11314_v22, %v2662_v5  ;;  %v2656_v38 = vmul.f32 %v11237_v11, %v2573_v12  ;;  %v15914_v12 = vld [vmem:[#allocation89_spill] sm:$0xff] }
 0x27e   :  { %1769 = vbcast.lane.b32.xlu1 %v15910_v1, 265  ;;  %v2147_v3 = vmax.f32 %v2145_v46, %v2146_v31  ;;  %v2153_v0 = vrot.slane %v2152_v16, 2  ;;  %v2160_v26 = vrot.slane %v2159_v6, 2  ;;  %v2166_v25 = vmax.f32 %v2164_v40, %v2165_v15  ;;  %v11749_v45 = vpop.permute.xlu1 %3940 }
 0x27f   :  { %v2808_v37 = vrot.slane %v2807_v51, 4  ;;  %v2822_v4 = vrot.slane %v2821_v28, 4  ;;  %v2828_v43 = vsel %vm71_vm7, %v2739_v61, -inf  ;;  %v2664_v2 = vadd.f32 %v2656_v38, %v2643_v58  ;;  %15912 = vst [vmem:[#allocation97_spill] sm:$0xff] %v11749_v45  ;;  %v11751_v11 = vpop.permute.xlu0 %3932  ;;  %v15915_v61 = vld [vmem:[#allocation131_spill] sm:$0xff] }
 0x280   :  { %1761 = vbcast.lane.b32.xlu0 %v15911_v18, 265  ;;  %v2148_v48 = vrot.slane %v2147_v3, 1  ;;  %v2154_v33 = vmax.f32 %v2152_v16, %v2153_v0  ;;  %v2161_v5 = vmax.f32 %v2159_v6, %v2160_v26  ;;  %v2167_v32 = vrot.slane %v2166_v25, 2  ;;  %15913 = vst [vmem:[#allocation43_spill] sm:$0xff] %v11751_v11  ;;  %v15916_v26 = vld [vmem:[#allocation128_spill] sm:$0xff] }
 0x281   :  { %v3311_v46 = vadd.f32 %v11708_v54, %v15914_v12  ;;  %v2816_v31 = vmax.f32 %v2814_v60, %v2815_v53  ;;  %v2692_v15 = vadd.f32 %v11568_v49, %v2677_v34  ;;  %v2679_v40 = vmul.f32 %v11314_v22, %v2664_v2 }
 0x282   :  { %3009 = vbcast.lane.b32.xlu1 %v15915_v61, 264  ;;  %v2149_v38 = vmax.f32 %v2147_v3, %v2148_v48  ;;  %v2155_v58 = vrot.slane %v2154_v33, 1  ;;  %v2162_v18 = vrot.slane %v2161_v5, 1  ;;  %v2168_v45 = vmax.f32 %v2166_v25, %v2167_v32  ;;  %v11760_v11 = vpop.permute.xlu1 %5205  ;;  %v15917_v3 = vld [vmem:[#allocation48_spill] sm:$0xff]  ;;  %v15920_v48 = vld [vmem:[#allocation49_spill] sm:$0xff] }
 0x283   :  { %v2809_v1 = vmax.f32 %v2807_v51, %v2808_v37  ;;  %v2823_v0 = vmax.f32 %v2821_v28, %v2822_v4  ;;  %v2829_v16 = vrot.slane %v2828_v43, 4  ;;  %v2245_v6 = vsel %vm856_vm11, %v2142_v50, %v2244_v8  ;;  %v11763_v34 = vpop.permute.xlu0 %3952  ;;  %v15918_v4 = vld [vmem:[#allocation72_spill] sm:$0xff] }
 0x284   :  { %1781 = vbcast.lane.b32.xlu0 %v15916_v26, 257  ;;  %v2156_v54 = vmax.f32 %v2154_v33, %v2155_v58  ;;  %v2163_v60 = vmax.f32 %v2161_v5, %v2162_v18  ;;  %v2169_v53 = vrot.slane %v2168_v45, 1  ;;  %v2246_v22 = vsel %vm858_vm12, %v2149_v38, %v2245_v6  ;;  %v15919_v32 = vld [vmem:[#allocation132_spill] sm:$0xff]  ;;  %v15922_v6 = vld [vmem:[#allocation130_spill] sm:$0xff] }
 0x285   :  { %v4583_v2 = vmul.f32 %v11502_v56, %v15917_v3  ;;  %v4602_v25 = vmul.f32 %v11400_v29, %v15917_v3  ;;  %v4478_v8 = vmul.f32 %v11173_v36, %v15918_v4  ;;  %v2817_v50 = vrot.slane %v2816_v31, 2  ;;  %v15921_v5 = vld [vmem:[#allocation52_spill] sm:$0xff] }
 0x286   :  { %3031 = vbcast.lane.b32.xlu1 %v15919_v32, 264  ;;  %v2700_v51 = vmax.f32 %v2692_v15, 0.0  ;;  %v2170_v28 = vmax.f32 %v2168_v45, %v2169_v53  ;;  %v2247_v37 = vsel %vm860_vm13, %v2156_v54, %v2246_v22  ;;  %v2694_v18 = vadd.f32 %v11568_v49, %v2679_v40  ;;  %v11780_v3 = vpop.permute.xlu1 %5320 }
 0x287   :  { %v1021_v33 = vmul.f32 %v11173_v36, %v15920_v48  ;;  %v3892_v12 = vmul.f32 %v11248_v52, %v15921_v5  ;;  %v2810_v38 = vrot.slane %v2809_v1, 2  ;;  %v2248_v58 = vsel %vm862_vm14, %v2163_v60, %v2247_v37  ;;  %15923 = vst [vmem:[#allocation98_spill] sm:$0xff] %v11780_v3  ;;  %v11783_v53 = vpop.permute.xlu0 %5312  ;;  %v15925_v36 = vld [vmem:[#allocation11_spill] sm:$0xff]  ;;  %v15926_v60 = vld [vmem:[#allocation66_spill] sm:$0xff] }
 0x288   :  { %3020 = vbcast.lane.b32.xlu0 %v15922_v6, 264  ;;  %v2824_v4 = vrot.slane %v2823_v0, 2  ;;  %v2830_v15 = vmax.f32 %v2828_v43, %v2829_v16  ;;  %v2249_v45 = vsel %vm864_vm15, %v2170_v28, %v2248_v58  ;;  %v2702_v54 = vmax.f32 %v2694_v18, 0.0  ;;  %15924 = vst [vmem:[#allocation102_spill] sm:$0xff] %v11783_v53  ;;  %v15927_v28 = vld [vmem:[#allocation81_spill] sm:$0xff] }
 0x289   :  { %v3332_v49 = vadd.f32 %v11701_v23, %v3311_v46  ;;  %v11787_v40 = vadd.f32 %v4583_v2, %v15925_v36  ;;  %v3911_v52 = vmul.f32 %v11400_v29, %v15921_v5  ;;  %v3326_v22 = vmul.f32 %v11683_v35, %v15926_v60  ;;  %2260 = vst.msk [vmem:[#allocation3 + $0x31] sm:$0xff] %vm69_vm6, %v2249_v45  ;;  %v11801_v23 = vld [vmem:[%s15251_s1 + $0xa] ss:$0 sm:$0xff]  ;;  %v15930_v45 = vld [vmem:[#allocation140_spill] sm:$0xff] }
 0x28a   :  { %3149 = vbcast.lane.b32.xlu1 %v15922_v6, 257  ;;  %v11796_v43 = vadd.f32 %v4602_v25, %v11577_v9  ;;  %v2818_v16 = vmax.f32 %v2816_v31, %v2817_v50  ;;  %v2710_v46 = vsel %vm69_vm6, %v2700_v51, -inf  ;;  %v2711_v2 = vsel %vm69_vm6, %v2702_v54, -inf  ;;  %v11811_v9 = vpop.permute.xlu1 %378 }
 0x28b   :  { %v11806_v37 = vadd.f32 %v4478_v8, %v15927_v28  ;;  %v2811_v18 = vmax.f32 %v2809_v1, %v2810_v38  ;;  %v3347_v48 = vmul.f32 %v11801_v23, %v11685_v27  ;;  %v2712_v5 = vmax.f32 %v2710_v46, %v2711_v2  ;;  %15928 = vst [vmem:[#allocation99_spill] sm:$0xff] %v11811_v9  ;;  %v11819_v58 = vpop.permute.xlu0 %370 }
 0x28c   :  { %3141 = vbcast.lane.b32.xlu0 %v15915_v61, 257  ;;  %v11814_v31 = vadd.f32 %v1021_v33, %v11579_v7  ;;  %v11817_v25 = vadd.f32 %v3892_v12, %v11596_v42  ;;  %v2825_v50 = vmax.f32 %v2823_v0, %v2824_v4  ;;  %v2831_v51 = vrot.slane %v2830_v15, 2  ;;  %15929 = vst [vmem:[#allocation100_spill] sm:$0xff] %v11819_v58  ;;  %v15931_v33 = vld [vmem:[#allocation64_spill] sm:$0xff]  ;;  %v15932_v4 = vld [vmem:[#allocation53_spill] sm:$0xff] }
 0x28d   :  { %v11822_v1 = vadd.f32 %v3911_v52, %v11608_v44  ;;  %v3334_v27 = vadd.f32 %v3326_v22, %v11720_v30  ;;  %v3345_v8 = vmul.f32 %v11801_v23, %v15926_v60  ;;  %v2740_v38 = vcombine.high %v2712_v5, %v2712_v5  ;;  %v15933_v52 = vld [vmem:[#allocation142_spill] sm:$0xff] }
 0x28e   :  { %4400 = vbcast.lane.b32.xlu1 %v15930_v45, 256  ;;  %v2819_v7 = vrot.slane %v2818_v16, 1  ;;  %v3997_v42 = vmul.f32 %v11661_v10, %v15931_v33  ;;  %v11832_v0 = vmul.f32 %v11683_v35, %v15931_v33  ;;  %v2747_v12 = vrot.slane %v2712_v5, %v15896_v17  ;;  %v11839_v60 = vpop.permute.xlu1 %1625 }
 0x28f   :  { %v2812_v44 = vrot.slane %v2811_v18, 1  ;;  %v3995_v30 = vmul.f32 %v11661_v10, %v15932_v4  ;;  %v3355_v54 = vadd.f32 %v3347_v48, %v3334_v27  ;;  %v2754_v36 = vrot.slane %v2740_v38, %v15896_v17  ;;  %15934 = vst [vmem:[#allocation101_spill] sm:$0xff] %v11839_v60  ;;  %v11842_v33 = vpop.permute.xlu0 %390  ;;  %v15936_v27 = vld [vmem:[#allocation26_spill] sm:$0xff] }
 0x290   :  { %4389 = vbcast.lane.b32.xlu0 %v15933_v52, 256  ;;  %v2826_v22 = vrot.slane %v2825_v50, 1  ;;  %v2832_v46 = vmax.f32 %v2830_v15, %v2831_v51  ;;  %v2755_v2 = vcombine.high %v2747_v12, %v2747_v12  ;;  %v2835_v28 = vsel %vm71_vm7, %v2747_v12, -inf  ;;  %15935 = vst [vmem:[#allocation105_spill] sm:$0xff] %v11842_v33  ;;  %v5725_v45 = vld [vmem:[#allocation3 + $0x30] sm:$0xff] }
 0x291   :  { %v6264_v5 = vld [vmem:[#allocation3 + $0x31] sm:$0xff]  ;;  %v3353_v6 = vadd.f32 %v3345_v8, %v3332_v49  ;;  %v2756_v61 = vcombine.high %v2754_v36, %v2754_v36  ;;  %v2836_v26 = vrot.slane %v2835_v28, 4  ;;  %v2849_v48 = vsel %vm71_vm7, %v2754_v36, -inf  ;;  %9150 = vmatprep.mubr.msk.f32.mxu1 %vm69_vm6, %v5725_v45  ;;  %v11852_v51 = vld [vmem:[%s15252_s2] ss:$0 sm:$0xff] }
 0x292   :  { %4640 = vbcast.lane.b32.xlu1 %v15936_v27, 266  ;;  %v2820_v38 = vmax.f32 %v2818_v16, %v2819_v7  ;;  %v15937_v4 = vld [vmem:[#allocation54_spill] sm:$0xff]  ;;  %15938 = vst [vmem:[#allocation108_spill] sm:$0xff] %v11852_v51  ;;  %v2842_v12 = vsel %vm71_vm7, %v2755_v2, -inf  ;;  %v2850_v49 = vrot.slane %v2849_v48, 4  ;;  %9262 = vmatprep.mubr.msk.f32.mxu0 %vm69_vm6, %v6264_v5  ;;  %v3370_v8 = vmul.f32 %v11852_v51, %v3355_v54  ;;  %v15939_v16 = vld [vmem:[#allocation143_spill] sm:$0xff]  ;;  %v11859_v7 = vpop.permute.xlu1 %1647 }
 0x293   :  { %v5275_v15 = vmul.f32 %v11502_v56, %v15937_v4  ;;  %v2837_v36 = vmax.f32 %v2835_v28, %v2836_v26  ;;  %v2843_v27 = vrot.slane %v2842_v12, 4  ;;  %v2856_v45 = vsel %vm71_vm7, %v2756_v61, -inf  ;;  %15940 = vst [vmem:[#allocation109_spill] sm:$0xff] %v11859_v7  ;;  %v11861_v58 = vpop.permute.xlu0 %1636  ;;  %v15942_v61 = vld [vmem:[#allocation71_spill] sm:$0xff] }
 0x294   :  { %4411 = vbcast.lane.b32.xlu0 %v15939_v16, 256  ;;  %v2813_v52 = vmax.f32 %v2811_v18, %v2812_v44  ;;  %v2833_v60 = vrot.slane %v2832_v46, 1  ;;  %v2851_v33 = vmax.f32 %v2849_v48, %v2850_v49  ;;  %v2857_v9 = vrot.slane %v2856_v45, 4  ;;  %15941 = vst [vmem:[#allocation111_spill] sm:$0xff] %v11861_v58  ;;  %v11870_v18 = vld [vmem:[%s15253_s3] ss:$0 sm:$0xff] }
 0x295   :  { %v2827_v2 = vmax.f32 %v2825_v50, %v2826_v22  ;;  %v3368_v3 = vmul.f32 %v11852_v51, %v3353_v6  ;;  %v2838_v5 = vrot.slane %v2837_v36, 2  ;;  %v2844_v53 = vmax.f32 %v2842_v12, %v2843_v27  ;;  %15943 = vst [vmem:[#allocation113_spill] sm:$0xff] %v11870_v18  ;;  %v15944_v12 = vld [vmem:[#allocation103_spill] sm:$0xff]  ;;  %v15957_v58 = vld [vmem:[#allocation133_spill] sm:$0xff] }
 0x296   :  { %1208 = vbcast.lane.b32.xlu1 %v15882_v41, 258  ;;  %v2935_v26 = vsel %vm852_vm9, %v2820_v38, %v2813_v52  ;;  %v4003_v54 = vadd.f32 %v3995_v30, %v15942_v61  ;;  %v2852_v44 = vrot.slane %v2851_v33, 2  ;;  %v2858_v28 = vmax.f32 %v2856_v45, %v2857_v9  ;;  %v11875_v49 = vpop.permute.xlu1 %1765 }
 0x297   :  { %v4005_v48 = vadd.f32 %v3997_v42, %v11629_v57  ;;  %v3385_v50 = vadd.f32 %v11870_v18, %v3370_v8  ;;  %v2839_v6 = vmax.f32 %v2837_v36, %v2838_v5  ;;  %v2845_v22 = vrot.slane %v2844_v53, 2  ;;  %15945 = vst [vmem:[#allocation13_spill] sm:$0xff] %v11875_v49  ;;  %v11879_v61 = vpop.permute.xlu0 %1757  ;;  %v15947_v36 = vld [vmem:[#allocation127_spill] sm:$0xff] }
 0x298   :  { %1093 = vbcast.lane.b32.xlu0 %v15944_v12, 265  ;;  %v2834_v52 = vmax.f32 %v2832_v46, %v2833_v60  ;;  %v5294_v30 = vmul.f32 %v11400_v29, %v15937_v4  ;;  %v2853_v38 = vmax.f32 %v2851_v33, %v2852_v44  ;;  %v2859_v27 = vrot.slane %v2858_v28, 2  ;;  %15946 = vst [vmem:[#allocation114_spill] sm:$0xff] %v11879_v61  ;;  %v15948_v4 = vld [vmem:[#allocation86_spill] sm:$0xff] }
 0x299   :  { %v2936_v9 = vsel %vm854_vm10, %v2827_v2, %v2935_v26  ;;  %v3383_v57 = vadd.f32 %v11870_v18, %v3368_v3  ;;  %v2840_v42 = vrot.slane %v2839_v6, 1  ;;  %v2846_v8 = vmax.f32 %v2844_v53, %v2845_v22  ;;  %v15949_v2 = vld [vmem:[#allocation125_spill] sm:$0xff]  ;;  %v11896_v53 = vld [vmem:[%s15251_s1 + $0x8] ss:$0 sm:$0xff] }
 0x29a   :  { %2461 = vbcast.lane.b32.xlu1 %v15947_v36, 265  ;;  %v4024_v45 = vadd.f32 %v11832_v0, %v4003_v54  ;;  %v11886_v5 = vadd.f32 %v5275_v15, %v11667_v13  ;;  %v2854_v60 = vrot.slane %v2853_v38, 1  ;;  %v2860_v46 = vmax.f32 %v2858_v28, %v2859_v27  ;;  %v11891_v3 = vpop.permute.xlu1 %3016  ;;  %v15951_v0 = vld [vmem:[#allocation55_spill] sm:$0xff] }
 0x29b   :  { %v4018_v33 = vmul.f32 %v11683_v35, %v15948_v4  ;;  %v3393_v44 = vmax.f32 %v3385_v50, 0.0  ;;  %v2841_v41 = vmax.f32 %v2839_v6, %v2840_v42  ;;  %v2847_v16 = vrot.slane %v2846_v8, 1  ;;  %15950 = vst [vmem:[#allocation116_spill] sm:$0xff] %v11891_v3  ;;  %v11901_v28 = vpop.permute.xlu0 %3005  ;;  %v15953_v42 = vld [vmem:[#allocation136_spill] sm:$0xff]  ;;  %v11910_v3 = vld [vmem:[%s15251_s1 + $0x4] ss:$0 sm:$0xff] }
 0x29c   :  { %2453 = vbcast.lane.b32.xlu0 %v15949_v2, 265  ;;  %v5170_v13 = vmul.f32 %v11896_v53, %v15951_v0  ;;  %v2855_v15 = vmax.f32 %v2853_v38, %v2854_v60  ;;  %v2861_v26 = vrot.slane %v2860_v46, 1  ;;  %v2937_v54 = vsel %vm856_vm11, %v2834_v52, %v2936_v9  ;;  %15952 = vst [vmem:[#allocation117_spill] sm:$0xff] %v11901_v28  ;;  %v15954_v38 = vld [vmem:[#allocation56_spill] sm:$0xff]  ;;  %v11917_v52 = vld [vmem:[%s15251_s1] ss:$0 sm:$0xff] }
 0x29d   :  { %v3391_v50 = vmax.f32 %v3383_v57, 0.0  ;;  %v2848_v6 = vmax.f32 %v2846_v8, %v2847_v16  ;;  %v2938_v22 = vsel %vm858_vm12, %v2841_v41, %v2937_v54  ;;  %v4039_v27 = vmul.f32 %v11801_v23, %v11763_v34  ;;  %v15955_v16 = vld [vmem:[#allocation9_spill] sm:$0xff]  ;;  %v15956_v9 = vld [vmem:[#allocation104_spill] sm:$0xff] }
 0x29e   :  { %3701 = vbcast.lane.b32.xlu1 %v15953_v42, 264  ;;  %v299_v60 = vmul.f32 %v11910_v3, %v15954_v38  ;;  %v277_v41 = vmul.f32 %v11917_v52, %v15955_v16  ;;  %v11924_v34 = vld [vmem:[%s15251_s1 + $0x1] ss:$0 sm:$0xff]  ;;  %v2862_v8 = vmax.f32 %v2860_v46, %v2861_v26  ;;  %v4026_v0 = vadd.f32 %v4018_v33, %v4005_v48  ;;  %v11933_v16 = vpop.permute.xlu1 %3256  ;;  %v15959_v33 = vld [vmem:[#allocation75_spill] sm:$0xff]  ;;  %v15980_v2 = vld [vmem:[#allocation112_spill] sm:$0xff] }
 0x29f   :  { %v405_v57 = vmul.f32 %v11924_v34, %v15956_v9  ;;  %v4037_v54 = vmul.f32 %v11801_v23, %v15948_v4  ;;  %v3400_v28 = vsel %vm69_vm6, %v3393_v44, -inf  ;;  %v2939_v61 = vsel %vm860_vm13, %v2848_v6, %v2938_v22  ;;  %v11943_v4 = vpop.permute.xlu0 %3027  ;;  %v15961_v9 = vld [vmem:[#allocation79_spill] sm:$0xff] }
 0x2a0   :  { %2473 = vbcast.lane.b32.xlu0 %v15884_v63, 257  ;;  %v11936_v49 = vadd.f32 %v5294_v30, %v11669_v24  ;;  %v301_v7 = vmul.f32 %v11910_v3, %v15957_v58  ;;  %v321_v48 = vmul.f32 %v11896_v53, %v15957_v58  ;;  %v2940_v46 = vsel %vm862_vm14, %v2855_v15, %v2939_v61  ;;  %v15960_v24 = vld [vmem:[#allocation137_spill] sm:$0xff]  ;;  %v11958_v61 = vld [vmem:[%s15251_s1 + $0x5] ss:$0 sm:$0xff] }
 0x2a1   :  { %15958 = vst [vmem:[#allocation120_spill] sm:$0xff] %v11943_v4  ;;  %v407_v44 = vmul.f32 %v11924_v34, %v15959_v33  ;;  %v3399_v26 = vsel %vm69_vm6, %v3391_v50, -inf  ;;  %v2941_v6 = vsel %vm864_vm15, %v2862_v8, %v2940_v46  ;;  %v4047_v22 = vadd.f32 %v4039_v27, %v4026_v0  ;;  %v15962_v0 = vld [vmem:[#allocation58_spill] sm:$0xff]  ;;  %v15963_v46 = vld [vmem:[#allocation135_spill] sm:$0xff]  ;;  %v15965_v4 = vld [vmem:[#allocation57_spill] sm:$0xff] }
 0x2a2   :  { %3723 = vbcast.lane.b32.xlu1 %v15960_v24, 264  ;;  %v11951_v30 = vadd.f32 %v5170_v13, %v11634_v59  ;;  %v279_v58 = vmul.f32 %v11917_v52, %v15954_v38  ;;  %v426_v15 = vmul.f32 %v11958_v61, %v15959_v33  ;;  %v3401_v50 = vmax.f32 %v3399_v26, %v3400_v28  ;;  %v11967_v38 = vpop.permute.xlu1 %4636 }
 0x2a3   :  { %2952 = vst.msk [vmem:[#allocation3 + $0x41] sm:$0xff] %vm69_vm6, %v2941_v6  ;;  %v307_v27 = vadd.f32 %v299_v60, %v277_v41  ;;  %v413_v8 = vadd.f32 %v405_v57, %v15961_v9  ;;  %v1690_v59 = vmul.f32 %v11910_v3, %v15962_v0  ;;  %v4045_v13 = vadd.f32 %v4037_v54, %v4024_v45  ;;  %v11978_v60 = vld [vmem:[%s15251_s1 + $0x9] ss:$0 sm:$0xff]  ;;  %v15966_v41 = vld [vmem:[#allocation61_spill] sm:$0xff]  ;;  %v11982_v57 = vpop.permute.xlu0 %4521  ;;  %v15970_v9 = vld [vmem:[#allocation60_spill] sm:$0xff] }
 0x2a4   :  { %3712 = vbcast.lane.b32.xlu0 %v15963_v46, 264  ;;  %15964 = vst [vmem:[#allocation123_spill] sm:$0xff] %v11967_v38  ;;  %v11969_v63 = vadd.f32 %v301_v7, %v279_v58  ;;  %v1692_v24 = vmul.f32 %v11910_v3, %v15965_v4  ;;  %v1671_v28 = vmul.f32 %v11917_v52, %v15962_v0  ;;  %15967 = vst [vmem:[#allocation124_spill] sm:$0xff] %v11982_v57  ;;  %v15969_v7 = vld [vmem:[#allocation10_spill] sm:$0xff]  ;;  %v15979_v38 = vld [vmem:[#allocation84_spill] sm:$0xff] }
 0x2a5   :  { %v3221_v45 = vmul.f32 %v11978_v60, %v15966_v41  ;;  %v11984_v54 = vadd.f32 %v321_v48, %v307_v27  ;;  %v1669_v33 = vmul.f32 %v11917_v52, %v15969_v7  ;;  %v11989_v26 = vadd.f32 %v407_v44, %v11672_v47  ;;  %v15971_v41 = vld [vmem:[#allocation67_spill] sm:$0xff]  ;;  %v15972_v47 = vld [vmem:[#allocation70_spill] sm:$0xff] }
 0x2a6   :  { %v4062_v6 = vmul.f32 %v11852_v51, %v4047_v22  ;;  %3841 = vbcast.lane.b32.xlu1 %v15963_v46, 257  ;;  %v11993_v58 = vadd.f32 %v426_v15, %v413_v8  ;;  %v4561_v0 = vmul.f32 %v11473_v19, %v15970_v9  ;;  %v4604_v57 = vmul.f32 %v11400_v29, %v15971_v41  ;;  %v12006_v15 = vpop.permute.xlu1 %1077  ;;  %v15974_v41 = vld [vmem:[#allocation68_spill] sm:$0xff]  ;;  %v15977_v46 = vld [vmem:[#allocation110_spill] sm:$0xff] }
 0x2a7   :  { %15968 = vst [vmem:[#allocation121_spill] sm:$0xff] %v11984_v54  ;;  %v3422_v48 = vrot.slane %v3401_v50, %v15896_v17  ;;  %v1711_v27 = vmul.f32 %v11896_v53, %v15965_v4  ;;  %v1698_v7 = vadd.f32 %v1690_v59, %v1669_v33  ;;  %v4563_v44 = vmul.f32 %v11473_v19, %v15972_v47  ;;  %v12017_v59 = vpop.permute.xlu0 %1069  ;;  %v15976_v33 = vld [vmem:[#allocation8_spill] sm:$0xff] }
 0x2a8   :  { %v4060_v22 = vmul.f32 %v11852_v51, %v4045_v13  ;;  %3833 = vbcast.lane.b32.xlu0 %v15953_v42, 257  ;;  %15973 = vst [vmem:[#allocation134_spill] sm:$0xff] %v12006_v15  ;;  %v12008_v8 = vadd.f32 %v1692_v24, %v1671_v28  ;;  %v12011_v9 = vadd.f32 %v3221_v45, %v11678_v55  ;;  %15975 = vst [vmem:[#allocation147_spill] sm:$0xff] %v12017_v59  ;;  %v15978_v45 = vld [vmem:[#allocation144_spill] sm:$0xff] }
 0x2a9   :  { %v4582_v29 = vmul.f32 %v11502_v56, %v15972_v47  ;;  %v999_v4 = vmul.f32 %v11910_v3, %v15974_v41  ;;  %v978_v13 = vmul.f32 %v11917_v52, %v15976_v33  ;;  %v1104_v42 = vmul.f32 %v11924_v34, %v15977_v46  ;;  %v15983_v33 = vld [vmem:[#allocation12_spill] sm:$0xff] }
 0x2aa   :  { %v3415_v15 = vcombine.high %v3401_v50, %v3401_v50  ;;  %v4077_v24 = vadd.f32 %v11870_v18, %v4062_v6  ;;  %v5726_v28 = vld [vmem:[#allocation3 + $0x40] sm:$0xff]  ;;  %5092 = vbcast.lane.b32.xlu1 %v15978_v45, 256  ;;  %v4569_v47 = vadd.f32 %v4561_v0, %v15979_v38  ;;  %v12027_v51 = vadd.f32 %v4604_v57, %v11787_v40  ;;  %v15981_v38 = vld [vmem:[#allocation145_spill] sm:$0xff]  ;;  %v12040_v40 = vpop.permute.xlu1 %2317 }
 0x2ab   :  { %v6265_v55 = vld [vmem:[#allocation3 + $0x41] sm:$0xff]  ;;  %v1001_v59 = vmul.f32 %v11910_v3, %v15980_v2  ;;  %v3430_v54 = vcombine.high %v3422_v48, %v3422_v48  ;;  %9151 = vmatmul.mubr.msk.f32.gmra.mrb[2].mxu1 %vm69_vm6, %v5726_v28  ;;  %v12033_v46 = vadd.f32 %v4563_v44, %v11806_v37  ;;  %v980_v50 = vmul.f32 %v11917_v52, %v15974_v41  ;;  %v15984_v44 = vld [vmem:[#allocation74_spill] sm:$0xff]  ;;  %v12050_v41 = vpop.permute.xlu0 %1089 }
 0x2ac   :  { %v4075_v6 = vadd.f32 %v11870_v18, %v4060_v22  ;;  %9263 = vmatmul.mubr.msk.f32.gmra.mrb[2].mxu0 %vm69_vm6, %v6265_v55  ;;  %5081 = vbcast.lane.b32.xlu0 %v15981_v38, 256  ;;  %15982 = vst [vmem:[#allocation141_spill] sm:$0xff] %v12040_v40  ;;  %v12042_v57 = vadd.f32 %v4582_v29, %v4569_v47  ;;  %15985 = vst [vmem:[#allocation18_spill] sm:$0xff] %v12050_v41  ;;  %v4085_v38 = vmax.f32 %v4077_v24, 0.0  ;;  %v15986_v40 = vld [vmem:[#allocation39_spill] sm:$0xff]  ;;  %v15987_v47 = vld [vmem:[#allocation14_spill] sm:$0xff] }
 0x2ad   :  { %v1020_v0 = vmul.f32 %v11896_v53, %v15980_v2  ;;  %v1106_v37 = vmul.f32 %v11924_v34, %v15983_v33  ;;  %v2382_v28 = vmul.f32 %v11910_v3, %v15984_v44  ;;  %v1007_v22 = vadd.f32 %v999_v4, %v978_v13  ;;  %v15989_v4 = vld [vmem:[#allocation73_spill] sm:$0xff]  ;;  %v15990_v13 = vld [vmem:[#allocation148_spill] sm:$0xff] }
 0x2ae   :  { %v1112_v55 = vadd.f32 %v1104_v42, %v11583_v39  ;;  %v3429_v45 = vrot.slane %v3415_v15, %v15896_v17  ;;  %5332 = vbcast.lane.b32.xlu1 %v15986_v40, 266  ;;  %v12055_v29 = vadd.f32 %v1001_v59, %v980_v50  ;;  %v2361_v2 = vmul.f32 %v11917_v52, %v15987_v47  ;;  %v12069_v59 = vpop.permute.xlu1 %2339 }
 0x2af   :  { %v3506_v18 = vsel %vm71_vm7, %v3430_v54, -inf  ;;  %v12060_v36 = vadd.f32 %v1711_v27, %v1698_v7  ;;  %v1125_v41 = vmul.f32 %v11958_v61, %v15983_v33  ;;  %v2384_v39 = vmul.f32 %v11910_v3, %v15989_v4  ;;  %15991 = vst [vmem:[#allocation19_spill] sm:$0xff] %v12069_v59  ;;  %v12077_v50 = vpop.permute.xlu0 %2328 }
 0x2b0   :  { %v2363_v42 = vmul.f32 %v11917_v52, %v15984_v44  ;;  %v4083_v15 = vmax.f32 %v4075_v6, 0.0  ;;  %5103 = vbcast.lane.b32.xlu0 %v15990_v13, 256  ;;  %v12071_v24 = vadd.f32 %v1020_v0, %v1007_v22  ;;  %v12074_v54 = vadd.f32 %v1106_v37, %v11814_v31  ;;  %15993 = vst [vmem:[#allocation151_spill] sm:$0xff] %v12077_v50  ;;  %v15994_v44 = vld [vmem:[#allocation62_spill] sm:$0xff]  ;;  %v15997_v13 = vld [vmem:[#allocation63_spill] sm:$0xff] }
 0x2b1   :  { %15988 = vst [vmem:[#allocation146_spill] sm:$0xff] %v12060_v36  ;;  %v2390_v27 = vadd.f32 %v2382_v28, %v2361_v2  ;;  %v3499_v7 = vsel %vm71_vm7, %v3422_v48, -inf  ;;  %v3431_v40 = vcombine.high %v3429_v45, %v3429_v45  ;;  %v3507_v33 = vrot.slane %v3506_v18, 4  ;;  %v12087_v31 = vld [vmem:[%s15251_s1 + $0x9] ss:$0 sm:$0xff] }
 0x2b2   :  { %15992 = vst [vmem:[#allocation28_spill] sm:$0xff] %v12071_v24  ;;  %v3513_v47 = vsel %vm71_vm7, %v3429_v45, -inf  ;;  %v4092_v6 = vsel %vm69_vm6, %v4085_v38, -inf  ;;  %505 = vbcast.lane.b32.xlu1 %v15994_v44, 266  ;;  %v2403_v0 = vmul.f32 %v11896_v53, %v15989_v4  ;;  %v15995_v37 = vld [vmem:[#allocation78_spill] sm:$0xff]  ;;  %v5296_v45 = vmul.f32 %v12087_v31, %v11575_v21  ;;  %v12101_v50 = vpop.permute.xlu1 %2457 }
 0x2b3   :  { %v3913_v48 = vmul.f32 %v12087_v31, %v15995_v37  ;;  %v15996_v28 = vld [vmem:[#allocation106_spill] sm:$0xff]  ;;  %v12095_v38 = vadd.f32 %v1125_v41, %v1112_v55  ;;  %v12097_v2 = vadd.f32 %v2384_v39, %v2363_v42  ;;  %v4091_v4 = vsel %vm69_vm6, %v4083_v15, -inf  ;;  %v12107_v36 = vpop.permute.xlu0 %2449 }
 0x2b4   :  { %v5253_v22 = vmul.f32 %v11473_v19, %v15996_v28  ;;  %v3500_v44 = vrot.slane %v3499_v7, 4  ;;  %497 = vbcast.lane.b32.xlu0 %v15997_v13, 266  ;;  %v5255_v37 = vmul.f32 %v11473_v19, %v11581_v14  ;;  %v3514_v59 = vrot.slane %v3513_v47, 4  ;;  %15999 = vst [vmem:[#allocation20_spill] sm:$0xff] %v12107_v36  ;;  %v16000_v42 = vld [vmem:[#allocation118_spill] sm:$0xff] }
 0x2b5   :  { %v4093_v24 = vmax.f32 %v4091_v4, %v4092_v6  ;;  %v12105_v28 = vadd.f32 %v2403_v0, %v2390_v27  ;;  %v5274_v21 = vmul.f32 %v11502_v56, %v11581_v14  ;;  %v428_v41 = vmul.f32 %v11958_v61, %v11600_v62  ;;  %v16001_v27 = vld [vmem:[#allocation85_spill] sm:$0xff]  ;;  %v16002_v56 = vld [vmem:[#allocation107_spill] sm:$0xff] }
 0x2b6   :  { %v3508_v55 = vmax.f32 %v3506_v18, %v3507_v33  ;;  %v3520_v39 = vsel %vm71_vm7, %v3431_v40, -inf  ;;  %1777 = vbcast.lane.b32.xlu1 %v16000_v42, 265  ;;  %v12116_v15 = vadd.f32 %v3913_v48, %v11817_v25  ;;  %v5261_v19 = vadd.f32 %v5253_v22, %v11655_v20  ;;  %v16003_v40 = vld [vmem:[#allocation87_spill] sm:$0xff]  ;;  %v16004_v25 = vld [vmem:[#allocation92_spill] sm:$0xff]  ;;  %v12131_v48 = vpop.permute.xlu1 %3708 }
 0x2b7   :  { %15998 = vst [vmem:[#allocation17_spill] sm:$0xff] %v12105_v28  ;;  %v12120_v13 = vadd.f32 %v5296_v45, %v11886_v5  ;;  %v3304_v6 = vmul.f32 %v11661_v10, %v16001_v27  ;;  %v447_v14 = vmul.f32 %v11978_v60, %v11600_v62  ;;  %v323_v18 = vmul.f32 %v11896_v53, %v16002_v56  ;;  %v16006_v56 = vld [vmem:[#allocation93_spill] sm:$0xff] }
 0x2b8   :  { %v1713_v33 = vmul.f32 %v11896_v53, %v16003_v40  ;;  %v3501_v0 = vmax.f32 %v3499_v7, %v3500_v44  ;;  %517 = vbcast.lane.b32.xlu0 %v16004_v25, 258  ;;  %16005 = vst [vmem:[#allocation21_spill] sm:$0xff] %v12131_v48  ;;  %v12134_v20 = vadd.f32 %v5255_v37, %v11951_v30  ;;  %v3521_v22 = vrot.slane %v3520_v39, 4  ;;  %v16008_v40 = vld [vmem:[#allocation119_spill] sm:$0xff]  ;;  %v16009_v25 = vld [vmem:[#allocation88_spill] sm:$0xff] }
 0x2b9   :  { %v3515_v5 = vmax.f32 %v3513_v47, %v3514_v59  ;;  %v4114_v45 = vrot.slane %v4093_v24, %v15896_v17  ;;  %v12137_v4 = vadd.f32 %v5274_v21, %v5261_v19  ;;  %v12140_v62 = vadd.f32 %v428_v41, %v11989_v26  ;;  %v12144_v44 = vpop.permute.xlu0 %3697  ;;  %v16010_v59 = vld [vmem:[#allocation90_spill] sm:$0xff]  ;;  %v16011_v26 = vld [vmem:[#allocation32_spill] sm:$0xff] }
 0x2ba   :  { %v3509_v27 = vrot.slane %v3508_v55, 2  ;;  %v4687_v7 = vmul.f32 %v11661_v10, %v16006_v56  ;;  %16007 = vst [vmem:[#allocation44_spill] sm:$0xff] %v12144_v44  ;;  %1892 = vbcast.lane.b32.xlu1 %v16008_v40, 258  ;;  %v3306_v30 = vmul.f32 %v11661_v10, %v16009_v25  ;;  %v3312_v47 = vadd.f32 %v3304_v6, %v16010_v59  ;;  %v12153_v37 = vld [vmem:[%s15251_s1 + $0x5] ss:$0 sm:$0xff]  ;;  %v16013_v6 = vld [vmem:[#allocation115_spill] sm:$0xff]  ;;  %v12167_v59 = vpop.permute.xlu1 %3948 }
 0x2bb   :  { %v4584_v21 = vmul.f32 %v12153_v37, %v16011_v26  ;;  %v4107_v41 = vcombine.high %v4093_v24, %v4093_v24  ;;  %v12158_v19 = vadd.f32 %v447_v14, %v11993_v58  ;;  %v12161_v56 = vadd.f32 %v323_v18, %v11969_v63  ;;  %v16014_v63 = vld [vmem:[#allocation91_spill] sm:$0xff] }
 0x2bc   :  { %v12164_v40 = vadd.f32 %v1713_v33, %v12008_v8  ;;  %v3502_v44 = vrot.slane %v3501_v0, 2  ;;  %1884 = vbcast.lane.b32.xlu0 %v16013_v6, 258  ;;  %v3325_v48 = vmul.f32 %v11683_v35, %v16009_v25  ;;  %v3516_v28 = vrot.slane %v3515_v5, 2 }
 0x2bd   :  { %16012 = vst [vmem:[#allocation24_spill] sm:$0xff] %v12158_v19  ;;  %v3522_v36 = vmax.f32 %v3520_v39, %v3521_v22  ;;  %v4122_v24 = vcombine.high %v4114_v45, %v4114_v45  ;;  %v4603_v58 = vmul.f32 %v12087_v31, %v16011_v26  ;;  %v3510_v14 = vmax.f32 %v3508_v55, %v3509_v27  ;;  %v12176_v33 = vpop.permute.xlu0 %3719  ;;  %v16016_v26 = vld [vmem:[#allocation94_spill] sm:$0xff] }
 0x2be   :  { %v4689_v18 = vmul.f32 %v11661_v10, %v16014_v63  ;;  %v4695_v8 = vadd.f32 %v4687_v7, %v11796_v43  ;;  %16015 = vst [vmem:[#allocation30_spill] sm:$0xff] %v12176_v33  ;;  %3157 = vbcast.lane.b32.xlu1 %v15919_v32, 257  ;;  %v12180_v6 = vadd.f32 %v3306_v30, %v12011_v9  ;;  %v16017_v32 = vld [vmem:[#allocation138_spill] sm:$0xff]  ;;  %v12195_v9 = vpop.permute.xlu1 %5328  ;;  %v16024_v33 = vld [vmem:[#allocation43_spill] sm:$0xff] }
 0x2bf   :  { %v12182_v25 = vadd.f32 %v3325_v48, %v3312_v47  ;;  %v12185_v39 = vadd.f32 %v4584_v21, %v12033_v46  ;;  %v4121_v22 = vrot.slane %v4107_v41, %v15896_v17  ;;  %v3503_v55 = vmax.f32 %v3501_v0, %v3502_v44  ;;  %16018 = vst [vmem:[#allocation25_spill] sm:$0xff] %v12195_v9  ;;  %v16019_v46 = vld [vmem:[#allocation95_spill] sm:$0xff]  ;;  %v16022_v19 = vld [vmem:[#allocation50_spill] sm:$0xff] }
 0x2c0   :  { %v4708_v27 = vmul.f32 %v11683_v35, %v16014_v63  ;;  %v1127_v43 = vmul.f32 %v11958_v61, %v16016_v26  ;;  %v1146_v7 = vmul.f32 %v11978_v60, %v16016_v26  ;;  %3042 = vbcast.lane.b32.xlu0 %v16017_v32, 264  ;;  %v3517_v48 = vmax.f32 %v3515_v5, %v3516_v28  ;;  %v16023_v28 = vld [vmem:[#allocation96_spill] sm:$0xff] }
 0x2c1   :  { %v3523_v30 = vrot.slane %v3522_v36, 2  ;;  %v1022_v47 = vmul.f32 %v11896_v53, %v16019_v46  ;;  %v4198_v0 = vsel %vm71_vm7, %v4122_v24, -inf  ;;  %v12201_v44 = vadd.f32 %v4603_v58, %v12042_v57  ;;  %v12208_v26 = vpop.permute.xlu0 %5213 }
 0x2c2   :  { %v3511_v21 = vrot.slane %v3510_v14, 1  ;;  %v12204_v41 = vadd.f32 %v4689_v18, %v12027_v51  ;;  %v12206_v63 = vadd.f32 %v4708_v27, %v4695_v8  ;;  %16021 = vst [vmem:[#allocation23_spill] sm:$0xff] %v12208_v26  ;;  %4648 = vbcast.lane.b32.xlu1 %v16022_v19, 266  ;;  %v2405_v5 = vmul.f32 %v11896_v53, %v16023_v28  ;;  %v16025_v27 = vld [vmem:[#allocation149_spill] sm:$0xff] }
 0x2c3   :  { %16020 = vst [vmem:[#allocation31_spill] sm:$0xff] %v12201_v44  ;;  %v3996_v46 = vmul.f32 %v11661_v10, %v16024_v33  ;;  %v4191_v24 = vsel %vm71_vm7, %v4114_v45, -inf  ;;  %v4205_v57 = vsel %vm71_vm7, %v4121_v22, -inf  ;;  %v3504_v58 = vrot.slane %v3503_v55, 1  ;;  %v12221_v44 = vpop.permute.xlu1 %493  ;;  %v12232_v45 = vld [vmem:[%s15251_s1 + $0x2] ss:$0 sm:$0xff] }
 0x2c4   :  { %v12218_v51 = vadd.f32 %v1127_v43, %v12074_v54  ;;  %v4123_v18 = vcombine.high %v4121_v22, %v4121_v22  ;;  %v4199_v8 = vrot.slane %v4198_v0, 4  ;;  %4422 = vbcast.lane.b32.xlu0 %v16025_v27, 256  ;;  %16026 = vst [vmem:[#allocation27_spill] sm:$0xff] %v12221_v44  ;;  %v3518_v19 = vrot.slane %v3517_v48, 1  ;;  %16028 = vst [vmem:[#allocation29_spill] sm:$0xff] %v12232_v45  ;;  %v16029_v22 = vld [vmem:[#allocation97_spill] sm:$0xff] }
 0x2c5   :  { %v3524_v26 = vmax.f32 %v3522_v36, %v3523_v30  ;;  %v12224_v28 = vadd.f32 %v1146_v7, %v12095_v38  ;;  %v12227_v33 = vadd.f32 %v1022_v47, %v12055_v29  ;;  %v3512_v54 = vmax.f32 %v3510_v14, %v3511_v21  ;;  %v12236_v44 = vpop.permute.xlu0 %386  ;;  %v16031_v36 = vld [vmem:[#allocation76_spill] sm:$0xff]  ;;  %v16032_v21 = vld [vmem:[#allocation102_spill] sm:$0xff] }
 0x2c6   :  { %v3998_v43 = vmul.f32 %v11661_v10, %v16029_v22  ;;  %v4192_v27 = vrot.slane %v4191_v24, 4  ;;  %v4206_v9 = vrot.slane %v4205_v57, 4  ;;  %16030 = vst [vmem:[#allocation15_spill] sm:$0xff] %v12236_v44  ;;  %1204 = vbcast.lane.b32.xlu1 %v16031_v36, 266  ;;  %v12240_v38 = vadd.f32 %v2405_v5, %v12097_v2  ;;  %v16033_v44 = vld [vmem:[#allocation77_spill] sm:$0xff] }
 0x2c7   :  { %16027 = vst [vmem:[#allocation42_spill] sm:$0xff] %v12224_v28  ;;  %v4017_v29 = vmul.f32 %v11683_v35, %v16029_v22  ;;  %v4004_v7 = vadd.f32 %v3996_v46, %v11822_v1  ;;  %v5276_v14 = vmul.f32 %v12153_v37, %v11760_v11  ;;  %v3505_v30 = vmax.f32 %v3503_v55, %v3504_v58  ;;  %v12251_v36 = vpop.permute.xlu1 %1658 }
 0x2c8   :  { %v4200_v47 = vmax.f32 %v4198_v0, %v4199_v8  ;;  %v4212_v10 = vsel %vm71_vm7, %v4123_v18, -inf  ;;  %v5379_v28 = vmul.f32 %v12232_v45, %v16032_v21  ;;  %1196 = vbcast.lane.b32.xlu0 %v16033_v44, 266  ;;  %v3519_v2 = vmax.f32 %v3517_v48, %v3518_v19  ;;  %v16034_v44 = vld [vmem:[#allocation126_spill] sm:$0xff] }
 0x2c9   :  { %v3525_v5 = vrot.slane %v3524_v26, 1  ;;  %v5295_v22 = vmul.f32 %v12087_v31, %v11760_v11  ;;  %v3346_v1 = vmul.f32 %v11801_v23, %v11933_v16  ;;  %v3627_v37 = vsel %vm852_vm9, %v3512_v54, %v3505_v30  ;;  %v12261_v58 = vpop.permute.xlu0 %501  ;;  %v12269_v11 = vld [vmem:[%s15251_s1 + $0x6] ss:$0 sm:$0xff]  ;;  %v16036_v54 = vld [vmem:[#allocation100_spill] sm:$0xff] }
 0x2ca   :  { %v12259_v55 = vadd.f32 %v3998_v43, %v12116_v15  ;;  %v4193_v0 = vmax.f32 %v4191_v24, %v4192_v27  ;;  %v4207_v46 = vmax.f32 %v4205_v57, %v4206_v9  ;;  %2469 = vbcast.lane.b32.xlu1 %v16034_v44, 265  ;;  %v12264_v18 = vadd.f32 %v4017_v29, %v4004_v7  ;;  %v16035_v8 = vld [vmem:[#allocation98_spill] sm:$0xff]  ;;  %v16037_v27 = vld [vmem:[#allocation99_spill] sm:$0xff] }
 0x2cb   :  { %v4213_v48 = vrot.slane %v4212_v10, 4  ;;  %v5381_v19 = vmul.f32 %v12232_v45, %v16035_v8  ;;  %v406_v15 = vmul.f32 %v11924_v34, %v16036_v54  ;;  %v12276_v9 = vadd.f32 %v5276_v14, %v12134_v20  ;;  %v12282_v29 = vpop.permute.xlu1 %3038 }
 0x2cc   :  { %v4201_v24 = vrot.slane %v4200_v47, 2  ;;  %v5387_v57 = vadd.f32 %v5379_v28, %v11936_v49  ;;  %v408_v43 = vmul.f32 %v11924_v34, %v16037_v27  ;;  %1216 = vbcast.lane.b32.xlu0 %v15944_v12, 258  ;;  %16038 = vst [vmem:[#allocation22_spill] sm:$0xff] %v12282_v29  ;;  %v12284_v7 = vmax.f32 %v3524_v26, %v3525_v5  ;;  %v16040_v28 = vld [vmem:[#allocation105_spill] sm:$0xff]  ;;  %v16042_v26 = vld [vmem:[#allocation127_spill] sm:$0xff] }
 0x2cd   :  { %v12287_v30 = vsel %vm854_vm10, %v3519_v2, %v3627_v37  ;;  %v12290_v21 = vadd.f32 %v5295_v22, %v12137_v4  ;;  %v3354_v20 = vadd.f32 %v3346_v1, %v12182_v25  ;;  %v4194_v14 = vrot.slane %v4193_v0, 2  ;;  %v12297_v12 = vpop.permute.xlu0 %1773  ;;  %v16043_v4 = vld [vmem:[#allocation121_spill] sm:$0xff] }
 0x2ce   :  { %v4208_v54 = vrot.slane %v4207_v46, 2  ;;  %v5400_v49 = vmul.f32 %v12269_v11, %v16035_v8  ;;  %v449_v45 = vmul.f32 %v11978_v60, %v16040_v28  ;;  %16041 = vst [vmem:[#allocation38_spill] sm:$0xff] %v12297_v12  ;;  %2584 = vbcast.lane.b32.xlu1 %v16042_v26, 258  ;;  %v4214_v5 = vmax.f32 %v4212_v10, %v4213_v48 }
 0x2cf   :  { %16039 = vst [vmem:[#allocation33_spill] sm:$0xff] %v12290_v21  ;;  %v12301_v2 = vadd.f32 %v5381_v19, %v12120_v13  ;;  %v414_v22 = vadd.f32 %v406_v15, %v16043_v4  ;;  %v3327_v25 = vmul.f32 %v11683_v35, %v11933_v16  ;;  %v4202_v1 = vmax.f32 %v4200_v47, %v4201_v24  ;;  %v16045_v21 = vld [vmem:[#allocation125_spill] sm:$0xff]  ;;  %v12314_v10 = vpop.permute.xlu1 %4624  ;;  %v16048_v19 = vld [vmem:[#allocation111_spill] sm:$0xff]  ;;  %v16049_v16 = vld [vmem:[#allocation108_spill] sm:$0xff] }
 0x2d0   :  { %v12306_v37 = vadd.f32 %v5400_v49, %v5387_v57  ;;  %v12309_v8 = vadd.f32 %v408_v43, %v12161_v56  ;;  %v427_v28 = vmul.f32 %v11958_v61, %v16037_v27  ;;  %2576 = vbcast.lane.b32.xlu0 %v16045_v21, 258  ;;  %16046 = vst [vmem:[#allocation34_spill] sm:$0xff] %v12314_v10  ;;  %v16047_v13 = vld [vmem:[#allocation109_spill] sm:$0xff]  ;;  %v4215_v21 = vrot.slane %v4214_v5, 2 }
 0x2d1   :  { %v1693_v48 = vmul.f32 %v11910_v3, %v16047_v13  ;;  %v1672_v15 = vmul.f32 %v11917_v52, %v16048_v19  ;;  %v1691_v35 = vmul.f32 %v11910_v3, %v16048_v19  ;;  %v3369_v47 = vmul.f32 %v16049_v16, %v3354_v20  ;;  %v16050_v57 = vld [vmem:[#allocation101_spill] sm:$0xff]  ;;  %v3265_v49 = vpop.permute.xlu0 %3264 }
 0x2d2   :  { %16044 = vst [vmem:[#allocation35_spill] sm:$0xff] %v12309_v8  ;;  %v4195_v56 = vmax.f32 %v4193_v0, %v4194_v14  ;;  %v4209_v24 = vmax.f32 %v4207_v46, %v4208_v54  ;;  %v1670_v27 = vmul.f32 %v11917_v52, %v16050_v57  ;;  %v12326_v43 = vadd.f32 %v449_v45, %v12140_v62  ;;  %v16052_v4 = vld [vmem:[#allocation137_spill] sm:$0xff]  ;;  %v16055_v62 = vld [vmem:[#allocation114_spill] sm:$0xff]  ;;  %v16056_v14 = vld [vmem:[#allocation139_spill] sm:$0xff] }
 0x2d3   :  { %3849 = vbcast.lane.b32.xlu1 %v16052_v4, 257  ;;  %v12329_v26 = vadd.f32 %v427_v28, %v414_v22  ;;  %v3335_v10 = vadd.f32 %v3327_v25, %v12180_v6  ;;  %v3348_v19 = vmul.f32 %v11801_v23, %v3265_v49  ;;  %v4203_v12 = vrot.slane %v4202_v1, 1  ;;  %v16054_v46 = vld [vmem:[#allocation13_spill] sm:$0xff]  ;;  %v4645_v54 = vpop.permute.xlu1 %4644 }
 0x2d4   :  { %16051 = vst [vmem:[#allocation45_spill] sm:$0xff] %v12326_v43  ;;  %v12335_v0 = vmul.f32 %v11896_v53, %v16047_v13  ;;  %v1798_v20 = vmul.f32 %v11924_v34, %v16054_v46  ;;  %v1796_v45 = vmul.f32 %v11924_v34, %v16055_v62  ;;  %3734 = vbcast.lane.b32.xlu0 %v16056_v14, 264  ;;  %v16058_v6 = vld [vmem:[#allocation113_spill] sm:$0xff]  ;;  %v4196_v49 = vrot.slane %v4195_v56, 1  ;;  %v16059_v13 = vld [vmem:[#allocation116_spill] sm:$0xff]  ;;  %v16062_v62 = vld [vmem:[#allocation59_spill] sm:$0xff] }
 0x2d5   :  { %16053 = vst [vmem:[#allocation37_spill] sm:$0xff] %v12329_v26  ;;  %v12342_v22 = vadd.f32 %v1691_v35, %v1670_v27  ;;  %v12344_v28 = vadd.f32 %v1693_v48, %v1672_v15  ;;  %v3384_v25 = vadd.f32 %v16058_v6, %v3369_v47  ;;  %v3356_v57 = vadd.f32 %v3348_v19, %v3335_v10  ;;  %v16060_v26 = vld [vmem:[#allocation117_spill] sm:$0xff]  ;;  %v12351_v29 = vpop.permute.xlu0 %4632  ;;  %v16063_v15 = vld [vmem:[#allocation123_spill] sm:$0xff]  ;;  %v16064_v19 = vld [vmem:[#allocation146_spill] sm:$0xff] }
 0x2d6   :  { %v4210_v4 = vrot.slane %v4209_v24, 1  ;;  %v3074_v43 = vmul.f32 %v11910_v3, %v16059_v13  ;;  %v3053_v8 = vmul.f32 %v11917_v52, %v16060_v26  ;;  %16061 = vst [vmem:[#allocation51_spill] sm:$0xff] %v12351_v29  ;;  %v4216_v14 = vmax.f32 %v4214_v5, %v4215_v21  ;;  %v16065_v29 = vld [vmem:[#allocation150_spill] sm:$0xff] }
 0x2d7   :  { %16057 = vst [vmem:[#allocation41_spill] sm:$0xff] %v12344_v28  ;;  %5340 = vbcast.lane.b32.xlu1 %v16062_v62, 266  ;;  %v1817_v48 = vmul.f32 %v11958_v61, %v16054_v46  ;;  %v4729_v35 = vmul.f32 %v11801_v23, %v16063_v15  ;;  %v3371_v10 = vmul.f32 %v16049_v16, %v3356_v57  ;;  %v12366_v21 = vpop.permute.xlu1 %1192  ;;  %v3392_v5 = vmax.f32 %v3384_v25, 0.0  ;;  %v16067_v46 = vld [vmem:[#allocation120_spill] sm:$0xff] }
 0x2d8   :  { %v4204_v47 = vmax.f32 %v4202_v1, %v4203_v12  ;;  %v12360_v27 = vadd.f32 %v1798_v20, %v12164_v40  ;;  %v1804_v28 = vadd.f32 %v1796_v45, %v16064_v19  ;;  %v3055_v26 = vmul.f32 %v11917_v52, %v16059_v13  ;;  %5114 = vbcast.lane.b32.xlu0 %v16065_v29, 256  ;;  %v12376_v45 = vld [vmem:[%s15251_s1 + $0x6] ss:$0 sm:$0xff]  ;;  %v16070_v19 = vld [vmem:[#allocation128_spill] sm:$0xff] }
 0x2d9   :  { %16066 = vst [vmem:[#allocation46_spill] sm:$0xff] %v12366_v21  ;;  %v3076_v62 = vmul.f32 %v11910_v3, %v16067_v46  ;;  %v3095_v57 = vmul.f32 %v11896_v53, %v16067_v46  ;;  %v3386_v12 = vadd.f32 %v16058_v6, %v3371_v10  ;;  %v4197_v40 = vmax.f32 %v4195_v56, %v4196_v49  ;;  %v12380_v25 = vpop.permute.xlu0 %1085  ;;  %v16071_v21 = vld [vmem:[#allocation147_spill] sm:$0xff]  ;;  %v16073_v10 = vld [vmem:[#allocation134_spill] sm:$0xff] }
 0x2da   :  { %v4211_v1 = vmax.f32 %v4209_v24, %v4210_v4  ;;  %v3082_v20 = vadd.f32 %v3074_v43, %v3053_v8  ;;  %16068 = vst [vmem:[#allocation69_spill] sm:$0xff] %v12376_v45  ;;  %v4710_v13 = vmul.f32 %v12376_v45, %v16063_v15  ;;  %16069 = vst [vmem:[#allocation36_spill] sm:$0xff] %v12380_v25  ;;  %v4217_v29 = vrot.slane %v4216_v14, 1  ;;  %v16072_v4 = vld [vmem:[#allocation124_spill] sm:$0xff]  ;;  %v16074_v25 = vld [vmem:[#allocation65_spill] sm:$0xff] }
 0x2db   :  { %1785 = vbcast.lane.b32.xlu1 %v16070_v19, 265  ;;  %v4737_v46 = vadd.f32 %v4729_v35, %v12206_v63  ;;  %v1105_v56 = vmul.f32 %v11924_v34, %v16071_v21  ;;  %v3394_v24 = vmax.f32 %v3386_v12, 0.0  ;;  %v4319_v8 = vsel %vm852_vm9, %v4204_v47, %v4197_v40  ;;  %v12394_v19 = vpop.permute.xlu1 %2350 }
 0x2dc   :  { %v12387_v43 = vadd.f32 %v1817_v48, %v1804_v28  ;;  %v4605_v49 = vmul.f32 %v12087_v31, %v16072_v4  ;;  %v1107_v15 = vmul.f32 %v11924_v34, %v16073_v10  ;;  %513 = vbcast.lane.b32.xlu0 %v16074_v25, 266  ;;  %16075 = vst [vmem:[#allocation16_spill] sm:$0xff] %v12394_v19  ;;  %v3402_v63 = vsel %vm69_vm6, %v3392_v5, -inf  ;;  %v16078_v25 = vld [vmem:[#allocation131_spill] sm:$0xff] }
 0x2dd   :  { %v12397_v35 = vadd.f32 %v3076_v62, %v3055_v26  ;;  %v12399_v21 = vadd.f32 %v3095_v57, %v3082_v20  ;;  %v3403_v47 = vsel %vm69_vm6, %v3394_v24, -inf  ;;  %v4718_v28 = vadd.f32 %v4710_v13, %v12204_v41  ;;  %v12406_v4 = vpop.permute.xlu0 %1200  ;;  %v16079_v62 = vld [vmem:[#allocation28_spill] sm:$0xff]  ;;  %v16083_v24 = vld [vmem:[#allocation18_spill] sm:$0xff] }
 0x2de   :  { %v1126_v48 = vmul.f32 %v11958_v61, %v16073_v10  ;;  %v3404_v12 = vmax.f32 %v3402_v63, %v3403_v47  ;;  %v4731_v40 = vmul.f32 %v11801_v23, %v4645_v54  ;;  %16077 = vst [vmem:[#allocation83_spill] sm:$0xff] %v12406_v4  ;;  %v12409_v19 = vmax.f32 %v4216_v14, %v4217_v29  ;;  %v16082_v14 = vld [vmem:[#allocation141_spill] sm:$0xff] }
 0x2df   :  { %16076 = vst [vmem:[#allocation47_spill] sm:$0xff] %v12399_v21  ;;  %3145 = vbcast.lane.b32.xlu1 %v16078_v25, 265  ;;  %v12412_v26 = vsel %vm854_vm10, %v4211_v1, %v4319_v8  ;;  %v4752_v5 = vmul.f32 %v16049_v16, %v4737_v46  ;;  %v1113_v57 = vadd.f32 %v1105_v56, %v16079_v62  ;;  %v12424_v29 = vpop.permute.xlu1 %3730  ;;  %v16084_v56 = vld [vmem:[#allocation19_spill] sm:$0xff] }
 0x2e0   :  { %v12417_v41 = vadd.f32 %v4605_v49, %v12185_v39  ;;  %v12420_v20 = vadd.f32 %v1107_v15, %v12227_v33  ;;  %v3432_v54 = vcombine.high %v3404_v12, %v3404_v12  ;;  %v3439_v13 = vrot.slane %v3404_v12, %v15896_v17  ;;  %1900 = vbcast.lane.b32.xlu0 %v16000_v42, 258  ;;  %v16085_v8 = vld [vmem:[#allocation151_spill] sm:$0xff] }
 0x2e1   :  { %16081 = vst [vmem:[#allocation40_spill] sm:$0xff] %v12424_v29  ;;  %v2362_v1 = vmul.f32 %v11917_v52, %v16082_v14  ;;  %v1148_v46 = vmul.f32 %v11978_v60, %v16083_v24  ;;  %v2385_v39 = vmul.f32 %v11910_v3, %v16084_v56  ;;  %v2364_v33 = vmul.f32 %v11917_v52, %v16085_v8  ;;  %v12436_v47 = vpop.permute.xlu0 %2465 }
 0x2e2   :  { %16080 = vst [vmem:[#allocation82_spill] sm:$0xff] %v12420_v20  ;;  %v3446_v49 = vrot.slane %v3432_v54, %v15896_v17  ;;  %v3447_v10 = vcombine.high %v3439_v13, %v3439_v13  ;;  %v3527_v15 = vsel %vm71_vm7, %v3439_v13, -inf  ;;  %v4739_v63 = vadd.f32 %v4731_v40, %v4718_v28  ;;  %16086 = vst [vmem:[#allocation89_spill] sm:$0xff] %v12436_v47  ;;  %v16088_v40 = vld [vmem:[#allocation130_spill] sm:$0xff]  ;;  %v16092_v47 = vld [vmem:[#allocation140_spill] sm:$0xff] }
 0x2e3   :  { %3165 = vbcast.lane.b32.xlu1 %v16017_v32, 257  ;;  %v4767_v12 = vadd.f32 %v16058_v6, %v4752_v5  ;;  %v12440_v62 = vadd.f32 %v1126_v48, %v1113_v57  ;;  %v12444_v14 = vmul.f32 %v11896_v53, %v16084_v56  ;;  %v3528_v24 = vrot.slane %v3527_v15, 4  ;;  %v12451_v32 = vpop.permute.xlu1 %5316 }
 0x2e4   :  { %v4038_v54 = vmul.f32 %v11801_v23, %v12167_v59  ;;  %v3448_v42 = vcombine.high %v3446_v49, %v3446_v49  ;;  %v3534_v13 = vsel %vm71_vm7, %v3447_v10, -inf  ;;  %v3541_v28 = vsel %vm71_vm7, %v3446_v49, -inf  ;;  %3153 = vbcast.lane.b32.xlu0 %v16088_v40, 265  ;;  %16089 = vst [vmem:[#allocation72_spill] sm:$0xff] %v12451_v32  ;;  %v16095_v40 = vld [vmem:[#allocation25_spill] sm:$0xff] }
 0x2e5   :  { %16087 = vst [vmem:[#allocation48_spill] sm:$0xff] %v12440_v62  ;;  %v12454_v48 = vadd.f32 %v1148_v46, %v12218_v51  ;;  %v3529_v5 = vmax.f32 %v3527_v15, %v3528_v24  ;;  %v3535_v57 = vrot.slane %v3534_v13, 4  ;;  %v3542_v56 = vrot.slane %v3541_v28, 4  ;;  %v12468_v51 = vld [vmem:[%s15251_s1 + $0xa] ss:$0 sm:$0xff] }
 0x2e6   :  { %v2383_v21 = vmul.f32 %v11910_v3, %v16085_v8  ;;  %v12458_v62 = vadd.f32 %v2385_v39, %v2364_v33  ;;  %v3548_v23 = vsel %vm71_vm7, %v3448_v42, -inf  ;;  %v4754_v10 = vmul.f32 %v16049_v16, %v4739_v63  ;;  %v12462_v49 = vpop.permute.xlu0 %3956  ;;  %16093 = vst [vmem:[#allocation11_spill] sm:$0xff] %v12468_v51  ;;  %v16094_v63 = vld [vmem:[#allocation142_spill] sm:$0xff] }
 0x2e7   :  { %16090 = vst [vmem:[#allocation49_spill] sm:$0xff] %v12454_v48  ;;  %4404 = vbcast.lane.b32.xlu1 %v16092_v47, 264  ;;  %v3530_v46 = vrot.slane %v3529_v5, 2  ;;  %v3536_v15 = vmax.f32 %v3534_v13, %v3535_v57  ;;  %v3543_v24 = vmax.f32 %v3541_v28, %v3542_v56  ;;  %v3549_v32 = vrot.slane %v3548_v23, 4 }
 0x2e8   :  { %16091 = vst [vmem:[#allocation52_spill] sm:$0xff] %v12458_v62  ;;  %v2490_v39 = vmul.f32 %v11924_v34, %v12101_v50  ;;  %v12474_v42 = vmul.f32 %v11958_v61, %v12101_v50  ;;  %v4046_v8 = vadd.f32 %v4038_v54, %v12264_v18  ;;  %v3629_v33 = vsel %vm856_vm11, %v12284_v7, %v12287_v30  ;;  %v5337_v48 = vpop.permute.xlu1 %5336 }
 0x2e9   :  { %4393 = vbcast.lane.b32.xlu0 %v16094_v63, 264  ;;  %v3531_v62 = vmax.f32 %v3529_v5, %v3530_v46  ;;  %v3537_v13 = vrot.slane %v3536_v15, 2  ;;  %v3544_v28 = vrot.slane %v3543_v24, 2  ;;  %v3550_v57 = vmax.f32 %v3548_v23, %v3549_v32  ;;  %v16096_v32 = vld [vmem:[#allocation20_spill] sm:$0xff]  ;;  %v16097_v23 = vld [vmem:[#allocation143_spill] sm:$0xff] }
 0x2ea   :  { %v4775_v56 = vmax.f32 %v4767_v12, 0.0  ;;  %v12481_v29 = vadd.f32 %v2383_v21, %v2362_v1  ;;  %v5421_v50 = vmul.f32 %v12468_v51, %v16095_v40  ;;  %v4769_v20 = vadd.f32 %v16058_v6, %v4754_v10  ;;  %v12486_v18 = vpop.permute.xlu0 %5324 }
 0x2eb   :  { %4525 = vbcast.lane.b32.xlu1 %v16094_v63, 257  ;;  %v3532_v7 = vrot.slane %v3531_v62, 1  ;;  %v3538_v30 = vmax.f32 %v3536_v15, %v3537_v13  ;;  %v3545_v54 = vmax.f32 %v3543_v24, %v3544_v28  ;;  %v3551_v4 = vrot.slane %v3550_v57, 2 }
 0x2ec   :  { %v12490_v5 = vadd.f32 %v2490_v39, %v12240_v38  ;;  %v2488_v21 = vmul.f32 %v11924_v34, %v16096_v32  ;;  %v4061_v1 = vmul.f32 %v16049_v16, %v4046_v8  ;;  %v12498_v12 = vsel %vm856_vm11, %v12409_v19, %v12412_v26  ;;  %v12501_v10 = vpop.permute.xlu1 %509  ;;  %v16098_v19 = vld [vmem:[#allocation80_spill] sm:$0xff]  ;;  %v12513_v26 = vld [vmem:[%s15252_s2] ss:$0 sm:$0xff] }
 0x2ed   :  { %4415 = vbcast.lane.b32.xlu0 %v16097_v23, 264  ;;  %v3533_v46 = vmax.f32 %v3531_v62, %v3532_v7  ;;  %v3539_v15 = vrot.slane %v3538_v30, 1  ;;  %v3546_v24 = vrot.slane %v3545_v54, 1  ;;  %v3552_v13 = vmax.f32 %v3550_v57, %v3551_v4  ;;  %16099 = vst [vmem:[#allocation66_spill] sm:$0xff] %v12513_v26 }
 0x2ee   :  { %v4783_v38 = vsel %vm69_vm6, %v4775_v56, -inf  ;;  %v4019_v34 = vmul.f32 %v12376_v45, %v12167_v59  ;;  %v5429_v16 = vadd.f32 %v5421_v50, %v12306_v37  ;;  %v4777_v39 = vmax.f32 %v4769_v20, 0.0  ;;  %v12507_v8 = vpop.permute.xlu0 %394  ;;  %v16100_v56 = vld [vmem:[#allocation17_spill] sm:$0xff] }
 0x2ef   :  { %1212 = vbcast.lane.b32.xlu1 %v16098_v19, 266  ;;  %v3540_v62 = vmax.f32 %v3538_v30, %v3539_v15  ;;  %v3547_v28 = vmax.f32 %v3545_v54, %v3546_v24  ;;  %v3553_v4 = vrot.slane %v3552_v13, 1  ;;  %v3630_v57 = vsel %vm858_vm12, %v3533_v46, %v3629_v33  ;;  %v16101_v59 = vld [vmem:[#allocation21_spill] sm:$0xff]  ;;  %v16102_v54 = vld [vmem:[#allocation44_spill] sm:$0xff] }
 0x2f0   :  { %v2496_v7 = vadd.f32 %v2488_v21, %v16100_v56  ;;  %v3747_v37 = vmul.f32 %v11917_v52, %v16101_v59  ;;  %v4076_v20 = vadd.f32 %v16058_v6, %v4061_v1  ;;  %v5402_v50 = vmul.f32 %v12269_v11, %v16095_v40  ;;  %v12523_v32 = vpop.permute.xlu1 %1769  ;;  %v16103_v56 = vld [vmem:[#allocation30_spill] sm:$0xff] }
 0x2f1   :  { %4533 = vbcast.lane.b32.xlu0 %v16092_v47, 257  ;;  %v3766_v30 = vmul.f32 %v11910_v3, %v16101_v59  ;;  %v3745_v33 = vmul.f32 %v11917_v52, %v16102_v54  ;;  %v3554_v46 = vmax.f32 %v3552_v13, %v3553_v4  ;;  %v3631_v21 = vsel %vm860_vm13, %v3540_v62, %v3630_v57  ;;  %v16105_v62 = vld [vmem:[#allocation23_spill] sm:$0xff]  ;;  %v16106_v57 = vld [vmem:[#allocation129_spill] sm:$0xff] }
 0x2f2   :  { %v4027_v15 = vadd.f32 %v4019_v34, %v12259_v55  ;;  %v5444_v1 = vmul.f32 %v12513_v26, %v5429_v16  ;;  %v3632_v24 = vsel %vm862_vm14, %v3547_v28, %v3631_v21  ;;  %v4784_v40 = vsel %vm69_vm6, %v4777_v39, -inf  ;;  %v12534_v19 = vpop.permute.xlu0 %1761  ;;  %v12544_v55 = vld [vmem:[%s15253_s3] ss:$0 sm:$0xff]  ;;  %v12550_v34 = vld [vmem:[%s15251_s1 + $0xa] ss:$0 sm:$0xff] }
 0x2f3   :  { %2592 = vbcast.lane.b32.xlu1 %v16034_v44, 258  ;;  %v3768_v59 = vmul.f32 %v11910_v3, %v16103_v56  ;;  %v3787_v52 = vmul.f32 %v11896_v53, %v16103_v56  ;;  %16104 = vst [vmem:[#allocation81_spill] sm:$0xff] %v12544_v55  ;;  %v3633_v13 = vsel %vm864_vm15, %v3554_v46, %v3632_v24  ;;  %v4084_v39 = vmax.f32 %v4076_v20, 0.0  ;;  %v12565_v21 = vld [vmem:[%s15251_s1 + $0x2] ss:$0 sm:$0xff]  ;;  %v16121_v47 = vld [vmem:[#allocation139_spill] sm:$0xff] }
 0x2f4   :  { %v4040_v16 = vmul.f32 %v12550_v34, %v12462_v49  ;;  %v5410_v3 = vadd.f32 %v5402_v50, %v12301_v2  ;;  %v5297_v28 = vmul.f32 %v12087_v31, %v16105_v62  ;;  %3644 = vst.msk [vmem:[#allocation3 + $0x51] sm:$0xff] %vm69_vm6, %v3633_v13  ;;  %v5423_v4 = vmul.f32 %v12468_v51, %v5337_v48  ;;  %v12560_v54 = vpop.permute.xlu1 %3009  ;;  %v16108_v49 = vld [vmem:[#allocation27_spill] sm:$0xff] }
 0x2f5   :  { %2477 = vbcast.lane.b32.xlu0 %v16106_v57, 265  ;;  %v3774_v46 = vadd.f32 %v3766_v30, %v3745_v33  ;;  %16107 = vst [vmem:[#allocation64_spill] sm:$0xff] %v12565_v21  ;;  %v532_v2 = vmul.f32 %v12565_v21, %v16108_v49  ;;  %v4785_v20 = vmax.f32 %v4783_v38, %v4784_v40  ;;  %v16109_v30 = vld [vmem:[#allocation135_spill] sm:$0xff]  ;;  %v16117_v49 = vld [vmem:[#allocation145_spill] sm:$0xff] }
 0x2f6   :  { %v4048_v50 = vadd.f32 %v4040_v16, %v4027_v15  ;;  %v5459_v31 = vadd.f32 %v12544_v55, %v5444_v1  ;;  %v5431_v24 = vadd.f32 %v5423_v4, %v5410_v3  ;;  %v12572_v48 = vadd.f32 %v12335_v0, %v12342_v22  ;;  %v12574_v56 = vpop.permute.xlu0 %1781  ;;  %v12591_v0 = vld [vmem:[%s15252_s2] ss:$0 sm:$0xff] }
 0x2f7   :  { %3845 = vbcast.lane.b32.xlu1 %v16109_v30, 265  ;;  %v12579_v33 = vadd.f32 %v12444_v14, %v12481_v29  ;;  %v12582_v13 = vadd.f32 %v12474_v42, %v2496_v7  ;;  %v12584_v38 = vadd.f32 %v3768_v59, %v3747_v37  ;;  %v12586_v15 = vadd.f32 %v3787_v52, %v3774_v46  ;;  %v16114_v29 = vld [vmem:[#allocation15_spill] sm:$0xff]  ;;  %v16115_v7 = vld [vmem:[#allocation136_spill] sm:$0xff] }
 0x2f8   :  { %16113 = vst [vmem:[#allocation71_spill] sm:$0xff] %v12591_v0  ;;  %v4063_v22 = vmul.f32 %v12591_v0, %v4048_v50  ;;  %v4094_v1 = vsel %vm69_vm6, %v4084_v39, -inf  ;;  %v12596_v40 = vadd.f32 %v5297_v28, %v12276_v9  ;;  %v429_v14 = vmul.f32 %v11958_v61, %v16114_v29  ;;  %v12602_v37 = vpop.permute.xlu1 %3031  ;;  %v16116_v59 = vld [vmem:[#allocation24_spill] sm:$0xff]  ;;  %v16118_v50 = vld [vmem:[#allocation22_spill] sm:$0xff] }
 0x2f9   :  { %16110 = vst [vmem:[#allocation53_spill] sm:$0xff] %v12579_v33  ;;  %16111 = vst [vmem:[#allocation26_spill] sm:$0xff] %v12582_v13  ;;  %v5446_v42 = vmul.f32 %v12513_v26, %v5431_v24  ;;  %3837 = vbcast.lane.b32.xlu0 %v16115_v7, 265  ;;  %v540_v52 = vadd.f32 %v532_v2, %v16116_v59  ;;  %v4799_v16 = vcombine.high %v4785_v20, %v4785_v20  ;;  %v16120_v59 = vld [vmem:[#allocation38_spill] sm:$0xff]  ;;  %v16128_v33 = vld [vmem:[#allocation148_spill] sm:$0xff] }
 0x2fa   :  { %16112 = vst [vmem:[#allocation54_spill] sm:$0xff] %v12586_v15  ;;  %v4806_v3 = vrot.slane %v4785_v20, %v15896_v17  ;;  %v4078_v62 = vadd.f32 %v16058_v6, %v4063_v22  ;;  %v5467_v39 = vmax.f32 %v5459_v31, 0.0  ;;  %v448_v9 = vmul.f32 %v11978_v60, %v16114_v29  ;;  %v12612_v46 = vpop.permute.xlu0 %3020  ;;  %v12620_v6 = vld [vmem:[%s15251_s1 + $0x6] ss:$0 sm:$0xff]  ;;  %v16119_v29 = vld [vmem:[#allocation35_spill] sm:$0xff] }
 0x2fb   :  { %v1714_v28 = vmul.f32 %v11896_v53, %v12251_v36  ;;  %v5461_v4 = vadd.f32 %v12544_v55, %v5446_v42  ;;  %5085 = vbcast.lane.b32.xlu1 %v16117_v49, 264  ;;  %v534_v2 = vmul.f32 %v12565_v21, %v12261_v58  ;;  %v553_v20 = vmul.f32 %v12620_v6, %v12261_v58  ;;  %v5727_v24 = vld [vmem:[#allocation3 + $0x50] sm:$0xff] }
 0x2fc   :  { %v3097_v36 = vmul.f32 %v11896_v53, %v16118_v50  ;;  %v4086_v31 = vmax.f32 %v4078_v62, 0.0  ;;  %v6266_v22 = vld [vmem:[#allocation3 + $0x51] sm:$0xff]  ;;  %v12627_v42 = vadd.f32 %v429_v14, %v16119_v29  ;;  %v1819_v44 = vmul.f32 %v11958_v61, %v16120_v59  ;;  %9153 = vmatprep.mubr.msk.f32.mxu1 %vm69_vm6, %v5727_v24  ;;  %v12635_v58 = vpop.permute.xlu1 %3149 }
 0x2fd   :  { %v1838_v55 = vmul.f32 %v11978_v60, %v16120_v59  ;;  %v5469_v13 = vmax.f32 %v5461_v4, 0.0  ;;  %3857 = vbcast.lane.b32.xlu0 %v16121_v47, 257  ;;  %16122 = vst [vmem:[#allocation86_spill] sm:$0xff] %v12635_v58  ;;  %v9647_v53 = vld [vmem:[%s15251_s1 + $0x2] ss:$0 sm:$0xff]  ;;  %v4813_v50 = vrot.slane %v4799_v16, %v15896_v17  ;;  %v4814_v29 = vcombine.high %v4806_v3, %v4806_v3  ;;  %v16124_v4 = vld [vmem:[#allocation37_spill] sm:$0xff] }
 0x2fe   :  { %v16123_v62 = vld [vmem:[#allocation34_spill] sm:$0xff]  ;;  %v4095_v61 = vsel %vm69_vm6, %v4086_v31, -inf  ;;  %9265 = vmatprep.mubr.msk.f32.mxu0 %vm69_vm6, %v6266_v22  ;;  %v5475_v60 = vsel %vm69_vm6, %v5467_v39, -inf  ;;  %v12646_v59 = vadd.f32 %v448_v9, %v16124_v4  ;;  %v16126_v24 = vld [vmem:[#allocation41_spill] sm:$0xff]  ;;  %v12651_v15 = vpop.permute.xlu0 %3141  ;;  %v12657_v63 = vadd.f32 %v553_v20, %v540_v52 }
 0x2ff   :  { %v4688_v14 = vmul.f32 %v9647_v53, %v16123_v62  ;;  %v12649_v47 = vadd.f32 %v1714_v28, %v16126_v24  ;;  %v4096_v26 = vmax.f32 %v4094_v1, %v4095_v61  ;;  %16127 = vst [vmem:[#allocation56_spill] sm:$0xff] %v12651_v15  ;;  %5107 = vbcast.lane.b32.xlu1 %v16128_v33, 264  ;;  %v16129_v62 = vld [vmem:[#allocation45_spill] sm:$0xff]  ;;  %v5476_v39 = vsel %vm69_vm6, %v5469_v13, -inf  ;;  %v16132_v61 = vld [vmem:[#allocation144_spill] sm:$0xff] }
 0x300   :  { %16125 = vst [vmem:[#allocation55_spill] sm:$0xff] %v12646_v59  ;;  %v12655_v16 = vadd.f32 %v534_v2, %v16129_v62  ;;  %v12660_v31 = vadd.f32 %v3097_v36, %v12397_v35  ;;  %v12664_v9 = vadd.f32 %v1819_v44, %v12360_v27  ;;  %v4883_v28 = vsel %vm71_vm7, %v4806_v3, -inf  ;;  %v12669_v4 = vpop.permute.xlu1 %4400  ;;  %v16135_v2 = vld [vmem:[#allocation31_spill] sm:$0xff] }
 0x301   :  { %v4124_v1 = vcombine.high %v4096_v26, %v4096_v26  ;;  %v4131_v22 = vrot.slane %v4096_v26, %v15896_v17  ;;  %5096 = vbcast.lane.b32.xlu0 %v16132_v61, 264  ;;  %16133 = vst [vmem:[#allocation133_spill] sm:$0xff] %v12669_v4  ;;  %v12672_v52 = vadd.f32 %v1838_v55, %v12387_v43  ;;  %v4890_v13 = vsel %vm71_vm7, %v4814_v29, -inf  ;;  %v16137_v43 = vld [vmem:[#allocation51_spill] sm:$0xff] }
 0x302   :  { %16130 = vst [vmem:[#allocation9_spill] sm:$0xff] %v12660_v31  ;;  %16131 = vst [vmem:[#allocation104_spill] sm:$0xff] %v12664_v9  ;;  %v4696_v35 = vadd.f32 %v4688_v14, %v16135_v2  ;;  %v4815_v20 = vcombine.high %v4813_v50, %v4813_v50  ;;  %v5477_v36 = vmax.f32 %v5475_v60, %v5476_v39  ;;  %v12678_v24 = vpop.permute.xlu0 %4389  ;;  %v4884_v26 = vrot.slane %v4883_v28, 4 }
 0x303   :  { %16134 = vst [vmem:[#allocation75_spill] sm:$0xff] %v12672_v52  ;;  %v4138_v44 = vrot.slane %v4124_v1, %v15896_v17  ;;  %v4139_v27 = vcombine.high %v4131_v22, %v4131_v22  ;;  %v4219_v3 = vsel %vm71_vm7, %v4131_v22, -inf  ;;  %16136 = vst [vmem:[#allocation79_spill] sm:$0xff] %v12678_v24  ;;  %5225 = vbcast.lane.b32.xlu1 %v16132_v61, 257  ;;  %v4897_v62 = vsel %vm71_vm7, %v4813_v50, -inf }
 0x304   :  { %v4690_v55 = vmul.f32 %v9647_v53, %v16137_v43  ;;  %v4220_v52 = vrot.slane %v4219_v3, 4  ;;  %v4891_v14 = vrot.slane %v4890_v13, 4  ;;  %v12686_v22 = vpop.permute.xlu1 %4640  ;;  %v4709_v60 = vmul.f32 %v12376_v45, %v16137_v43  ;;  %v16141_v45 = vld [vmem:[#allocation92_spill] sm:$0xff] }
 0x305   :  { %v4140_v2 = vcombine.high %v4138_v44, %v4138_v44  ;;  %v4226_v29 = vsel %vm71_vm7, %v4139_v27, -inf  ;;  %v4233_v1 = vsel %vm71_vm7, %v4138_v44, -inf  ;;  %5217 = vbcast.lane.b32.xlu0 %v16117_v49, 257  ;;  %v4898_v50 = vrot.slane %v4897_v62, 4  ;;  %v16139_v44 = vld [vmem:[#allocation115_spill] sm:$0xff] }
 0x306   :  { %v4221_v39 = vmax.f32 %v4219_v3, %v4220_v52  ;;  %v4227_v61 = vrot.slane %v4226_v29, 4  ;;  %v4234_v59 = vrot.slane %v4233_v1, 4  ;;  %v4904_v53 = vsel %vm71_vm7, %v4815_v20, -inf  ;;  %v12693_v27 = vpop.permute.xlu0 %4411 }
 0x307   :  { %v4240_v51 = vsel %vm71_vm7, %v4140_v2, -inf  ;;  %v5498_v0 = vrot.slane %v5477_v36, %v15896_v17  ;;  %16138 = vst [vmem:[#allocation58_spill] sm:$0xff] %v12693_v27  ;;  %1888 = vbcast.lane.b32.xlu1 %v16139_v44, 266  ;;  %v4885_v24 = vmax.f32 %v4883_v28, %v4884_v26  ;;  %v4892_v43 = vmax.f32 %v4890_v13, %v4891_v14  ;;  %v16144_v28 = vld [vmem:[#allocation128_spill] sm:$0xff]  ;;  %v16145_v14 = vld [vmem:[#allocation46_spill] sm:$0xff] }
 0x308   :  { %v4222_v49 = vrot.slane %v4221_v39, 2  ;;  %v4228_v31 = vmax.f32 %v4226_v29, %v4227_v61  ;;  %v4235_v9 = vmax.f32 %v4233_v1, %v4234_v59  ;;  %v4241_v33 = vrot.slane %v4240_v51, 4  ;;  %v12700_v20 = vpop.permute.xlu1 %1208 }
 0x309   :  { %v12697_v52 = vadd.f32 %v4690_v55, %v12417_v41  ;;  %v5491_v3 = vcombine.high %v5477_v36, %v5477_v36  ;;  %521 = vbcast.lane.b32.xlu0 %v16141_v45, 266  ;;  %v4899_v15 = vmax.f32 %v4897_v62, %v4898_v50  ;;  %v4905_v44 = vrot.slane %v4904_v53, 4 }
 0x30a   :  { %v4223_v2 = vmax.f32 %v4221_v39, %v4222_v49  ;;  %v4229_v4 = vrot.slane %v4228_v31, 2  ;;  %v4236_v7 = vrot.slane %v4235_v9, 2  ;;  %v4242_v27 = vmax.f32 %v4240_v51, %v4241_v33  ;;  %v12704_v61 = vpop.permute.xlu0 %1093  ;;  %v16146_v33 = vld [vmem:[#allocation119_spill] sm:$0xff] }
 0x30b   :  { %16140 = vst [vmem:[#allocation57_spill] sm:$0xff] %v12697_v52  ;;  %v12702_v58 = vadd.f32 %v4709_v60, %v4696_v35  ;;  %v5506_v59 = vcombine.high %v5498_v0, %v5498_v0  ;;  %16143 = vst [vmem:[#allocation10_spill] sm:$0xff] %v12704_v61  ;;  %1908 = vbcast.lane.b32.xlu1 %v16144_v28, 258  ;;  %v4886_v45 = vrot.slane %v4885_v24, 2  ;;  %v4893_v55 = vrot.slane %v4892_v43, 2 }
 0x30c   :  { %v4224_v41 = vrot.slane %v4223_v2, 1  ;;  %v4230_v13 = vmax.f32 %v4228_v31, %v4229_v4  ;;  %v4237_v36 = vmax.f32 %v4235_v9, %v4236_v7  ;;  %v4243_v26 = vrot.slane %v4242_v27, 2  ;;  %v12711_v35 = vpop.permute.xlu1 %2461  ;;  %v12716_v7 = vld [vmem:[%s15251_s1 + $0x5] ss:$0 sm:$0xff]  ;;  %v16148_v31 = vld [vmem:[#allocation36_spill] sm:$0xff] }
 0x30d   :  { %16142 = vst [vmem:[#allocation61_spill] sm:$0xff] %v12702_v58  ;;  %v1231_v49 = vmul.f32 %v12565_v21, %v16145_v14  ;;  %v5505_v51 = vrot.slane %v5491_v3, %v15896_v17  ;;  %1896 = vbcast.lane.b32.xlu0 %v16146_v33, 266  ;;  %16147 = vst [vmem:[#allocation60_spill] sm:$0xff] %v12711_v35  ;;  %v4900_v39 = vrot.slane %v4899_v15, 2  ;;  %v5582_v4 = vsel %vm71_vm7, %v5506_v59, -inf  ;;  %v16151_v17 = vld [vmem:[#allocation132_spill] sm:$0xff] }
 0x30e   :  { %v4225_v62 = vmax.f32 %v4223_v2, %v4224_v41  ;;  %v4231_v29 = vrot.slane %v4230_v13, 1  ;;  %v4238_v1 = vrot.slane %v4237_v36, 1  ;;  %v4244_v60 = vmax.f32 %v4242_v27, %v4243_v26  ;;  %v12721_v3 = vpop.permute.xlu0 %2453  ;;  %v16150_v26 = vld [vmem:[#allocation42_spill] sm:$0xff] }
 0x30f   :  { %v4906_v50 = vmax.f32 %v4904_v53, %v4905_v44  ;;  %v1128_v9 = vmul.f32 %v12716_v7, %v16148_v31  ;;  %16149 = vst [vmem:[#allocation67_spill] sm:$0xff] %v12721_v3  ;;  %3268 = vbcast.lane.b32.xlu1 %v16078_v25, 258  ;;  %v4887_v27 = vmax.f32 %v4885_v24, %v4886_v45  ;;  %v12730_v28 = vld [vmem:[%s15251_s1 + $0x9] ss:$0 sm:$0xff]  ;;  %v5575_v24 = vsel %vm71_vm7, %v5498_v0, -inf  ;;  %v16156_v0 = vld [vmem:[#allocation83_spill] sm:$0xff] }
 0x310   :  { %v4232_v2 = vmax.f32 %v4230_v13, %v4231_v29  ;;  %v4239_v41 = vmax.f32 %v4237_v36, %v4238_v1  ;;  %v4245_v14 = vrot.slane %v4244_v60, 1  ;;  %v4322_v53 = vsel %vm858_vm12, %v4225_v62, %v12498_v12  ;;  %v12735_v13 = vpop.permute.xlu1 %3701  ;;  %v16154_v1 = vld [vmem:[#allocation149_spill] sm:$0xff]  ;;  %v16160_v25 = vld [vmem:[#allocation130_spill] sm:$0xff]  ;;  %v16165_v3 = vld [vmem:[#allocation52_spill] sm:$0xff] }
 0x311   :  { %v4894_v44 = vmax.f32 %v4892_v43, %v4893_v55  ;;  %v1239_v33 = vadd.f32 %v1231_v49, %v16150_v26  ;;  %v1147_v59 = vmul.f32 %v12730_v28, %v16148_v31  ;;  %3161 = vbcast.lane.b32.xlu0 %v16151_v17, 265  ;;  %16152 = vst [vmem:[#allocation70_spill] sm:$0xff] %v12735_v13  ;;  %v4907_v43 = vrot.slane %v4906_v50, 2  ;;  %v16163_v17 = vld [vmem:[#allocation89_spill] sm:$0xff] }
 0x312   :  { %v4246_v36 = vmax.f32 %v4244_v60, %v4245_v14  ;;  %v4323_v29 = vsel %vm860_vm13, %v4232_v2, %v4322_v53  ;;  %v5507_v12 = vcombine.high %v5505_v51, %v5505_v51  ;;  %v5583_v55 = vrot.slane %v5582_v4, 4  ;;  %v12741_v62 = vpop.permute.xlu0 %2473  ;;  %v12747_v60 = vld [vmem:[%s15251_s1 + $0x8] ss:$0 sm:$0xff]  ;;  %v16155_v2 = vld [vmem:[#allocation16_spill] sm:$0xff] }
 0x313   :  { %v4324_v45 = vsel %vm862_vm14, %v4239_v41, %v4323_v29  ;;  %v5589_v49 = vsel %vm71_vm7, %v5505_v51, -inf  ;;  %16153 = vst [vmem:[#allocation68_spill] sm:$0xff] %v12741_v62  ;;  %4426 = vbcast.lane.b32.xlu1 %v16154_v1, 264  ;;  %v4901_v31 = vmax.f32 %v4899_v15, %v4900_v39  ;;  %v2406_v14 = vmul.f32 %v12747_v60, %v16155_v2  ;;  %v16157_v51 = vld [vmem:[#allocation82_spill] sm:$0xff]  ;;  %v12761_v39 = vld [vmem:[%s15251_s1 + $0xa] ss:$0 sm:$0xff] }
 0x314   :  { %v1233_v53 = vmul.f32 %v12565_v21, %v16156_v0  ;;  %v4325_v41 = vsel %vm864_vm15, %v4246_v36, %v4324_v45  ;;  %v4895_v26 = vrot.slane %v4894_v44, 1  ;;  %v12755_v29 = vadd.f32 %v1128_v9, %v16157_v51  ;;  %16159 = vst [vmem:[#allocation110_spill] sm:$0xff] %v12761_v39  ;;  %v12766_v21 = vpop.permute.xlu1 %3723  ;;  %v16162_v9 = vld [vmem:[#allocation40_spill] sm:$0xff] }
 0x315   :  { %4336 = vst.msk [vmem:[#allocation3 + $0x61] sm:$0xff] %vm69_vm6, %v4325_v41  ;;  %v5576_v15 = vrot.slane %v5575_v24, 4  ;;  %v574_v2 = vmul.f32 %v12761_v39, %v12501_v10  ;;  %3276 = vbcast.lane.b32.xlu0 %v16160_v25, 258  ;;  %16161 = vst [vmem:[#allocation84_spill] sm:$0xff] %v12766_v21  ;;  %v1252_v36 = vmul.f32 %v12620_v6, %v16156_v0  ;;  %v5590_v41 = vrot.slane %v5589_v49, 4  ;;  %v16164_v25 = vld [vmem:[#allocation103_spill] sm:$0xff] }
 0x316   :  { %16158 = vst [vmem:[#allocation8_spill] sm:$0xff] %v12755_v29  ;;  %v3789_v45 = vmul.f32 %v12747_v60, %v16162_v9  ;;  %v5596_v51 = vsel %vm71_vm7, %v5507_v12, -inf  ;;  %v4888_v52 = vrot.slane %v4887_v27, 1  ;;  %v4908_v1 = vmax.f32 %v4906_v50, %v4907_v43  ;;  %v12775_v13 = vpop.permute.xlu0 %3712  ;;  %v16166_v0 = vld [vmem:[#allocation49_spill] sm:$0xff]  ;;  %v16167_v9 = vld [vmem:[#allocation48_spill] sm:$0xff] }
 0x317   :  { %v2511_v29 = vmul.f32 %v12716_v7, %v16163_v17  ;;  %v5584_v62 = vmax.f32 %v5582_v4, %v5583_v55  ;;  %1220 = vbcast.lane.b32.xlu1 %v16164_v25, 266  ;;  %v4902_v21 = vrot.slane %v4901_v31, 1  ;;  %v12779_v35 = vadd.f32 %v2406_v14, %v16165_v3  ;;  %v16169_v55 = vld [vmem:[#allocation72_spill] sm:$0xff]  ;;  %v16170_v14 = vld [vmem:[#allocation29_spill] sm:$0xff] }
 0x318   :  { %v12782_v61 = vadd.f32 %v1233_v53, %v16166_v0  ;;  %v12785_v58 = vadd.f32 %v1147_v59, %v16167_v9  ;;  %v4896_v12 = vmax.f32 %v4894_v44, %v4895_v26  ;;  %v5577_v50 = vmax.f32 %v5575_v24, %v5576_v15  ;;  %v12789_v4 = vpop.permute.xlu1 %3841  ;;  %v16171_v26 = vld [vmem:[#allocation127_spill] sm:$0xff] }
 0x319   :  { %v5597_v43 = vrot.slane %v5596_v51, 4  ;;  %v582_v39 = vadd.f32 %v574_v2, %v12657_v63  ;;  %4541 = vbcast.lane.b32.xlu0 %v16097_v23, 257  ;;  %v12791_v25 = vadd.f32 %v1252_v36, %v1239_v33  ;;  %v12794_v3 = vadd.f32 %v3789_v45, %v12584_v38  ;;  %v12814_v36 = vld [vmem:[%s15252_s2] ss:$0 sm:$0xff]  ;;  %v16188_v23 = vld [vmem:[#allocation136_spill] sm:$0xff] }
 0x31a   :  { %16168 = vst [vmem:[#allocation112_spill] sm:$0xff] %v12785_v58  ;;  %v5380_v53 = vmul.f32 %v16170_v14, %v16169_v55  ;;  %v5591_v0 = vmax.f32 %v5589_v49, %v5590_v41  ;;  %v4889_v59 = vmax.f32 %v4887_v27, %v4888_v52  ;;  %v4909_v9 = vrot.slane %v4908_v1, 1  ;;  %v12801_v63 = vpop.permute.xlu0 %3833  ;;  %16172 = vst [vmem:[#allocation12_spill] sm:$0xff] %v12814_v36  ;;  %v12827_v41 = vld [vmem:[%s15251_s1 + $0x1] ss:$0 sm:$0xff] }
 0x31b   :  { %v12799_v44 = vadd.f32 %v2511_v29, %v12490_v5  ;;  %v5585_v24 = vrot.slane %v5584_v62, 2  ;;  %2588 = vbcast.lane.b32.xlu1 %v16171_v26, 266  ;;  %v4903_v15 = vmax.f32 %v4901_v31, %v4902_v21  ;;  %v5382_v33 = vmul.f32 %v16170_v14, %v12486_v18  ;;  %16174 = vst [vmem:[#allocation74_spill] sm:$0xff] %v12827_v41 }
 0x31c   :  { %v5401_v38 = vmul.f32 %v12269_v11, %v12486_v18  ;;  %v555_v49 = vmul.f32 %v12620_v6, %v12501_v10  ;;  %v5728_v52 = vld [vmem:[#allocation3 + $0x60] sm:$0xff]  ;;  %v5011_v5 = vsel %vm852_vm9, %v4896_v12, %v4889_v59  ;;  %v5578_v29 = vrot.slane %v5577_v50, 2  ;;  %v12819_v11 = vpop.permute.xlu1 %5092  ;;  %v16173_v18 = vld [vmem:[#allocation33_spill] sm:$0xff] }
 0x31d   :  { %v6267_v27 = vld [vmem:[#allocation3 + $0x61] sm:$0xff]  ;;  %v5598_v2 = vmax.f32 %v5596_v51, %v5597_v43  ;;  %v597_v21 = vmul.f32 %v12814_v36, %v582_v39  ;;  %9154 = vmatmul.mubr.msk.f32.gmra.mrb[4].mxu1 %vm69_vm6, %v5728_v52  ;;  %v5388_v10 = vadd.f32 %v5380_v53, %v16173_v18  ;;  %v5592_v31 = vrot.slane %v5591_v0, 2  ;;  %v16175_v51 = vld [vmem:[#allocation125_spill] sm:$0xff] }
 0x31e   :  { %9266 = vmatmul.mubr.msk.f32.gmra.mrb[4].mxu0 %vm69_vm6, %v6267_v27  ;;  %v450_v45 = vmul.f32 %v12730_v28, %v12507_v8  ;;  %v1797_v39 = vmul.f32 %v12827_v41, %v12534_v19  ;;  %2580 = vbcast.lane.b32.xlu0 %v16175_v51, 266  ;;  %v12832_v12 = vmax.f32 %v4908_v1, %v4909_v9  ;;  %v12840_v14 = vpop.permute.xlu0 %5081  ;;  %v16176_v53 = vld [vmem:[#allocation137_spill] sm:$0xff] }
 0x31f   :  { %v12836_v43 = vmul.f32 %v12730_v28, %v16163_v17  ;;  %v5586_v55 = vmax.f32 %v5584_v62, %v5585_v24  ;;  %v1799_v8 = vmul.f32 %v12827_v41, %v12523_v32  ;;  %3853 = vbcast.lane.b32.xlu1 %v16176_v53, 265  ;;  %v12844_v59 = vsel %vm854_vm10, %v4903_v15, %v5011_v5  ;;  %v12857_v24 = vld [vmem:[%s15253_s3] ss:$0 sm:$0xff] }
 0x320   :  { %v12847_v19 = vadd.f32 %v5382_v33, %v12596_v40  ;;  %v12849_v1 = vadd.f32 %v5401_v38, %v5388_v10  ;;  %v12852_v9 = vadd.f32 %v555_v49, %v12655_v16  ;;  %v5579_v17 = vmax.f32 %v5577_v50, %v5578_v29  ;;  %16178 = vst [vmem:[#allocation14_spill] sm:$0xff] %v12857_v24  ;;  %v12862_v52 = vpop.permute.xlu1 %5332  ;;  %v12871_v50 = vld [vmem:[%s15251_s1] ss:$0 sm:$0xff]  ;;  %v16183_v10 = vld [vmem:[#allocation110_spill] sm:$0xff] }
 0x321   :  { %v5599_v62 = vrot.slane %v5598_v2, 2  ;;  %v612_v26 = vadd.f32 %v12857_v24, %v597_v21  ;;  %v1818_v15 = vmul.f32 %v12716_v7, %v12523_v32  ;;  %v5593_v40 = vmax.f32 %v5591_v0, %v5592_v31  ;;  %16180 = vst [vmem:[#allocation62_spill] sm:$0xff] %v12871_v50 }
 0x322   :  { %16177 = vst [vmem:[#allocation39_spill] sm:$0xff] %v12847_v19  ;;  %v12865_v33 = vadd.f32 %v450_v45, %v12627_v42  ;;  %v1805_v16 = vadd.f32 %v1797_v39, %v12572_v48  ;;  %v3054_v38 = vmul.f32 %v12871_v50, %v12560_v54  ;;  %2600 = vbcast.lane.b32.xlu0 %v16106_v57, 258  ;;  %v5587_v49 = vrot.slane %v5586_v55, 1  ;;  %v12883_v0 = vpop.permute.xlu0 %5103  ;;  %v12889_v54 = vld [vmem:[%s15251_s1 + $0x4] ss:$0 sm:$0xff] }
 0x323   :  { %v12877_v32 = vadd.f32 %v1799_v8, %v12649_v47  ;;  %v1840_v42 = vmul.f32 %v12730_v28, %v12574_v56  ;;  %v4730_v48 = vmul.f32 %v12550_v34, %v12686_v22  ;;  %3968 = vbcast.lane.b32.xlu1 %v16109_v30, 258  ;;  %16182 = vst [vmem:[#allocation106_spill] sm:$0xff] %v12889_v54  ;;  %v5580_v29 = vrot.slane %v5579_v17, 1  ;;  %v16186_v8 = vld [vmem:[#allocation86_spill] sm:$0xff]  ;;  %v16187_v30 = vld [vmem:[#allocation56_spill] sm:$0xff] }
 0x324   :  { %16179 = vst [vmem:[#allocation73_spill] sm:$0xff] %v12865_v33  ;;  %v3077_v27 = vmul.f32 %v12889_v54, %v12602_v37  ;;  %v12895_v47 = vmul.f32 %v12747_v60, %v12602_v37  ;;  %v3056_v56 = vmul.f32 %v12871_v50, %v12612_v46  ;;  %v3075_v5 = vmul.f32 %v12889_v54, %v12612_v46  ;;  %v12903_v45 = vpop.permute.xlu1 %505  ;;  %v16191_v33 = vld [vmem:[#allocation61_spill] sm:$0xff] }
 0x325   :  { %16181 = vst [vmem:[#allocation78_spill] sm:$0xff] %v12877_v32  ;;  %v5600_v21 = vmax.f32 %v5598_v2, %v5599_v62  ;;  %v620_v18 = vmax.f32 %v612_v26, 0.0  ;;  %v1273_v31 = vmul.f32 %v16183_v10, %v12700_v20  ;;  %16184 = vst [vmem:[#allocation63_spill] sm:$0xff] %v12903_v45  ;;  %v5594_v39 = vrot.slane %v5593_v40, 1  ;;  %v16189_v32 = vld [vmem:[#allocation133_spill] sm:$0xff]  ;;  %v16190_v62 = vld [vmem:[#allocation79_spill] sm:$0xff] }
 0x326   :  { %v12905_v51 = vadd.f32 %v1818_v15, %v1805_v16  ;;  %v3182_v37 = vmul.f32 %v12827_v41, %v16186_v8  ;;  %v3180_v57 = vmul.f32 %v12827_v41, %v16187_v30  ;;  %3960 = vbcast.lane.b32.xlu0 %v16188_v23, 258  ;;  %v5588_v46 = vmax.f32 %v5586_v55, %v5587_v49  ;;  %v12917_v58 = vpop.permute.xlu0 %497  ;;  %v16192_v15 = vld [vmem:[#allocation148_spill] sm:$0xff]  ;;  %v16196_v45 = vld [vmem:[#allocation9_spill] sm:$0xff] }
 0x327   :  { %v4458_v2 = vmul.f32 %v12889_v54, %v16189_v32  ;;  %v4437_v26 = vmul.f32 %v12871_v50, %v16190_v62  ;;  %v4738_v19 = vadd.f32 %v4730_v48, %v16191_v33  ;;  %5233 = vbcast.lane.b32.xlu1 %v16192_v15, 257  ;;  %v16193_v16 = vld [vmem:[#allocation104_spill] sm:$0xff]  ;;  %v12923_v53 = vadd.f32 %v3075_v5, %v3054_v38  ;;  %v16198_v38 = vld [vmem:[#allocation47_spill] sm:$0xff] }
 0x328   :  { %16185 = vst [vmem:[#allocation85_spill] sm:$0xff] %v12905_v51  ;;  %v12921_v51 = vadd.f32 %v1840_v42, %v16193_v16  ;;  %v12925_v30 = vadd.f32 %v3077_v27, %v3056_v56  ;;  %v3201_v55 = vmul.f32 %v12716_v7, %v16186_v8  ;;  %v5581_v49 = vmax.f32 %v5579_v17, %v5580_v29  ;;  %v12933_v48 = vpop.permute.xlu1 %1777  ;;  %v16199_v56 = vld [vmem:[#allocation150_spill] sm:$0xff]  ;;  %v16205_v16 = vld [vmem:[#allocation60_spill] sm:$0xff] }
 0x329   :  { %v5601_v23 = vrot.slane %v5600_v21, 1  ;;  %v12930_v62 = vsel %vm69_vm6, %v620_v18, -inf  ;;  %v1281_v33 = vadd.f32 %v1273_v31, %v12791_v25  ;;  %v5595_v15 = vmax.f32 %v5593_v40, %v5594_v39  ;;  %v16200_v25 = vld [vmem:[#allocation69_spill] sm:$0xff]  ;;  %v16201_v31 = vld [vmem:[#allocation71_spill] sm:$0xff]  ;;  %v16203_v8 = vld [vmem:[#allocation58_spill] sm:$0xff] }
 0x32a   :  { %16194 = vst [vmem:[#allocation107_spill] sm:$0xff] %v12921_v51  ;;  %16195 = vst [vmem:[#allocation87_spill] sm:$0xff] %v12925_v30  ;;  %v12936_v42 = vadd.f32 %v3182_v37, %v16196_v45  ;;  %v3188_v5 = vadd.f32 %v3180_v57, %v16198_v38  ;;  %v12941_v27 = vmul.f32 %v12871_v50, %v16189_v32  ;;  %5118 = vbcast.lane.b32.xlu0 %v16199_v56, 264  ;;  %v518_v39 = vpop.permute.xlu0 %517  ;;  %v16202_v45 = vld [vmem:[#allocation138_spill] sm:$0xff] }
 0x32b   :  { %v5703_v17 = vsel %vm852_vm9, %v5588_v46, %v5581_v49  ;;  %v12945_v29 = vadd.f32 %v4458_v2, %v4437_v26  ;;  %v4711_v18 = vmul.f32 %v16200_v25, %v12686_v22  ;;  %v4753_v40 = vmul.f32 %v16201_v31, %v4738_v19  ;;  %3169 = vbcast.lane.b32.xlu1 %v16202_v45, 265  ;;  %v16204_v37 = vld [vmem:[#allocation10_spill] sm:$0xff]  ;;  %v16206_v26 = vld [vmem:[#allocation67_spill] sm:$0xff] }
 0x32c   :  { %16197 = vst [vmem:[#allocation93_spill] sm:$0xff] %v12936_v42  ;;  %v4460_v57 = vmul.f32 %v12889_v54, %v16203_v8  ;;  %v1149_v32 = vmul.f32 %v12730_v28, %v16204_v37  ;;  %v2491_v38 = vmul.f32 %v12827_v41, %v16205_v16  ;;  %v576_v46 = vmul.f32 %v16183_v10, %v518_v39  ;;  %v12967_v25 = vpop.permute.xlu1 %1892  ;;  %v16211_v42 = vld [vmem:[#allocation68_spill] sm:$0xff] }
 0x32d   :  { %v12958_v2 = vmax.f32 %v5600_v21, %v5601_v23  ;;  %v12962_v22 = vmul.f32 %v12747_v60, %v16203_v8  ;;  %v1296_v19 = vmul.f32 %v12814_v36, %v1281_v33  ;;  %v2489_v49 = vmul.f32 %v12827_v41, %v16206_v26  ;;  %16207 = vst [vmem:[#allocation88_spill] sm:$0xff] %v12967_v25  ;;  %v16208_v23 = vld [vmem:[#allocation11_spill] sm:$0xff]  ;;  %v16209_v8 = vld [vmem:[#allocation118_spill] sm:$0xff]  ;;  %v12981_v33 = vld [vmem:[%s15253_s3] ss:$0 sm:$0xff] }
 0x32e   :  { %v12970_v37 = vsel %vm854_vm10, %v5595_v15, %v5703_v17  ;;  %v1254_v30 = vmul.f32 %v12620_v6, %v12700_v20  ;;  %v5422_v21 = vmul.f32 %v16208_v23, %v12862_v52  ;;  %v584_v39 = vadd.f32 %v576_v46, %v12852_v9  ;;  %1904 = vbcast.lane.b32.xlu0 %v16209_v8, 266  ;;  %v16210_v17 = vld [vmem:[#allocation70_spill] sm:$0xff]  ;;  %v12990_v51 = vpop.permute.xlu0 %1884  ;;  %v16213_v46 = vld [vmem:[#allocation8_spill] sm:$0xff]  ;;  %v16216_v25 = vld [vmem:[#allocation53_spill] sm:$0xff] }
 0x32f   :  { %v4768_v26 = vadd.f32 %v12981_v33, %v4753_v40  ;;  %v2510_v15 = vmul.f32 %v12716_v7, %v16205_v16  ;;  %v3746_v20 = vmul.f32 %v12871_v50, %v16210_v17  ;;  %v2532_v23 = vmul.f32 %v12730_v28, %v16211_v42  ;;  %v16212_v9 = vld [vmem:[#allocation142_spill] sm:$0xff] }
 0x330   :  { %4529 = vbcast.lane.b32.xlu1 %v16212_v9, 265  ;;  %v12994_v8 = vadd.f32 %v1149_v32, %v16213_v46  ;;  %v12997_v45 = vadd.f32 %v2491_v38, %v12779_v35  ;;  %v3767_v40 = vmul.f32 %v12889_v54, %v12775_v13  ;;  %v599_v16 = vmul.f32 %v12814_v36, %v584_v39  ;;  %v13008_v32 = vpop.permute.xlu1 %3157  ;;  %v16218_v46 = vld [vmem:[#allocation84_spill] sm:$0xff] }
 0x331   :  { %v1311_v17 = vadd.f32 %v12857_v24, %v1296_v19  ;;  %v2497_v10 = vadd.f32 %v2489_v49, %v16216_v25  ;;  %v3874_v42 = vmul.f32 %v12827_v41, %v12789_v4  ;;  %v3872_v9 = vmul.f32 %v12827_v41, %v12801_v63  ;;  %16217 = vst [vmem:[#allocation91_spill] sm:$0xff] %v13008_v32  ;;  %v16221_v32 = vld [vmem:[#allocation149_spill] sm:$0xff] }
 0x332   :  { %16214 = vst [vmem:[#allocation90_spill] sm:$0xff] %v12994_v8  ;;  %16215 = vst [vmem:[#allocation32_spill] sm:$0xff] %v12997_v45  ;;  %v3769_v35 = vmul.f32 %v12889_v54, %v16218_v46  ;;  %v3788_v38 = vmul.f32 %v12747_v60, %v16218_v46  ;;  %v5430_v39 = vadd.f32 %v5422_v21, %v12849_v1  ;;  %v16219_v45 = vld [vmem:[#allocation132_spill] sm:$0xff]  ;;  %v4776_v49 = vmax.f32 %v4768_v26, 0.0  ;;  %v13024_v8 = vpop.permute.xlu0 %3042 }
 0x333   :  { %v614_v19 = vadd.f32 %v12857_v24, %v599_v16  ;;  %3284 = vbcast.lane.b32.xlu0 %v16219_v45, 258  ;;  %v13018_v25 = vadd.f32 %v2532_v23, %v12799_v44  ;;  %v3748_v63 = vmul.f32 %v12871_v50, %v12775_v13  ;;  %v3893_v41 = vmul.f32 %v12716_v7, %v12789_v4  ;;  %v16222_v16 = vld [vmem:[#allocation57_spill] sm:$0xff]  ;;  %v16223_v23 = vld [vmem:[#allocation54_spill] sm:$0xff] }
 0x334   :  { %4549 = vbcast.lane.b32.xlu1 %v16221_v32, 257  ;;  %v3775_v46 = vadd.f32 %v3767_v40, %v3746_v20  ;;  %v13027_v21 = vadd.f32 %v3201_v55, %v3188_v5  ;;  %v4719_v45 = vadd.f32 %v4711_v18, %v16222_v16  ;;  %v1319_v26 = vmax.f32 %v1311_v17, 0.0  ;;  %v4649_v13 = vpop.permute.xlu1 %4648  ;;  %v16224_v40 = vld [vmem:[#allocation66_spill] sm:$0xff]  ;;  %v16225_v18 = vld [vmem:[#allocation140_spill] sm:$0xff] }
 0x335   :  { %16220 = vst [vmem:[#allocation94_spill] sm:$0xff] %v13018_v25  ;;  %v622_v1 = vmax.f32 %v614_v19, 0.0  ;;  %v13031_v44 = vadd.f32 %v3874_v42, %v12794_v3  ;;  %v3880_v25 = vadd.f32 %v3872_v9, %v16223_v23  ;;  %v13037_v4 = vsel %vm856_vm11, %v12832_v12, %v12844_v59  ;;  %v16226_v19 = vld [vmem:[#allocation139_spill] sm:$0xff] }
 0x336   :  { %v5131_v20 = vmul.f32 %v12871_v50, %v12819_v11  ;;  %v5445_v55 = vmul.f32 %v16224_v40, %v5430_v39  ;;  %v4732_v3 = vmul.f32 %v12550_v34, %v4649_v13  ;;  %v5150_v9 = vmul.f32 %v12889_v54, %v12819_v11  ;;  %v13051_v42 = vpop.permute.xlu0 %4422  ;;  %v16227_v11 = vld [vmem:[#allocation122_spill] sm:$0xff] }
 0x337   :  { %v631_v5 = vsel %vm69_vm6, %v622_v1, -inf  ;;  %4537 = vbcast.lane.b32.xlu0 %v16225_v18, 265  ;;  %v5129_v17 = vmul.f32 %v12871_v50, %v12840_v14  ;;  %v4786_v59 = vsel %vm69_vm6, %v4776_v49, -inf  ;;  %v13055_v1 = vadd.f32 %v4460_v57, %v12941_v27  ;;  %v16228_v49 = vld [vmem:[#allocation26_spill] sm:$0xff]  ;;  %v16230_v27 = vld [vmem:[#allocation81_spill] sm:$0xff] }
 0x338   :  { %v632_v12 = vmax.f32 %v12930_v62, %v631_v5  ;;  %3861 = vbcast.lane.b32.xlu1 %v16226_v19, 265  ;;  %v4740_v39 = vadd.f32 %v4732_v3, %v4719_v45  ;;  %v13057_v16 = vadd.f32 %v2510_v15, %v2497_v10  ;;  %v13060_v34 = vadd.f32 %v1254_v30, %v12782_v61  ;;  %v13063_v14 = vpop.permute.xlu1 %1204  ;;  %v16231_v61 = vld [vmem:[#allocation126_spill] sm:$0xff]  ;;  %v16232_v3 = vld [vmem:[#allocation145_spill] sm:$0xff] }
 0x339   :  { %v13066_v62 = vsel %vm69_vm6, %v1319_v26, -inf  ;;  %v13070_v13 = vadd.f32 %v12836_v43, %v16228_v49  ;;  %v13072_v45 = vadd.f32 %v3893_v41, %v3880_v25  ;;  %v5460_v57 = vadd.f32 %v16230_v27, %v5445_v55  ;;  %v16239_v27 = vld [vmem:[#allocation112_spill] sm:$0xff] }
 0x33a   :  { %v681_v23 = vrot.slane %v632_v12, %v16227_v11  ;;  %v674_v10 = vcombine.high %v632_v12, %v632_v12  ;;  %v4755_v15 = vmul.f32 %v16201_v31, %v4740_v39  ;;  %v13077_v30 = vadd.f32 %v3769_v35, %v3748_v63  ;;  %v1197_v5 = vpop.permute.xlu0 %1196  ;;  %v9658_v35 = vld [vmem:[%s15251_s1 + $0x6] ss:$0 sm:$0xff]  ;;  %v16235_v63 = vld [vmem:[#allocation64_spill] sm:$0xff]  ;;  %v16238_v12 = vld [vmem:[#allocation137_spill] sm:$0xff] }
 0x33b   :  { %16229 = vst [vmem:[#allocation95_spill] sm:$0xff] %v13072_v45  ;;  %2596 = vbcast.lane.b32.xlu0 %v16231_v61, 266  ;;  %v5158_v40 = vadd.f32 %v5150_v9, %v5129_v17  ;;  %v13083_v43 = vsel %vm856_vm11, %v12958_v2, %v12970_v37  ;;  %v13087_v41 = vadd.f32 %v12895_v47, %v12923_v53  ;;  %v5468_v9 = vmax.f32 %v5460_v57, 0.0 }
 0x33c   :  { %5221 = vbcast.lane.b32.xlu1 %v16232_v3, 265  ;;  %16233 = vst [vmem:[#allocation50_spill] sm:$0xff] %v13083_v43  ;;  %v13091_v31 = vadd.f32 %v12962_v22, %v12945_v29  ;;  %v5403_v25 = vmul.f32 %v9658_v35, %v12862_v52  ;;  %v533_v26 = vmul.f32 %v16235_v63, %v12917_v58  ;;  %v13105_v22 = vpop.permute.xlu1 %2469  ;;  %v16237_v52 = vld [vmem:[#allocation63_spill] sm:$0xff]  ;;  %v780_v49 = vsel %vm71_vm7, %v681_v23, -inf  ;;  %v16246_v43 = vld [vmem:[#allocation144_spill] sm:$0xff] }
 0x33d   :  { %v4770_v2 = vadd.f32 %v12981_v33, %v4755_v15  ;;  %v1232_v37 = vmul.f32 %v16235_v63, %v1197_v5  ;;  %v5152_v53 = vmul.f32 %v12889_v54, %v12883_v0  ;;  %v5171_v47 = vmul.f32 %v12747_v60, %v12883_v0  ;;  %v16241_v5 = vld [vmem:[#allocation39_spill] sm:$0xff] }
 0x33e   :  { %16234 = vst [vmem:[#allocation96_spill] sm:$0xff] %v13091_v31  ;;  %v689_v29 = vcombine.high %v681_v23, %v681_v23  ;;  %v13107_v55 = vadd.f32 %v3788_v38, %v3775_v46  ;;  %v535_v17 = vmul.f32 %v16235_v63, %v16237_v52  ;;  %v688_v58 = vrot.slane %v674_v10, %v16227_v11  ;;  %v1217_v46 = vpop.permute.xlu0 %1216  ;;  %v16240_v10 = vld [vmem:[#allocation55_spill] sm:$0xff] }
 0x33f   :  { %v4778_v33 = vmax.f32 %v4770_v2, 0.0  ;;  %3976 = vbcast.lane.b32.xlu0 %v16238_v12, 258  ;;  %v1820_v39 = vmul.f32 %v12716_v7, %v12933_v48  ;;  %v1253_v0 = vmul.f32 %v12620_v6, %v13063_v14  ;;  %v1240_v38 = vadd.f32 %v1232_v37, %v16239_v27  ;;  %v16265_v54 = vld [vmem:[#allocation143_spill] sm:$0xff] }
 0x340   :  { %16236 = vst [vmem:[#allocation43_spill] sm:$0xff] %v13107_v55  ;;  %5241 = vbcast.lane.b32.xlu1 %v16199_v56, 257  ;;  %v554_v57 = vmul.f32 %v12620_v6, %v16237_v52  ;;  %v541_v15 = vadd.f32 %v533_v26, %v16240_v10  ;;  %v1839_v61 = vmul.f32 %v12730_v28, %v12933_v48  ;;  %v787_v23 = vsel %vm71_vm7, %v689_v29, -inf  ;;  %v13132_v37 = vpop.permute.xlu1 %2584  ;;  %v16244_v55 = vld [vmem:[#allocation73_spill] sm:$0xff] }
 0x341   :  { %v13126_v35 = vadd.f32 %v5403_v25, %v16241_v5  ;;  %v4787_v2 = vsel %vm69_vm6, %v4778_v33, -inf  ;;  %v13130_v45 = vadd.f32 %v1253_v0, %v1240_v38  ;;  %v13134_v27 = vadd.f32 %v5152_v53, %v5131_v20  ;;  %v16248_v5 = vld [vmem:[#allocation110_spill] sm:$0xff]  ;;  %v16249_v33 = vld [vmem:[#allocation131_spill] sm:$0xff] }
 0x342   :  { %v13137_v52 = vadd.f32 %v535_v17, %v16244_v55  ;;  %v690_v26 = vcombine.high %v688_v58, %v688_v58  ;;  %v781_v10 = vrot.slane %v780_v49, 4  ;;  %v13140_v48 = vadd.f32 %v5171_v47, %v5158_v40  ;;  %v2577_v31 = vpop.permute.xlu0 %2576  ;;  %v16250_v20 = vld [vmem:[#allocation78_spill] sm:$0xff]  ;;  %v16252_v17 = vld [vmem:[#allocation88_spill] sm:$0xff]  ;;  %v16254_v40 = vld [vmem:[#allocation85_spill] sm:$0xff] }
 0x343   :  { %16242 = vst [vmem:[#allocation97_spill] sm:$0xff] %v13130_v45  ;;  %16243 = vst [vmem:[#allocation76_spill] sm:$0xff] %v13134_v27  ;;  %5229 = vbcast.lane.b32.xlu0 %v16246_v43, 265  ;;  %v4788_v25 = vmax.f32 %v4786_v59, %v4787_v2  ;;  %v1275_v29 = vmul.f32 %v16248_v5, %v1217_v46  ;;  %v13145_v0 = vsel %vm69_vm6, %v5468_v9, -inf  ;;  %v788_v55 = vrot.slane %v787_v23, 4 }
 0x344   :  { %16245 = vst [vmem:[#allocation102_spill] sm:$0xff] %v13137_v52  ;;  %16247 = vst [vmem:[#allocation77_spill] sm:$0xff] %v13140_v48  ;;  %3272 = vbcast.lane.b32.xlu1 %v16249_v33, 266  ;;  %v13148_v53 = vadd.f32 %v1820_v39, %v16250_v20  ;;  %v1925_v38 = vmul.f32 %v16235_v63, %v16252_v17  ;;  %v13152_v45 = vadd.f32 %v554_v57, %v541_v15  ;;  %v16260_v52 = vld [vmem:[#allocation75_spill] sm:$0xff] }
 0x345   :  { %v13155_v47 = vadd.f32 %v1839_v61, %v16254_v40  ;;  %v794_v59 = vsel %vm71_vm7, %v688_v58, -inf  ;;  %v4816_v46 = vcombine.high %v4788_v25, %v4788_v25  ;;  %v4823_v2 = vrot.slane %v4788_v25, %v16227_v11  ;;  %v13160_v33 = vpop.permute.xlu1 %3849  ;;  %v16256_v61 = vld [vmem:[#allocation128_spill] sm:$0xff] }
 0x346   :  { %16251 = vst [vmem:[#allocation98_spill] sm:$0xff] %v13148_v53  ;;  %16253 = vst [vmem:[#allocation100_spill] sm:$0xff] %v13152_v45  ;;  %v1283_v9 = vadd.f32 %v1275_v29, %v13060_v34  ;;  %v13162_v39 = vmax.f32 %v780_v49, %v781_v10  ;;  %v801_v20 = vsel %vm71_vm7, %v690_v26, -inf  ;;  %v13167_v57 = vmul.f32 %v12620_v6, %v16252_v17  ;;  %v13175_v49 = vpop.permute.xlu0 %3734  ;;  %v16257_v10 = vld [vmem:[#allocation138_spill] sm:$0xff]  ;;  %v16258_v17 = vld [vmem:[#allocation107_spill] sm:$0xff] }
 0x347   :  { %16255 = vst [vmem:[#allocation99_spill] sm:$0xff] %v13155_v47  ;;  %v1923_v15 = vmul.f32 %v16235_v63, %v12990_v51  ;;  %1912 = vbcast.lane.b32.xlu0 %v16256_v61, 266  ;;  %v4830_v58 = vrot.slane %v4816_v46, %v16227_v11  ;;  %v4831_v25 = vcombine.high %v4823_v2, %v4823_v2  ;;  %v4911_v34 = vsel %vm71_vm7, %v4823_v2, -inf }
 0x348   :  { %v1298_v29 = vmul.f32 %v12814_v36, %v1283_v9  ;;  %3292 = vbcast.lane.b32.xlu1 %v16257_v10, 258  ;;  %v789_v26 = vmax.f32 %v787_v23, %v788_v55  ;;  %v795_v40 = vrot.slane %v794_v59, 4  ;;  %v13179_v47 = vadd.f32 %v1925_v38, %v16258_v17  ;;  %v16261_v55 = vld [vmem:[#allocation130_spill] sm:$0xff] }
 0x349   :  { %v4912_v53 = vrot.slane %v4911_v34, 4  ;;  %v4832_v51 = vcombine.high %v4830_v58, %v4830_v58  ;;  %v4918_v61 = vsel %vm71_vm7, %v4831_v25, -inf  ;;  %v4925_v46 = vsel %vm71_vm7, %v4830_v58, -inf  ;;  %v13184_v2 = vpop.permute.xlu1 %5340  ;;  %v16263_v58 = vld [vmem:[#allocation142_spill] sm:$0xff] }
 0x34a   :  { %16259 = vst [vmem:[#allocation105_spill] sm:$0xff] %v13179_v47  ;;  %v1313_v48 = vadd.f32 %v12857_v24, %v1298_v29  ;;  %v802_v9 = vrot.slane %v801_v20, 4  ;;  %v13187_v36 = vadd.f32 %v1923_v15, %v16260_v52  ;;  %v4919_v23 = vrot.slane %v4918_v61, 4  ;;  %v13192_v45 = vpop.permute.xlu0 %5114 }
 0x34b   :  { %v4913_v27 = vmax.f32 %v4911_v34, %v4912_v53  ;;  %3280 = vbcast.lane.b32.xlu0 %v16261_v55, 266  ;;  %v783_v38 = vrot.slane %v13162_v39, 2  ;;  %v4926_v17 = vrot.slane %v4925_v46, 4  ;;  %v4932_v47 = vsel %vm71_vm7, %v4832_v51, -inf  ;;  %16262 = vst [vmem:[#allocation121_spill] sm:$0xff] %v13192_v45 }
 0x34c   :  { %v1321_v25 = vmax.f32 %v1313_v48, 0.0  ;;  %4652 = vbcast.lane.b32.xlu1 %v16263_v58, 258  ;;  %v4920_v24 = vmax.f32 %v4918_v61, %v4919_v23  ;;  %v4933_v10 = vrot.slane %v4932_v47, 4  ;;  %v2615_v52 = vmul.f32 %v16235_v63, %v2577_v31 }
 0x34d   :  { %v4914_v29 = vrot.slane %v4913_v27, 2  ;;  %v790_v15 = vrot.slane %v789_v26, 2  ;;  %v796_v53 = vmax.f32 %v794_v59, %v795_v40  ;;  %v4927_v34 = vmax.f32 %v4925_v46, %v4926_v17  ;;  %v13197_v5 = vpop.permute.xlu1 %1785  ;;  %v16267_v40 = vld [vmem:[#allocation129_spill] sm:$0xff]  ;;  %v16268_v46 = vld [vmem:[#allocation91_spill] sm:$0xff] }
 0x34e   :  { %v1330_v55 = vsel %vm69_vm6, %v1321_v25, -inf  ;;  %16264 = vst [vmem:[#allocation109_spill] sm:$0xff] %v13197_v5  ;;  %v803_v56 = vmax.f32 %v801_v20, %v802_v9  ;;  %v4921_v51 = vrot.slane %v4920_v24, 2  ;;  %v4934_v48 = vmax.f32 %v4932_v47, %v4933_v10  ;;  %v13204_v59 = vpop.permute.xlu0 %513  ;;  %v16269_v5 = vld [vmem:[#allocation135_spill] sm:$0xff] }
 0x34f   :  { %v4915_v50 = vmax.f32 %v4913_v27, %v4914_v29  ;;  %4545 = vbcast.lane.b32.xlu0 %v16265_v54, 265  ;;  %v4928_v45 = vrot.slane %v4927_v34, 2  ;;  %v1331_v58 = vmax.f32 %v13066_v62, %v1330_v55  ;;  %v2636_v61 = vmul.f32 %v12620_v6, %v13132_v37  ;;  %16266 = vst [vmem:[#allocation111_spill] sm:$0xff] %v13204_v59 }
 0x350   :  { %v2623_v31 = vadd.f32 %v2615_v52, %v13070_v13  ;;  %2604 = vbcast.lane.b32.xlu1 %v16267_v40, 266  ;;  %v3203_v20 = vmul.f32 %v12716_v7, %v16268_v46  ;;  %v4922_v9 = vmax.f32 %v4920_v24, %v4921_v51  ;;  %v4935_v47 = vrot.slane %v4934_v48, 2 }
 0x351   :  { %v4916_v27 = vrot.slane %v4915_v50, 1  ;;  %v797_v10 = vrot.slane %v796_v53, 2  ;;  %v3222_v23 = vmul.f32 %v12730_v28, %v16268_v46  ;;  %v4929_v62 = vmax.f32 %v4927_v34, %v4928_v45  ;;  %v13213_v6 = vpop.permute.xlu1 %3145 }
 0x352   :  { %v13211_v17 = vadd.f32 %v2636_v61, %v2623_v31  ;;  %v791_v13 = vmax.f32 %v789_v26, %v790_v15  ;;  %v4923_v29 = vrot.slane %v4922_v9, 1  ;;  %v4936_v52 = vmax.f32 %v4934_v48, %v4935_v47  ;;  %v13217_v59 = vpop.permute.xlu0 %1900  ;;  %v16270_v15 = vld [vmem:[#allocation93_spill] sm:$0xff] }
 0x353   :  { %v4917_v25 = vmax.f32 %v4915_v50, %v4916_v27  ;;  %4660 = vbcast.lane.b32.xlu0 %v16225_v18, 258  ;;  %v784_v55 = vmax.f32 %v13162_v39, %v783_v38  ;;  %v804_v40 = vrot.slane %v803_v56, 2  ;;  %v4930_v24 = vrot.slane %v4929_v62, 1 }
 0x354   :  { %v1373_v51 = vcombine.high %v1331_v58, %v1331_v58  ;;  %3972 = vbcast.lane.b32.xlu1 %v16269_v5, 266  ;;  %v4924_v45 = vmax.f32 %v4922_v9, %v4923_v29  ;;  %v4937_v34 = vrot.slane %v4936_v52, 1  ;;  %v1380_v50 = vrot.slane %v1331_v58, %v16227_v11 }
 0x355   :  { %v5014_v61 = vsel %vm858_vm12, %v4917_v25, %v13037_v4  ;;  %v798_v26 = vmax.f32 %v796_v53, %v797_v10  ;;  %v13224_v48 = vadd.f32 %v3203_v20, %v16270_v15  ;;  %v13227_v39 = vadd.f32 %v3222_v23, %v13027_v21  ;;  %v13229_v31 = vpop.permute.xlu1 %3165  ;;  %v16272_v4 = vld [vmem:[#allocation136_spill] sm:$0xff]  ;;  %v9659_v21 = vld [vmem:[%s15251_s1 + $0xa] ss:$0 sm:$0xff] }
 0x356   :  { %v4931_v38 = vmax.f32 %v4929_v62, %v4930_v24  ;;  %v792_v46 = vrot.slane %v791_v13, 1  ;;  %v3098_v5 = vmul.f32 %v12747_v60, %v13024_v8  ;;  %v4938_v27 = vmax.f32 %v4936_v52, %v4937_v34  ;;  %v13242_v10 = vpop.permute.xlu0 %3153  ;;  %v16273_v8 = vld [vmem:[#allocation148_spill] sm:$0xff] }
 0x357   :  { %16271 = vst [vmem:[#allocation108_spill] sm:$0xff] %v13227_v39  ;;  %v5015_v9 = vsel %vm860_vm13, %v4924_v45, %v5014_v61  ;;  %3964 = vbcast.lane.b32.xlu0 %v16272_v4, 266  ;;  %v785_v58 = vrot.slane %v784_v55, 1  ;;  %v4481_v20 = vmul.f32 %v12747_v60, %v13051_v42  ;;  %v5424_v47 = vmul.f32 %v9659_v21, %v13184_v2 }
 0x358   :  { %v5016_v53 = vsel %vm862_vm14, %v4931_v38, %v5015_v9  ;;  %5237 = vbcast.lane.b32.xlu1 %v16273_v8, 265  ;;  %v805_v23 = vmax.f32 %v803_v56, %v804_v40  ;;  %v1387_v25 = vrot.slane %v1373_v51, %v16227_v11  ;;  %v1388_v29 = vcombine.high %v1380_v50, %v1380_v50  ;;  %v16274_v40 = vld [vmem:[#allocation87_spill] sm:$0xff]  ;;  %v9662_v9 = vld [vmem:[%s15253_s3] ss:$0 sm:$0xff] }
 0x359   :  { %v5017_v62 = vsel %vm864_vm15, %v4938_v27, %v5016_v53  ;;  %v799_v52 = vrot.slane %v798_v26, 1  ;;  %v1234_v42 = vmul.f32 %v16235_v63, %v13063_v14  ;;  %v5432_v24 = vadd.f32 %v5424_v47, %v13126_v35  ;;  %v13255_v45 = vpop.permute.xlu1 %4404  ;;  %v13272_v63 = vld [vmem:[%s15251_s1 + $0x2] ss:$0 sm:$0xff] }
 0x35a   :  { %5028 = vst.msk [vmem:[#allocation3 + $0x71] sm:$0xff] %vm69_vm6, %v5017_v62  ;;  %v13253_v2 = vadd.f32 %v13167_v57, %v13187_v36  ;;  %v793_v56 = vmax.f32 %v791_v13, %v792_v46  ;;  %v13258_v34 = vadd.f32 %v3098_v5, %v16274_v40  ;;  %v2512_v51 = vmul.f32 %v12716_v7, %v13105_v22  ;;  %v9661_v57 = vld [vmem:[%s15252_s2] ss:$0 sm:$0xff]  ;;  %v16277_v5 = vld [vmem:[#allocation90_spill] sm:$0xff] }
 0x35b   :  { %v1479_v61 = vsel %vm71_vm7, %v1380_v50, -inf  ;;  %3984 = vbcast.lane.b32.xlu0 %v16226_v19, 258  ;;  %v13265_v14 = vadd.f32 %v4481_v20, %v13055_v1  ;;  %v2531_v36 = vmul.f32 %v12730_v28, %v13105_v22  ;;  %16276 = vst [vmem:[#allocation13_spill] sm:$0xff] %v13272_v63  ;;  %v2617_v35 = vmul.f32 %v13272_v63, %v13132_v37  ;;  %v13279_v50 = vpop.permute.xlu0 %4393 }
 0x35c   :  { %16275 = vst [vmem:[#allocation101_spill] sm:$0xff] %v13258_v34  ;;  %v5447_v13 = vmul.f32 %v9661_v57, %v5432_v24  ;;  %5352 = vbcast.lane.b32.xlu1 %v16246_v43, 258  ;;  %v786_v1 = vmax.f32 %v784_v55, %v785_v58  ;;  %v806_v15 = vrot.slane %v805_v23, 1  ;;  %v1486_v22 = vsel %vm71_vm7, %v1388_v29, -inf  ;;  %v16279_v55 = vld [vmem:[#allocation32_spill] sm:$0xff] }
 0x35d   :  { %v1493_v38 = vsel %vm71_vm7, %v1387_v25, -inf  ;;  %v800_v46 = vmax.f32 %v798_v26, %v799_v52  ;;  %v13285_v27 = vadd.f32 %v1234_v42, %v16277_v5  ;;  %v1480_v37 = vrot.slane %v1479_v61, 4  ;;  %v13290_v53 = vpop.permute.xlu1 %4525 }
 0x35e   :  { %v5462_v4 = vadd.f32 %v9662_v9, %v5447_v13  ;;  %v866_v20 = vsel %vm852_vm9, %v793_v56, %v786_v1  ;;  %v13294_v58 = vadd.f32 %v2512_v51, %v16279_v55  ;;  %v1389_v21 = vcombine.high %v1387_v25, %v1387_v25  ;;  %v16282_v25 = vld [vmem:[#allocation94_spill] sm:$0xff] }
 0x35f   :  { %16278 = vst [vmem:[#allocation114_spill] sm:$0xff] %v13285_v27  ;;  %v3895_v26 = vmul.f32 %v12716_v7, %v13160_v33  ;;  %5344 = vbcast.lane.b32.xlu0 %v16232_v3, 258  ;;  %v1487_v47 = vrot.slane %v1486_v22, 4  ;;  %v1494_v62 = vrot.slane %v1493_v38, 4  ;;  %v3790_v29 = vmul.f32 %v12747_v60, %v13175_v49  ;;  %v13301_v42 = vpop.permute.xlu0 %4415  ;;  %v16283_v51 = vld [vmem:[#allocation74_spill] sm:$0xff] }
 0x360   :  { %v5470_v52 = vmax.f32 %v5462_v4, 0.0  ;;  %4553 = vbcast.lane.b32.xlu1 %v16221_v32, 265  ;;  %v13304_v24 = vmax.f32 %v805_v23, %v806_v15  ;;  %v13307_v56 = vadd.f32 %v2531_v36, %v13057_v16  ;;  %v13310_v40 = vadd.f32 %v2617_v35, %v16282_v25  ;;  %v16285_v15 = vld [vmem:[#allocation132_spill] sm:$0xff] }
 0x361   :  { %v3181_v57 = vmul.f32 %v16283_v51, %v13213_v6  ;;  %v5729_v13 = vld [vmem:[#allocation3 + $0x70] sm:$0xff]  ;;  %v13315_v49 = vsel %vm854_vm10, %v800_v46, %v866_v20  ;;  %v13317_v5 = vmax.f32 %v1479_v61, %v1480_v37  ;;  %v3224_v23 = vmul.f32 %v12730_v28, %v13229_v31  ;;  %v13324_v16 = vpop.permute.xlu1 %1212  ;;  %v13333_v61 = vld [vmem:[%s15251_s1 + $0x9] ss:$0 sm:$0xff] }
 0x362   :  { %16280 = vst [vmem:[#allocation113_spill] sm:$0xff] %v13304_v24  ;;  %16281 = vst [vmem:[#allocation116_spill] sm:$0xff] %v13307_v56  ;;  %v6268_v1 = vld [vmem:[#allocation3 + $0x71] sm:$0xff]  ;;  %v5479_v9 = vsel %vm69_vm6, %v5470_v52, -inf  ;;  %9156 = vmatprep.mubr.msk.f32.mxu1 %vm69_vm6, %v5729_v13  ;;  %v1500_v6 = vsel %vm71_vm7, %v1389_v21, -inf  ;;  %v13328_v36 = vadd.f32 %v3895_v26, %v13031_v44  ;;  %v13337_v35 = vmul.f32 %v13333_v61, %v13160_v33 }
 0x363   :  { %16284 = vst [vmem:[#allocation117_spill] sm:$0xff] %v13315_v49  ;;  %9268 = vmatprep.mubr.msk.f32.mxu0 %vm69_vm6, %v6268_v1  ;;  %v5480_v31 = vmax.f32 %v13145_v0, %v5479_v9  ;;  %3288 = vbcast.lane.b32.xlu0 %v16285_v15, 266  ;;  %v13341_v46 = vmax.f32 %v1486_v22, %v1487_v47  ;;  %v13351_v20 = vpop.permute.xlu0 %4533  ;;  %v1501_v21 = vrot.slane %v1500_v6, 4  ;;  %v16291_v1 = vld [vmem:[#allocation62_spill] sm:$0xff]  ;;  %v16294_v49 = vld [vmem:[#allocation111_spill] sm:$0xff] }
 0x364   :  { %v13343_v37 = vmax.f32 %v1493_v38, %v1494_v62  ;;  %v13346_v44 = vadd.f32 %v3790_v29, %v13077_v30  ;;  %v13349_v4 = vadd.f32 %v3224_v23, %v13224_v48  ;;  %3980 = vbcast.lane.b32.xlu1 %v16238_v12, 266  ;;  %v3189_v0 = vadd.f32 %v3181_v57, %v13087_v41  ;;  %v16287_v30 = vld [vmem:[#allocation121_spill] sm:$0xff]  ;;  %v16288_v48 = vld [vmem:[#allocation106_spill] sm:$0xff] }
 0x365   :  { %v5508_v33 = vcombine.high %v5480_v31, %v5480_v31  ;;  %v5515_v55 = vrot.slane %v5480_v31, %v16227_v11  ;;  %v3202_v22 = vmul.f32 %v12716_v7, %v13242_v10  ;;  %v1482_v38 = vrot.slane %v13317_v5, 2  ;;  %v13365_v62 = vpop.permute.xlu1 %2592  ;;  %v16290_v57 = vld [vmem:[#allocation109_spill] sm:$0xff]  ;;  %v16292_v24 = vld [vmem:[#allocation150_spill] sm:$0xff] }
 0x366   :  { %16286 = vst [vmem:[#allocation59_spill] sm:$0xff] %v13349_v4  ;;  %v13361_v26 = vmul.f32 %v12747_v60, %v16287_v30  ;;  %v4459_v47 = vmul.f32 %v16288_v48, %v13255_v45  ;;  %v13375_v13 = vmul.f32 %v12730_v28, %v16290_v57  ;;  %v4438_v9 = vmul.f32 %v16291_v1, %v13279_v50 }
 0x367   :  { %v5522_v12 = vrot.slane %v5508_v33, %v16227_v11  ;;  %v5523_v29 = vcombine.high %v5515_v55, %v5515_v55  ;;  %v5603_v41 = vsel %vm71_vm7, %v5515_v55, -inf  ;;  %v13369_v52 = vadd.f32 %v3202_v22, %v3189_v0  ;;  %4668 = vbcast.lane.b32.xlu0 %v16265_v54, 258  ;;  %v13379_v23 = vpop.permute.xlu0 %2477 }
 0x368   :  { %v5604_v25 = vrot.slane %v5603_v41, 4  ;;  %5360 = vbcast.lane.b32.xlu1 %v16273_v8, 258  ;;  %v13385_v0 = vmax.f32 %v1500_v6, %v1501_v21  ;;  %v4440_v56 = vmul.f32 %v16291_v1, %v13255_v45  ;;  %v4467_v63 = vadd.f32 %v4459_v47, %v4438_v9  ;;  %v13408_v47 = vld [vmem:[%s15251_s1 + $0x1] ss:$0 sm:$0xff] }
 0x369   :  { %16289 = vst [vmem:[#allocation123_spill] sm:$0xff] %v13369_v52  ;;  %v5524_v15 = vcombine.high %v5522_v12, %v5522_v12  ;;  %v5610_v33 = vsel %vm71_vm7, %v5523_v29, -inf  ;;  %v5617_v55 = vsel %vm71_vm7, %v5522_v12, -inf  ;;  %v13387_v7 = vpop.permute.xlu1 %3845  ;;  %v4461_v31 = vmul.f32 %v16288_v48, %v13301_v42  ;;  %16295 = vst [vmem:[#allocation146_spill] sm:$0xff] %v13408_v47  ;;  %v16296_v52 = vld [vmem:[#allocation110_spill] sm:$0xff] }
 0x36a   :  { %v5605_v22 = vmax.f32 %v5603_v41, %v5604_v25  ;;  %v5611_v30 = vrot.slane %v5610_v33, 4  ;;  %v5618_v57 = vrot.slane %v5617_v55, 4  ;;  %v16293_v25 = vld [vmem:[#allocation142_spill] sm:$0xff]  ;;  %v4564_v9 = vmul.f32 %v13408_v47, %v13290_v53 }
 0x36b   :  { %v5624_v50 = vsel %vm71_vm7, %v5524_v15, -inf  ;;  %5245 = vbcast.lane.b32.xlu0 %v16292_v24, 265  ;;  %v3838_v41 = vpop.permute.xlu0 %3837  ;;  %v13399_v15 = vld [vmem:[%s15251_s1 + $0x6] ss:$0 sm:$0xff]  ;;  %v13417_v11 = vmax.f32 %v13317_v5, %v1482_v38  ;;  %v575_v39 = vmul.f32 %v16296_v52, %v16294_v49  ;;  %v4566_v53 = vmul.f32 %v13408_v47, %v13351_v20 }
 0x36c   :  { %v5606_v29 = vrot.slane %v5605_v22, 2  ;;  %v5612_v12 = vmax.f32 %v5610_v33, %v5611_v30  ;;  %v5619_v6 = vmax.f32 %v5617_v55, %v5618_v57  ;;  %v5625_v21 = vrot.slane %v5624_v50, 4  ;;  %4656 = vbcast.lane.b32.xlu1 %v16293_v25, 266 }
 0x36d   :  { %v13403_v45 = vmul.f32 %v13399_v15, %v16294_v49  ;;  %v13412_v33 = vadd.f32 %v4461_v31, %v4440_v56  ;;  %v4480_v55 = vmul.f32 %v12747_v60, %v13301_v42  ;;  %v5086_v4 = vpop.permute.xlu1 %5085  ;;  %v16298_v56 = vld [vmem:[#allocation138_spill] sm:$0xff]  ;;  %v13429_v38 = vadd.f32 %v4566_v53, %v13265_v14 }
 0x36e   :  { %v5607_v30 = vmax.f32 %v5605_v22, %v5606_v29  ;;  %v5613_v57 = vrot.slane %v5612_v12, 2  ;;  %v5620_v25 = vrot.slane %v5619_v6, 2  ;;  %v5626_v27 = vmax.f32 %v5624_v50, %v5625_v21  ;;  %v16299_v50 = vld [vmem:[#allocation96_spill] sm:$0xff] }
 0x36f   :  { %v13421_v34 = vadd.f32 %v4480_v55, %v4467_v63  ;;  %3296 = vbcast.lane.b32.xlu0 %v16298_v56, 266  ;;  %v3858_v29 = vpop.permute.xlu0 %3857  ;;  %v4572_v5 = vadd.f32 %v4564_v9, %v16299_v50  ;;  %v13434_v63 = vld [vmem:[%s15251_s1 + $0x5] ss:$0 sm:$0xff]  ;;  %v1965_v14 = vmul.f32 %v16296_v52, %v13217_v59  ;;  %v2657_v56 = vmul.f32 %v16296_v52, %v13365_v62 }
 0x370   :  { %v5608_v31 = vrot.slane %v5607_v30, 1  ;;  %v5614_v60 = vmax.f32 %v5612_v12, %v5613_v57  ;;  %v5621_v42 = vmax.f32 %v5619_v6, %v5620_v25  ;;  %v5627_v22 = vrot.slane %v5626_v27, 2  ;;  %4676 = vbcast.lane.b32.xlu1 %v16221_v32, 258 }
 0x371   :  { %16297 = vst [vmem:[#allocation120_spill] sm:$0xff] %v13421_v34  ;;  %v4585_v49 = vmul.f32 %v13434_v63, %v13351_v20  ;;  %v2638_v12 = vmul.f32 %v13399_v15, %v13365_v62  ;;  %v5108_v25 = vpop.permute.xlu1 %5107  ;;  %v16301_v34 = vld [vmem:[#allocation100_spill] sm:$0xff] }
 0x372   :  { %v5609_v6 = vmax.f32 %v5607_v30, %v5608_v31  ;;  %v5615_v21 = vrot.slane %v5614_v60, 1  ;;  %v5622_v55 = vrot.slane %v5621_v42, 1  ;;  %v5628_v57 = vmax.f32 %v5626_v27, %v5627_v22  ;;  %v16300_v31 = vld [vmem:[#allocation50_spill] sm:$0xff] }
 0x373   :  { %v13442_v9 = vadd.f32 %v4585_v49, %v4572_v5  ;;  %v13445_v53 = vadd.f32 %v2638_v12, %v13310_v40  ;;  %4664 = vbcast.lane.b32.xlu0 %v16225_v18, 266  ;;  %v5097_v22 = vpop.permute.xlu0 %5096  ;;  %v583_v5 = vadd.f32 %v575_v39, %v16301_v34  ;;  %v13455_v49 = vadd.f32 %v2657_v56, %v13211_v17 }
 0x374   :  { %v5616_v20 = vmax.f32 %v5614_v60, %v5615_v21  ;;  %v5623_v50 = vmax.f32 %v5621_v42, %v5622_v55  ;;  %v5629_v30 = vrot.slane %v5628_v57, 1  ;;  %v5706_v27 = vsel %vm858_vm12, %v5609_v6, %v16300_v31  ;;  %5348 = vbcast.lane.b32.xlu1 %v16232_v3, 266  ;;  %v16302_v60 = vld [vmem:[#allocation76_spill] sm:$0xff]  ;;  %v16305_v21 = vld [vmem:[#allocation43_spill] sm:$0xff] }
 0x375   :  { %v2533_v40 = vmul.f32 %v12730_v28, %v13379_v23  ;;  %v3875_v18 = vmul.f32 %v16283_v51, %v13387_v7  ;;  %v5181_v42 = vadd.f32 %v13361_v26, %v16302_v60  ;;  %v3873_v12 = vmul.f32 %v16283_v51, %v3838_v41  ;;  %v5226_v3 = vpop.permute.xlu1 %5225  ;;  %v13483_v41 = vld [vmem:[%s15251_s1 + $0x5] ss:$0 sm:$0xff] }
 0x376   :  { %v5630_v62 = vmax.f32 %v5628_v57, %v5629_v30  ;;  %v5707_v52 = vsel %vm860_vm13, %v5616_v20, %v5706_v27  ;;  %v16303_v39 = vrot.slane %v13341_v46, 2  ;;  %v1973_v28 = vadd.f32 %v1965_v14, %v13253_v2  ;;  %v16309_v60 = vld [vmem:[#allocation14_spill] sm:$0xff] }
 0x377   :  { %v5708_v34 = vsel %vm862_vm14, %v5623_v50, %v5707_v52  ;;  %v13473_v23 = vadd.f32 %v2533_v40, %v13294_v58  ;;  %3988 = vbcast.lane.b32.xlu0 %v16226_v19, 266  ;;  %v13478_v26 = vadd.f32 %v3875_v18, %v13346_v44  ;;  %v3881_v2 = vadd.f32 %v3873_v12, %v16305_v21  ;;  %v5218_v55 = vpop.permute.xlu0 %5217  ;;  %v16307_v44 = vld [vmem:[#allocation12_spill] sm:$0xff]  ;;  %v16308_v18 = vld [vmem:[#allocation102_spill] sm:$0xff]  ;;  %v13531_v52 = vld [vmem:[%s15251_s1 + $0xa] ss:$0 sm:$0xff] }
 0x378   :  { %v13468_v17 = vmax.f32 %v13341_v46, %v16303_v39  ;;  %v5709_v6 = vsel %vm864_vm15, %v5630_v62, %v5708_v34  ;;  %v3894_v46 = vmul.f32 %v13483_v41, %v13387_v7  ;;  %5368 = vbcast.lane.b32.xlu1 %v16292_v24, 258  ;;  %v16306_v19 = vrot.slane %v13343_v37, 2  ;;  %v16310_v34 = vld [vmem:[#allocation77_spill] sm:$0xff] }
 0x379   :  { %16304 = vst [vmem:[#allocation147_spill] sm:$0xff] %v13473_v23  ;;  %5720 = vst.msk [vmem:[#allocation3 + $0x81] sm:$0xff] %vm69_vm6, %v5709_v6  ;;  %v598_v57 = vmul.f32 %v16307_v44, %v583_v5  ;;  %v3916_v14 = vmul.f32 %v13333_v61, %v3858_v29  ;;  %v5153_v56 = vmul.f32 %v16288_v48, %v5108_v25  ;;  %v13503_v31 = vpop.permute.xlu1 %1888 }
 0x37a   :  { %v13492_v58 = vmax.f32 %v13343_v37, %v16306_v19  ;;  %v13498_v20 = vadd.f32 %v3894_v46, %v3881_v2  ;;  %v5130_v7 = vmul.f32 %v16291_v1, %v5086_v4  ;;  %v5132_v50 = vmul.f32 %v16291_v1, %v5097_v22  ;;  %v13516_v4 = vld [vmem:[%s15251_s1 + $0x8] ss:$0 sm:$0xff] }
 0x37b   :  { %v5151_v30 = vmul.f32 %v16288_v48, %v5097_v22  ;;  %v1946_v37 = vmul.f32 %v13399_v15, %v13217_v59  ;;  %v1988_v27 = vmul.f32 %v16307_v44, %v1973_v28  ;;  %v13509_v5 = vadd.f32 %v3916_v14, %v13328_v36  ;;  %5356 = vbcast.lane.b32.xlu0 %v16246_v43, 266  ;;  %v522_v40 = vpop.permute.xlu0 %521 }
 0x37c   :  { %v5258_v29 = vmul.f32 %v13408_v47, %v5226_v3  ;;  %v5172_v48 = vmul.f32 %v13516_v4, %v5108_v25  ;;  %v13519_v22 = vadd.f32 %v5153_v56, %v5132_v50  ;;  %v5256_v59 = vmul.f32 %v13408_v47, %v5218_v55  ;;  %5364 = vbcast.lane.b32.xlu1 %v16273_v8, 266  ;;  %v16313_v50 = vld [vmem:[#allocation95_spill] sm:$0xff] }
 0x37d   :  { %v5159_v1 = vadd.f32 %v5151_v30, %v5130_v7  ;;  %v1503_v36 = vrot.slane %v13385_v0, 2  ;;  %v564_v43 = vadd.f32 %v13403_v45, %v16308_v18  ;;  %v577_v25 = vmul.f32 %v13531_v52, %v522_v40  ;;  %v1909_v28 = vpop.permute.xlu1 %1908 }
 0x37e   :  { %v13526_v62 = vadd.f32 %v5258_v29, %v5181_v42  ;;  %v613_v12 = vadd.f32 %v16309_v60, %v598_v57  ;;  %v5277_v39 = vmul.f32 %v13434_v63, %v5226_v3  ;;  %v5264_v8 = vadd.f32 %v5256_v59, %v16310_v34  ;;  %v16312_v42 = vld [vmem:[#allocation105_spill] sm:$0xff] }
 0x37f   :  { %v13537_v6 = vadd.f32 %v5172_v48, %v5159_v1  ;;  %v1484_v45 = vrot.slane %v13417_v11, 1  ;;  %v1954_v46 = vadd.f32 %v1946_v37, %v16312_v42  ;;  %v585_v21 = vadd.f32 %v577_v25, %v564_v43  ;;  %4672 = vbcast.lane.b32.xlu0 %v16265_v54, 266  ;;  %v13549_v7 = vpop.permute.xlu0 %1896  ;;  %v16316_v43 = vld [vmem:[#allocation101_spill] sm:$0xff] }
 0x380   :  { %v1967_v2 = vmul.f32 %v13531_v52, %v1909_v28  ;;  %v1491_v55 = vrot.slane %v13468_v17, 1  ;;  %v2003_v19 = vadd.f32 %v16309_v60, %v1988_v27  ;;  %v3183_v3 = vmul.f32 %v16283_v51, %v13242_v10  ;;  %v5730_v57 = vld [vmem:[#allocation3 + $0x80] sm:$0xff]  ;;  %5372 = vbcast.lane.b32.xlu1 %v16292_v24, 266  ;;  %v16314_v51 = vld [vmem:[#allocation98_spill] sm:$0xff] }
 0x381   :  { %16311 = vst [vmem:[#allocation124_spill] sm:$0xff] %v13537_v6  ;;  %v6269_v14 = vld [vmem:[#allocation3 + $0x81] sm:$0xff]  ;;  %v13547_v56 = vadd.f32 %v5277_v39, %v5264_v8  ;;  %v13554_v54 = vadd.f32 %v13337_v35, %v16313_v50  ;;  %9157 = vmatmul.mubr.msk.f32.gmra.mrb[6].mxu1 %vm69_vm6, %v5730_v57  ;;  %v600_v30 = vmul.f32 %v16307_v44, %v585_v21  ;;  %v621_v29 = vmax.f32 %v613_v12, 0.0  ;;  %v3269_v48 = vpop.permute.xlu1 %3268  ;;  %v13571_v44 = vld [vmem:[%s15252_s2] ss:$0 sm:$0xff] }
 0x382   :  { %9269 = vmatmul.mubr.msk.f32.gmra.mrb[6].mxu0 %vm69_vm6, %v6269_v14  ;;  %v1975_v37 = vadd.f32 %v1967_v2, %v1954_v46  ;;  %v1504_v10 = vmax.f32 %v13385_v0, %v1503_v36  ;;  %v13562_v27 = vadd.f32 %v13375_v13, %v16314_v51  ;;  %v1274_v24 = vmul.f32 %v13531_v52, %v13324_v16  ;;  %v13578_v13 = vld [vmem:[%s15251_s1 + $0x2] ss:$0 sm:$0xff]  ;;  %v16317_v8 = vld [vmem:[#allocation108_spill] sm:$0xff]  ;;  %v16318_v21 = vld [vmem:[#allocation97_spill] sm:$0xff] }
 0x383   :  { %v1498_v35 = vrot.slane %v13492_v58, 1  ;;  %v615_v1 = vadd.f32 %v16309_v60, %v600_v30  ;;  %4680 = vbcast.lane.b32.xlu0 %v16221_v32, 266  ;;  %v3307_v59 = vmul.f32 %v13578_v13, %v3269_v48  ;;  %v1485_v40 = vmax.f32 %v13417_v11, %v1484_v45  ;;  %v3162_v12 = vpop.permute.xlu0 %3161  ;;  %v13592_v11 = vld [vmem:[%s15251_s1 + $0x9] ss:$0 sm:$0xff]  ;;  %v16320_v30 = vld [vmem:[#allocation123_spill] sm:$0xff] }
 0x384   :  { %16315 = vst [vmem:[#allocation134_spill] sm:$0xff] %v13562_v27  ;;  %v1990_v0 = vmul.f32 %v13571_v44, %v1975_v37  ;;  %v1492_v36 = vmax.f32 %v13468_v17, %v1491_v55  ;;  %v2011_v18 = vmax.f32 %v2003_v19, 0.0  ;;  %v3191_v25 = vadd.f32 %v3183_v3, %v16316_v43 }
 0x385   :  { %v623_v39 = vmax.f32 %v615_v1, 0.0  ;;  %v3315_v32 = vadd.f32 %v3307_v59, %v16317_v8  ;;  %v3204_v28 = vmul.f32 %v13483_v41, %v3162_v12  ;;  %v1505_v42 = vrot.slane %v1504_v10, 1  ;;  %v4427_v45 = vpop.permute.xlu1 %4426  ;;  %v13612_v1 = vld [vmem:[%s15251_s1 + $0x6] ss:$0 sm:$0xff] }
 0x386   :  { %v2005_v34 = vadd.f32 %v16309_v60, %v1990_v0  ;;  %v633_v46 = vsel %vm69_vm6, %v621_v29, -inf  ;;  %v1282_v2 = vadd.f32 %v1274_v24, %v16318_v21  ;;  %v3223_v17 = vmul.f32 %v13592_v11, %v3162_v12  ;;  %v16323_v59 = vld [vmem:[#allocation122_spill] sm:$0xff] }
 0x387   :  { %v634_v55 = vsel %vm69_vm6, %v623_v39, -inf  ;;  %v13596_v19 = vadd.f32 %v3204_v28, %v3191_v25  ;;  %v4482_v3 = vmul.f32 %v13516_v4, %v4427_v45  ;;  %v1499_v57 = vmax.f32 %v13492_v58, %v1498_v35  ;;  %v3277_v51 = vpop.permute.xlu0 %3276  ;;  %v16324_v39 = vld [vmem:[#allocation59_spill] sm:$0xff] }
 0x388   :  { %v2013_v60 = vmax.f32 %v2005_v34, 0.0  ;;  %v2021_v14 = vsel %vm69_vm6, %v2011_v18, -inf  ;;  %v635_v50 = vmax.f32 %v633_v46, %v634_v55  ;;  %v13602_v37 = vadd.f32 %v3223_v17, %v16320_v30 }
 0x389   :  { %16319 = vst [vmem:[#allocation65_spill] sm:$0xff] %v13596_v19  ;;  %v13606_v24 = vadd.f32 %v4482_v3, %v13412_v33  ;;  %v3309_v48 = vmul.f32 %v13578_v13, %v3277_v51  ;;  %v3328_v58 = vmul.f32 %v13612_v1, %v3277_v51  ;;  %v1558_v35 = vsel %vm852_vm9, %v1492_v36, %v1485_v40  ;;  %v1221_v25 = vpop.permute.xlu1 %1220 }
 0x38a   :  { %16321 = vst [vmem:[#allocation28_spill] sm:$0xff] %v13602_v37  ;;  %v2022_v29 = vsel %vm69_vm6, %v2013_v60, -inf  ;;  %v691_v0 = vcombine.high %v635_v50, %v635_v50  ;;  %v698_v18 = vrot.slane %v635_v50, %v16323_v59  ;;  %v13617_v12 = vmax.f32 %v1504_v10, %v1505_v42 }
 0x38b   :  { %16322 = vst [vmem:[#allocation141_spill] sm:$0xff] %v13606_v24  ;;  %v2023_v43 = vmax.f32 %v2021_v14, %v2022_v29  ;;  %v1297_v33 = vmul.f32 %v13571_v44, %v1282_v2  ;;  %v13621_v34 = vadd.f32 %v3309_v48, %v16324_v39  ;;  %v13623_v8 = vadd.f32 %v3328_v58, %v3315_v32  ;;  %v13627_v36 = vpop.permute.xlu0 %4541 }
 0x38c   :  { %v705_v28 = vrot.slane %v691_v0, %v16323_v59  ;;  %v706_v46 = vcombine.high %v698_v18, %v698_v18  ;;  %v808_v21 = vsel %vm71_vm7, %v698_v18, -inf  ;;  %v13630_v17 = vsel %vm854_vm10, %v1499_v57, %v1558_v35  ;;  %v13643_v57 = vld [vmem:[%s15253_s3] ss:$0 sm:$0xff] }
 0x38d   :  { %16325 = vst [vmem:[#allocation18_spill] sm:$0xff] %v13621_v34  ;;  %16326 = vst [vmem:[#allocation19_spill] sm:$0xff] %v13623_v8  ;;  %v2065_v40 = vcombine.high %v2023_v43, %v2023_v43  ;;  %v1255_v10 = vmul.f32 %v13399_v15, %v13324_v16  ;;  %v809_v42 = vrot.slane %v808_v21, 4  ;;  %v2072_v2 = vrot.slane %v2023_v43, %v16323_v59  ;;  %v13638_v3 = vpop.permute.xlu1 %2588 }
 0x38e   :  { %v707_v45 = vcombine.high %v705_v28, %v705_v28  ;;  %v815_v32 = vsel %vm71_vm7, %v706_v46, -inf  ;;  %v822_v55 = vsel %vm71_vm7, %v705_v28, -inf  ;;  %16327 = vst [vmem:[#allocation151_spill] sm:$0xff] %v13638_v3  ;;  %v1312_v14 = vadd.f32 %v13643_v57, %v1297_v33  ;;  %v16329_v28 = vld [vmem:[#allocation114_spill] sm:$0xff]  ;;  %v16331_v3 = vld [vmem:[#allocation113_spill] sm:$0xff] }
 0x38f   :  { %v2079_v60 = vrot.slane %v2065_v40, %v16323_v59  ;;  %v810_v16 = vmax.f32 %v808_v21, %v809_v42  ;;  %v816_v50 = vrot.slane %v815_v32, 4  ;;  %v823_v30 = vrot.slane %v822_v55, 4 }
 0x390   :  { %v829_v51 = vsel %vm71_vm7, %v707_v45, -inf  ;;  %v2080_v29 = vcombine.high %v2072_v2, %v2072_v2  ;;  %v2171_v48 = vsel %vm71_vm7, %v2072_v2, -inf  ;;  %v13649_v39 = vpop.permute.xlu0 %2580  ;;  %v1263_v46 = vadd.f32 %v1255_v10, %v16329_v28 }
 0x391   :  { %v2185_v58 = vsel %vm71_vm7, %v2079_v60, -inf  ;;  %v811_v35 = vrot.slane %v810_v16, 2  ;;  %v817_v0 = vmax.f32 %v815_v32, %v816_v50  ;;  %v824_v18 = vmax.f32 %v822_v55, %v823_v30  ;;  %16328 = vst [vmem:[#allocation25_spill] sm:$0xff] %v13649_v39  ;;  %v13655_v42 = vpop.permute.xlu1 %3853 }
 0x392   :  { %v830_v43 = vrot.slane %v829_v51, 4  ;;  %v2680_v33 = vmul.f32 %v13571_v44, %v13455_v49  ;;  %v2081_v21 = vcombine.high %v2079_v60, %v2079_v60  ;;  %v1276_v40 = vmul.f32 %v13531_v52, %v1221_v25 }
 0x393   :  { %v812_v45 = vmax.f32 %v810_v16, %v811_v35  ;;  %v818_v2 = vrot.slane %v817_v0, 2  ;;  %v825_v37 = vrot.slane %v824_v18, 2  ;;  %v1320_v23 = vmax.f32 %v1312_v14, 0.0 }
 0x394   :  { %v831_v6 = vmax.f32 %v829_v51, %v830_v43  ;;  %v2172_v32 = vrot.slane %v2171_v48, 4  ;;  %v2178_v55 = vsel %vm71_vm7, %v2080_v29, -inf  ;;  %v2186_v50 = vrot.slane %v2185_v58, 4  ;;  %v2601_v24 = vpop.permute.xlu0 %2600  ;;  %v16330_v29 = vld [vmem:[#allocation117_spill] sm:$0xff] }
 0x395   :  { %v813_v30 = vrot.slane %v812_v45, 1  ;;  %v819_v27 = vmax.f32 %v817_v0, %v818_v2  ;;  %v826_v10 = vmax.f32 %v824_v18, %v825_v37  ;;  %v2695_v49 = vadd.f32 %v13643_v57, %v2680_v33  ;;  %v3969_v35 = vpop.permute.xlu1 %3968 }
 0x396   :  { %v832_v28 = vrot.slane %v831_v6, 2  ;;  %v2192_v25 = vsel %vm71_vm7, %v2081_v21, -inf  ;;  %v1284_v60 = vadd.f32 %v1276_v40, %v1263_v46  ;;  %v4587_v16 = vmul.f32 %v13434_v63, %v13627_v36 }
 0x397   :  { %v814_v51 = vmax.f32 %v812_v45, %v813_v30  ;;  %v820_v14 = vrot.slane %v819_v27, 1  ;;  %v827_v43 = vrot.slane %v826_v10, 1  ;;  %v868_v0 = vsel %vm856_vm11, %v16331_v3, %v16330_v29  ;;  %v16332_v45 = vld [vmem:[#allocation13_spill] sm:$0xff] }
 0x398   :  { %v833_v8 = vmax.f32 %v831_v6, %v832_v28  ;;  %v2173_v37 = vmax.f32 %v2171_v48, %v2172_v32  ;;  %v2179_v18 = vrot.slane %v2178_v55, 4  ;;  %v2187_v2 = vmax.f32 %v2185_v58, %v2186_v50  ;;  %v3961_v21 = vpop.permute.xlu0 %3960 }
 0x399   :  { %v821_v39 = vmax.f32 %v819_v27, %v820_v14  ;;  %v828_v33 = vmax.f32 %v826_v10, %v827_v43  ;;  %v869_v46 = vsel %vm858_vm12, %v814_v51, %v868_v0  ;;  %v1332_v40 = vsel %vm69_vm6, %v1320_v23, -inf  ;;  %v5234_v28 = vpop.permute.xlu1 %5233 }
 0x39a   :  { %v834_v34 = vrot.slane %v833_v8, 1  ;;  %v2703_v47 = vmax.f32 %v2695_v49, 0.0  ;;  %v1924_v30 = vmul.f32 %v16332_v45, %v13503_v31  ;;  %v2193_v6 = vrot.slane %v2192_v25, 4  ;;  %v16333_v49 = vld [vmem:[#allocation99_spill] sm:$0xff] }
 0x39b   :  { %v870_v3 = vsel %vm860_vm13, %v821_v39, %v869_v46  ;;  %v1299_v48 = vmul.f32 %v13571_v44, %v1284_v60  ;;  %v13672_v27 = vadd.f32 %v4587_v16, %v13429_v38  ;;  %v2174_v32 = vrot.slane %v2173_v37, 2 }
 0x39c   :  { %v835_v19 = vmax.f32 %v833_v8, %v834_v34  ;;  %v871_v58 = vsel %vm862_vm14, %v828_v33, %v870_v3  ;;  %v13675_v50 = vmax.f32 %v2178_v55, %v2179_v18  ;;  %v1945_v23 = vmul.f32 %v13399_v15, %v13549_v7  ;;  %v5119_v39 = vpop.permute.xlu0 %5118 }
 0x39d   :  { %v2188_v10 = vrot.slane %v2187_v2, 2  ;;  %v1314_v34 = vadd.f32 %v13643_v57, %v1299_v48  ;;  %v4606_v8 = vmul.f32 %v13333_v61, %v13627_v36  ;;  %v13684_v38 = vsel %vm69_vm6, %v2703_v47, -inf  ;;  %v3170_v16 = vpop.permute.xlu1 %3169 }
 0x39e   :  { %v872_v31 = vsel %vm864_vm15, %v835_v19, %v871_v58  ;;  %v1932_v60 = vadd.f32 %v1924_v30, %v16333_v49  ;;  %v13688_v55 = vmax.f32 %v2192_v25, %v2193_v6  ;;  %v13693_v19 = vsel %vm856_vm11, %v13617_v12, %v13630_v17 }
 0x39f   :  { %877 = vst.msk [vmem:[#allocation3 + $0xb1] sm:$0xff] %vm69_vm6, %v872_v31  ;;  %v13697_v51 = vmul.f32 %v16332_v45, %v13549_v7  ;;  %v1322_v36 = vmax.f32 %v1314_v34, 0.0  ;;  %v13700_v47 = vadd.f32 %v4606_v8, %v13442_v9  ;;  %v3896_v14 = vmul.f32 %v13483_v41, %v13655_v42 }
 0x3a0   :  { %v13704_v43 = vmax.f32 %v2173_v37, %v2174_v32  ;;  %v2181_v25 = vrot.slane %v13675_v50, 2  ;;  %v13707_v29 = vadd.f32 %v1945_v23, %v1932_v60  ;;  %v3915_v12 = vmul.f32 %v13333_v61, %v13655_v42  ;;  %v13718_v18 = vpop.permute.xlu0 %1904 }
 0x3a1   :  { %v13711_v17 = vmax.f32 %v2187_v2, %v2188_v10  ;;  %v1333_v7 = vsel %vm69_vm6, %v1322_v36, -inf  ;;  %v13715_v0 = vadd.f32 %v3896_v14, %v13478_v26  ;;  %v2659_v9 = vmul.f32 %v13531_v52, %v2601_v24 }
 0x3a2   :  { %v2195_v41 = vrot.slane %v13688_v55, 2  ;;  %v1334_v37 = vmax.f32 %v1332_v40, %v1333_v7  ;;  %v13722_v33 = vadd.f32 %v3915_v12, %v13498_v20  ;;  %v4001_v46 = vmul.f32 %v13578_v13, %v3969_v35  ;;  %v4530_v42 = vpop.permute.xlu1 %4529 }
 0x3a3   :  { %v2667_v2 = vadd.f32 %v2659_v9, %v13445_v53  ;;  %v4020_v30 = vmul.f32 %v13612_v1, %v3969_v35  ;;  %v3999_v26 = vmul.f32 %v13578_v13, %v3961_v21  ;;  %v5279_v6 = vmul.f32 %v13434_v63, %v5234_v28 }
 0x3a4   :  { %v1390_v24 = vcombine.high %v1334_v37, %v1334_v37  ;;  %v1397_v3 = vrot.slane %v1334_v37, %v16323_v59  ;;  %v13731_v48 = vadd.f32 %v4001_v46, %v13509_v5  ;;  %v5298_v20 = vmul.f32 %v13333_v61, %v5234_v28 }
 0x3a5   :  { %v2682_v40 = vmul.f32 %v13571_v44, %v2667_v2  ;;  %v4007_v58 = vadd.f32 %v3999_v26, %v13554_v54  ;;  %v13737_v53 = vadd.f32 %v5279_v6, %v13526_v62  ;;  %v5174_v35 = vmul.f32 %v13516_v4, %v5119_v39  ;;  %v13740_v21 = vpop.permute.xlu0 %3284  ;;  %v16335_v2 = vld [vmem:[#allocation65_spill] sm:$0xff] }
 0x3a6   :  { %v5733_v32 = vld [vmem:[#allocation3 + $0xb0] sm:$0xff]  ;;  %v1404_v31 = vrot.slane %v1390_v24, %v16323_v59  ;;  %v1405_v10 = vcombine.high %v1397_v3, %v1397_v3  ;;  %v1507_v5 = vsel %vm71_vm7, %v1397_v3, -inf  ;;  %v13745_v28 = vadd.f32 %v5298_v20, %v13547_v56  ;;  %v13749_v62 = vpop.permute.xlu1 %4549 }
 0x3a7   :  { %v6272_v23 = vld [vmem:[#allocation3 + $0xb1] sm:$0xff]  ;;  %9159 = vmatprep.mubr.msk.f32.mxu1 %vm69_vm6, %v5733_v32  ;;  %v1508_v54 = vrot.slane %v1507_v5, 4  ;;  %v2697_v4 = vadd.f32 %v13643_v57, %v2682_v40  ;;  %v13752_v34 = vadd.f32 %v4020_v30, %v4007_v58  ;;  %v13755_v8 = vadd.f32 %v5174_v35, %v13519_v22 }
 0x3a8   :  { %16334 = vst [vmem:[#allocation20_spill] sm:$0xff] %v13745_v28  ;;  %9271 = vmatprep.mubr.msk.f32.mxu0 %vm69_vm6, %v6272_v23  ;;  %v1406_v39 = vcombine.high %v1404_v31, %v1404_v31  ;;  %v1514_v49 = vsel %vm71_vm7, %v1405_v10, -inf  ;;  %v1521_v56 = vsel %vm71_vm7, %v1404_v31, -inf  ;;  %v3225_v60 = vmul.f32 %v13592_v11, %v3170_v16  ;;  %v16336_v58 = vld [vmem:[#allocation146_spill] sm:$0xff] }
 0x3a9   :  { %v1509_v36 = vmax.f32 %v1507_v5, %v1508_v54  ;;  %v1515_v14 = vrot.slane %v1514_v49, 4  ;;  %v1522_v12 = vrot.slane %v1521_v56, 4  ;;  %v2705_v7 = vmax.f32 %v2697_v4, 0.0  ;;  %v13760_v9 = vpop.permute.xlu0 %4537  ;;  %v16337_v54 = vld [vmem:[#allocation120_spill] sm:$0xff]  ;;  %v16345_v28 = vld [vmem:[#allocation134_spill] sm:$0xff] }
 0x3aa   :  { %v2176_v37 = vrot.slane %v13704_v43, 1  ;;  %v2182_v46 = vmax.f32 %v13675_v50, %v2181_v25  ;;  %v1528_v22 = vsel %vm71_vm7, %v1406_v39, -inf  ;;  %v13766_v30 = vadd.f32 %v3225_v60, %v16335_v2  ;;  %v13768_v26 = vpop.permute.xlu1 %3861 }
 0x3ab   :  { %v1510_v6 = vrot.slane %v1509_v36, 2  ;;  %v1516_v24 = vmax.f32 %v1514_v49, %v1515_v14  ;;  %v1523_v11 = vmax.f32 %v1521_v56, %v1522_v12  ;;  %v1529_v16 = vrot.slane %v1528_v22, 4  ;;  %v16338_v12 = vld [vmem:[#allocation18_spill] sm:$0xff] }
 0x3ac   :  { %v13772_v20 = vmax.f32 %v13688_v55, %v2195_v41  ;;  %v2714_v40 = vsel %vm69_vm6, %v2705_v7, -inf  ;;  %v4565_v50 = vmul.f32 %v16336_v58, %v4530_v42  ;;  %v1966_v5 = vmul.f32 %v13531_v52, %v13718_v18 }
 0x3ad   :  { %v1511_v25 = vmax.f32 %v1509_v36, %v1510_v6  ;;  %v1517_v35 = vrot.slane %v1516_v24, 2  ;;  %v1524_v32 = vrot.slane %v1523_v11, 2  ;;  %v1530_v23 = vmax.f32 %v1528_v22, %v1529_v16  ;;  %v13776_v31 = vpop.permute.xlu0 %2596 }
 0x3ae   :  { %v2715_v10 = vmax.f32 %v13684_v38, %v2714_v40  ;;  %v4573_v4 = vadd.f32 %v4565_v50, %v16337_v54  ;;  %v3330_v55 = vmul.f32 %v13612_v1, %v13740_v21  ;;  %v13784_v41 = vpop.permute.xlu1 %5221  ;;  %v2183_v60 = vrot.slane %v2182_v46, 1 }
 0x3af   :  { %v1512_v39 = vrot.slane %v1511_v25, 1  ;;  %v1518_v42 = vmax.f32 %v1516_v24, %v1517_v35  ;;  %v1525_v49 = vmax.f32 %v1523_v11, %v1524_v32  ;;  %v1531_v56 = vrot.slane %v1530_v23, 2 }
 0x3b0   :  { %v2757_v36 = vcombine.high %v2715_v10, %v2715_v10  ;;  %v2764_v14 = vrot.slane %v2715_v10, %v16323_v59  ;;  %v13788_v38 = vadd.f32 %v3330_v55, %v16338_v12  ;;  %v1974_v11 = vadd.f32 %v1966_v5, %v13707_v29 }
 0x3b1   :  { %v1513_v7 = vmax.f32 %v1511_v25, %v1512_v39  ;;  %v1519_v22 = vrot.slane %v1518_v42, 1  ;;  %v1526_v2 = vrot.slane %v1525_v49, 1  ;;  %v1532_v6 = vmax.f32 %v1530_v23, %v1531_v56  ;;  %v13790_v16 = vpop.permute.xlu0 %3976 }
 0x3b2   :  { %v2771_v40 = vrot.slane %v2757_v36, %v16323_v59  ;;  %v2772_v50 = vcombine.high %v2764_v14, %v2764_v14  ;;  %v2863_v24 = vsel %vm71_vm7, %v2764_v14, -inf  ;;  %v13795_v35 = vpop.permute.xlu1 %5241  ;;  %v2177_v5 = vmax.f32 %v13704_v43, %v2176_v37  ;;  %v13819_v37 = vld [vmem:[%s15251_s1 + $0xa] ss:$0 sm:$0xff] }
 0x3b3   :  { %v1520_v32 = vmax.f32 %v1518_v42, %v1519_v22  ;;  %v1527_v10 = vmax.f32 %v1525_v49, %v1526_v2  ;;  %v1533_v54 = vrot.slane %v1532_v6, 1  ;;  %v1561_v25 = vsel %vm858_vm12, %v1513_v7, %v13693_v19  ;;  %v16339_v2 = vld [vmem:[#allocation25_spill] sm:$0xff] }
 0x3b4   :  { %v2773_v55 = vcombine.high %v2771_v40, %v2771_v40  ;;  %v2864_v39 = vrot.slane %v2863_v24, 4  ;;  %v2870_v23 = vsel %vm71_vm7, %v2772_v50, -inf  ;;  %v2877_v56 = vsel %vm71_vm7, %v2771_v40, -inf }
 0x3b5   :  { %v1534_v36 = vmax.f32 %v1532_v6, %v1533_v54  ;;  %v1562_v12 = vsel %vm860_vm13, %v1520_v32, %v1561_v25  ;;  %v2871_v14 = vrot.slane %v2870_v23, 4  ;;  %v2878_v3 = vrot.slane %v2877_v56, 4  ;;  %v13802_v29 = vpop.permute.xlu0 %5229  ;;  %v16340_v32 = vld [vmem:[#allocation151_spill] sm:$0xff] }
 0x3b6   :  { %v2184_v42 = vmax.f32 %v2182_v46, %v2183_v60  ;;  %v2197_v49 = vrot.slane %v13772_v20, 1  ;;  %v1563_v19 = vsel %vm862_vm14, %v1527_v10, %v1562_v12  ;;  %v13807_v7 = vpop.permute.xlu1 %3272  ;;  %v2616_v6 = vmul.f32 %v16332_v45, %v16339_v2 }
 0x3b7   :  { %v1564_v22 = vsel %vm864_vm15, %v1534_v36, %v1563_v19  ;;  %v2865_v40 = vmax.f32 %v2863_v24, %v2864_v39  ;;  %v2884_v50 = vsel %vm71_vm7, %v2773_v55, -inf  ;;  %v2618_v43 = vmul.f32 %v16332_v45, %v16340_v32  ;;  %v16341_v36 = vld [vmem:[#allocation19_spill] sm:$0xff] }
 0x3b8   :  { %1569 = vst.msk [vmem:[#allocation3 + $0xc1] sm:$0xff] %vm69_vm6, %v1564_v22  ;;  %v3349_v46 = vmul.f32 %v13819_v37, %v13740_v21  ;;  %v4608_v60 = vmul.f32 %v13333_v61, %v13749_v62  ;;  %v4567_v24 = vmul.f32 %v16336_v58, %v13760_v9  ;;  %v2872_v10 = vmax.f32 %v2870_v23, %v2871_v14  ;;  %v16342_v21 = vld [vmem:[#allocation141_spill] sm:$0xff] }
 0x3b9   :  { %v2879_v54 = vmax.f32 %v2877_v56, %v2878_v3  ;;  %v1989_v25 = vmul.f32 %v13571_v44, %v1974_v11  ;;  %v4586_v45 = vmul.f32 %v13434_v63, %v13760_v9  ;;  %v1913_v55 = vpop.permute.xlu0 %1912  ;;  %v2885_v39 = vrot.slane %v2884_v50, 4  ;;  %v16344_v3 = vld [vmem:[#allocation116_spill] sm:$0xff] }
 0x3ba   :  { %v3357_v12 = vadd.f32 %v3349_v46, %v16341_v36  ;;  %v13832_v19 = vadd.f32 %v4608_v60, %v13672_v27  ;;  %v13835_v22 = vadd.f32 %v4567_v24, %v16342_v21  ;;  %v16343_v62 = vrot.slane %v13711_v17, 1  ;;  %v3293_v9 = vpop.permute.xlu1 %3292 }
 0x3bb   :  { %v2624_v56 = vadd.f32 %v2616_v6, %v16344_v3  ;;  %v2866_v11 = vrot.slane %v2865_v40, 2  ;;  %v13841_v14 = vadd.f32 %v4586_v45, %v4573_v4  ;;  %v2250_v2 = vsel %vm852_vm9, %v2184_v42, %v2177_v5  ;;  %v16346_v45 = vld [vmem:[#allocation147_spill] sm:$0xff]  ;;  %v16347_v3 = vld [vmem:[#allocation124_spill] sm:$0xff] }
 0x3bc   :  { %v2191_v23 = vmax.f32 %v13711_v17, %v16343_v62  ;;  %v1934_v46 = vadd.f32 %v13697_v51, %v16345_v28  ;;  %v3917_v27 = vmul.f32 %v13333_v61, %v13768_v26  ;;  %v13849_v60 = vmax.f32 %v13772_v20, %v2197_v49 }
 0x3bd   :  { %v2637_v17 = vmul.f32 %v13399_v15, %v16340_v32  ;;  %v2873_v24 = vrot.slane %v2872_v10, 2  ;;  %v2004_v6 = vadd.f32 %v13643_v57, %v1989_v25  ;;  %v13854_v4 = vpop.permute.xlu0 %3280  ;;  %v13857_v36 = vadd.f32 %v2618_v43, %v16346_v45 }
 0x3be   :  { %v2880_v5 = vrot.slane %v2879_v54, 2  ;;  %v2886_v42 = vmax.f32 %v2884_v50, %v2885_v39  ;;  %v13860_v51 = vadd.f32 %v3917_v27, %v13715_v0  ;;  %v13863_v28 = vsel %vm854_vm10, %v2191_v23, %v2250_v2  ;;  %v4653_v62 = vpop.permute.xlu1 %4652 }
 0x3bf   :  { %v2645_v26 = vadd.f32 %v2637_v17, %v2624_v56  ;;  %v2867_v20 = vmax.f32 %v2865_v40, %v2866_v11  ;;  %v1947_v49 = vmul.f32 %v13399_v15, %v13718_v18  ;;  %v5734_v32 = vld [vmem:[#allocation3 + $0xc0] sm:$0xff]  ;;  %v5257_v21 = vmul.f32 %v16336_v58, %v13784_v41 }
 0x3c0   :  { %v6273_v25 = vld [vmem:[#allocation3 + $0xc1] sm:$0xff]  ;;  %v4022_v43 = vmul.f32 %v13612_v1, %v13790_v16  ;;  %v4041_v0 = vmul.f32 %v13819_v37, %v13790_v16  ;;  %9160 = vmatmul.mubr.msk.f32.gmra.mrb[8].mxu1 %vm69_vm6, %v5734_v32  ;;  %v2874_v50 = vmax.f32 %v2872_v10, %v2873_v24  ;;  %v2012_v40 = vmax.f32 %v2004_v6, 0.0  ;;  %v13886_v16 = vld [vmem:[%s15252_s2] ss:$0 sm:$0xff] }
 0x3c1   :  { %9272 = vmatmul.mubr.msk.f32.gmra.mrb[8].mxu0 %vm69_vm6, %v6273_v25  ;;  %v2658_v18 = vmul.f32 %v13531_v52, %v13776_v31  ;;  %v5300_v39 = vmul.f32 %v13333_v61, %v13795_v35  ;;  %v2881_v41 = vmax.f32 %v2879_v54, %v2880_v5  ;;  %v2887_v23 = vrot.slane %v2886_v42, 2  ;;  %v4546_v27 = vpop.permute.xlu0 %4545 }
 0x3c2   :  { %v5265_v56 = vadd.f32 %v5257_v21, %v16347_v3  ;;  %v13881_v11 = vadd.f32 %v4022_v43, %v13731_v48  ;;  %v3372_v10 = vmul.f32 %v13886_v16, %v3357_v12  ;;  %v13890_v2 = vadd.f32 %v4041_v0, %v13752_v34 }
 0x3c3   :  { %v13893_v35 = vadd.f32 %v5300_v39, %v13737_v53  ;;  %v5259_v54 = vmul.f32 %v16336_v58, %v13802_v29  ;;  %v2868_v17 = vrot.slane %v2867_v20, 1  ;;  %v1955_v48 = vadd.f32 %v1947_v49, %v1934_v46 }
 0x3c4   :  { %v5278_v24 = vmul.f32 %v13434_v63, %v13802_v29  ;;  %v1968_v6 = vmul.f32 %v13531_v52, %v1913_v55  ;;  %v2875_v45 = vrot.slane %v2874_v50, 1  ;;  %v2666_v5 = vadd.f32 %v2658_v18, %v2645_v26  ;;  %v13910_v29 = vld [vmem:[%s15253_s3] ss:$0 sm:$0xff] }
 0x3c5   :  { %v13901_v12 = vadd.f32 %v5259_v54, %v13755_v8  ;;  %v3351_v34 = vmul.f32 %v13819_v37, %v3293_v9  ;;  %v2882_v53 = vrot.slane %v2881_v41, 1  ;;  %v2024_v32 = vsel %vm69_vm6, %v2012_v40, -inf  ;;  %v2605_v9 = vpop.permute.xlu1 %2604 }
 0x3c6   :  { %v13905_v25 = vadd.f32 %v5278_v24, %v5265_v56  ;;  %v1976_v58 = vadd.f32 %v1968_v6, %v1955_v48  ;;  %v2888_v21 = vmax.f32 %v2886_v42, %v2887_v23  ;;  %v3387_v55 = vadd.f32 %v13910_v29, %v3372_v10  ;;  %v4661_v23 = vpop.permute.xlu0 %4660 }
 0x3c7   :  { %v2639_v8 = vmul.f32 %v13399_v15, %v13776_v31  ;;  %v3359_v46 = vadd.f32 %v3351_v34, %v13788_v38  ;;  %v2869_v26 = vmax.f32 %v2867_v20, %v2868_v17  ;;  %v4691_v43 = vmul.f32 %v13578_v13, %v4653_v62 }
 0x3c8   :  { %v1991_v49 = vmul.f32 %v13571_v44, %v1976_v58  ;;  %v4588_v42 = vmul.f32 %v13434_v63, %v4546_v27  ;;  %v2876_v0 = vmax.f32 %v2874_v50, %v2875_v45  ;;  %v2681_v40 = vmul.f32 %v13571_v44, %v2666_v5 }
 0x3c9   :  { %v3374_v18 = vmul.f32 %v13886_v16, %v3359_v46  ;;  %v4607_v39 = vmul.f32 %v13333_v61, %v4546_v27  ;;  %v2883_v3 = vmax.f32 %v2881_v41, %v2882_v53  ;;  %v4699_v31 = vadd.f32 %v4691_v43, %v13700_v47  ;;  %v13937_v17 = vpop.permute.xlu1 %3972  ;;  %v16348_v46 = vld [vmem:[#allocation28_spill] sm:$0xff] }
 0x3ca   :  { %v2006_v15 = vadd.f32 %v13643_v57, %v1991_v49  ;;  %v13925_v38 = vadd.f32 %v4588_v42, %v13835_v22  ;;  %v2889_v20 = vrot.slane %v2888_v21, 1  ;;  %v3395_v62 = vmax.f32 %v3387_v55, 0.0  ;;  %v3965_v49 = vpop.permute.xlu0 %3964 }
 0x3cb   :  { %v3389_v63 = vadd.f32 %v13910_v29, %v3374_v18  ;;  %v13929_v50 = vadd.f32 %v4607_v39, %v13841_v14  ;;  %v2660_v10 = vmul.f32 %v13531_v52, %v2605_v9  ;;  %v4693_v61 = vmul.f32 %v13578_v13, %v4661_v23 }
 0x3cc   :  { %v2014_v56 = vmax.f32 %v2006_v15, 0.0  ;;  %v4712_v41 = vmul.f32 %v13612_v1, %v4661_v23  ;;  %v2942_v54 = vsel %vm852_vm9, %v2876_v0, %v2869_v26  ;;  %v2647_v47 = vadd.f32 %v2639_v8, %v13857_v36 }
 0x3cd   :  { %v2696_v22 = vadd.f32 %v13643_v57, %v2681_v40  ;;  %v3397_v27 = vmax.f32 %v3389_v63, 0.0  ;;  %v3308_v14 = vmul.f32 %v13578_v13, %v13807_v7  ;;  %v13943_v52 = vadd.f32 %v4693_v61, %v13832_v19 }
 0x3ce   :  { %v2025_v48 = vsel %vm69_vm6, %v2014_v56, -inf  ;;  %v13945_v24 = vadd.f32 %v4712_v41, %v4699_v31  ;;  %v3405_v6 = vsel %vm69_vm6, %v3395_v62, -inf  ;;  %v13949_v5 = vmax.f32 %v2888_v21, %v2889_v20 }
 0x3cf   :  { %v2026_v45 = vmax.f32 %v2024_v32, %v2025_v48  ;;  %v3406_v36 = vsel %vm69_vm6, %v3397_v27, -inf  ;;  %v13952_v34 = vsel %vm854_vm10, %v2883_v3, %v2942_v54  ;;  %v2668_v58 = vadd.f32 %v2660_v10, %v2647_v47 }
 0x3d0   :  { %v3407_v53 = vmax.f32 %v3405_v6, %v3406_v36  ;;  %v2704_v7 = vmax.f32 %v2696_v22, 0.0  ;;  %v13957_v19 = vsel %vm856_vm11, %v13849_v60, %v13863_v28  ;;  %v4064_v32 = vmul.f32 %v13886_v16, %v13890_v2  ;;  %v13970_v28 = vpop.permute.xlu1 %5237 }
 0x3d1   :  { %v2082_v55 = vcombine.high %v2026_v45, %v2026_v45  ;;  %v2089_v8 = vrot.slane %v2026_v45, %v16323_v59  ;;  %v3316_v21 = vadd.f32 %v3308_v14, %v16348_v46  ;;  %v13968_v60 = vmul.f32 %v13578_v13, %v13854_v4  ;;  %v3985_v14 = vpop.permute.xlu0 %3984 }
 0x3d2   :  { %v3449_v9 = vcombine.high %v3407_v53, %v3407_v53  ;;  %v3456_v26 = vrot.slane %v3407_v53, %v16323_v59  ;;  %v2683_v39 = vmul.f32 %v13571_v44, %v2668_v58  ;;  %v2716_v20 = vsel %vm69_vm6, %v2704_v7, -inf }
 0x3d3   :  { %v2096_v43 = vrot.slane %v2082_v55, %v16323_v59  ;;  %v2097_v42 = vcombine.high %v2089_v8, %v2089_v8  ;;  %v2199_v0 = vsel %vm71_vm7, %v2089_v8, -inf  ;;  %v4079_v10 = vadd.f32 %v13910_v29, %v4064_v32 }
 0x3d4   :  { %v2200_v40 = vrot.slane %v2199_v0, 4  ;;  %v3464_v18 = vcombine.high %v3456_v26, %v3456_v26  ;;  %v3555_v2 = vsel %vm71_vm7, %v3456_v26, -inf  ;;  %v3463_v31 = vrot.slane %v3449_v9, %v16323_v59  ;;  %v13983_v53 = vpop.permute.xlu1 %5352 }
 0x3d5   :  { %v2098_v23 = vcombine.high %v2096_v43, %v2096_v43  ;;  %v2206_v3 = vsel %vm71_vm7, %v2097_v42, -inf  ;;  %v2213_v15 = vsel %vm71_vm7, %v2096_v43, -inf  ;;  %v3556_v41 = vrot.slane %v3555_v2, 4 }
 0x3d6   :  { %v2201_v62 = vmax.f32 %v2199_v0, %v2200_v40  ;;  %v2207_v63 = vrot.slane %v2206_v3, 4  ;;  %v2214_v56 = vrot.slane %v2213_v15, 4  ;;  %v3562_v54 = vsel %vm71_vm7, %v3464_v18, -inf }
 0x3d7   :  { %v2220_v61 = vsel %vm71_vm7, %v2098_v23, -inf  ;;  %v3465_v48 = vcombine.high %v3463_v31, %v3463_v31  ;;  %v3563_v6 = vrot.slane %v3562_v54, 4  ;;  %v3569_v45 = vsel %vm71_vm7, %v3463_v31, -inf }
 0x3d8   :  { %v2202_v44 = vrot.slane %v2201_v62, 2  ;;  %v2208_v47 = vmax.f32 %v2206_v3, %v2207_v63  ;;  %v2215_v22 = vmax.f32 %v2213_v15, %v2214_v56  ;;  %v2221_v27 = vrot.slane %v2220_v61, 4  ;;  %v13989_v63 = vpop.permute.xlu0 %5344 }
 0x3d9   :  { %v2698_v36 = vadd.f32 %v13643_v57, %v2683_v39  ;;  %v4087_v32 = vmax.f32 %v4079_v10, 0.0  ;;  %v3557_v46 = vmax.f32 %v3555_v2, %v3556_v41  ;;  %v3329_v9 = vmul.f32 %v13612_v1, %v13854_v4 }
 0x3da   :  { %v2203_v58 = vmax.f32 %v2201_v62, %v2202_v44  ;;  %v2209_v7 = vrot.slane %v2208_v47, 2  ;;  %v2216_v55 = vrot.slane %v2215_v22, 2  ;;  %v2222_v8 = vmax.f32 %v2220_v61, %v2221_v27  ;;  %v13997_v61 = vpop.permute.xlu1 %4553 }
 0x3db   :  { %v4043_v26 = vmul.f32 %v13819_v37, %v3985_v14  ;;  %v3564_v18 = vmax.f32 %v3562_v54, %v3563_v6  ;;  %v3570_v23 = vrot.slane %v3569_v45, 4  ;;  %v3576_v57 = vsel %vm71_vm7, %v3465_v48, -inf }
 0x3dc   :  { %v2204_v43 = vrot.slane %v2203_v58, 1  ;;  %v2210_v42 = vmax.f32 %v2208_v47, %v2209_v7  ;;  %v2217_v0 = vmax.f32 %v2215_v22, %v2216_v55  ;;  %v2223_v40 = vrot.slane %v2222_v8, 2 }
 0x3dd   :  { %v2706_v39 = vmax.f32 %v2698_v36, 0.0  ;;  %v13992_v2 = vsel %vm69_vm6, %v4087_v32, -inf  ;;  %v3558_v4 = vrot.slane %v3557_v46, 2  ;;  %v13994_v56 = vadd.f32 %v3329_v9, %v3316_v21 }
 0x3de   :  { %v2205_v3 = vmax.f32 %v2203_v58, %v2204_v43  ;;  %v2211_v15 = vrot.slane %v2210_v42, 1  ;;  %v2218_v31 = vrot.slane %v2217_v0, 1  ;;  %v2224_v62 = vmax.f32 %v2222_v8, %v2223_v40 }
 0x3df   :  { %v4000_v10 = vmul.f32 %v13578_v13, %v3965_v49  ;;  %v3565_v22 = vrot.slane %v3564_v18, 2  ;;  %v3571_v27 = vmax.f32 %v3569_v45, %v3570_v23  ;;  %v3577_v14 = vrot.slane %v3576_v57, 4  ;;  %v9678_v23 = vld [vmem:[%s15251_s1 + $0x5] ss:$0 sm:$0xff] }
 0x3e0   :  { %v2212_v41 = vmax.f32 %v2210_v42, %v2211_v15  ;;  %v2219_v54 = vmax.f32 %v2217_v0, %v2218_v31  ;;  %v2225_v44 = vrot.slane %v2224_v62, 1  ;;  %v2253_v47 = vsel %vm858_vm12, %v2205_v3, %v13957_v19 }
 0x3e1   :  { %v2717_v48 = vsel %vm69_vm6, %v2706_v39, -inf  ;;  %v4051_v58 = vadd.f32 %v4043_v26, %v13881_v11  ;;  %v3559_v7 = vmax.f32 %v3557_v46, %v3558_v4  ;;  %v14008_v55 = vsel %vm856_vm11, %v13949_v5, %v13952_v34  ;;  %v14017_v11 = vpop.permute.xlu0 %3288 }
 0x3e2   :  { %v2226_v6 = vmax.f32 %v2224_v62, %v2225_v44  ;;  %v2254_v36 = vsel %vm860_vm13, %v2212_v41, %v2253_v47  ;;  %v2718_v21 = vmax.f32 %v2716_v20, %v2717_v48  ;;  %v14012_v19 = vmul.f32 %v13578_v13, %v13937_v17  ;;  %v14023_v13 = vpop.permute.xlu1 %3980 }
 0x3e3   :  { %v2255_v49 = vsel %vm862_vm14, %v2219_v54, %v2254_v36  ;;  %v4066_v20 = vmul.f32 %v13886_v16, %v4051_v58  ;;  %v3572_v46 = vrot.slane %v3571_v27, 2  ;;  %v3578_v9 = vmax.f32 %v3576_v57, %v3577_v14 }
 0x3e4   :  { %v2256_v45 = vsel %vm864_vm15, %v2226_v6, %v2255_v49  ;;  %v2774_v8 = vcombine.high %v2718_v21, %v2718_v21  ;;  %v2781_v32 = vrot.slane %v2718_v21, %v16323_v59  ;;  %v4021_v5 = vmul.f32 %v13612_v1, %v13937_v17  ;;  %v14036_v1 = vld [vmem:[%s15251_s1 + $0x9] ss:$0 sm:$0xff] }
 0x3e5   :  { %2261 = vst.msk [vmem:[#allocation3 + $0xd1] sm:$0xff] %vm69_vm6, %v2256_v45  ;;  %v4008_v34 = vadd.f32 %v4000_v10, %v13722_v33  ;;  %v3566_v26 = vmax.f32 %v3564_v18, %v3565_v22  ;;  %v14031_v57 = vmul.f32 %v9678_v23, %v13970_v28  ;;  %v14040_v33 = vmul.f32 %v14036_v1, %v13970_v28  ;;  %v14048_v28 = vpop.permute.xlu0 %4668 }
 0x3e6   :  { %v2788_v43 = vrot.slane %v2774_v8, %v16323_v59  ;;  %v2789_v42 = vcombine.high %v2781_v32, %v2781_v32  ;;  %v2891_v0 = vsel %vm71_vm7, %v2781_v32, -inf  ;;  %v4081_v17 = vadd.f32 %v13910_v29, %v4066_v20  ;;  %v14050_v36 = vpop.permute.xlu1 %5360 }
 0x3e7   :  { %v2892_v40 = vrot.slane %v2891_v0, 4  ;;  %v3560_v18 = vrot.slane %v3559_v7, 1  ;;  %v3567_v41 = vrot.slane %v3566_v26, 1  ;;  %v14045_v54 = vmax.f32 %v3571_v27, %v3572_v46 }
 0x3e8   :  { %v2790_v39 = vcombine.high %v2788_v43, %v2788_v43  ;;  %v2898_v3 = vsel %vm71_vm7, %v2789_v42, -inf  ;;  %v2905_v15 = vsel %vm71_vm7, %v2788_v43, -inf  ;;  %v4089_v10 = vmax.f32 %v4081_v17, 0.0 }
 0x3e9   :  { %v2893_v31 = vmax.f32 %v2891_v0, %v2892_v40  ;;  %v2899_v62 = vrot.slane %v2898_v3, 4  ;;  %v2906_v4 = vrot.slane %v2905_v15, 4  ;;  %v3579_v44 = vrot.slane %v3578_v9, 2 }
 0x3ea   :  { %v2912_v47 = vsel %vm71_vm7, %v2790_v39, -inf  ;;  %v14052_v21 = vmax.f32 %v3559_v7, %v3560_v18  ;;  %v14054_v58 = vadd.f32 %v4021_v5, %v4008_v34  ;;  %v4098_v49 = vsel %vm69_vm6, %v4089_v10, -inf  ;;  %v14080_v10 = vpop.permute.xlu1 %4656 }
 0x3eb   :  { %v2894_v22 = vrot.slane %v2893_v31, 2  ;;  %v2900_v14 = vmax.f32 %v2898_v3, %v2899_v62  ;;  %v2907_v48 = vmax.f32 %v2905_v15, %v2906_v4  ;;  %v2913_v6 = vrot.slane %v2912_v47, 4  ;;  %v14073_v3 = vld [vmem:[%s15251_s1 + $0x2] ss:$0 sm:$0xff] }
 0x3ec   :  { %v3350_v27 = vmul.f32 %v13819_v37, %v14017_v11  ;;  %v14059_v45 = vld [vmem:[#allocation3 + $0xd0] sm:$0xff]  ;;  %v3568_v7 = vmax.f32 %v3566_v26, %v3567_v41  ;;  %v3574_v5 = vrot.slane %v14045_v54, 1  ;;  %v3580_v34 = vmax.f32 %v3578_v9, %v3579_v44  ;;  %v14078_v9 = vpop.permute.xlu0 %5245 }
 0x3ed   :  { %v14061_v8 = vld [vmem:[#allocation3 + $0xd1] sm:$0xff]  ;;  %v2895_v32 = vmax.f32 %v2893_v31, %v2894_v22  ;;  %v2901_v20 = vrot.slane %v2900_v14, 2  ;;  %v2908_v46 = vrot.slane %v2907_v48, 2  ;;  %v2914_v43 = vmax.f32 %v2912_v47, %v2913_v6  ;;  %9162 = vmatprep.mubr.msk.f32.mxu1 %vm69_vm6, %v14059_v45 }
 0x3ee   :  { %9274 = vmatprep.mubr.msk.f32.mxu0 %vm69_vm6, %v14061_v8  ;;  %v4099_v42 = vmax.f32 %v13992_v2, %v4098_v49  ;;  %v5383_v26 = vmul.f32 %v14073_v3, %v13989_v63  ;;  %v3358_v15 = vadd.f32 %v3350_v27, %v13994_v56  ;;  %v4042_v22 = vmul.f32 %v13819_v37, %v14023_v13 }
 0x3ef   :  { %v2896_v0 = vrot.slane %v2895_v32, 1  ;;  %v2902_v40 = vmax.f32 %v2900_v14, %v2901_v20  ;;  %v2909_v23 = vmax.f32 %v2907_v48, %v2908_v46  ;;  %v2915_v17 = vrot.slane %v2914_v43, 2 }
 0x3f0   :  { %v4141_v18 = vcombine.high %v4099_v42, %v4099_v42  ;;  %v4148_v39 = vrot.slane %v4099_v42, %v16323_v59 }
 0x3f1   :  { %v2897_v2 = vmax.f32 %v2895_v32, %v2896_v0  ;;  %v2903_v31 = vrot.slane %v2902_v40, 1  ;;  %v2910_v62 = vrot.slane %v2909_v23, 1  ;;  %v2916_v4 = vmax.f32 %v2914_v43, %v2915_v17 }
 0x3f2   :  { %v4155_v41 = vrot.slane %v4141_v18, %v16323_v59  ;;  %v4156_v44 = vcombine.high %v4148_v39, %v4148_v39  ;;  %v4247_v47 = vsel %vm71_vm7, %v4148_v39, -inf  ;;  %v3297_v18 = vpop.permute.xlu0 %3296 }
 0x3f3   :  { %v2904_v14 = vmax.f32 %v2902_v40, %v2903_v31  ;;  %v2911_v63 = vmax.f32 %v2909_v23, %v2910_v62  ;;  %v2917_v48 = vrot.slane %v2916_v4, 1  ;;  %v2945_v56 = vsel %vm858_vm12, %v2897_v2, %v14008_v55  ;;  %v4677_v62 = vpop.permute.xlu1 %4676 }
 0x3f4   :  { %v4157_v6 = vcombine.high %v4155_v41, %v4155_v41  ;;  %v4248_v49 = vrot.slane %v4247_v47, 4  ;;  %v4254_v27 = vsel %vm71_vm7, %v4156_v44, -inf  ;;  %v4261_v32 = vsel %vm71_vm7, %v4155_v41, -inf }
 0x3f5   :  { %v2918_v20 = vmax.f32 %v2916_v4, %v2917_v48  ;;  %v2946_v46 = vsel %vm860_vm13, %v2904_v14, %v2945_v56  ;;  %v4255_v43 = vrot.slane %v4254_v27, 4  ;;  %v4262_v42 = vrot.slane %v4261_v32, 4 }
 0x3f6   :  { %v2947_v0 = vsel %vm862_vm14, %v2911_v63, %v2946_v46  ;;  %v4249_v17 = vmax.f32 %v4247_v47, %v4248_v49  ;;  %v4268_v40 = vsel %vm71_vm7, %v4157_v6, -inf  ;;  %v3373_v23 = vmul.f32 %v13886_v16, %v3358_v15  ;;  %v14144_v6 = vld [vmem:[%s15251_s1 + $0x6] ss:$0 sm:$0xff] }
 0x3f7   :  { %v3581_v55 = vrot.slane %v3580_v34, 1  ;;  %v2948_v39 = vsel %vm864_vm15, %v2918_v20, %v2947_v0  ;;  %v4256_v2 = vmax.f32 %v4254_v27, %v4255_v43  ;;  %v4269_v31 = vrot.slane %v4268_v40, 4 }
 0x3f8   :  { %v3575_v4 = vmax.f32 %v14045_v54, %v3574_v5  ;;  %v3318_v41 = vadd.f32 %v13968_v60, %v13766_v30  ;;  %2953 = vst.msk [vmem:[#allocation3 + $0xe1] sm:$0xff] %vm69_vm6, %v2948_v39  ;;  %v4010_v44 = vadd.f32 %v14012_v19, %v13860_v51  ;;  %v4263_v47 = vmax.f32 %v4261_v32, %v4262_v42  ;;  %v16349_v5 = vld [vmem:[#allocation20_spill] sm:$0xff]  ;;  %v14150_v32 = vpop.permute.xlu1 %5348 }
 0x3f9   :  { %v3634_v15 = vsel %vm852_vm9, %v3568_v7, %v14052_v21  ;;  %v14105_v14 = vadd.f32 %v14031_v57, %v13901_v12  ;;  %v4050_v63 = vadd.f32 %v4042_v22, %v14054_v58  ;;  %v4733_v54 = vmul.f32 %v13819_v37, %v14048_v28  ;;  %v14137_v22 = vpop.permute.xlu0 %4664 }
 0x3fa   :  { %v14112_v30 = vadd.f32 %v14040_v33, %v13905_v25  ;;  %v4250_v60 = vrot.slane %v4249_v17, 2  ;;  %v5391_v51 = vadd.f32 %v5383_v26, %v16349_v5  ;;  %v3388_v19 = vadd.f32 %v13910_v29, %v3373_v23  ;;  %v14126_v25 = vld [vmem:[%s15251_s1 + $0x6] ss:$0 sm:$0xff] }
 0x3fb   :  { %v14116_v48 = vmax.f32 %v3580_v34, %v3581_v55  ;;  %v4257_v21 = vrot.slane %v4256_v2, 2  ;;  %v4270_v7 = vmax.f32 %v4268_v40, %v4269_v31  ;;  %v5385_v12 = vmul.f32 %v14073_v3, %v13983_v53  ;;  %v14133_v34 = vld [vmem:[%s15251_s1 + $0xa] ss:$0 sm:$0xff] }
 0x3fc   :  { %v14121_v57 = vsel %vm854_vm10, %v3575_v4, %v3634_v15  ;;  %v4264_v58 = vrot.slane %v4263_v47, 2  ;;  %v5404_v33 = vmul.f32 %v14126_v25, %v13983_v53  ;;  %v5425_v26 = vmul.f32 %v14133_v34, %v14050_v36 }
 0x3fd   :  { %v4609_v56 = vmul.f32 %v14036_v1, %v13997_v61  ;;  %v3331_v53 = vmul.f32 %v14144_v6, %v14017_v11  ;;  %v4065_v49 = vmul.f32 %v13886_v16, %v4050_v63  ;;  %v4741_v27 = vadd.f32 %v4733_v54, %v13945_v24  ;;  %v3989_v15 = vpop.permute.xlu0 %3988 }
 0x3fe   :  { %v4251_v20 = vmax.f32 %v4249_v17, %v4250_v60  ;;  %v5412_v46 = vadd.f32 %v5404_v33, %v5391_v51  ;;  %v3396_v43 = vmax.f32 %v3388_v19, 0.0  ;;  %v4023_v61 = vmul.f32 %v14144_v6, %v14023_v13  ;;  %v14179_v19 = vld [vmem:[%s15252_s2] ss:$0 sm:$0xff] }
 0x3ff   :  { %v4258_v42 = vmax.f32 %v4256_v2, %v4257_v21  ;;  %v4271_v0 = vrot.slane %v4270_v7, 2  ;;  %v5393_v40 = vadd.f32 %v5385_v12, %v13893_v35  ;;  %v4714_v23 = vmul.f32 %v14144_v6, %v14048_v28  ;;  %v14157_v11 = vld [vmem:[#allocation3 + $0xe0] sm:$0xff] }
 0x400   :  { %v14159_v55 = vld [vmem:[#allocation3 + $0xe1] sm:$0xff]  ;;  %v4265_v24 = vmax.f32 %v4263_v47, %v4264_v58  ;;  %v5406_v17 = vmul.f32 %v14126_v25, %v14050_v36  ;;  %v5433_v39 = vadd.f32 %v5425_v26, %v5412_v46  ;;  %9163 = vmatmul.mubr.msk.f32.gmra.mrb[10].mxu1 %vm69_vm6, %v14157_v11  ;;  %v14168_v35 = vadd.f32 %v4609_v56, %v13925_v38  ;;  %v5369_v38 = vpop.permute.xlu1 %5368 }
 0x401   :  { %9275 = vmatmul.mubr.msk.f32.gmra.mrb[10].mxu0 %vm69_vm6, %v14159_v55  ;;  %v3339_v13 = vadd.f32 %v3331_v53, %v3318_v41  ;;  %v4080_v28 = vadd.f32 %v13910_v29, %v4065_v49  ;;  %v4756_v2 = vmul.f32 %v13886_v16, %v4741_v27  ;;  %v4252_v31 = vrot.slane %v4251_v20, 1 }
 0x402   :  { %v3408_v4 = vsel %vm69_vm6, %v3396_v43, -inf  ;;  %v4031_v47 = vadd.f32 %v4023_v61, %v4010_v44  ;;  %v3352_v36 = vmul.f32 %v13819_v37, %v3297_v18  ;;  %v4259_v63 = vrot.slane %v4258_v42, 1  ;;  %v14192_v43 = vld [vmem:[%s15253_s3] ss:$0 sm:$0xff] }
 0x403   :  { %v4272_v54 = vmax.f32 %v4270_v7, %v4271_v0  ;;  %v4722_v60 = vadd.f32 %v4714_v23, %v13943_v52  ;;  %v4735_v5 = vmul.f32 %v13819_v37, %v4677_v62  ;;  %v4266_v51 = vrot.slane %v4265_v24, 1 }
 0x404   :  { %v5414_v41 = vadd.f32 %v5406_v17, %v5393_v40  ;;  %v5448_v21 = vmul.f32 %v14179_v19, %v5433_v39  ;;  %v3360_v44 = vadd.f32 %v3352_v36, %v3339_v13  ;;  %v4088_v12 = vmax.f32 %v4080_v28, 0.0 }
 0x405   :  { %v4771_v18 = vadd.f32 %v13910_v29, %v4756_v2  ;;  %v4743_v58 = vadd.f32 %v4735_v5, %v4722_v60  ;;  %v4044_v7 = vmul.f32 %v13819_v37, %v3989_v15  ;;  %v4253_v52 = vmax.f32 %v4251_v20, %v4252_v31 }
 0x406   :  { %v5301_v62 = vmul.f32 %v14036_v1, %v14078_v9  ;;  %v3375_v33 = vmul.f32 %v13886_v16, %v3360_v44  ;;  %v5427_v26 = vmul.f32 %v14133_v34, %v5369_v38  ;;  %v4260_v56 = vmax.f32 %v4258_v42, %v4259_v63 }
 0x407   :  { %v4273_v53 = vrot.slane %v4272_v54, 1  ;;  %v4758_v49 = vmul.f32 %v13886_v16, %v4743_v58  ;;  %v4052_v27 = vadd.f32 %v4044_v7, %v4031_v47  ;;  %v4267_v46 = vmax.f32 %v4265_v24, %v4266_v51  ;;  %v9686_v24 = vld [vmem:[%s15251_s1 + $0x2] ss:$0 sm:$0xff] }
 0x408   :  { %v5463_v20 = vadd.f32 %v14192_v43, %v5448_v21  ;;  %v3390_v61 = vadd.f32 %v13910_v29, %v3375_v33  ;;  %v5435_v1 = vadd.f32 %v5427_v26, %v5414_v41  ;;  %v4100_v9 = vsel %vm69_vm6, %v4088_v12, -inf }
 0x409   :  { %v4779_v0 = vmax.f32 %v4771_v18, 0.0  ;;  %v4773_v42 = vadd.f32 %v13910_v29, %v4758_v49  ;;  %v4067_v40 = vmul.f32 %v13886_v16, %v4052_v27  ;;  %v14200_v23 = vadd.f32 %v5301_v62, %v14105_v14 }
 0x40a   :  { %v4692_v17 = vmul.f32 %v9686_v24, %v14080_v10  ;;  %v3398_v39 = vmax.f32 %v3390_v61, 0.0  ;;  %v5450_v13 = vmul.f32 %v14179_v19, %v5435_v1  ;;  %v4274_v28 = vmax.f32 %v4272_v54, %v4273_v53 }
 0x40b   :  { %v4326_v2 = vsel %vm852_vm9, %v4260_v56, %v4253_v52  ;;  %v4781_v31 = vmax.f32 %v4773_v42, 0.0  ;;  %v4082_v47 = vadd.f32 %v13910_v29, %v4067_v40  ;;  %v5471_v36 = vmax.f32 %v5463_v20, 0.0  ;;  %v5357_v52 = vpop.permute.xlu0 %5356  ;;  %v5365_v40 = vpop.permute.xlu1 %5364 }
 0x40c   :  { %v14212_v14 = vsel %vm856_vm11, %v14116_v48, %v14121_v57  ;;  %v3409_v15 = vsel %vm69_vm6, %v3398_v39, -inf  ;;  %v5465_v63 = vadd.f32 %v14192_v43, %v5450_v13  ;;  %v4789_v10 = vsel %vm69_vm6, %v4779_v0, -inf }
 0x40d   :  { %v3410_v60 = vmax.f32 %v3408_v4, %v3409_v15  ;;  %v4790_v54 = vsel %vm69_vm6, %v4781_v31, -inf  ;;  %v4090_v5 = vmax.f32 %v4082_v47, 0.0  ;;  %v4327_v38 = vsel %vm854_vm10, %v4267_v46, %v4326_v2 }
 0x40e   :  { %v4791_v51 = vmax.f32 %v4789_v10, %v4790_v54  ;;  %v4694_v41 = vmul.f32 %v9686_v24, %v14137_v22  ;;  %v5473_v21 = vmax.f32 %v5465_v63, 0.0  ;;  %v4713_v57 = vmul.f32 %v14144_v6, %v14137_v22 }
 0x40f   :  { %v3466_v44 = vcombine.high %v3410_v60, %v3410_v60  ;;  %v3473_v48 = vrot.slane %v3410_v60, %v16323_v59  ;;  %v4101_v12 = vsel %vm69_vm6, %v4090_v5, -inf  ;;  %v5481_v18 = vsel %vm69_vm6, %v5471_v36, -inf  ;;  %v4673_v31 = vpop.permute.xlu0 %4672 }
 0x410   :  { %v5384_v4 = vmul.f32 %v14073_v3, %v14150_v32  ;;  %v14227_v58 = vmax.f32 %v4100_v9, %v4101_v12  ;;  %v5482_v7 = vsel %vm69_vm6, %v5473_v21, -inf  ;;  %v4700_v22 = vadd.f32 %v4692_v17, %v13929_v50 }
 0x411   :  { %v3480_v62 = vrot.slane %v3466_v44, %v16323_v59  ;;  %v3481_v33 = vcombine.high %v3473_v48, %v3473_v48  ;;  %v3583_v26 = vsel %vm71_vm7, %v3473_v48, -inf  ;;  %v14232_v56 = vmax.f32 %v5481_v18, %v5482_v7 }
 0x412   :  { %v3584_v53 = vrot.slane %v3583_v26, 4  ;;  %v14236_v49 = vadd.f32 %v4694_v41, %v14168_v35  ;;  %v14239_v32 = vsel %vm856_vm11, %v4274_v28, %v4327_v38  ;;  %v4840_v61 = vrot.slane %v4791_v51, %v16323_v59 }
 0x413   :  { %v3482_v27 = vcombine.high %v3480_v62, %v3480_v62  ;;  %v3590_v46 = vsel %vm71_vm7, %v3481_v33, -inf  ;;  %v3597_v20 = vsel %vm71_vm7, %v3480_v62, -inf  ;;  %v4721_v42 = vadd.f32 %v4713_v57, %v4700_v22 }
 0x414   :  { %v3585_v1 = vmax.f32 %v3583_v26, %v3584_v53  ;;  %v3591_v9 = vrot.slane %v3590_v46, 4  ;;  %v3598_v0 = vrot.slane %v3597_v20, 4  ;;  %v4833_v24 = vcombine.high %v4791_v51, %v4791_v51 }
 0x415   :  { %v3604_v50 = vsel %vm71_vm7, %v3482_v27, -inf  ;;  %v5392_v35 = vadd.f32 %v5384_v4, %v14112_v30  ;;  %v5405_v17 = vmul.f32 %v14126_v25, %v5357_v52  ;;  %v4848_v47 = vcombine.high %v4840_v61, %v4840_v61 }
 0x416   :  { %v3586_v39 = vrot.slane %v3585_v1, 2  ;;  %v3592_v13 = vmax.f32 %v3590_v46, %v3591_v9  ;;  %v3599_v28 = vmax.f32 %v3597_v20, %v3598_v0  ;;  %v3605_v2 = vrot.slane %v3604_v50, 4  ;;  %v5373_v20 = vpop.permute.xlu1 %5372 }
 0x417   :  { %v5386_v36 = vmul.f32 %v14073_v3, %v5357_v52  ;;  %v5407_v15 = vmul.f32 %v14126_v25, %v5365_v40  ;;  %v5426_v63 = vmul.f32 %v14133_v34, %v5365_v40  ;;  %v4847_v30 = vrot.slane %v4833_v24, %v16323_v59 }
 0x418   :  { %v3587_v10 = vmax.f32 %v3585_v1, %v3586_v39  ;;  %v3593_v60 = vrot.slane %v3592_v13, 2  ;;  %v3600_v54 = vrot.slane %v3599_v28, 2  ;;  %v3606_v5 = vmax.f32 %v3604_v50, %v3605_v2 }
 0x419   :  { %v4939_v38 = vsel %vm71_vm7, %v4840_v61, -inf  ;;  %v5413_v51 = vadd.f32 %v5405_v17, %v5392_v35  ;;  %v4734_v41 = vmul.f32 %v13819_v37, %v4673_v31  ;;  %v4946_v3 = vsel %vm71_vm7, %v4848_v47, -inf }
 0x41a   :  { %v3588_v21 = vrot.slane %v3587_v10, 1  ;;  %v3594_v44 = vmax.f32 %v3592_v13, %v3593_v60  ;;  %v3601_v48 = vmax.f32 %v3599_v28, %v3600_v54  ;;  %v3607_v57 = vrot.slane %v3606_v5, 2 }
 0x41b   :  { %v5394_v25 = vadd.f32 %v5386_v36, %v14200_v23  ;;  %v5434_v12 = vadd.f32 %v5426_v63, %v5413_v51  ;;  %v14256_v18 = vmul.f32 %v14144_v6, %v4673_v31  ;;  %v4940_v33 = vrot.slane %v4939_v38, 4 }
 0x41c   :  { %v3589_v4 = vmax.f32 %v3587_v10, %v3588_v21  ;;  %v3595_v7 = vrot.slane %v3594_v44, 1  ;;  %v3602_v52 = vrot.slane %v3601_v48, 1  ;;  %v3608_v62 = vmax.f32 %v3606_v5, %v3607_v57 }
 0x41d   :  { %v4953_v26 = vsel %vm71_vm7, %v4847_v30, -inf  ;;  %v14259_v37 = vadd.f32 %v5407_v15, %v5394_v25  ;;  %v14261_v22 = vadd.f32 %v4734_v41, %v4721_v42  ;;  %v4849_v6 = vcombine.high %v4847_v30, %v4847_v30 }
 0x41e   :  { %v3596_v53 = vmax.f32 %v3594_v44, %v3595_v7  ;;  %v3603_v27 = vmax.f32 %v3601_v48, %v3602_v52  ;;  %v3609_v46 = vrot.slane %v3608_v62, 1  ;;  %v3637_v23 = vsel %vm858_vm12, %v3589_v4, %v14212_v14 }
 0x41f   :  { %v4947_v61 = vrot.slane %v4946_v3, 4  ;;  %v4158_v1 = vcombine.high %v14227_v58, %v14227_v58  ;;  %v14268_v9 = vmul.f32 %v14179_v19, %v5434_v12  ;;  %v4954_v42 = vrot.slane %v4953_v26, 4 }
 0x420   :  { %v3610_v0 = vmax.f32 %v3608_v62, %v3609_v46  ;;  %v3638_v40 = vsel %vm860_vm13, %v3596_v53, %v3637_v23  ;;  %v4165_v50 = vrot.slane %v14227_v58, %v16323_v59  ;;  %v14274_v35 = vmax.f32 %v4939_v38, %v4940_v33 }
 0x421   :  { %v3639_v24 = vsel %vm862_vm14, %v3603_v27, %v3638_v40  ;;  %v5525_v14 = vcombine.high %v14232_v56, %v14232_v56  ;;  %v14279_v17 = vmul.f32 %v14133_v34, %v5373_v20  ;;  %v4172_v13 = vrot.slane %v4158_v1, %v16323_v59 }
 0x422   :  { %v3640_v39 = vsel %vm864_vm15, %v3610_v0, %v3639_v24  ;;  %v4173_v28 = vcombine.high %v4165_v50, %v4165_v50  ;;  %v4275_v2 = vsel %vm71_vm7, %v4165_v50, -inf  ;;  %v4948_v58 = vmax.f32 %v4946_v3, %v4947_v61 }
 0x423   :  { %3645 = vst.msk [vmem:[#allocation3 + $0xf1] sm:$0xff] %vm69_vm6, %v3640_v39  ;;  %v4960_v31 = vsel %vm71_vm7, %v4849_v6, -inf  ;;  %v4276_v47 = vrot.slane %v4275_v2, 4  ;;  %v5532_v36 = vrot.slane %v14232_v56, %v16323_v59  ;;  %v14288_v15 = vmax.f32 %v4953_v26, %v4954_v42 }
 0x424   :  { %v4174_v34 = vcombine.high %v4172_v13, %v4172_v13  ;;  %v4282_v63 = vsel %vm71_vm7, %v4173_v28, -inf  ;;  %v4289_v10 = vsel %vm71_vm7, %v4172_v13, -inf  ;;  %v5539_v30 = vrot.slane %v5525_v14, %v16323_v59 }
 0x425   :  { %v4277_v60 = vmax.f32 %v4275_v2, %v4276_v47  ;;  %v4283_v54 = vrot.slane %v4282_v63, 4  ;;  %v4290_v5 = vrot.slane %v4289_v10, 4  ;;  %v4961_v38 = vrot.slane %v4960_v31, 4 }
 0x426   :  { %v4296_v51 = vsel %vm71_vm7, %v4174_v34, -inf  ;;  %v5540_v41 = vcombine.high %v5532_v36, %v5532_v36  ;;  %v5631_v21 = vsel %vm71_vm7, %v5532_v36, -inf  ;;  %v5541_v3 = vcombine.high %v5539_v30, %v5539_v30 }
 0x427   :  { %v4278_v44 = vrot.slane %v4277_v60, 2  ;;  %v4284_v56 = vmax.f32 %v4282_v63, %v4283_v54  ;;  %v4291_v48 = vmax.f32 %v4289_v10, %v4290_v5  ;;  %v4297_v57 = vrot.slane %v4296_v51, 4 }
 0x428   :  { %v5632_v25 = vrot.slane %v5631_v21, 4  ;;  %v5638_v12 = vsel %vm71_vm7, %v5540_v41, -inf  ;;  %v5645_v4 = vsel %vm71_vm7, %v5539_v30, -inf  ;;  %v4949_v26 = vrot.slane %v4948_v58, 2 }
 0x429   :  { %v4279_v7 = vmax.f32 %v4277_v60, %v4278_v44  ;;  %v4285_v52 = vrot.slane %v4284_v56, 2  ;;  %v4292_v62 = vrot.slane %v4291_v48, 2  ;;  %v4298_v33 = vmax.f32 %v4296_v51, %v4297_v57 }
 0x42a   :  { %v5639_v53 = vrot.slane %v5638_v12, 4  ;;  %v5646_v27 = vrot.slane %v5645_v4, 4  ;;  %v5652_v46 = vsel %vm71_vm7, %v5541_v3, -inf  ;;  %v14298_v23 = vld [vmem:[#allocation3 + $0xf0] sm:$0xff]  ;;  %v5633_v40 = vmax.f32 %v5631_v21, %v5632_v25  ;;  %v5743_v25 = vld [vmem:[%s15254_s4 + $0x8] sm:$0xff] }
 0x42b   :  { %v14300_v20 = vld [vmem:[#allocation3 + $0xf1] sm:$0xff]  ;;  %v4280_v6 = vrot.slane %v4279_v7, 1  ;;  %v4286_v61 = vmax.f32 %v4284_v56, %v4285_v52  ;;  %v4293_v1 = vmax.f32 %v4291_v48, %v4292_v62  ;;  %v4299_v0 = vrot.slane %v4298_v33, 2  ;;  %9165 = vmatprep.mubr.msk.f32.mxu1 %vm69_vm6, %v14298_v23 }
 0x42c   :  { %9277 = vmatprep.mubr.msk.f32.mxu0 %vm69_vm6, %v14300_v20  ;;  %v5640_v42 = vmax.f32 %v5638_v12, %v5639_v53  ;;  %v5647_v50 = vmax.f32 %v5645_v4, %v5646_v27  ;;  %v5653_v24 = vrot.slane %v5652_v46, 4  ;;  %v4942_v2 = vrot.slane %v14274_v35, 2  ;;  %v8859_v12 = vld [vmem:[%s15254_s4 + $0x20] sm:$0xff]  ;;  %v8860_v4 = vld [vmem:[%s15254_s4 + $0x28] sm:$0xff] }
 0x42d   :  { %v4281_v14 = vmax.f32 %v4279_v7, %v4280_v6  ;;  %v4287_v39 = vrot.slane %v4286_v61, 1  ;;  %v4294_v13 = vrot.slane %v4293_v1, 1  ;;  %v4300_v28 = vmax.f32 %v4298_v33, %v4299_v0  ;;  %v8787_v62 = vld [vmem:[%s15254_s4 + $0x60] sm:$0xff]  ;;  %v8788_v33 = vld [vmem:[%s15254_s4 + $0x68] sm:$0xff] }
 0x42e   :  { %v4956_v47 = vrot.slane %v14288_v15, 2  ;;  %v4962_v36 = vmax.f32 %v4960_v31, %v4961_v38  ;;  %v5641_v34 = vrot.slane %v5640_v42, 2  ;;  %v4950_v5 = vmax.f32 %v4948_v58, %v4949_v26  ;;  %v4681_v38 = vpop.permute.xlu0 %4680 }
 0x42f   :  { %v4288_v63 = vmax.f32 %v4286_v61, %v4287_v39  ;;  %v4295_v10 = vmax.f32 %v4293_v1, %v4294_v13  ;;  %v4301_v60 = vrot.slane %v4300_v28, 1  ;;  %v4329_v54 = vsel %vm858_vm12, %v4281_v14, %v14239_v32 }
 0x430   :  { %v5634_v30 = vrot.slane %v5633_v40, 2  ;;  %v5654_v51 = vmax.f32 %v5652_v46, %v5653_v24  ;;  %v4723_v41 = vadd.f32 %v14256_v18, %v14236_v49  ;;  %v5648_v56 = vrot.slane %v5647_v50, 2  ;;  %v8841_v49 = vld [vmem:[%s15254_s4 + $0x70] sm:$0xff]  ;;  %v8842_v18 = vld [vmem:[%s15254_s4 + $0x78] sm:$0xff] }
 0x431   :  { %v4302_v21 = vmax.f32 %v4300_v28, %v4301_v60  ;;  %v4330_v44 = vsel %vm860_vm13, %v4288_v63, %v4329_v54  ;;  %v4757_v31 = vmul.f32 %v13886_v16, %v14261_v22  ;;  %v14316_v48 = vmax.f32 %v14274_v35, %v4942_v2  ;;  %v5742_v16 = vld [vmem:[%s15254_s4] sm:$0xff] }
 0x432   :  { %v4331_v57 = vsel %vm862_vm14, %v4295_v10, %v4330_v44  ;;  %v5642_v32 = vmax.f32 %v5640_v42, %v5641_v34  ;;  %v5464_v58 = vadd.f32 %v14192_v43, %v14268_v9  ;;  %v4957_v22 = vmax.f32 %v14288_v15, %v4956_v47  ;;  %v9689_v34 = vld [vmem:[%s15253_s3] ss:$0 sm:$0xff] }
 0x433   :  { %v4963_v35 = vrot.slane %v4962_v36, 2  ;;  %v4332_v3 = vsel %vm864_vm15, %v4302_v21, %v4331_v57  ;;  %v5436_v9 = vadd.f32 %v14279_v17, %v14259_v37  ;;  %v4951_v7 = vrot.slane %v4950_v5, 1  ;;  %v9687_v37 = vld [vmem:[%s15251_s1 + $0xa] ss:$0 sm:$0xff] }
 0x434   :  { %4337 = vst.msk [vmem:[#allocation3 + $0x101] sm:$0xff] %vm69_vm6, %v4332_v3  ;;  %v5635_v15 = vmax.f32 %v5633_v40, %v5634_v30  ;;  %v5655_v52 = vrot.slane %v5654_v51, 2  ;;  %v4736_v17 = vmul.f32 %v9687_v37, %v4681_v38  ;;  %v5649_v26 = vmax.f32 %v5647_v50, %v5648_v56 }
 0x435   :  { %v4772_v53 = vadd.f32 %v13910_v29, %v4757_v31  ;;  %v5451_v27 = vmul.f32 %v14179_v19, %v5436_v9  ;;  %v9429_v46 = vpack.c.bf16 %v8842_v18, %v8841_v49  ;;  %v5643_v6 = vrot.slane %v5642_v32, 1  ;;  %v9688_v29 = vld [vmem:[%s15252_s2] ss:$0 sm:$0xff]  ;;  %s9746_s2 = smov [#allocation5]  }
 0x436   :  { %v4744_v61 = vadd.f32 %v4736_v17, %v4723_v41  ;;  %v9413_v1 = vpack.c.bf16 %v5743_v25, %v5742_v16  ;;  %v14355_v0 = vpack.c.bf16 %v8860_v4, %v8859_v12  ;;  %v4964_v40 = vmax.f32 %v4962_v36, %v4963_v35  ;;  %s8609_s3 = sshll.u32 %s9746_s2, 4  ;;  %s8610_s3 = int_to_ptr.vmem [resolvable:$true] %s8609_s3 }
 0x437   :  { %v5472_v42 = vmax.f32 %v5464_v58, 0.0  ;;  %v5466_v24 = vadd.f32 %v14192_v43, %v5451_v27  ;;  %9430 = vmatprep.subr.bf16.mxu0 %v9429_v46  ;;  %v14358_v14 = vpack.c.bf16 %v8788_v33, %v8787_v62  ;;  %v4944_v39 = vrot.slane %v14316_v48, 1  ;;  %s9718_s22 = scalar_lea.vmem %s8610_s3, 32  ;;  %p9723_p1 = scmp.lt.s32.totalorder %s8610_s3, %s8610_s3 }
 0x438   :  { %v5636_v50 = vrot.slane %v5635_v15, 1  ;;  %v5656_v13 = vmax.f32 %v5654_v51, %v5655_v52  ;;  %v4759_v19 = vmul.f32 %v9688_v29, %v4744_v61  ;;  %9432 = vmatpush3.bf16.msra.mxu0 %v9429_v46  ;;  %9414 = vmatprep.subr.bf16.mxu1 %v9413_v1  ;;  %v4958_v28 = vrot.slane %v4957_v22, 1  ;;  %p9719_p0 = scmp.ne.s32.totalorder %s8610_s3, %s9718_s22  ;;  %p9724_p2 = scmp.lt.s32.totalorder %s9718_s22, %s9718_s22 }
 0x439   :  { %v5650_v2 = vrot.slane %v5649_v26, 1  ;;  %v4780_v47 = vmax.f32 %v4772_v53, 0.0  ;;  %v5474_v36 = vmax.f32 %v5466_v24, 0.0  ;;  %9416 = vmatpush3.bf16.msra.mxu1 %v9413_v1  ;;  %9434 = vmatprep.subr.bf16.mxu0 %v14355_v0  ;;  %v5644_v43 = vmax.f32 %v5642_v32, %v5643_v6 }
 0x43a   :  { %v4774_v63 = vadd.f32 %v9689_v34, %v4759_v19  ;;  %9418 = vmatprep.subr.bf16.mxu1 %v14358_v14  ;;  %v4952_v10 = vmax.f32 %v4950_v5, %v4951_v7  ;;  %v4965_v60 = vrot.slane %v4964_v40, 1  ;;  %v5484_v54 = vsel %vm69_vm6, %v5472_v42, -inf  ;;  %p9725_p3 = por %p9724_p2, %p9723_p1 }
 0x43b   :  { %v5485_v30 = vsel %vm69_vm6, %v5474_v36, -inf  ;;  %v14371_v51 = vld [vmem:[#allocation3 + $0x100] sm:$0xff]  ;;  %v5637_v21 = vmax.f32 %v5635_v15, %v5636_v50  ;;  %v5657_v44 = vrot.slane %v5656_v13, 1  ;;  %v4945_v5 = vmax.f32 %v14316_v48, %v4944_v39 }
 0x43c   :  { %v14373_v41 = vld [vmem:[#allocation3 + $0x101] sm:$0xff]  ;;  %v5486_v56 = vmax.f32 %v5484_v54, %v5485_v30  ;;  %v4782_v31 = vmax.f32 %v4774_v63, 0.0  ;;  %9166 = vmatmul.mubr.msk.f32.gmra.mrb[12].mxu1 %vm69_vm6, %v14371_v51  ;;  %v4959_v38 = vmax.f32 %v4957_v22, %v4958_v28  ;;  %v5651_v57 = vmax.f32 %v5649_v26, %v5650_v2  ;;  %p9726_p4 = pnand %p9725_p3, %p9719_p0 }
 0x43d   :  { %9278 = vmatmul.mubr.msk.f32.gmra.mrb[12].mxu0 %vm69_vm6, %v14373_v41  ;;  %v4792_v32 = vsel %vm69_vm6, %v4780_v47, -inf  ;;  %v5710_v58 = vsel %vm852_vm9, %v5644_v43, %v5637_v21  ;;  %v14384_v35 = vmax.f32 %v4964_v40, %v4965_v60  ;;  %v5018_v3 = vsel %vm852_vm9, %v4952_v10, %v4945_v5 }
 0x43e   :  { %v5542_v49 = vcombine.high %v5486_v56, %v5486_v56  ;;  %v5549_v18 = vrot.slane %v5486_v56, %v16323_v59  ;;  %v4793_v16 = vsel %vm69_vm6, %v4782_v31, -inf  ;;  %v5658_v25 = vmax.f32 %v5656_v13, %v5657_v44 }
 0x43f   :  { %v4794_v9 = vmax.f32 %v4792_v32, %v4793_v16  ;;  %v5711_v4 = vsel %vm854_vm10, %v5651_v57, %v5710_v58  ;;  %v5019_v37 = vsel %vm854_vm10, %v4959_v38, %v5018_v3 }
 0x440   :  { %v5556_v12 = vrot.slane %v5542_v49, %v16323_v59  ;;  %v5557_v48 = vcombine.high %v5549_v18, %v5549_v18  ;;  %v5659_v22 = vsel %vm71_vm7, %v5549_v18, -inf  ;;  %v5712_v61 = vsel %vm856_vm11, %v5658_v25, %v5711_v4 }
 0x441   :  { %v5660_v7 = vrot.slane %v5659_v22, 4  ;;  %v4850_v15 = vcombine.high %v4794_v9, %v4794_v9  ;;  %v4857_v52 = vrot.slane %v4794_v9, %v16323_v59 }
 0x442   :  { %v5558_v17 = vcombine.high %v5556_v12, %v5556_v12  ;;  %v5666_v62 = vsel %vm71_vm7, %v5557_v48, -inf  ;;  %v5673_v33 = vsel %vm71_vm7, %v5556_v12, -inf }
 0x443   :  { %v5661_v26 = vmax.f32 %v5659_v22, %v5660_v7  ;;  %v5667_v53 = vrot.slane %v5666_v62, 4  ;;  %v5674_v27 = vrot.slane %v5673_v33, 4  ;;  %v4864_v46 = vrot.slane %v4850_v15, %v16323_v59 }
 0x444   :  { %v5680_v6 = vsel %vm71_vm7, %v5558_v17, -inf  ;;  %v4865_v1 = vcombine.high %v4857_v52, %v4857_v52  ;;  %v4967_v40 = vsel %vm71_vm7, %v4857_v52, -inf }
 0x445   :  { %v5662_v42 = vrot.slane %v5661_v26, 2  ;;  %v5668_v24 = vmax.f32 %v5666_v62, %v5667_v53  ;;  %v5675_v39 = vmax.f32 %v5673_v33, %v5674_v27  ;;  %v5681_v50 = vrot.slane %v5680_v6, 4 }
 0x446   :  { %v4866_v13 = vcombine.high %v4864_v46, %v4864_v46  ;;  %v4968_v29 = vrot.slane %v4967_v40, 4  ;;  %v4974_v19 = vsel %vm71_vm7, %v4865_v1, -inf  ;;  %v4981_v28 = vsel %vm71_vm7, %v4864_v46, -inf }
 0x447   :  { %v5663_v2 = vmax.f32 %v5661_v26, %v5662_v42  ;;  %v5669_v47 = vrot.slane %v5668_v24, 2  ;;  %v5676_v36 = vrot.slane %v5675_v39, 2  ;;  %v5682_v43 = vmax.f32 %v5680_v6, %v5681_v50 }
 0x448   :  { %v4969_v34 = vmax.f32 %v4967_v40, %v4968_v29  ;;  %v4975_v63 = vrot.slane %v4974_v19, 4  ;;  %v4982_v10 = vrot.slane %v4981_v28, 4  ;;  %v4988_v60 = vsel %vm71_vm7, %v4866_v13, -inf }
 0x449   :  { %v5664_v54 = vrot.slane %v5663_v2, 1  ;;  %v5670_v30 = vmax.f32 %v5668_v24, %v5669_v47  ;;  %v5677_v21 = vmax.f32 %v5675_v39, %v5676_v36  ;;  %v5683_v44 = vrot.slane %v5682_v43, 2  ;;  %v8877_v47 = vld [vmem:[%s15254_s4 + $0x50] sm:$0xff]  ;;  %v8878_v36 = vld [vmem:[%s15254_s4 + $0x58] sm:$0xff] }
 0x44a   :  { %v4970_v56 = vrot.slane %v4969_v34, 2  ;;  %v4976_v31 = vmax.f32 %v4974_v19, %v4975_v63  ;;  %v4983_v5 = vmax.f32 %v4981_v28, %v4982_v10  ;;  %v4989_v38 = vrot.slane %v4988_v60, 4  ;;  %v14441_v63 = vld [vmem:[#allocation3 + $0x21] sm:$0xff] }
 0x44b   :  { %v5665_v57 = vmax.f32 %v5663_v2, %v5664_v54  ;;  %v5671_v32 = vrot.slane %v5670_v30, 1  ;;  %v5678_v58 = vrot.slane %v5677_v21, 1  ;;  %v5684_v49 = vmax.f32 %v5682_v43, %v5683_v44  ;;  %v5722_v2 = vld [vmem:[#allocation3] sm:$0xff]  ;;  %v9691_v54 = vld [vmem:[#allocation3 + $0x10] sm:$0xff] }
 0x44c   :  { %v4971_v18 = vmax.f32 %v4969_v34, %v4970_v56  ;;  %v4977_v16 = vrot.slane %v4976_v31, 2  ;;  %v4984_v3 = vrot.slane %v4983_v5, 2  ;;  %v4990_v9 = vmax.f32 %v4988_v60, %v4989_v38  ;;  %v8805_v43 = vld [vmem:[%s15254_s4 + $0x10] sm:$0xff]  ;;  %v8806_v34 = vld [vmem:[%s15254_s4 + $0x18] sm:$0xff]  ;;  %v9695_v56 = vld [vmem:[#allocation3 + $0x30] sm:$0xff] }
 0x44d   :  { %v5672_v25 = vmax.f32 %v5670_v30, %v5671_v32  ;;  %v5679_v12 = vmax.f32 %v5677_v21, %v5678_v58  ;;  %v5685_v48 = vrot.slane %v5684_v49, 1  ;;  %v5713_v22 = vsel %vm858_vm12, %v5665_v57, %v5712_v61  ;;  %v14451_v30 = vld [vmem:[#allocation3 + $0x31] sm:$0xff]  ;;  %v9693_v21 = vld [vmem:[#allocation3 + $0x20] sm:$0xff] }
 0x44e   :  { %v4972_v4 = vrot.slane %v4971_v18, 1  ;;  %v4978_v7 = vmax.f32 %v4976_v31, %v4977_v16  ;;  %v4985_v15 = vmax.f32 %v4983_v5, %v4984_v3  ;;  %v4991_v52 = vrot.slane %v4990_v9, 2  ;;  %v14457_v44 = vld [vmem:[#allocation3 + $0x41] sm:$0xff]  ;;  %v14465_v31 = vld [vmem:[#allocation3 + $0x51] sm:$0xff] }
 0x44f   :  { %v5686_v17 = vmax.f32 %v5684_v49, %v5685_v48  ;;  %v5714_v62 = vsel %vm860_vm13, %v5672_v25, %v5713_v22  ;;  %v5020_v6 = vsel %vm856_vm11, %v14384_v35, %v5019_v37  ;;  %v14446_v10 = vpack.c.bf16 %v8878_v36, %v8877_v47  ;;  %v14470_v5 = vld [vmem:[#allocation3 + $0x61] sm:$0xff]  ;;  %v14475_v38 = vld [vmem:[#allocation3 + $0x71] sm:$0xff] }
 0x450   :  { %v5715_v33 = vsel %vm862_vm14, %v5679_v12, %v5714_v62  ;;  %v4973_v26 = vmax.f32 %v4971_v18, %v4972_v4  ;;  %v4979_v53 = vrot.slane %v4978_v7, 1  ;;  %v4986_v27 = vrot.slane %v4985_v15, 1  ;;  %v9701_v57 = vld [vmem:[#allocation3 + $0x60] sm:$0xff]  ;;  %v6270_v58 = vld [vmem:[#allocation3 + $0x91] sm:$0xff] }
 0x451   :  { %v5716_v46 = vsel %vm864_vm15, %v5686_v17, %v5715_v33  ;;  %v4992_v1 = vmax.f32 %v4990_v9, %v4991_v52  ;;  %v14448_v60 = vpack.c.bf16 %v8806_v34, %v8805_v43  ;;  %v9702_v32 = vld [vmem:[#allocation3 + $0x81] sm:$0xff]  ;;  %v9703_v18 = vld [vmem:[#allocation3 + $0x70] sm:$0xff]  ;;  %v8896_v12 = vld [vmem:[%s15254_s4 + $0x88] sm:$0xff]  ;;  %vm8490_vm7 = vcmask 523264  }
 0x452   :  { %5721 = vst.msk [vmem:[#allocation3 + $0x121] sm:$0xff] %vm69_vm6, %v5716_v46  ;;  %v4980_v61 = vmax.f32 %v4978_v7, %v4979_v53  ;;  %v4987_v40 = vmax.f32 %v4985_v15, %v4986_v27  ;;  %v5021_v42 = vsel %vm858_vm12, %v4973_v26, %v5020_v6  ;;  %v5732_v49 = vld [vmem:[#allocation3 + $0xa0] sm:$0xff]  ;;  %v9705_v3 = vld [vmem:[#allocation3 + $0xb0] sm:$0xff] }
 0x453   :  { %v4993_v24 = vrot.slane %v4992_v1, 1  ;;  %v14483_v16 = vld [vmem:[#allocation3 + $0xc1] sm:$0xff]  ;;  %v8895_v25 = vld [vmem:[%s15254_s4 + $0x80] sm:$0xff] }
 0x454   :  { %v5022_v39 = vsel %vm860_vm13, %v4980_v61, %v5021_v42  ;;  %v9706_v9 = vld [vmem:[#allocation3 + $0xc0] sm:$0xff]  ;;  %v6834_v48 = vld [vmem:[#allocation3 + $0x12] sm:$0xff]  ;;  %v9441_v22 = vpack.c.bf16 %v8896_v12, %v8895_v25  ;;  %v14763_v12 = vld [vmem:[%s15257_s7] ss:$0 sm:$0xff] }
 0x455   :  { %v4994_v50 = vmax.f32 %v4992_v1, %v4993_v24  ;;  %v5023_v13 = vsel %vm862_vm14, %v4987_v40, %v5022_v39  ;;  %v14525_v4 = vld [vmem:[#allocation3 + $0x22] sm:$0xff]  ;;  %v14530_v7 = vld [vmem:[#allocation3 + $0x32] sm:$0xff] }
 0x456   :  { %v14535_v15 = vld [vmem:[#allocation3 + $0x42] sm:$0xff]  ;;  %v14540_v52 = vld [vmem:[#allocation3 + $0x52] sm:$0xff] }
 0x457   :  { %v5024_v29 = vsel %vm864_vm15, %v4994_v50, %v5023_v13  ;;  %v14545_v17 = vld [vmem:[#allocation3 + $0x62] sm:$0xff]  ;;  %v5731_v33 = vld [vmem:[#allocation3 + $0x90] sm:$0xff] }
 0x458   :  { %5029 = vst.msk [vmem:[#allocation3 + $0x111] sm:$0xff] %vm69_vm6, %v5024_v29  ;;  %v9707_v62 = vld [vmem:[#allocation3 + $0x80] sm:$0xff]  ;;  %v14550_v53 = vld [vmem:[#allocation3 + $0x72] sm:$0xff] }
 0x459   :  { %v14413_v19 = vld [vmem:[#allocation3 + $0x120] sm:$0xff]  ;;  %v6844_v27 = vld [vmem:[#allocation3 + $0xb2] sm:$0xff] }
 0x45a   :  { %v14415_v35 = vld [vmem:[#allocation3 + $0x121] sm:$0xff]  ;;  %v9708_v46 = vld [vmem:[#allocation3 + $0xd0] sm:$0xff] }
 0x45b   :  { %v6843_v26 = vld [vmem:[#allocation3 + $0xa2] sm:$0xff]  ;;  %v14565_v1 = vld [vmem:[#allocation3 + $0xd2] sm:$0xff] }
 0x45c   :  { %v14559_v6 = vld [vmem:[#allocation3 + $0xc2] sm:$0xff]  ;;  %v9710_v13 = vld [vmem:[#allocation3 + $0xb1] sm:$0xff] }
 0x45d   :  { %v14571_v61 = vld [vmem:[#allocation3 + $0xe2] sm:$0xff]  ;;  %v9711_v29 = vld [vmem:[#allocation3 + $0xd1] sm:$0xff] }
 0x45e   :  { %v6849_v40 = vld [vmem:[#allocation3 + $0x102] sm:$0xff]  ;;  %v8209_v34 = vld [vmem:[%s15259_s9] sm:$0xff] }
 0x45f   :  { %v14417_v37 = vld [vmem:[#allocation3 + $0x110] sm:$0xff]  ;;  %v6261_v42 = vld [vmem:[#allocation3 + $0x1] sm:$0xff] }
 0x460   :  { %v14419_v28 = vld [vmem:[#allocation3 + $0x111] sm:$0xff]  ;;  %9168 = vmatprep.mubr.msk.f32.mxu1 %vm69_vm6, %v14417_v37  ;;  %v6271_v39 = vld [vmem:[#allocation3 + $0xa1] sm:$0xff] }
 0x461   :  { %9280 = vmatprep.mubr.msk.f32.mxu0 %vm69_vm6, %v14419_v28  ;;  %9169 = vmatmul.mubr.msk.f32.gmra.mrb[14].mxu1 %vm69_vm6, %v14413_v19  ;;  %v6850_v24 = vld [vmem:[#allocation3 + $0x112] sm:$0xff]  ;;  %v6841_v50 = vld [vmem:[#allocation3 + $0x82] sm:$0xff] }
 0x462   :  { %9281 = vmatmul.mubr.msk.f32.gmra.mrb[14].mxu0 %vm69_vm6, %v14415_v35  ;;  %9175 = vmatprep.mubr.msk.f32.mxu1 %vm69_vm6, %v5722_v2 }
 0x463   :  { %9287 = vmatprep.mubr.msk.f32.mxu0 %vm69_vm6, %v14441_v63 }
 0x465   :  { %9176 = vmatmul.mubr.msk.f32.vlgmr.msra.gmra.mrb[0].mxu1 %vm69_vm6, %v9691_v54 }
 0x466   :  { %9288 = vmatmul.mubr.msk.f32.vlgmr.msra.gmra.mrb[0].mxu0 %vm69_vm6, %v14451_v30  ;;  %9178 = vmatprep.mubr.msk.f32.mxu1 %vm69_vm6, %v9693_v21 }
 0x467   :  { %9436 = vmatpush3.bf16.msra.mxu0 %v14355_v0  ;;  %9290 = vmatprep.mubr.msk.f32.mxu0 %vm69_vm6, %v14457_v44  ;;  %v9697_v0 = vld [vmem:[#allocation3 + $0x40] sm:$0xff] }
 0x468   :  { %9420 = vmatpush3.bf16.msra.mxu1 %v14358_v14  ;;  %9438 = vmatprep.subr.bf16.mxu0 %v14446_v10  ;;  %v9699_v14 = vld [vmem:[#allocation3 + $0x50] sm:$0xff] }
 0x469   :  { %9422 = vmatprep.subr.bf16.mxu1 %v14448_v60  ;;  %9179 = vmatmul.mubr.msk.f32.gmra.mrb[2].mxu1 %vm69_vm6, %v9695_v56 }
 0x46a   :  { %9291 = vmatmul.mubr.msk.f32.gmra.mrb[2].mxu0 %vm69_vm6, %v14465_v31  ;;  %9181 = vmatprep.mubr.msk.f32.mxu1 %vm69_vm6, %v9697_v0 }
 0x46b   :  { %9293 = vmatprep.mubr.msk.f32.mxu0 %vm69_vm6, %v14470_v5 }
 0x46d   :  { %9182 = vmatmul.mubr.msk.f32.gmra.mrb[4].mxu1 %vm69_vm6, %v9699_v14 }
 0x46e   :  { %9294 = vmatmul.mubr.msk.f32.gmra.mrb[4].mxu0 %vm69_vm6, %v14475_v38  ;;  %9184 = vmatprep.mubr.msk.f32.mxu1 %vm69_vm6, %v9701_v57 }
 0x46f   :  { %9296 = vmatprep.mubr.msk.f32.mxu0 %vm69_vm6, %v9702_v32 }
 0x471   :  { %9185 = vmatmul.mubr.msk.f32.gmra.mrb[6].mxu1 %vm69_vm6, %v9703_v18 }
 0x472   :  { %9297 = vmatmul.mubr.msk.f32.gmra.mrb[6].mxu0 %vm69_vm6, %v6270_v58  ;;  %9187 = vmatprep.mubr.msk.f32.mxu1 %vm69_vm6, %v5732_v49  ;;  %v14751_v58 = vld [vmem:[%s15255_s5] ss:$0 sm:$0xff] }
 0x473   :  { %9299 = vmatprep.mubr.msk.f32.mxu0 %vm69_vm6, %v14483_v16 }
 0x475   :  { %9188 = vmatmul.mubr.msk.f32.gmra.mrb[8].mxu1 %vm69_vm6, %v9705_v3 }
 0x476   :  { %9300 = vmatmul.mubr.msk.f32.gmra.mrb[8].mxu0 %vm69_vm6, %v14061_v8  ;;  %9190 = vmatprep.mubr.msk.f32.mxu1 %vm69_vm6, %v9706_v9  ;;  %v6833_v8 = vld [vmem:[#allocation3 + $0x2] sm:$0xff] }
 0x477   :  { %9302 = vmatprep.mubr.msk.f32.mxu0 %vm69_vm6, %v14159_v55 }
 0x479   :  { %9191 = vmatmul.mubr.msk.f32.gmra.mrb[10].mxu1 %vm69_vm6, %v14059_v45  ;;  %v6280_v45 = vld [vmem:[#allocation3 + $0x131] sm:$0xff] }
 0x47a   :  { %9303 = vmatmul.mubr.msk.f32.gmra.mrb[10].mxu0 %vm69_vm6, %v14300_v20  ;;  %9193 = vmatprep.mubr.msk.f32.mxu1 %vm69_vm6, %v14157_v11 }
 0x47b   :  { %9305 = vmatprep.mubr.msk.f32.mxu0 %vm69_vm6, %v14373_v41 }
 0x47d   :  { %9194 = vmatmul.mubr.msk.f32.gmra.mrb[12].mxu1 %vm69_vm6, %v14298_v23 }
 0x47e   :  { %9306 = vmatmul.mubr.msk.f32.gmra.mrb[12].mxu0 %vm69_vm6, %v14419_v28  ;;  %9196 = vmatprep.mubr.msk.f32.mxu1 %vm69_vm6, %v14371_v51 }
 0x47f   :  { %9308 = vmatprep.mubr.msk.f32.mxu0 %vm69_vm6, %v14415_v35 }
 0x481   :  { %9197 = vmatmul.mubr.msk.f32.gmra.mrb[14].mxu1 %vm69_vm6, %v14417_v37 }
 0x482   :  { %9309 = vmatmul.mubr.msk.f32.gmra.mrb[14].mxu0 %vm69_vm6, %v6280_v45  ;;  %9203 = vmatprep.mubr.msk.f32.mxu1 %vm69_vm6, %v9693_v21 }
 0x483   :  { %9315 = vmatprep.mubr.msk.f32.mxu0 %vm69_vm6, %v6833_v8 }
 0x485   :  { %9204 = vmatmul.mubr.msk.f32.vlgmr.msra.gmra.mrb[0].mxu1 %vm69_vm6, %v9695_v56 }
 0x486   :  { %9316 = vmatmul.mubr.msk.f32.vlgmr.msra.gmra.mrb[0].mxu0 %vm69_vm6, %v6834_v48  ;;  %9206 = vmatprep.mubr.msk.f32.mxu1 %vm69_vm6, %v9697_v0  ;;  %v8211_v0 = vld [vmem:[%s15259_s9 + $0x10] sm:$0xff] }
 0x487   :  { %9440 = vmatpush3.bf16.msra.mxu0 %v14446_v10  ;;  %9318 = vmatprep.mubr.msk.f32.mxu0 %vm69_vm6, %v14525_v4 }
 0x488   :  { %9424 = vmatpush3.bf16.msra.mxu1 %v14448_v60  ;;  %9442 = vmatprep.subr.bf16.mxu0 %v9441_v22 }
 0x489   :  { %9207 = vmatmul.mubr.msk.f32.gmra.mrb[2].mxu1 %vm69_vm6, %v9699_v14 }
 0x48a   :  { %9319 = vmatmul.mubr.msk.f32.gmra.mrb[2].mxu0 %vm69_vm6, %v14530_v7  ;;  %9209 = vmatprep.mubr.msk.f32.mxu1 %vm69_vm6, %v9701_v57 }
 0x48b   :  { %9321 = vmatprep.mubr.msk.f32.mxu0 %vm69_vm6, %v14535_v15 }
 0x48d   :  { %9210 = vmatmul.mubr.msk.f32.gmra.mrb[4].mxu1 %vm69_vm6, %v9703_v18 }
 0x48e   :  { %9322 = vmatmul.mubr.msk.f32.gmra.mrb[4].mxu0 %vm69_vm6, %v14540_v52  ;;  %9212 = vmatprep.mubr.msk.f32.mxu1 %vm69_vm6, %v9707_v62  ;;  %v14770_v62 = vld [vmem:[%s15257_s7 + $0x8] ss:$0 sm:$0xff] }
 0x48f   :  { %9324 = vmatprep.mubr.msk.f32.mxu0 %vm69_vm6, %v14545_v17 }
 0x491   :  { %9213 = vmatmul.mubr.msk.f32.gmra.mrb[6].mxu1 %vm69_vm6, %v5731_v33 }
 0x492   :  { %9325 = vmatmul.mubr.msk.f32.gmra.mrb[6].mxu0 %vm69_vm6, %v14550_v53  ;;  %9215 = vmatprep.mubr.msk.f32.mxu1 %vm69_vm6, %v9706_v9 }
 0x493   :  { %9327 = vmatprep.mubr.msk.f32.mxu0 %vm69_vm6, %v6843_v26  ;;  %v14775_v26 = vld [vmem:[%s15257_s7 + $0x1] ss:$0 sm:$0xff] }
 0x495   :  { %9216 = vmatmul.mubr.msk.f32.gmra.mrb[8].mxu1 %vm69_vm6, %v9708_v46 }
 0x496   :  { %9328 = vmatmul.mubr.msk.f32.gmra.mrb[8].mxu0 %vm69_vm6, %v6844_v27  ;;  %9218 = vmatprep.mubr.msk.f32.mxu1 %vm69_vm6, %v14157_v11  ;;  %v6848_v11 = vld [vmem:[#allocation3 + $0xf2] sm:$0xff] }
 0x497   :  { %9330 = vmatprep.mubr.msk.f32.mxu0 %vm69_vm6, %v14559_v6 }
 0x499   :  { %9219 = vmatmul.mubr.msk.f32.gmra.mrb[10].mxu1 %vm69_vm6, %v14298_v23  ;;  %v5741_v23 = vld [vmem:[#allocation3 + $0x130] sm:$0xff] }
 0x49a   :  { %9331 = vmatmul.mubr.msk.f32.gmra.mrb[10].mxu0 %vm69_vm6, %v14565_v1  ;;  %9221 = vmatprep.mubr.msk.f32.mxu1 %vm69_vm6, %v14371_v51  ;;  %v9709_v51 = vld [vmem:[#allocation3 + $0x11] sm:$0xff] }
 0x49b   :  { %9333 = vmatprep.mubr.msk.f32.mxu0 %vm69_vm6, %v14571_v61 }
 0x49d   :  { %9222 = vmatmul.mubr.msk.f32.gmra.mrb[12].mxu1 %vm69_vm6, %v14417_v37 }
 0x49e   :  { %9334 = vmatmul.mubr.msk.f32.gmra.mrb[12].mxu0 %vm69_vm6, %v6848_v11  ;;  %9224 = vmatprep.mubr.msk.f32.mxu1 %vm69_vm6, %v14413_v19  ;;  %v6851_v19 = vld [vmem:[#allocation3 + $0x122] sm:$0xff] }
 0x49f   :  { %9336 = vmatprep.mubr.msk.f32.mxu0 %vm69_vm6, %v6849_v40 }
 0x4a1   :  { %9225 = vmatmul.mubr.msk.f32.gmra.mrb[14].mxu1 %vm69_vm6, %v5741_v23 }
 0x4a2   :  { %9337 = vmatmul.mubr.msk.f32.gmra.mrb[14].mxu0 %vm69_vm6, %v6850_v24  ;;  %9231 = vmatprep.mubr.msk.f32.mxu1 %vm69_vm6, %v6261_v42 }
 0x4a3   :  { %9343 = vmatprep.mubr.msk.f32.mxu0 %vm69_vm6, %v6834_v48 }
 0x4a5   :  { %9232 = vmatmul.mubr.msk.f32.vlgmr.msra.gmra.mrb[0].mxu1 %vm69_vm6, %v9709_v51 }
 0x4a6   :  { %9344 = vmatmul.mubr.msk.f32.vlgmr.msra.gmra.mrb[0].mxu0 %vm69_vm6, %v14525_v4  ;;  %9234 = vmatprep.mubr.msk.f32.mxu1 %vm69_vm6, %v14441_v63  ;;  %v8210_v63 = vld [vmem:[%s15259_s9 + $0x8] sm:$0xff] }
 0x4a7   :  { %9444 = vmatpush3.bf16.msra.mxu0 %v9441_v22  ;;  %9346 = vmatprep.mubr.msk.f32.mxu0 %vm69_vm6, %v14530_v7  ;;  %v9445_v60 = vpack.c.bf16 %v8210_v63, %v8209_v34 }
 0x4a9   :  { %9235 = vmatmul.mubr.msk.f32.gmra.mrb[2].mxu1 %vm69_vm6, %v14451_v30  ;;  %9446 = vmatprep.subr.bf16.mxu1 %v9445_v60 }
 0x4aa   :  { %9347 = vmatmul.mubr.msk.f32.gmra.mrb[2].mxu0 %vm69_vm6, %v14535_v15  ;;  %9237 = vmatprep.mubr.msk.f32.mxu1 %vm69_vm6, %v14457_v44 }
 0x4ab   :  { %9349 = vmatprep.mubr.msk.f32.mxu0 %vm69_vm6, %v14540_v52  ;;  %9448 = vmatpush3.bf16.msra.mxu1 %v9445_v60 }
 0x4ad   :  { %9238 = vmatmul.mubr.msk.f32.gmra.mrb[4].mxu1 %vm69_vm6, %v14465_v31 }
 0x4ae   :  { %9350 = vmatmul.mubr.msk.f32.gmra.mrb[4].mxu0 %vm69_vm6, %v14545_v17  ;;  %9240 = vmatprep.mubr.msk.f32.mxu1 %vm69_vm6, %v14470_v5  ;;  %v8212_v5 = vld [vmem:[%s15259_s9 + $0x18] sm:$0xff] }
 0x4af   :  { %9352 = vmatprep.mubr.msk.f32.mxu0 %vm69_vm6, %v14550_v53 }
 0x4b1   :  { %9241 = vmatmul.mubr.msk.f32.gmra.mrb[6].mxu1 %vm69_vm6, %v14475_v38  ;;  %v9449_v38 = vpack.c.bf16 %v8212_v5, %v8211_v0 }
 0x4b2   :  { %9353 = vmatmul.mubr.msk.f32.gmra.mrb[6].mxu0 %vm69_vm6, %v6841_v50  ;;  %9243 = vmatprep.mubr.msk.f32.mxu1 %vm69_vm6, %v6271_v39 }
 0x4b3   :  { %9355 = vmatprep.mubr.msk.f32.mxu0 %vm69_vm6, %v6844_v27  ;;  %9450 = vmatprep.subr.bf16.mxu1 %v9449_v38 }
 0x4b4   :  { %9452 = vmatpush3.bf16.msra.mxu1 %v9449_v38 }
 0x4b5   :  { %9244 = vmatmul.mubr.msk.f32.gmra.mrb[8].mxu1 %vm69_vm6, %v9710_v13 }
 0x4b6   :  { %9356 = vmatmul.mubr.msk.f32.gmra.mrb[8].mxu0 %vm69_vm6, %v14559_v6  ;;  %9246 = vmatprep.mubr.msk.f32.mxu1 %vm69_vm6, %v14483_v16  ;;  %v14756_v16 = vld [vmem:[%s15256_s6] ss:$0 sm:$0xff] }
 0x4b7   :  { %9358 = vmatprep.mubr.msk.f32.mxu0 %vm69_vm6, %v14565_v1 }
 0x4b9   :  { %9247 = vmatmul.mubr.msk.f32.gmra.mrb[10].mxu1 %vm69_vm6, %v9711_v29 }
 0x4ba   :  { %9359 = vmatmul.mubr.msk.f32.gmra.mrb[10].mxu0 %vm69_vm6, %v14571_v61  ;;  %9249 = vmatprep.mubr.msk.f32.mxu1 %vm69_vm6, %v14159_v55  ;;  %v6842_v55 = vld [vmem:[#allocation3 + $0x92] sm:$0xff] }
 0x4bb   :  { %9361 = vmatprep.mubr.msk.f32.mxu0 %vm69_vm6, %v6848_v11 }
 0x4bd   :  { %9250 = vmatmul.mubr.msk.f32.gmra.mrb[12].mxu1 %vm69_vm6, %v14300_v20  ;;  %v6852_v20 = vld [vmem:[#allocation3 + $0x132] sm:$0xff] }
 0x4be   :  { %9362 = vmatmul.mubr.msk.f32.gmra.mrb[12].mxu0 %vm69_vm6, %v6849_v40  ;;  %9252 = vmatprep.mubr.msk.f32.mxu1 %vm69_vm6, %v14373_v41  ;;  %v16350_v41 = vmov 0.0  }
 0x4bf   :  { %9364 = vmatprep.mubr.msk.f32.mxu0 %vm69_vm6, %v6850_v24  ;;  %122 = vst.msk [vmem:[#allocation4] sm:$0x3f] %vm121_vm0, %v16350_v41  ;;  %125 = vst.msk [vmem:[#allocation4 + $0x28] sm:$0x3f] %vm121_vm0, %v16350_v41 }
 0x4c0   :  { %123 = vst.msk [vmem:[#allocation4 + $0x30] sm:$0x3f] %vm121_vm0, %v16350_v41  ;;  %126 = vst.msk [vmem:[#allocation4 + $0x58] sm:$0x3f] %vm121_vm0, %v16350_v41 }
 0x4c1   :  { %9253 = vmatmul.mubr.msk.f32.gmra.mrb[14].mxu1 %vm69_vm6, %v14419_v28  ;;  %128 = vst.msk [vmem:[#allocation4] sm:$0x1] %vm127_vm1, %v16350_v41  ;;  %129 = vst.msk [vmem:[#allocation4 + $0x8] sm:$0x1] %vm127_vm1, %v16350_v41 }
 0x4c2   :  { %9365 = vmatmul.mubr.msk.f32.gmra.mrb[14].mxu0 %vm69_vm6, %v6851_v19  ;;  %130 = vst.msk [vmem:[#allocation4 + $0x10] sm:$0x1] %vm127_vm1, %v16350_v41  ;;  %131 = vst.msk [vmem:[#allocation4 + $0x18] sm:$0x1] %vm127_vm1, %v16350_v41 }
 0x4c3   :  { %9371 = vmatprep.mubr.msk.f32.mxu0 %vm69_vm6, %v14525_v4  ;;  %132 = vst.msk [vmem:[#allocation4 + $0x20] sm:$0x1] %vm127_vm1, %v16350_v41  ;;  %133 = vst.msk [vmem:[#allocation4 + $0x28] sm:$0x1] %vm127_vm1, %v16350_v41 }
 0x4c4   :  { %140 = vst.msk [vmem:[#allocation4 + $0x5] sm:$0x1] %vm127_vm1, %v16350_v41  ;;  %141 = vst.msk [vmem:[#allocation4 + $0xd] sm:$0x1] %vm127_vm1, %v16350_v41 }
 0x4c5   :  { %142 = vst.msk [vmem:[#allocation4 + $0x15] sm:$0x1] %vm127_vm1, %v16350_v41  ;;  %143 = vst.msk [vmem:[#allocation4 + $0x1d] sm:$0x1] %vm127_vm1, %v16350_v41 }
 0x4c6   :  { %9372 = vmatmul.mubr.msk.f32.vlgmr.msra.gmra.mrb[0].mxu0 %vm69_vm6, %v14530_v7  ;;  %144 = vst.msk [vmem:[#allocation4 + $0x25] sm:$0x1] %vm127_vm1, %v16350_v41  ;;  %135 = vst.msk [vmem:[#allocation4 + $0x38] sm:$0x1] %vm127_vm1, %v16350_v41  ;;  %v8049_v33 = vld [vmem:[#allocation4 + $0x29] sm:$0xf] }
 0x4c7   :  { %9374 = vmatprep.mubr.msk.f32.mxu0 %vm69_vm6, %v14535_v15  ;;  %136 = vst.msk [vmem:[#allocation4 + $0x40] sm:$0x1] %vm127_vm1, %v16350_v41  ;;  %137 = vst.msk [vmem:[#allocation4 + $0x48] sm:$0x1] %vm127_vm1, %v16350_v41  ;;  %v8044_v15 = vld [vmem:[#allocation4 + $0x1] sm:$0xf] }
 0x4c8   :  { %138 = vst.msk [vmem:[#allocation4 + $0x50] sm:$0x1] %vm127_vm1, %v16350_v41  ;;  %145 = vst.msk [vmem:[#allocation4 + $0x2d] sm:$0x1] %vm127_vm1, %v16350_v41  ;;  %v7967_v25 = vld [vmem:[#allocation4] sm:$0xf]  ;;  %v14791_v42 = vmul.f32 %v14775_v26, %v8044_v15 }
 0x4c9   :  { %147 = vst.msk [vmem:[#allocation4 + $0x3d] sm:$0x1] %vm127_vm1, %v16350_v41  ;;  %148 = vst.msk [vmem:[#allocation4 + $0x45] sm:$0x1] %vm127_vm1, %v16350_v41  ;;  %v14779_v46 = vmul.f32 %v14763_v12, %v7967_v25 }
 0x4ca   :  { %9375 = vmatmul.mubr.msk.f32.gmra.mrb[2].mxu0 %vm69_vm6, %v14540_v52  ;;  %149 = vst.msk [vmem:[#allocation4 + $0x4d] sm:$0x1] %vm127_vm1, %v16350_v41  ;;  %150 = vst.msk [vmem:[#allocation4 + $0x55] sm:$0x1] %vm127_vm1, %v16350_v41  ;;  %v7972_v7 = vld [vmem:[#allocation4 + $0x28] sm:$0xf] }
 0x4cb   :  { %9377 = vmatprep.mubr.msk.f32.mxu0 %vm69_vm6, %v14545_v17  ;;  %134 = vst.msk [vmem:[#allocation4 + $0x30] sm:$0x1] %vm127_vm1, %v16350_v41  ;;  %139 = vst.msk [vmem:[#allocation4 + $0x58] sm:$0x1] %vm127_vm1, %v16350_v41  ;;  %v14788_v23 = vmul.f32 %v14770_v62, %v7972_v7 }
 0x4cc   :  { %146 = vst.msk [vmem:[#allocation4 + $0x35] sm:$0x1] %vm127_vm1, %v16350_v41  ;;  %151 = vst.msk [vmem:[#allocation4 + $0x5d] sm:$0x1] %vm127_vm1, %v16350_v41 }
 0x4ce   :  { %9378 = vmatmul.mubr.msk.f32.gmra.mrb[4].mxu0 %vm69_vm6, %v14550_v53 }
 0x4cf   :  { %9380 = vmatprep.mubr.msk.f32.mxu0 %vm69_vm6, %v6841_v50  ;;  %v8124_v51 = vld [vmem:[#allocation4 + $0x2a] sm:$0xf] }
 0x4d2   :  { %9381 = vmatmul.mubr.msk.f32.gmra.mrb[6].mxu0 %vm69_vm6, %v6842_v55  ;;  %v7973_v55 = vld [vmem:[#allocation4 + $0x30] sm:$0xf] }
 0x4d3   :  { %9383 = vmatprep.mubr.msk.f32.mxu0 %vm69_vm6, %v14559_v6  ;;  %v8119_v6 = vld [vmem:[#allocation4 + $0x2] sm:$0xf] }
 0x4d6   :  { %9384 = vmatmul.mubr.msk.f32.gmra.mrb[8].mxu0 %vm69_vm6, %v14565_v1  ;;  %v14784_v1 = vld [vmem:[%s15257_s7 + $0x2] ss:$0 sm:$0xff] }
 0x4d7   :  { %9386 = vmatprep.mubr.msk.f32.mxu0 %vm69_vm6, %v14571_v61 }
 0x4da   :  { %9387 = vmatmul.mubr.msk.f32.gmra.mrb[10].mxu0 %vm69_vm6, %v6848_v11 }
 0x4db   :  { %9389 = vmatprep.mubr.msk.f32.mxu0 %vm69_vm6, %v6849_v40 }
 0x4de   :  { %9390 = vmatmul.mubr.msk.f32.gmra.mrb[12].mxu0 %vm69_vm6, %v6850_v24  ;;  %v14796_v24 = vld [vmem:[%s15257_s7 + $0x9] ss:$0 sm:$0xff] }
 0x4df   :  { %9392 = vmatprep.mubr.msk.f32.mxu0 %vm69_vm6, %v6851_v19  ;;  %v14801_v19 = vmul.f32 %v14796_v24, %v8049_v33 }
 0x4e2   :  { %9393 = vmatmul.mubr.msk.f32.gmra.mrb[14].mxu0 %vm69_vm6, %v6852_v20  ;;  %v8050_v20 = vld [vmem:[#allocation4 + $0x31] sm:$0xf]  ;;  %vm8413_vm6 = vcmask 517120  }
 0x578   :  { %v9233_v35 = vpop.f32.mrb[0].mxu1 }
 0x579   :  { %v6398_v37 = vpop.f32.mrb[1].mxu1 }
 0x57c   :  { %v9236_v28 = vpop.f32.mrb[2].mxu1 }
 0x57d   :  { %v6408_v2 = vpop.f32.mrb[3].mxu1 }
 0x580   :  { %v9239_v47 = vpop.f32.mrb[4].mxu1 }
 0x581   :  { %v14714_v36 = vpop.f32.mrb[5].mxu1 }
 0x584   :  { %v14716_v43 = vpop.f32.mrb[6].mxu1 }
 0x585   :  { %v14724_v10 = vpop.f32.mrb[7].mxu1 }
 0x588   :  { %v14726_v54 = vpop.f32.mrb[8].mxu1 }
 0x589   :  { %v14728_v30 = vpop.f32.mrb[9].mxu1 }
 0x58c   :  { %v14730_v21 = vpop.f32.mrb[10].mxu1 }
 0x58d   :  { %v14732_v44 = vpop.f32.mrb[11].mxu1 }
 0x590   :  { %v14734_v56 = vpop.f32.mrb[12].mxu1 }
 0x591   :  { %v14736_v31 = vpop.f32.mrb[13].mxu1 }
 0x594   :  { %v14744_v14 = vpop.f32.mrb[14].mxu1 }
 0x595   :  { %v14746_v57 = vpop.f32.mrb[15].mxu1 }
 0x599   :  { %v9373_v32 = vpop.f32.mrb[0].mxu0 }
 0x59a   :  { %v9485_v49 = vadd.f32 %v9373_v32, %v9233_v35  ;;  %v7310_v18 = vpop.f32.mrb[1].mxu0  ;;  %v14823_v32 = vmul.f32 %v14775_v26, %v8050_v20 }
 0x59b   :  { %v9486_v3 = vadd.f32 %v7310_v18, %v6398_v37 }
 0x59c   :  { %v7413_v9 = vmul.f32 %v9485_v49, %v14751_v58  ;;  %16351 = vst [vmem:[#allocation80_spill] sm:$0xff] %v14823_v32 }
 0x59d   :  { %v7412_v45 = vmul.f32 %v9486_v3, %v14751_v58  ;;  %v9376_v8 = vpop.f32.mrb[2].mxu0 }
 0x59e   :  { %v7436_v48 = vadd.f32 %v14756_v16, %v7413_v9  ;;  %v9487_v22 = vadd.f32 %v9376_v8, %v9236_v28  ;;  %v7320_v4 = vpop.f32.mrb[3].mxu0  ;;  %v14807_v28 = vmul.f32 %v14784_v1, %v8119_v6 }
 0x59f   :  { %v7435_v52 = vadd.f32 %v14756_v16, %v7412_v45  ;;  %v9488_v17 = vadd.f32 %v7320_v4, %v6408_v2  ;;  %v14812_v2 = vld [vmem:[%s15257_s7 + $0xa] ss:$0 sm:$0xff] }
 0x5a0   :  { %v7452_v53 = vmax.f32 %v7436_v48, 0.0  ;;  %v7415_v27 = vmul.f32 %v9487_v22, %v14751_v58  ;;  %v14816_v60 = vmul.f32 %v14812_v2, %v8124_v51 }
 0x5a1   :  { %v7451_v61 = vmax.f32 %v7435_v52, 0.0  ;;  %v7414_v11 = vmul.f32 %v9488_v17, %v14751_v58  ;;  %v9379_v40 = vpop.f32.mrb[4].mxu0 }
 0x5a2   :  { %v7469_v39 = vsel %vm7467_vm2, %v7452_v53, -inf  ;;  %v7438_v50 = vadd.f32 %v14756_v16, %v7415_v27  ;;  %v9489_v13 = vadd.f32 %v9379_v40, %v9239_v47  ;;  %v7330_v29 = vpop.f32.mrb[5].mxu0 }
 0x5a3   :  { %v7468_v41 = vsel %vm7467_vm2, %v7451_v61, -inf  ;;  %v7437_v35 = vadd.f32 %v14756_v16, %v7414_v11  ;;  %v9490_v37 = vadd.f32 %v7330_v29, %v14714_v36  ;;  %v14820_v36 = vmul.f32 %v14763_v12, %v7973_v55 }
 0x5a4   :  { %v7470_v47 = vmax.f32 %v7468_v41, %v7469_v39  ;;  %v7454_v34 = vmax.f32 %v7438_v50, 0.0  ;;  %v7417_v63 = vmul.f32 %v9489_v13, %v14751_v58 }
 0x5a5   :  { %v7453_v0 = vmax.f32 %v7437_v35, 0.0  ;;  %v7416_v5 = vmul.f32 %v9490_v37, %v14751_v58  ;;  %v9382_v38 = vpop.f32.mrb[6].mxu0 }
 0x5a6   :  { %v7500_v49 = vcombine.high %v7470_v47, %v7470_v47  ;;  %v7507_v18 = vrot.slane %v7470_v47, %v16323_v59  ;;  %v7472_v3 = vsel %vm7467_vm2, %v7454_v34, -inf  ;;  %v7440_v9 = vadd.f32 %v14756_v16, %v7417_v63  ;;  %v7340_v45 = vpop.f32.mrb[7].mxu0 }
 0x5a7   :  { %v7471_v8 = vsel %vm7467_vm2, %v7453_v0, -inf  ;;  %v7439_v25 = vadd.f32 %v14756_v16, %v7416_v5  ;;  %v9491_v48 = vadd.f32 %v9382_v38, %v14716_v43  ;;  %v14832_v22 = vadd.f32 %v7340_v45, %v14724_v10 }
 0x5a8   :  { %v7514_v4 = vrot.slane %v7500_v49, %v16323_v59  ;;  %v7515_v7 = vcombine.high %v7507_v18, %v7507_v18  ;;  %v7669_v15 = vsel %vm7668_vm3, %v7507_v18, -inf  ;;  %v7473_v52 = vmax.f32 %v7471_v8, %v7472_v3 }
 0x5a9   :  { %v7670_v17 = vrot.slane %v7669_v15, 4  ;;  %v7456_v33 = vmax.f32 %v7440_v9, 0.0  ;;  %v7455_v53 = vmax.f32 %v7439_v25, 0.0  ;;  %v14837_v27 = vmul.f32 %v9491_v48, %v14751_v58  ;;  %v14839_v6 = vpop.f32.mrb[8].mxu0 }
 0x5aa   :  { %v7516_v61 = vcombine.high %v7514_v4, %v7514_v4  ;;  %v7676_v43 = vsel %vm7668_vm3, %v7515_v7, -inf  ;;  %v7683_v10 = vsel %vm7668_vm3, %v7514_v4, -inf  ;;  %v7517_v11 = vcombine.high %v7473_v52, %v7473_v52  ;;  %v14843_v40 = vpop.f32.mrb[9].mxu0 }
 0x5ab   :  { %v7671_v51 = vmax.f32 %v7669_v15, %v7670_v17  ;;  %v7677_v39 = vrot.slane %v7676_v43, 4  ;;  %v7684_v50 = vrot.slane %v7683_v10, 4  ;;  %v7524_v13 = vrot.slane %v7473_v52, %v16323_v59 }
 0x5ac   :  { %v7690_v29 = vsel %vm7668_vm3, %v7516_v61, -inf  ;;  %v7531_v55 = vrot.slane %v7517_v11, %v16323_v59  ;;  %v7475_v20 = vsel %vm7467_vm2, %v7456_v33, -inf  ;;  %v7474_v41 = vsel %vm7467_vm2, %v7455_v53, -inf }
 0x5ad   :  { %v7672_v35 = vrot.slane %v7671_v51, 2  ;;  %v7678_v37 = vmax.f32 %v7676_v43, %v7677_v39  ;;  %v7685_v47 = vmax.f32 %v7683_v10, %v7684_v50  ;;  %v7691_v34 = vrot.slane %v7690_v29, 4  ;;  %v14850_v63 = vpop.f32.mrb[10].mxu0 }
 0x5ae   :  { %v7532_v0 = vcombine.high %v7524_v13, %v7524_v13  ;;  %v7533_v5 = vcombine.high %v7531_v55, %v7531_v55  ;;  %v7697_v38 = vsel %vm7668_vm3, %v7524_v13, -inf  ;;  %v7711_v49 = vsel %vm7668_vm3, %v7531_v55, -inf  ;;  %v14854_v18 = vpop.f32.mrb[11].mxu0 }
 0x5af   :  { %v7673_v3 = vmax.f32 %v7671_v51, %v7672_v35  ;;  %v7679_v9 = vrot.slane %v7678_v37, 2  ;;  %v7686_v45 = vrot.slane %v7685_v47, 2  ;;  %v7692_v8 = vmax.f32 %v7690_v29, %v7691_v34 }
 0x5b0   :  { %v7698_v25 = vrot.slane %v7697_v38, 4  ;;  %v7704_v48 = vsel %vm7668_vm3, %v7532_v0, -inf  ;;  %v7712_v4 = vrot.slane %v7711_v49, 4  ;;  %v7718_v7 = vsel %vm7668_vm3, %v7533_v5, -inf }
 0x5b1   :  { %v7674_v15 = vrot.slane %v7673_v3, 1  ;;  %v7680_v52 = vmax.f32 %v7678_v37, %v7679_v9  ;;  %v7687_v17 = vmax.f32 %v7685_v47, %v7686_v45  ;;  %v7693_v33 = vrot.slane %v7692_v8, 2  ;;  %v14858_v53 = vpop.f32.mrb[12].mxu0 }
 0x5b2   :  { %v7699_v61 = vmax.f32 %v7697_v38, %v7698_v25  ;;  %v7705_v43 = vrot.slane %v7704_v48, 4  ;;  %v7713_v10 = vmax.f32 %v7711_v49, %v7712_v4  ;;  %v7719_v11 = vrot.slane %v7718_v7, 4  ;;  %v14860_v51 = vpop.f32.mrb[13].mxu0 }
 0x5b3   :  { %v7675_v39 = vmax.f32 %v7673_v3, %v7674_v15  ;;  %v7681_v50 = vrot.slane %v7680_v52, 1  ;;  %v7688_v13 = vrot.slane %v7687_v17, 1  ;;  %v7694_v29 = vmax.f32 %v7692_v8, %v7693_v33 }
 0x5b4   :  { %v7700_v55 = vrot.slane %v7699_v61, 2  ;;  %v7706_v35 = vmax.f32 %v7704_v48, %v7705_v43  ;;  %v7714_v34 = vrot.slane %v7713_v10, 2  ;;  %v7720_v0 = vmax.f32 %v7718_v7, %v7719_v11 }
 0x5b5   :  { %v7682_v5 = vmax.f32 %v7680_v52, %v7681_v50  ;;  %v7689_v37 = vmax.f32 %v7687_v17, %v7688_v13  ;;  %v7695_v47 = vrot.slane %v7694_v29, 1  ;;  %v7476_v9 = vmax.f32 %v7474_v41, %v7475_v20  ;;  %v14862_v45 = vpop.f32.mrb[14].mxu0 }
 0x5b6   :  { %v7701_v38 = vmax.f32 %v7699_v61, %v7700_v55  ;;  %v7707_v25 = vrot.slane %v7706_v35, 2  ;;  %v7715_v49 = vmax.f32 %v7713_v10, %v7714_v34  ;;  %v7721_v4 = vrot.slane %v7720_v0, 2  ;;  %v14864_v32 = vpop.f32.mrb[15].mxu0 }
 0x5b7   :  { %v7696_v3 = vmax.f32 %v7694_v29, %v7695_v47  ;;  %v7925_v15 = vsel %vm852_vm9, %v7682_v5, %v7675_v39  ;;  %v7534_v8 = vcombine.high %v7476_v9, %v7476_v9  ;;  %v7541_v48 = vrot.slane %v7476_v9, %v16323_v59 }
 0x5b8   :  { %v7926_v7 = vsel %vm854_vm10, %v7689_v37, %v7925_v15  ;;  %v7702_v52 = vrot.slane %v7701_v38, 1  ;;  %v7708_v17 = vmax.f32 %v7706_v35, %v7707_v25  ;;  %v7716_v33 = vrot.slane %v7715_v49, 1 }
 0x5b9   :  { %v7927_v20 = vsel %vm856_vm11, %v7696_v3, %v7926_v7  ;;  %v7722_v41 = vmax.f32 %v7720_v0, %v7721_v4  ;;  %v7548_v61 = vrot.slane %v7534_v8, %v16323_v59  ;;  %v7549_v43 = vcombine.high %v7541_v48, %v7541_v48 }
 0x5ba   :  { %7959 = vst.msk [vmem:[#allocation4 + $0x9] sm:$0xf] %vm7958_vm4, %v7927_v20  ;;  %v7703_v10 = vmax.f32 %v7701_v38, %v7702_v52  ;;  %v7709_v11 = vrot.slane %v7708_v17, 1  ;;  %v7717_v50 = vmax.f32 %v7715_v49, %v7716_v33  ;;  %v7725_v39 = vsel %vm7668_vm3, %v7541_v48, -inf }
 0x5bb   :  { %v7723_v13 = vrot.slane %v7722_v41, 1  ;;  %v7550_v29 = vcombine.high %v7548_v61, %v7548_v61  ;;  %v7726_v55 = vrot.slane %v7725_v39, 4  ;;  %v7732_v34 = vsel %vm7668_vm3, %v7549_v43, -inf }
 0x5bc   :  { %v7710_v35 = vmax.f32 %v7708_v17, %v7709_v11  ;;  %v7733_v5 = vrot.slane %v7732_v34, 4  ;;  %v7739_v37 = vsel %vm7668_vm3, %v7548_v61, -inf  ;;  %v7442_v0 = vadd.f32 %v14756_v16, %v14837_v27 }
 0x5bd   :  { %v7724_v47 = vmax.f32 %v7722_v41, %v7723_v13  ;;  %v7727_v9 = vmax.f32 %v7725_v39, %v7726_v55  ;;  %v7740_v25 = vrot.slane %v7739_v37, 4  ;;  %v7746_v38 = vsel %vm7668_vm3, %v7550_v29, -inf }
 0x5be   :  { %v7928_v49 = vsel %vm852_vm9, %v7710_v35, %v7703_v10  ;;  %v7734_v4 = vmax.f32 %v7732_v34, %v7733_v5  ;;  %v7747_v3 = vrot.slane %v7746_v38, 4  ;;  %v7458_v15 = vmax.f32 %v7442_v0, 0.0 }
 0x5bf   :  { %v7929_v8 = vsel %vm854_vm10, %v7717_v50, %v7928_v49  ;;  %v7728_v48 = vrot.slane %v7727_v9, 2  ;;  %v7741_v7 = vmax.f32 %v7739_v37, %v7740_v25  ;;  %v7418_v52 = vmul.f32 %v14832_v22, %v14751_v58 }
 0x5c0   :  { %v7930_v17 = vsel %vm856_vm11, %v7724_v47, %v7929_v8  ;;  %v7735_v27 = vrot.slane %v7734_v4, 2  ;;  %v7748_v33 = vmax.f32 %v7746_v38, %v7747_v3  ;;  %v7478_v20 = vsel %vm7467_vm2, %v7458_v15, -inf }
 0x5c1   :  { %7960 = vst.msk [vmem:[#allocation4 + $0x11] sm:$0xf] %vm7958_vm4, %v7930_v17  ;;  %v7729_v41 = vmax.f32 %v7727_v9, %v7728_v48  ;;  %v7742_v61 = vrot.slane %v7741_v7, 2  ;;  %v7441_v43 = vadd.f32 %v14756_v16, %v7418_v52  ;;  %v9493_v10 = vadd.f32 %v14839_v6, %v14726_v54 }
 0x5c2   :  { %v7736_v11 = vmax.f32 %v7734_v4, %v7735_v27  ;;  %v7749_v50 = vrot.slane %v7748_v33, 2  ;;  %v9494_v22 = vadd.f32 %v14843_v40, %v14728_v30  ;;  %v9495_v39 = vadd.f32 %v14850_v63, %v14730_v21 }
 0x5c3   :  { %v7730_v13 = vrot.slane %v7729_v41, 1  ;;  %v7743_v29 = vmax.f32 %v7741_v7, %v7742_v61  ;;  %v7457_v55 = vmax.f32 %v7441_v43, 0.0  ;;  %v7421_v34 = vmul.f32 %v9493_v10, %v14751_v58 }
 0x5c4   :  { %v7737_v35 = vrot.slane %v7736_v11, 1  ;;  %v7750_v5 = vmax.f32 %v7748_v33, %v7749_v50  ;;  %v7420_v37 = vmul.f32 %v9494_v22, %v14751_v58  ;;  %v7423_v0 = vmul.f32 %v9495_v39, %v14751_v58 }
 0x5c5   :  { %v7731_v54 = vmax.f32 %v7729_v41, %v7730_v13  ;;  %v7744_v6 = vrot.slane %v7743_v29, 1  ;;  %v7477_v47 = vsel %vm7467_vm2, %v7457_v55, -inf  ;;  %v7444_v30 = vadd.f32 %v14756_v16, %v7421_v34 }
 0x5c6   :  { %v7738_v40 = vmax.f32 %v7736_v11, %v7737_v35  ;;  %v7751_v9 = vrot.slane %v7750_v5, 1  ;;  %v7479_v21 = vmax.f32 %v7477_v47, %v7478_v20  ;;  %v7443_v63 = vadd.f32 %v14756_v16, %v7420_v37 }
 0x5c7   :  { %v7745_v25 = vmax.f32 %v7743_v29, %v7744_v6  ;;  %v7460_v38 = vmax.f32 %v7444_v30, 0.0  ;;  %v7446_v49 = vadd.f32 %v14756_v16, %v7423_v0  ;;  %v9496_v4 = vadd.f32 %v14854_v18, %v14732_v44 }
 0x5c8   :  { %v7752_v3 = vmax.f32 %v7750_v5, %v7751_v9  ;;  %v7931_v15 = vsel %vm852_vm9, %v7738_v40, %v7731_v54  ;;  %v7551_v8 = vcombine.high %v7479_v21, %v7479_v21  ;;  %v7558_v48 = vrot.slane %v7479_v21, %v16323_v59 }
 0x5c9   :  { %v7932_v7 = vsel %vm854_vm10, %v7745_v25, %v7931_v15  ;;  %v7481_v52 = vsel %vm7467_vm2, %v7460_v38, -inf  ;;  %v7459_v17 = vmax.f32 %v7443_v63, 0.0  ;;  %v7462_v27 = vmax.f32 %v7446_v49, 0.0 }
 0x5ca   :  { %v7933_v33 = vsel %vm856_vm11, %v7752_v3, %v7932_v7  ;;  %v7565_v20 = vrot.slane %v7551_v8, %v16323_v59  ;;  %v7566_v41 = vcombine.high %v7558_v48, %v7558_v48  ;;  %v7753_v61 = vsel %vm7668_vm3, %v7558_v48, -inf }
 0x5cb   :  { %7961 = vst.msk [vmem:[#allocation4 + $0x19] sm:$0xf] %vm7958_vm4, %v7933_v33  ;;  %v7754_v44 = vrot.slane %v7753_v61, 4  ;;  %v7480_v18 = vsel %vm7467_vm2, %v7459_v17, -inf  ;;  %v7484_v43 = vsel %vm7467_vm2, %v7462_v27, -inf  ;;  %v7422_v10 = vmul.f32 %v9496_v4, %v14751_v58 }
 0x5cc   :  { %v7567_v11 = vcombine.high %v7565_v20, %v7565_v20  ;;  %v7760_v50 = vsel %vm7668_vm3, %v7566_v41, -inf  ;;  %v7767_v22 = vsel %vm7668_vm3, %v7565_v20, -inf  ;;  %v7482_v39 = vmax.f32 %v7480_v18, %v7481_v52 }
 0x5cd   :  { %v7755_v13 = vmax.f32 %v7753_v61, %v7754_v44  ;;  %v7761_v29 = vrot.slane %v7760_v50, 4  ;;  %v7768_v55 = vrot.slane %v7767_v22, 4  ;;  %v7445_v34 = vadd.f32 %v14756_v16, %v7422_v10 }
 0x5ce   :  { %v7774_v35 = vsel %vm7668_vm3, %v7567_v11, -inf  ;;  %v7568_v5 = vcombine.high %v7482_v39, %v7482_v39  ;;  %v7575_v37 = vrot.slane %v7482_v39, %v16323_v59  ;;  %v9497_v0 = vadd.f32 %v14858_v53, %v14734_v56 }
 0x5cf   :  { %v7756_v54 = vrot.slane %v7755_v13, 2  ;;  %v7762_v6 = vmax.f32 %v7760_v50, %v7761_v29  ;;  %v7769_v47 = vmax.f32 %v7767_v22, %v7768_v55  ;;  %v7775_v30 = vrot.slane %v7774_v35, 4 }
 0x5d0   :  { %v7582_v40 = vrot.slane %v7568_v5, %v16323_v59  ;;  %v7583_v9 = vcombine.high %v7575_v37, %v7575_v37  ;;  %v7781_v21 = vsel %vm7668_vm3, %v7575_v37, -inf  ;;  %v7461_v63 = vmax.f32 %v7445_v34, 0.0 }
 0x5d1   :  { %v7757_v25 = vmax.f32 %v7755_v13, %v7756_v54  ;;  %v7763_v38 = vrot.slane %v7762_v6, 2  ;;  %v7770_v49 = vrot.slane %v7769_v47, 2  ;;  %v7776_v4 = vmax.f32 %v7774_v35, %v7775_v30 }
 0x5d2   :  { %v7584_v3 = vcombine.high %v7582_v40, %v7582_v40  ;;  %v7782_v15 = vrot.slane %v7781_v21, 4  ;;  %v7788_v8 = vsel %vm7668_vm3, %v7583_v9, -inf  ;;  %v7795_v56 = vsel %vm7668_vm3, %v7582_v40, -inf }
 0x5d3   :  { %v7758_v53 = vrot.slane %v7757_v25, 1  ;;  %v7764_v48 = vmax.f32 %v7762_v6, %v7763_v38  ;;  %v7771_v7 = vmax.f32 %v7769_v47, %v7770_v49  ;;  %v7777_v52 = vrot.slane %v7776_v4, 2 }
 0x5d4   :  { %v7783_v17 = vmax.f32 %v7781_v21, %v7782_v15  ;;  %v7789_v27 = vrot.slane %v7788_v8, 4  ;;  %v7796_v33 = vrot.slane %v7795_v56, 4  ;;  %v7802_v20 = vsel %vm7668_vm3, %v7584_v3, -inf }
 0x5d5   :  { %v7759_v41 = vmax.f32 %v7757_v25, %v7758_v53  ;;  %v7765_v61 = vrot.slane %v7764_v48, 1  ;;  %v7772_v44 = vrot.slane %v7771_v7, 1  ;;  %v7778_v18 = vmax.f32 %v7776_v4, %v7777_v52 }
 0x5d6   :  { %v7784_v10 = vrot.slane %v7783_v17, 2  ;;  %v7790_v11 = vmax.f32 %v7788_v8, %v7789_v27  ;;  %v7797_v50 = vmax.f32 %v7795_v56, %v7796_v33  ;;  %v7803_v22 = vrot.slane %v7802_v20, 4 }
 0x5d7   :  { %v7766_v39 = vmax.f32 %v7764_v48, %v7765_v61  ;;  %v7773_v13 = vmax.f32 %v7771_v7, %v7772_v44  ;;  %v7779_v29 = vrot.slane %v7778_v18, 1  ;;  %v7483_v55 = vsel %vm7467_vm2, %v7461_v63, -inf }
 0x5d8   :  { %v7785_v34 = vmax.f32 %v7783_v17, %v7784_v10  ;;  %v7791_v35 = vrot.slane %v7790_v11, 2  ;;  %v7798_v5 = vrot.slane %v7797_v50, 2  ;;  %v7804_v37 = vmax.f32 %v7802_v20, %v7803_v22 }
 0x5d9   :  { %v7780_v54 = vmax.f32 %v7778_v18, %v7779_v29  ;;  %v7934_v6 = vsel %vm852_vm9, %v7766_v39, %v7759_v41  ;;  %v7485_v47 = vmax.f32 %v7483_v55, %v7484_v43  ;;  %v7425_v30 = vmul.f32 %v9497_v0, %v14751_v58 }
 0x5da   :  { %v7935_v40 = vsel %vm854_vm10, %v7773_v13, %v7934_v6  ;;  %v7786_v9 = vrot.slane %v7785_v34, 1  ;;  %v7792_v21 = vmax.f32 %v7790_v11, %v7791_v35  ;;  %v7799_v25 = vmax.f32 %v7797_v50, %v7798_v5  ;;  %v7968_v5 = vld [vmem:[#allocation4 + $0x8] sm:$0xf] }
 0x5db   :  { %v7936_v38 = vsel %vm856_vm11, %v7780_v54, %v7935_v40  ;;  %v7805_v49 = vrot.slane %v7804_v37, 2  ;;  %v7585_v4 = vcombine.high %v7485_v47, %v7485_v47  ;;  %v7592_v63 = vrot.slane %v7485_v47, %v16323_v59 }
 0x5dc   :  { %7962 = vst.msk [vmem:[#allocation4 + $0x21] sm:$0xf] %vm7958_vm4, %v7936_v38  ;;  %v7787_v3 = vmax.f32 %v7785_v34, %v7786_v9  ;;  %v7793_v15 = vrot.slane %v7792_v21, 1  ;;  %v7800_v8 = vrot.slane %v7799_v25, 1  ;;  %v7448_v43 = vadd.f32 %v14756_v16, %v7425_v30 }
 0x5dd   :  { %v7806_v56 = vmax.f32 %v7804_v37, %v7805_v49  ;;  %v7599_v0 = vrot.slane %v7585_v4, %v16323_v59  ;;  %v7600_v53 = vcombine.high %v7592_v63, %v7592_v63  ;;  %v7809_v48 = vsel %vm7668_vm3, %v7592_v63, -inf }
 0x5de   :  { %v7794_v7 = vmax.f32 %v7792_v21, %v7793_v15  ;;  %v7801_v52 = vmax.f32 %v7799_v25, %v7800_v8  ;;  %v7810_v17 = vrot.slane %v7809_v48, 4  ;;  %v7464_v27 = vmax.f32 %v7448_v43, 0.0  ;;  %v7969_v25 = vld [vmem:[#allocation4 + $0x10] sm:$0xf] }
 0x5df   :  { %v7807_v33 = vrot.slane %v7806_v56, 1  ;;  %v7601_v20 = vcombine.high %v7599_v0, %v7599_v0  ;;  %v7816_v41 = vsel %vm7668_vm3, %v7600_v53, -inf  ;;  %v7823_v61 = vsel %vm7668_vm3, %v7599_v0, -inf }
 0x5e0   :  { %v7937_v44 = vsel %vm852_vm9, %v7794_v7, %v7787_v3  ;;  %v7811_v18 = vmax.f32 %v7809_v48, %v7810_v17  ;;  %v7817_v10 = vrot.slane %v7816_v41, 4  ;;  %v7824_v11 = vrot.slane %v7823_v61, 4 }
 0x5e1   :  { %v7808_v50 = vmax.f32 %v7806_v56, %v7807_v33  ;;  %v7938_v22 = vsel %vm854_vm10, %v7801_v52, %v7937_v44  ;;  %v7830_v39 = vsel %vm7668_vm3, %v7601_v20, -inf  ;;  %v7487_v13 = vsel %vm7467_vm2, %v7464_v27, -inf }
 0x5e2   :  { %v7812_v29 = vrot.slane %v7811_v18, 2  ;;  %v7818_v55 = vmax.f32 %v7816_v41, %v7817_v10  ;;  %v7825_v34 = vmax.f32 %v7823_v61, %v7824_v11  ;;  %v7831_v35 = vrot.slane %v7830_v39, 4 }
 0x5e3   :  { %v7939_v37 = vsel %vm856_vm11, %v7808_v50, %v7938_v22  ;;  %v9498_v54 = vadd.f32 %v14860_v51, %v14736_v31  ;;  %v9499_v6 = vadd.f32 %v14862_v45, %v14744_v14  ;;  %v9500_v47 = vadd.f32 %v14864_v32, %v14746_v57  ;;  %v14952_v57 = vld [vmem:[#allocation4 + $0x18] sm:$0xf]  ;;  %v14965_v20 = vld [vmem:[#allocation4 + $0x20] sm:$0xf] }
 0x5e4   :  { %7963 = vst.msk [vmem:[#allocation4 + $0x39] sm:$0xf] %vm7958_vm4, %v7939_v37  ;;  %v7813_v30 = vmax.f32 %v7811_v18, %v7812_v29  ;;  %v7819_v40 = vrot.slane %v7818_v55, 2  ;;  %v7826_v9 = vrot.slane %v7825_v34, 2  ;;  %v7832_v21 = vmax.f32 %v7830_v39, %v7831_v35 }
 0x5e5   :  { %v7424_v38 = vmul.f32 %v9498_v54, %v14751_v58  ;;  %v7427_v49 = vmul.f32 %v9499_v6, %v14751_v58  ;;  %v7426_v4 = vmul.f32 %v9500_v47, %v14751_v58  ;;  %v7985_v31 = vmul.f32 %v14763_v12, %v7968_v5  ;;  %v14961_v58 = vld [vmem:[%s15257_s7 + $0x4] ss:$0 sm:$0xff] }
 0x5e6   :  { %v7814_v51 = vrot.slane %v7813_v30, 1  ;;  %v7820_v14 = vmax.f32 %v7818_v55, %v7819_v40  ;;  %v7827_v45 = vmax.f32 %v7825_v34, %v7826_v9  ;;  %v7833_v63 = vrot.slane %v7832_v21, 2 }
 0x5e7   :  { %v7447_v32 = vadd.f32 %v14756_v16, %v7424_v38  ;;  %v7450_v3 = vadd.f32 %v14756_v16, %v7427_v49  ;;  %v7449_v15 = vadd.f32 %v14756_v16, %v7426_v4  ;;  %v7986_v8 = vmul.f32 %v14763_v12, %v7969_v25 }
 0x5e8   :  { %v7815_v43 = vmax.f32 %v7813_v30, %v7814_v51  ;;  %v7821_v56 = vrot.slane %v7820_v14, 1  ;;  %v7828_v0 = vrot.slane %v7827_v45, 1  ;;  %v7834_v53 = vmax.f32 %v7832_v21, %v7833_v63 }
 0x5e9   :  { %v7463_v48 = vmax.f32 %v7447_v32, 0.0  ;;  %v7466_v7 = vmax.f32 %v7450_v3, 0.0  ;;  %v7465_v52 = vmax.f32 %v7449_v15, 0.0  ;;  %v7987_v17 = vmul.f32 %v14763_v12, %v14952_v57 }
 0x5ea   :  { %v7822_v27 = vmax.f32 %v7820_v14, %v7821_v56  ;;  %v7829_v33 = vmax.f32 %v7827_v45, %v7828_v0  ;;  %v7835_v16 = vrot.slane %v7834_v53, 1  ;;  %v8006_v41 = vmul.f32 %v14961_v58, %v7968_v5 }
 0x5eb   :  { %v7486_v61 = vsel %vm7467_vm2, %v7463_v48, -inf  ;;  %v7490_v44 = vsel %vm7467_vm2, %v7466_v7, -inf  ;;  %v7489_v18 = vsel %vm7467_vm2, %v7465_v52, -inf  ;;  %v8007_v10 = vmul.f32 %v14961_v58, %v7969_v25 }
 0x5ec   :  { %v7836_v11 = vmax.f32 %v7834_v53, %v7835_v16  ;;  %v7940_v50 = vsel %vm852_vm9, %v7822_v27, %v7815_v43  ;;  %v7488_v22 = vmax.f32 %v7486_v61, %v7487_v13  ;;  %v7491_v39 = vmax.f32 %v7489_v18, %v7490_v44 }
 0x5ed   :  { %v7941_v29 = vsel %vm854_vm10, %v7829_v33, %v7940_v50  ;;  %v8008_v55 = vmul.f32 %v14961_v58, %v14952_v57  ;;  %v8009_v34 = vmul.f32 %v14961_v58, %v14965_v20  ;;  %v14979_v35 = vadd.f32 %v8006_v41, %v14779_v46 }
 0x5ee   :  { %v7942_v5 = vsel %vm856_vm11, %v7836_v11, %v7941_v29  ;;  %v7602_v37 = vcombine.high %v7488_v22, %v7488_v22  ;;  %v7609_v54 = vrot.slane %v7488_v22, %v16323_v59  ;;  %v7619_v6 = vcombine.high %v7491_v39, %v7491_v39 }
 0x5ef   :  { %7964 = vst.msk [vmem:[#allocation4 + $0x41] sm:$0xf] %vm7958_vm4, %v7942_v5  ;;  %v7626_v13 = vrot.slane %v7491_v39, %v16323_v59  ;;  %v14985_v47 = vadd.f32 %v8007_v10, %v7985_v31  ;;  %v14987_v30 = vadd.f32 %v8008_v55, %v7986_v8  ;;  %v14989_v40 = vadd.f32 %v8009_v34, %v7987_v17 }
 0x5f0   :  { %v7616_v9 = vrot.slane %v7602_v37, %v16323_v59  ;;  %v7617_v46 = vcombine.high %v7609_v54, %v7609_v54  ;;  %v7837_v21 = vsel %vm7668_vm3, %v7609_v54, -inf  ;;  %v7633_v38 = vrot.slane %v7619_v6, %v16323_v59 }
 0x5f1   :  { %v7838_v49 = vrot.slane %v7837_v21, 4  ;;  %v7634_v4 = vcombine.high %v7626_v13, %v7626_v13  ;;  %v7865_v51 = vsel %vm7668_vm3, %v7626_v13, -inf  ;;  %v8028_v14 = vmul.f32 %v14770_v62, %v7969_v25 }
 0x5f2   :  { %v7618_v45 = vcombine.high %v7616_v9, %v7616_v9  ;;  %v7844_v31 = vsel %vm7668_vm3, %v7617_v46, -inf  ;;  %v7851_v63 = vsel %vm7668_vm3, %v7616_v9, -inf  ;;  %v7635_v32 = vcombine.high %v7633_v38, %v7633_v38 }
 0x5f3   :  { %v7839_v3 = vmax.f32 %v7837_v21, %v7838_v49  ;;  %v7845_v15 = vrot.slane %v7844_v31, 4  ;;  %v7852_v8 = vrot.slane %v7851_v63, 4  ;;  %v7866_v43 = vrot.slane %v7865_v51, 4 }
 0x5f4   :  { %v7858_v56 = vsel %vm7668_vm3, %v7618_v45, -inf  ;;  %v7872_v0 = vsel %vm7668_vm3, %v7634_v4, -inf  ;;  %v7879_v53 = vsel %vm7668_vm3, %v7633_v38, -inf  ;;  %v7886_v48 = vsel %vm7668_vm3, %v7635_v32, -inf }
 0x5f5   :  { %v7840_v7 = vrot.slane %v7839_v3, 2  ;;  %v7846_v25 = vmax.f32 %v7844_v31, %v7845_v15  ;;  %v7853_v52 = vmax.f32 %v7851_v63, %v7852_v8  ;;  %v7859_v17 = vrot.slane %v7858_v56, 4 }
 0x5f6   :  { %v7867_v27 = vmax.f32 %v7865_v51, %v7866_v43  ;;  %v7873_v33 = vrot.slane %v7872_v0, 4  ;;  %v7880_v16 = vrot.slane %v7879_v53, 4  ;;  %v7887_v41 = vrot.slane %v7886_v48, 4 }
 0x5f7   :  { %v7841_v61 = vmax.f32 %v7839_v3, %v7840_v7  ;;  %v7847_v44 = vrot.slane %v7846_v25, 2  ;;  %v7854_v18 = vrot.slane %v7853_v52, 2  ;;  %v7860_v10 = vmax.f32 %v7858_v56, %v7859_v17  ;;  %v8047_v17 = vld [vmem:[#allocation4 + $0x19] sm:$0xf] }
 0x5f8   :  { %v7868_v11 = vrot.slane %v7867_v27, 2  ;;  %v7874_v50 = vmax.f32 %v7872_v0, %v7873_v33  ;;  %v7881_v22 = vmax.f32 %v7879_v53, %v7880_v16  ;;  %v7888_v39 = vmax.f32 %v7886_v48, %v7887_v41  ;;  %v15012_v41 = vld [vmem:[%s15257_s7 + $0x5] ss:$0 sm:$0xff] }
 0x5f9   :  { %v7842_v29 = vrot.slane %v7841_v61, 1  ;;  %v7848_v55 = vmax.f32 %v7846_v25, %v7847_v44  ;;  %v7855_v34 = vmax.f32 %v7853_v52, %v7854_v18  ;;  %v7861_v5 = vrot.slane %v7860_v10, 2  ;;  %v8045_v25 = vld [vmem:[#allocation4 + $0x9] sm:$0xf]  ;;  %v8046_v52 = vld [vmem:[#allocation4 + $0x11] sm:$0xf] }
 0x5fa   :  { %v7869_v37 = vmax.f32 %v7867_v27, %v7868_v11  ;;  %v7875_v54 = vrot.slane %v7874_v50, 2  ;;  %v7882_v6 = vrot.slane %v7881_v22, 2  ;;  %v7889_v13 = vrot.slane %v7888_v39, 2  ;;  %v8048_v18 = vld [vmem:[#allocation4 + $0x21] sm:$0xf] }
 0x5fb   :  { %v7843_v9 = vmax.f32 %v7841_v61, %v7842_v29  ;;  %v7849_v46 = vrot.slane %v7848_v55, 1  ;;  %v7856_v21 = vrot.slane %v7855_v34, 1  ;;  %v7862_v38 = vmax.f32 %v7860_v10, %v7861_v5  ;;  %v8121_v5 = vld [vmem:[#allocation4 + $0x12] sm:$0xf] }
 0x5fc   :  { %v7870_v49 = vrot.slane %v7869_v37, 1  ;;  %v7876_v4 = vmax.f32 %v7874_v50, %v7875_v54  ;;  %v7883_v51 = vmax.f32 %v7881_v22, %v7882_v6  ;;  %v7890_v45 = vmax.f32 %v7888_v39, %v7889_v13  ;;  %v8122_v13 = vld [vmem:[#allocation4 + $0x1a] sm:$0xf] }
 0x5fd   :  { %v7850_v31 = vmax.f32 %v7848_v55, %v7849_v46  ;;  %v7857_v63 = vmax.f32 %v7855_v34, %v7856_v21  ;;  %v7863_v32 = vrot.slane %v7862_v38, 1  ;;  %v8029_v3 = vmul.f32 %v14770_v62, %v14952_v57 }
 0x5fe   :  { %v7871_v15 = vmax.f32 %v7869_v37, %v7870_v49  ;;  %v7877_v8 = vrot.slane %v7876_v4, 1  ;;  %v7884_v43 = vrot.slane %v7883_v51, 1  ;;  %v7891_v56 = vrot.slane %v7890_v45, 1 }
 0x5ff   :  { %v7864_v0 = vmax.f32 %v7862_v38, %v7863_v32  ;;  %v7943_v53 = vsel %vm852_vm9, %v7850_v31, %v7843_v9  ;;  %v8030_v48 = vmul.f32 %v14770_v62, %v14965_v20  ;;  %v8036_v7 = vadd.f32 %v8028_v14, %v14979_v35  ;;  %v15036_v9 = vld [vmem:[%s15257_s7 + $0x6] ss:$0 sm:$0xff]  ;;  %v8123_v31 = vld [vmem:[#allocation4 + $0x22] sm:$0xf] }
 0x600   :  { %v7944_v27 = vsel %vm854_vm10, %v7857_v63, %v7943_v53  ;;  %v7878_v33 = vmax.f32 %v7876_v4, %v7877_v8  ;;  %v7885_v16 = vmax.f32 %v7883_v51, %v7884_v43  ;;  %v7892_v57 = vmax.f32 %v7890_v45, %v7891_v56 }
 0x601   :  { %v7945_v61 = vsel %vm856_vm11, %v7864_v0, %v7944_v27  ;;  %v8037_v44 = vadd.f32 %v8029_v3, %v14985_v47  ;;  %v8038_v20 = vadd.f32 %v8030_v48, %v14987_v30  ;;  %v8039_v35 = vadd.f32 %v14788_v23, %v14989_v40  ;;  %v8120_v23 = vld [vmem:[#allocation4 + $0xa] sm:$0xf]  ;;  %v7974_v48 = vld [vmem:[#allocation4 + $0x38] sm:$0xf] }
 0x602   :  { %7965 = vst.msk [vmem:[#allocation4 + $0x49] sm:$0xf] %vm7958_vm4, %v7945_v61  ;;  %v7946_v14 = vsel %vm852_vm9, %v7878_v33, %v7871_v15  ;;  %v8062_v10 = vmul.f32 %v14775_v26, %v8045_v25  ;;  %v8063_v11 = vmul.f32 %v14775_v26, %v8046_v52  ;;  %v8064_v50 = vmul.f32 %v14775_v26, %v8047_v17 }
 0x603   :  { %v7947_v22 = vsel %vm854_vm10, %v7885_v16, %v7946_v14  ;;  %v8069_v47 = vadd.f32 %v14791_v42, %v8036_v7  ;;  %v8082_v30 = vmul.f32 %v15012_v41, %v8045_v25  ;;  %v8083_v39 = vmul.f32 %v15012_v41, %v8046_v52  ;;  %v7975_v7 = vld [vmem:[#allocation4 + $0x40] sm:$0xf] }
 0x604   :  { %v7948_v40 = vsel %vm856_vm11, %v7892_v57, %v7947_v22  ;;  %v8070_v29 = vadd.f32 %v8062_v10, %v8037_v44  ;;  %v8071_v55 = vadd.f32 %v8063_v11, %v8038_v20  ;;  %v8072_v34 = vadd.f32 %v8064_v50, %v8039_v35  ;;  %v8051_v22 = vld [vmem:[#allocation4 + $0x39] sm:$0xf] }
 0x605   :  { %7966 = vst.msk [vmem:[#allocation4 + $0x51] sm:$0xf] %vm7958_vm4, %v7948_v40  ;;  %v8084_v37 = vmul.f32 %v15012_v41, %v8047_v17  ;;  %v8085_v54 = vmul.f32 %v15012_v41, %v8048_v18  ;;  %v8090_v6 = vadd.f32 %v8082_v30, %v8069_v47  ;;  %v8103_v42 = vmul.f32 %v14796_v24, %v8046_v52 }
 0x606   :  { %v8091_v46 = vadd.f32 %v8083_v39, %v8070_v29  ;;  %v8104_v21 = vmul.f32 %v14796_v24, %v8047_v17  ;;  %v8105_v38 = vmul.f32 %v14796_v24, %v8048_v18  ;;  %v8137_v49 = vmul.f32 %v14784_v1, %v8120_v23  ;;  %v8052_v29 = vld [vmem:[#allocation4 + $0x41] sm:$0xf] }
 0x607   :  { %v8092_v4 = vadd.f32 %v8084_v37, %v8071_v55  ;;  %v8093_v51 = vadd.f32 %v8085_v54, %v8072_v34  ;;  %v8111_v45 = vadd.f32 %v8103_v42, %v8090_v6  ;;  %v8138_v63 = vmul.f32 %v14784_v1, %v8121_v5  ;;  %v8125_v54 = vld [vmem:[#allocation4 + $0x32] sm:$0xf]  ;;  %v7978_v6 = vld [vmem:[#allocation4 + $0x58] sm:$0xf] }
 0x608   :  { %v8112_v32 = vadd.f32 %v8104_v21, %v8091_v46  ;;  %v8139_v3 = vmul.f32 %v14784_v1, %v8122_v13  ;;  %v8157_v15 = vmul.f32 %v15036_v9, %v8120_v23  ;;  %v8158_v8 = vmul.f32 %v15036_v9, %v8121_v5  ;;  %v16352_v21 = vld [vmem:[#allocation80_spill] sm:$0xff] }
 0x609   :  { %v8113_v43 = vadd.f32 %v8105_v38, %v8092_v4  ;;  %v8114_v56 = vadd.f32 %v14801_v19, %v8093_v51  ;;  %v8144_v0 = vadd.f32 %v14807_v28, %v8111_v45  ;;  %v8159_v53 = vmul.f32 %v15036_v9, %v8122_v13  ;;  %v7976_v44 = vld [vmem:[#allocation4 + $0x48] sm:$0xf]  ;;  %v15055_v28 = vld [vmem:[%s15258_s8] ss:$0 sm:$0xff]  ;;  %v8126_v45 = vld [vmem:[#allocation4 + $0x3a] sm:$0xf] }
 0x60a   :  { %v8145_v25 = vadd.f32 %v8137_v49, %v8112_v32  ;;  %v8160_v52 = vmul.f32 %v15036_v9, %v8123_v31  ;;  %v8178_v17 = vmul.f32 %v14812_v2, %v8121_v5  ;;  %v8179_v27 = vmul.f32 %v14812_v2, %v8122_v13  ;;  %v8053_v13 = vld [vmem:[#allocation4 + $0x49] sm:$0xf] }
 0x60b   :  { %v8146_v33 = vadd.f32 %v8138_v63, %v8113_v43  ;;  %v8147_v16 = vadd.f32 %v8139_v3, %v8114_v56  ;;  %v8165_v57 = vadd.f32 %v8157_v15, %v8144_v0  ;;  %v8180_v61 = vmul.f32 %v14812_v2, %v8123_v31  ;;  %v9712_v31 = vld [vmem:[%s15257_s7 + $0x8] ss:$0 sm:$0xff]  ;;  %v8055_v43 = vld [vmem:[#allocation4 + $0x59] sm:$0xf]  ;;  %v8127_v56 = vld [vmem:[#allocation4 + $0x42] sm:$0xf] }
 0x60c   :  { %v8166_v19 = vadd.f32 %v8158_v8, %v8145_v25  ;;  %v7989_v20 = vmul.f32 %v14763_v12, %v7974_v48  ;;  %v8010_v35 = vmul.f32 %v14961_v58, %v7974_v48  ;;  %v8011_v14 = vmul.f32 %v14961_v58, %v7975_v7  ;;  %v7977_v4 = vld [vmem:[#allocation4 + $0x50] sm:$0xf] }
 0x60d   :  { %v8167_v18 = vadd.f32 %v8159_v53, %v8146_v33  ;;  %v8168_v10 = vadd.f32 %v8160_v52, %v8147_v16  ;;  %v8186_v11 = vadd.f32 %v8178_v17, %v8165_v57  ;;  %v8032_v50 = vmul.f32 %v14770_v62, %v7975_v7  ;;  %v8128_v16 = vld [vmem:[#allocation4 + $0x4a] sm:$0xf] }
 0x60e   :  { %v8187_v2 = vadd.f32 %v8179_v27, %v8166_v19  ;;  %v8018_v47 = vadd.f32 %v8010_v35, %v14820_v36  ;;  %v8019_v30 = vadd.f32 %v8011_v14, %v7989_v20  ;;  %v8033_v39 = vmul.f32 %v14770_v62, %v7976_v44  ;;  %v8054_v14 = vld [vmem:[#allocation4 + $0x51] sm:$0xf] }
 0x60f   :  { %v8201_v23 = vadd.f32 %v15055_v28, %v8186_v11  ;;  %v8188_v40 = vadd.f32 %v8180_v61, %v8167_v18  ;;  %v8189_v12 = vadd.f32 %v14816_v60, %v8168_v10  ;;  %v8066_v37 = vmul.f32 %v14775_v26, %v8051_v22  ;;  %v9716_v11 = vld [vmem:[%s15257_s7 + $0x1] ss:$0 sm:$0xff] }
 0x610   :  { %v8202_v55 = vadd.f32 %v15055_v28, %v8187_v2  ;;  %v8040_v34 = vadd.f32 %v8032_v50, %v8018_v47  ;;  %v8041_v5 = vadd.f32 %v8033_v39, %v8019_v30  ;;  %v8086_v62 = vmul.f32 %v15012_v41, %v8051_v22  ;;  %v9717_v30 = vld [vmem:[%s15257_s7 + $0xa] ss:$0 sm:$0xff] }
 0x611   :  { %v8203_v42 = vadd.f32 %v15055_v28, %v8188_v40  ;;  %v8204_v36 = vadd.f32 %v15055_v28, %v8189_v12  ;;  %v8087_v49 = vmul.f32 %v15012_v41, %v8052_v29  ;;  %v8140_v26 = vmul.f32 %v14784_v1, %v8125_v54  ;;  %v9713_v1 = vld [vmem:[%s15257_s7] ss:$0 sm:$0xff] }
 0x612   :  { %v8221_v46 = vcombine.low %v8201_v23, %v8202_v55  ;;  %v8073_v38 = vadd.f32 %v16352_v21, %v8040_v34  ;;  %v8074_v60 = vadd.f32 %v8066_v37, %v8041_v5  ;;  %v8035_v63 = vmul.f32 %v9712_v31, %v7978_v6 }
 0x613   :  { %v8222_v51 = vcombine.low %v8203_v42, %v8204_v36  ;;  %v8107_v15 = vmul.f32 %v14796_v24, %v8052_v29  ;;  %v8108_v8 = vmul.f32 %v14796_v24, %v8053_v13  ;;  %v7990_v0 = vmul.f32 %v9713_v1, %v7975_v7  ;;  %v9714_v24 = vld [vmem:[%s15257_s7 + $0x2] ss:$0 sm:$0xff]  ;;  %v9715_v7 = vld [vmem:[%s15257_s7 + $0x9] ss:$0 sm:$0xff]  ;;  %v8130_v42 = vld [vmem:[#allocation4 + $0x5a] sm:$0xf] }
 0x614   :  { %9403 = vmatprep.mubr.msk.f32.mxu1 %vm7467_vm2, %v8221_v46  ;;  %v8094_v32 = vadd.f32 %v8086_v62, %v8073_v38  ;;  %v8095_v3 = vadd.f32 %v8087_v49, %v8074_v60  ;;  %v7991_v53 = vmul.f32 %v9713_v1, %v7976_v44  ;;  %v8012_v48 = vmul.f32 %v14961_v58, %v7976_v44  ;;  %v8129_v46 = vld [vmem:[#allocation4 + $0x52] sm:$0xf] }
 0x615   :  { %9404 = vmatmul.mubr.msk.f32.vlgmr.msra.gmra.mrb[16].mxu1 %vm7467_vm2, %v8222_v51  ;;  %v8013_v25 = vmul.f32 %v14961_v58, %v7977_v4  ;;  %v8141_v27 = vmul.f32 %v9714_v24, %v8126_v45  ;;  %v8034_v33 = vmul.f32 %v9712_v31, %v7977_v4  ;;  %v8110_v19 = vmul.f32 %v9715_v7, %v8055_v43  ;;  %v8509_v1 = vld [vmem:[%s15262_s12 + $0x80] sm:$0xff] }
 0x616   :  { %v8115_v52 = vadd.f32 %v8107_v15, %v8094_v32  ;;  %v8116_v17 = vadd.f32 %v8108_v8, %v8095_v3  ;;  %v8020_v57 = vadd.f32 %v8012_v48, %v7990_v0  ;;  %v8161_v58 = vmul.f32 %v15036_v9, %v8126_v45  ;;  %v8493_v0 = vld [vmem:[%s15262_s12] sm:$0xff]  ;;  %v8511_v48 = vld [vmem:[%s15262_s12 + $0x90] sm:$0xff] }
 0x617   :  { %v8021_v61 = vadd.f32 %v8013_v25, %v7991_v53  ;;  %v8162_v35 = vmul.f32 %v15036_v9, %v8127_v56  ;;  %v8067_v50 = vmul.f32 %v9716_v11, %v8052_v29  ;;  %v8068_v22 = vmul.f32 %v9716_v11, %v8053_v13  ;;  %v8512_v25 = vld [vmem:[%s15262_s12 + $0x98] sm:$0xff]  ;;  %v8518_v11 = vld [vmem:[%s15262_s12 + $0xc8] sm:$0xff] }
 0x618   :  { %v8148_v20 = vadd.f32 %v8140_v26, %v8115_v52  ;;  %v8149_v44 = vadd.f32 %v8141_v27, %v8116_v17  ;;  %v8042_v18 = vadd.f32 %v8034_v33, %v8020_v57  ;;  %v8182_v39 = vmul.f32 %v9717_v30, %v8127_v56  ;;  %v8496_v27 = vld [vmem:[%s15262_s12 + $0x18] sm:$0xff]  ;;  %v8513_v33 = vld [vmem:[%s15262_s12 + $0xa0] sm:$0xff] }
 0x619   :  { %v8043_v10 = vadd.f32 %v8035_v63, %v8021_v61  ;;  %v8183_v23 = vmul.f32 %v9717_v30, %v8128_v16  ;;  %v8088_v55 = vmul.f32 %v15012_v41, %v8053_v13  ;;  %v8089_v34 = vmul.f32 %v15012_v41, %v8054_v14 }
 0x61a   :  { %v8169_v2 = vadd.f32 %v8161_v58, %v8148_v20  ;;  %v8170_v47 = vadd.f32 %v8162_v35, %v8149_v44  ;;  %v8075_v40 = vadd.f32 %v8067_v50, %v8042_v18  ;;  %v8109_v29 = vmul.f32 %v9715_v7, %v8054_v14  ;;  %v8497_v7 = vld [vmem:[%s15262_s12 + $0x20] sm:$0xff]  ;;  %v8515_v20 = vld [vmem:[%s15262_s12 + $0xb0] sm:$0xff]  ;;  %v8516_v44 = vld [vmem:[%s15262_s12 + $0xb8] sm:$0xff] }
 0x61b   :  { %v8076_v12 = vadd.f32 %v8068_v22, %v8043_v10  ;;  %v8142_v60 = vmul.f32 %v9714_v24, %v8127_v56  ;;  %v8143_v49 = vmul.f32 %v9714_v24, %v8128_v16  ;;  %v8185_v51 = vmul.f32 %v9717_v30, %v8130_v42  ;;  %v8495_v24 = vld [vmem:[%s15262_s12 + $0x10] sm:$0xff]  ;;  %v8500_v18 = vld [vmem:[%s15262_s12 + $0x38] sm:$0xff]  ;;  %v8517_v10 = vld [vmem:[%s15262_s12 + $0xc0] sm:$0xff] }
 0x61c   :  { %v8190_v5 = vadd.f32 %v8182_v39, %v8169_v2  ;;  %v8191_v37 = vadd.f32 %v8183_v23, %v8170_v47  ;;  %v8096_v54 = vadd.f32 %v8088_v55, %v8075_v40  ;;  %v8163_v41 = vmul.f32 %v15036_v9, %v8128_v16  ;;  %v8514_v16 = vld [vmem:[%s15262_s12 + $0xa8] sm:$0xff]  ;;  %v8499_v14 = vld [vmem:[%s15262_s12 + $0x30] sm:$0xff]  ;;  %v8501_v2 = vld [vmem:[%s15262_s12 + $0x40] sm:$0xff] }
 0x61d   :  { %v8097_v6 = vadd.f32 %v8089_v34, %v8076_v12  ;;  %v8164_v26 = vmul.f32 %v15036_v9, %v8129_v46  ;;  %v8184_v32 = vmul.f32 %v9717_v30, %v8129_v46  ;;  %v8510_v9 = vld [vmem:[%s15262_s12 + $0x88] sm:$0xff]  ;;  %v9457_v17 = vpack.c.bf16 %v8512_v25, %v8511_v48  ;;  %v8519_v30 = vld [vmem:[%s15262_s12 + $0xd0] sm:$0xff]  ;;  %v8520_v39 = vld [vmem:[%s15262_s12 + $0xd8] sm:$0xff] }
 0x61e   :  { %v8205_v36 = vadd.f32 %v15055_v28, %v8190_v5  ;;  %v8206_v62 = vadd.f32 %v15055_v28, %v8191_v37  ;;  %v8117_v21 = vadd.f32 %v8109_v29, %v8096_v54  ;;  %v9453_v53 = vpack.c.bf16 %v8510_v9, %v8509_v1  ;;  %v8502_v47 = vld [vmem:[%s15262_s12 + $0x48] sm:$0xff]  ;;  %v8503_v12 = vld [vmem:[%s15262_s12 + $0x50] sm:$0xff]  ;;  %v8504_v55 = vld [vmem:[%s15262_s12 + $0x58] sm:$0xff] }
 0x61f   :  { %v8118_v38 = vadd.f32 %v8110_v19, %v8097_v6  ;;  %v9459_v57 = vpack.c.bf16 %v8496_v27, %v8495_v24  ;;  %v9461_v61 = vpack.c.bf16 %v8514_v16, %v8513_v33  ;;  %v8498_v19 = vld [vmem:[%s15262_s12 + $0x28] sm:$0xff]  ;;  %v9465_v35 = vpack.c.bf16 %v8516_v44, %v8515_v20  ;;  %v8521_v34 = vld [vmem:[%s15262_s12 + $0xe0] sm:$0xff] }
 0x620   :  { %v8223_v4 = vcombine.low %v8205_v36, %v8206_v62  ;;  %v8150_v13 = vadd.f32 %v8142_v60, %v8117_v21  ;;  %9454 = vmatprep.subr.bf16.mxu1 %v9453_v53  ;;  %v9463_v58 = vpack.c.bf16 %v8498_v19, %v8497_v7  ;;  %v9467_v50 = vpack.c.bf16 %v8500_v18, %v8499_v14  ;;  %v8522_v5 = vld [vmem:[%s15262_s12 + $0xe8] sm:$0xff]  ;;  %v8505_v6 = vld [vmem:[%s15262_s12 + $0x60] sm:$0xff] }
 0x621   :  { %v8151_v45 = vadd.f32 %v8143_v49, %v8118_v38  ;;  %v9469_v22 = vpack.c.bf16 %v8518_v11, %v8517_v10  ;;  %v9471_v23 = vpack.c.bf16 %v8502_v47, %v8501_v2  ;;  %v9473_v40 = vpack.c.bf16 %v8520_v39, %v8519_v30  ;;  %v8506_v29 = vld [vmem:[%s15262_s12 + $0x68] sm:$0xff]  ;;  %v8935_v36 = vld [vmem:[%s15260_s10] ss:$0 sm:$0xff] }
 0x622   :  { %9406 = vmatprep.mubr.msk.f32.mxu1 %vm7467_vm2, %v8223_v4  ;;  %v8171_v31 = vadd.f32 %v8163_v41, %v8150_v13  ;;  %v9475_v37 = vpack.c.bf16 %v8504_v55, %v8503_v12  ;;  %v9477_v54 = vpack.c.bf16 %v8522_v5, %v8521_v34  ;;  %v9479_v42 = vpack.c.bf16 %v8506_v29, %v8505_v6  ;;  %v8936_v46 = vld [vmem:[%s15261_s11] ss:$0 sm:$0xff] }
 0x623   :  { %v8172_v63 = vadd.f32 %v8164_v26, %v8151_v45 }
 0x624   :  { %v8192_v3 = vadd.f32 %v8184_v32, %v8171_v31 }
 0x625   :  { %v8193_v15 = vadd.f32 %v8185_v51, %v8172_v63 }
 0x626   :  { %v8207_v8 = vadd.f32 %v15055_v28, %v8192_v3 }
 0x627   :  { %v8208_v43 = vadd.f32 %v15055_v28, %v8193_v15  ;;  %v8494_v28 = vld [vmem:[%s15262_s12 + $0x8] sm:$0xff] }
 0x628   :  { %v9455_v52 = vpack.c.bf16 %v8494_v28, %v8493_v0 }
 0x629   :  { %v8224_v56 = vcombine.low %v8207_v8, %v8208_v43 }
 0x62a   :  { %9456 = vmatpush3.bf16.msra.mxu1 %v9455_v52 }
 0x62b   :  { %9407 = vmatmul.mubr.msk.f32.gmra.mrb[18].mxu1 %vm7467_vm2, %v8224_v56  ;;  %9458 = vmatprep.subr.bf16.mxu1 %v9457_v17 }
 0x62e   :  { %9460 = vmatpush3.bf16.msra.mxu1 %v9459_v57 }
 0x62f   :  { %9462 = vmatprep.subr.bf16.mxu1 %v9461_v61 }
 0x632   :  { %9464 = vmatpush3.bf16.msra.mxu1 %v9463_v58 }
 0x633   :  { %9466 = vmatprep.subr.bf16.mxu1 %v9465_v35 }
 0x636   :  { %9468 = vmatpush3.bf16.msra.mxu1 %v9467_v50 }
 0x637   :  { %9470 = vmatprep.subr.bf16.mxu1 %v9469_v22 }
 0x63a   :  { %9472 = vmatpush3.bf16.msra.mxu1 %v9471_v23 }
 0x63b   :  { %9474 = vmatprep.subr.bf16.mxu1 %v9473_v40 }
 0x63e   :  { %9476 = vmatpush3.bf16.msra.mxu1 %v9475_v37 }
 0x63f   :  { %9478 = vmatprep.subr.bf16.mxu1 %v9477_v54 }
 0x642   :  { %9480 = vmatpush3.bf16.msra.mxu1 %v9479_v42 }
 0x6e8   :  { %v9405_v62 = vpop.f32.mrb[16].mxu1 }
 0x6e9   :  { %v8326_v21 = vmul.f32 %v9405_v62, %v8935_v36  ;;  %v8299_v38 = vpop.f32.mrb[17].mxu1 }
 0x6ea   :  { %v8325_v60 = vmul.f32 %v8935_v36, %v8299_v38 }
 0x6eb   :  { %v8337_v49 = vadd.f32 %v8936_v46, %v8326_v21 }
 0x6ec   :  { %v8336_v4 = vadd.f32 %v8936_v46, %v8325_v60 }
 0x6ed   :  { %v8341_v51 = vmax.f32 %v8337_v49, 0.0 }
 0x6ee   :  { %v8340_v13 = vmax.f32 %v8336_v4, 0.0 }
 0x6ef   :  { %v8349_v45 = vcombine.high %v8341_v51, %v8341_v51  ;;  %v8360_v26 = vsel %vm8356_vm5, %v8341_v51, -inf }
 0x6f0   :  { %v8348_v41 = vcombine.high %v8340_v13, %v8340_v13  ;;  %v8357_v32 = vsel %vm8356_vm5, %v8340_v13, -inf }
 0x6f1   :  { %v8361_v31 = vsel %vm8356_vm5, %v8349_v45, -inf }
 0x6f2   :  { %v8362_v63 = vmax.f32 %v8360_v26, %v8361_v31  ;;  %v8358_v3 = vsel %vm8356_vm5, %v8348_v41, -inf  ;;  %v8523_v26 = vld [vmem:[%s15262_s12 + $0xf0] sm:$0xff]  ;;  %v8524_v31 = vld [vmem:[%s15262_s12 + $0xf8] sm:$0xff] }
 0x6f3   :  { %v8359_v15 = vmax.f32 %v8357_v32, %v8358_v3  ;;  %v9481_v3 = vpack.c.bf16 %v8524_v31, %v8523_v26 }
 0x6f4   :  { %v8387_v8 = vrot.slane %v8362_v63, %v16323_v59  ;;  %v8507_v63 = vld [vmem:[%s15262_s12 + $0x70] sm:$0xff] }
 0x6f5   :  { %v8379_v43 = vrot.slane %v8359_v15, %v16323_v59  ;;  %v8508_v15 = vld [vmem:[%s15262_s12 + $0x78] sm:$0xff]  ;;  %9482 = vmatprep.subr.bf16.mxu1 %v9481_v3  ;;  %s9745_s12 = smov 64  }
 0x6f6   :  { %v8428_v56 = vsel %vm8413_vm6, %v8387_v8, -inf  ;;  %v8388_v9 = vcombine.high %v8387_v8, %v8387_v8 }
 0x6f7   :  { %v8414_v1 = vsel %vm8413_vm6, %v8379_v43, -inf  ;;  %v8380_v53 = vcombine.high %v8379_v43, %v8379_v43  ;;  %v8429_v27 = vrot.slane %v8428_v56, 4 }
 0x6f8   :  { %v8435_v17 = vsel %vm8413_vm6, %v8388_v9, -inf  ;;  %v8415_v57 = vrot.slane %v8414_v1, 4  ;;  %v9483_v9 = vpack.c.bf16 %v8508_v15, %v8507_v63 }
 0x6f9   :  { %v8421_v33 = vsel %vm8413_vm6, %v8380_v53, -inf  ;;  %v8436_v7 = vrot.slane %v8435_v17, 4  ;;  %v8430_v58 = vmax.f32 %v8428_v56, %v8429_v27 }
 0x6fa   :  { %v8422_v20 = vrot.slane %v8421_v33, 4  ;;  %v8416_v18 = vmax.f32 %v8414_v1, %v8415_v57  ;;  %9484 = vmatpush3.bf16.msra.mxu1 %v9483_v9 }
 0x6fb   :  { %v8437_v22 = vmax.f32 %v8435_v17, %v8436_v7  ;;  %v8431_v23 = vrot.slane %v8430_v58, 2 }
 0x6fc   :  { %v8423_v47 = vmax.f32 %v8421_v33, %v8422_v20  ;;  %v8417_v40 = vrot.slane %v8416_v18, 2 }
 0x6fd   :  { %v8438_v34 = vrot.slane %v8437_v22, 2  ;;  %v8432_v21 = vmax.f32 %v8430_v58, %v8431_v23  ;;  %v8937_v23 = vld [vmem:[%s15263_s13] ss:$0 sm:$0xff] }
 0x6fe   :  { %v9408_v0 = vpop.f32.mrb[18].mxu1  ;;  %v8424_v6 = vrot.slane %v8423_v47, 2 }
 0x6ff   :  { %v8328_v28 = vmul.f32 %v9408_v0, %v8935_v36  ;;  %v8309_v48 = vpop.f32.mrb[19].mxu1  ;;  %v8439_v4 = vmax.f32 %v8437_v22, %v8438_v34  ;;  %v8433_v8 = vrot.slane %v8432_v21, 1 }
 0x700   :  { %v8327_v25 = vmul.f32 %v8935_v36, %v8309_v48  ;;  %v8425_v41 = vmax.f32 %v8423_v47, %v8424_v6 }
 0x701   :  { %v8339_v52 = vadd.f32 %v8936_v46, %v8328_v28  ;;  %v8440_v53 = vrot.slane %v8439_v4, 1  ;;  %v8434_v27 = vmax.f32 %v8432_v21, %v8433_v8 }
 0x702   :  { %v8338_v24 = vadd.f32 %v8936_v46, %v8327_v25  ;;  %v8426_v25 = vrot.slane %v8425_v41, 1 }
 0x703   :  { %v8343_v16 = vmax.f32 %v8339_v52, 0.0  ;;  %v8441_v7 = vmax.f32 %v8439_v4, %v8440_v53 }
 0x704   :  { %v8342_v61 = vmax.f32 %v8338_v24, 0.0 }
 0x705   :  { %v8351_v19 = vcombine.high %v8343_v16, %v8343_v16  ;;  %v8366_v35 = vsel %vm8356_vm5, %v8343_v16, -inf }
 0x706   :  { %v8350_v44 = vcombine.high %v8342_v61, %v8342_v61  ;;  %v8363_v11 = vsel %vm8356_vm5, %v8342_v61, -inf }
 0x707   :  { %v8367_v14 = vsel %vm8356_vm5, %v8351_v19, -inf }
 0x708   :  { %v8368_v10 = vmax.f32 %v8366_v35, %v8367_v14  ;;  %v8364_v50 = vsel %vm8356_vm5, %v8350_v44, -inf  ;;  %v8427_v44 = vmax.f32 %v8425_v41, %v8426_v25 }
 0x709   :  { %v8365_v2 = vmax.f32 %v8363_v11, %v8364_v50 }
 0x70a   :  { %v8403_v30 = vrot.slane %v8368_v10, %v16323_v59 }
 0x70b   :  { %v8395_v39 = vrot.slane %v8365_v2, %v16323_v59  ;;  %v8418_v59 = vmax.f32 %v8416_v18, %v8417_v40 }
 0x70c   :  { %v8404_v12 = vcombine.high %v8403_v30, %v8403_v30  ;;  %v8456_v55 = vsel %vm8413_vm6, %v8403_v30, -inf }
 0x70d   :  { %v8457_v5 = vrot.slane %v8456_v55, 4  ;;  %v8396_v37 = vcombine.high %v8395_v39, %v8395_v39  ;;  %v8442_v54 = vsel %vm8413_vm6, %v8395_v39, -inf  ;;  %v8419_v0 = vrot.slane %v8418_v59, 1 }
 0x70e   :  { %v8463_v29 = vsel %vm8413_vm6, %v8404_v12, -inf  ;;  %v8443_v42 = vrot.slane %v8442_v54, 4 }
 0x70f   :  { %v8458_v36 = vmax.f32 %v8456_v55, %v8457_v5  ;;  %v8464_v62 = vrot.slane %v8463_v29, 4  ;;  %v8449_v46 = vsel %vm8413_vm6, %v8396_v37, -inf  ;;  %v8420_v57 = vmax.f32 %v8418_v59, %v8419_v0 }
 0x710   :  { %v8444_v38 = vmax.f32 %v8442_v54, %v8443_v42  ;;  %v8450_v60 = vrot.slane %v8449_v46, 4 }
 0x711   :  { %v8465_v49 = vmax.f32 %v8463_v29, %v8464_v62  ;;  %v8459_v51 = vrot.slane %v8458_v36, 2 }
 0x712   :  { %v8445_v13 = vrot.slane %v8444_v38, 2  ;;  %v8451_v45 = vmax.f32 %v8449_v46, %v8450_v60 }
 0x713   :  { %v8466_v32 = vrot.slane %v8465_v49, 2  ;;  %v8460_v43 = vmax.f32 %v8458_v36, %v8459_v51 }
 0x714   :  { %v8446_v56 = vmax.f32 %v8444_v38, %v8445_v13  ;;  %v8452_v1 = vrot.slane %v8451_v45, 2 }
 0x715   :  { %v8467_v28 = vmax.f32 %v8465_v49, %v8466_v32  ;;  %v8461_v48 = vrot.slane %v8460_v43, 1 }
 0x716   :  { %v8453_v52 = vmax.f32 %v8451_v45, %v8452_v1  ;;  %v8447_v17 = vrot.slane %v8446_v56, 1 }
 0x717   :  { %v8468_v24 = vrot.slane %v8467_v28, 1  ;;  %v8462_v33 = vmax.f32 %v8460_v43, %v8461_v48 }
 0x718   :  { %v8454_v16 = vrot.slane %v8453_v52, 1  ;;  %v8448_v61 = vmax.f32 %v8446_v56, %v8447_v17 }
 0x719   :  { %v8469_v19 = vmax.f32 %v8467_v28, %v8468_v24  ;;  %v8482_v20 = vsel %vm852_vm9, %v8462_v33, %v8434_v27 }
 0x71a   :  { %v8455_v58 = vmax.f32 %v8453_v52, %v8454_v16  ;;  %v8472_v35 = vsel %vm852_vm9, %v8448_v61, %v8420_v57 }
 0x71b   :  { %v8486_v14 = vsel %vm852_vm9, %v8469_v19, %v8441_v7 }
 0x71c   :  { %v8476_v18 = vsel %vm852_vm9, %v8455_v58, %v8427_v44 }
 0x71d   :  { %v9618_v10 = vpack.i.bf16 %v8476_v18, %v8486_v14 }
 0x71f   :  { %9619 = vrot.lane.b32.xlu0 %v9618_v10, %s9745_s12 }
 0x791   :  { %v9620_v11 = vpop.permute.xlu0 %9619 }
 0x792   :  { %v9622_v50 = vunpack.i.h.bf16 %v9620_v11  ;;  %v9621_v22 = vunpack.i.l.bf16 %v9620_v11 }
 0x794   :  { %v8492_v2 = vsel %vm8490_vm7, %v8482_v20, %v9621_v22  ;;  %v8491_v47 = vsel %vm8490_vm7, %v8472_v35, %v9622_v50 }
 0x795   :  { %8596 = vmatprep.mubr.f32.mxu1 %v8492_v2 }
 0x796   :  { %8597 = vmatmul.mubr.f32.vlgmr.msra.gmra.mrb[20].mxu1 %v8491_v47 }
 0x869   :  { %v9140_v30 = vpop.f32.mrb[20].mxu1 }
 0x86a   :  { %v9141_v39 = vpop.f32.mrb[21].mxu1 }
 0x86b   :  { %v9142_v40 = vadd.f32 %v9141_v39, %v9140_v30 }
 0x86d   :  { %v8599_v12 = vadd.f32 %v9142_v40, %v8937_v23 }
 0x86f   :  { %8602 = vst [vmem:[#allocation5] sm:$0x3] %v8599_v12 }
 0x870   :  { %9729 = shalt.err (!%p9726_p4)
}
 0x871   :  { %s9730_s5 = scalar_lea.hbm %s15264_s14, 32 }
 0x872   :  { %p9731_p5 = scmp.ne.s32.totalorder %s15264_s14, %s9730_s5  ;;  %p9734_p6 = scmp.lt.u32.totalorder %s9730_s5, %s15264_s14 }
 0x874   :  { %p9736_p7 = pnand %p9734_p6, %p9731_p5 }
 0x876   :  { %9739 = shalt.err (!%p9736_p7)
}
 0x877   :  { %8612 = dma.vmem_to_hbm [thread:$0]  %s8610_s3, 32, %s15264_s14, [#allocation6]  }
 0x878   :  { %9740 = dma.done.wait [#allocation6], 32  }
 0x879   :  { %9741 = vsyncadd [#allocation6], 4294967264 }
 0x87a   :  { %8616 = vsyncpa [#allocation6], 1 }

</bundles_post_ra>
